<compile_context>
chip_gen: v5e
topology: v5e:2x2
jax: 0.10.0
libtpu: 0.0.40
codegen_flags: <defaults>
</compile_context>

<pallas_src>
import numpy as np
import jax
import jax.numpy as jnp
from jax.experimental import pallas as pl
from jax.experimental.pallas import tpu as pltpu

# ----------------------------- configuration --------------------------------
ENC_DIM = 16                         # F: encoder channels == STFT bins (multiple of 8)
SR      = 3200                       # so that int(SR*2.5/1000) == 8
WIN     = int(SR * 2.5 / 1000)       # 8
STRIDE  = WIN // 2                   # 4
N_MIC   = 6
N_GRID  = 4
NUM_SPK = 1                          # forward below assumes num_spk == 1
PAIRS     = ((0, 3), (1, 4), (2, 5), (0, 1), (2, 3), (4, 5))
ORI_PAIRS = ((0, 0), (0, 1), (0, 2), (0, 3), (0, 4), (0, 5))
N_PAIRS = len(PAIRS)
N_BLOCKS = 1 + N_PAIRS + N_GRID + N_PAIRS                   # 17 feature blocks
TCN_DIM = N_BLOCKS * ENC_DIM                                # 17 * ENC_DIM
PI = np.float32(np.pi)
TWO_PI = np.float32(2.0 * np.pi)
SOUND = 343.0
EPS = np.float32(1e-8)

TILE_T = 128                         # lane tile (multiple of 128); production: sweep 128-512

FREQ = (np.arange(ENC_DIM) * SR / ENC_DIM).astype(np.float32)   # frequency_vector

# R_global is an undefined global in the reference code; use a fixed synthetic
# 3x6 microphone layout (meters).
R_GLOBAL = np.array([
    [0.00, 0.03, 0.06, 0.09, 0.12, 0.15],
    [0.00, 0.01, 0.00, 0.01, 0.00, 0.01],
    [0.00, 0.00, 0.00, 0.00, 0.00, 0.00]], dtype=np.float64)
MIC_LAYOUT = R_GLOBAL - np.tile(R_GLOBAL[:, :1], (1, N_MIC))


def build_w():
    """self.w = exp(-2j*pi*m*delay)/343, shape (N_MIC, N_GRID, ENC_DIM, 1)."""
    m_data = np.zeros((N_MIC, N_GRID, ENC_DIM)) + np.arange(ENC_DIM).reshape(1, 1, ENC_DIM)
    delay = np.zeros((N_MIC, N_GRID))
    for h, m in enumerate(ORI_PAIRS):
        dx = MIC_LAYOUT[0, m[1]] - MIC_LAYOUT[0, m[0]]
        dy = MIC_LAYOUT[1, m[1]] - MIC_LAYOUT[1, m[0]]
        for i in range(N_GRID):
            delay[h, i] = dx * np.cos(i * np.pi / 18) + dy * np.sin(i * np.pi / 18)
    delay = delay[:, :, None] * np.ones((1, 1, ENC_DIM))
    w = np.exp(-2j * np.pi * m_data * delay) / SOUND
    # trailing singleton lane dim so the kernel can broadcast against (F, TILE_T)
    wr = w.real.astype(np.float32)[..., None]
    wi = w.imag.astype(np.float32)[..., None]
    return jnp.asarray(wr), jnp.asarray(wi)


def steering_vector_real(angle):
    """Real part of __get_steering_vector (imag part is discarded by .float())."""
    dx = jnp.asarray([MIC_LAYOUT[0, m[1]] - MIC_LAYOUT[0, m[0]] for m in PAIRS],
                     dtype=jnp.float32)
    dy = jnp.asarray([MIC_LAYOUT[1, m[1]] - MIC_LAYOUT[1, m[0]] for m in PAIRS],
                     dtype=jnp.float32)
    delay = dx[None, :] * jnp.cos(angle)[:, None] + dy[None, :] * jnp.sin(angle)[:, None]
    phase = 2.0 * jnp.pi * jnp.asarray(FREQ)[None, None, :] * delay[:, :, None] / SOUND
    return jnp.cos(phase)                      # (B, N_PAIRS, F)


# ------------------------------ fused Pallas kernel ---------------------------
def _tasnet_fused_kernel(frames_ref, re_ref, im_ref, ph_ref, sv_ref, invf_ref,
                         wr_ref, wi_ref, wenc_ref, wtcn_ref, wdect_ref, out_ref):
    # Per-(batch, T-tile) shapes (batch dim squeezed by BlockSpec):
    #   frames: (WIN, TT); re/im/ph: (N_MIC, F, TT); sv: (N_PAIRS, F, 1); invf: (F, 1)
    #   wr/wi: (N_MIC, N_GRID, F, 1); wenc: (F, WIN); wtcn: (F, N_BLOCKS, F)
    #   wdect: (WIN, F); out: (WIN, TT)
    tt = frames_ref.shape[-1]

    # --- encoder: Conv1d(1, F, WIN, stride) as one MXU matmul over the tile ---
    enc = jnp.dot(wenc_ref[...].astype(jnp.bfloat16),
                  frames_ref[...].astype(jnp.bfloat16),
                  preferred_element_type=jnp.float32)            # (F, TT)

    # TCN(1x1 proj) logits are accumulated per feature block — no fusion slab.
    # Block column order matches torch.cat([enc, AF, dpr, cos(IPD)]).
    def wblk(k):
        return wtcn_ref[:, k, :].astype(jnp.bfloat16)            # (F_out, F)

    logits = jnp.dot(wblk(0), enc.astype(jnp.bfloat16),
                     preferred_element_type=jnp.float32)         # (F_out, TT)

    ph = ph_ref[...]
    invf = invf_ref[...]
    sv = sv_ref[...]

    # --- IPD / cos(IPD) / AF features (select+add wraps, no floor) ---
    svipds = []
    af_sum = jnp.zeros((ENC_DIM, tt), jnp.float32)
    for i, (a, b) in enumerate(PAIRS):
        d = ph[a] - ph[b]                           # in (-2pi, 2pi)
        # torch.angle(c_a * conj(c_b)) == phase difference wrapped to (-pi, pi]
        d = jnp.where(d > PI, d - TWO_PI, d)
        d = jnp.where(d <= -PI, d + TWO_PI, d)
        v = d * invf                                # IPD /= (freq + 1); |v| <= pi
        v = jnp.where(v < 0.0, v + PI, v)           # IPD % pi
        v = jnp.where(v >= PI, v - PI, v)
        svi = sv[i] * v                             # (F,1) broadcast along lanes
        svipds.append(svi)
        af_sum = af_sum + svi
        # cos(IPD) block contribution
        logits = logits + jnp.dot(wblk(1 + N_PAIRS + N_GRID + i),
                                  jnp.cos(v).astype(jnp.bfloat16),
                                  preferred_element_type=jnp.float32)

    # AF = (sv*IPD) / sum_pairs(sv*IPD); sign-preserving eps avoids 0/0 on padded lanes
    safe_sum = jnp.where(jnp.abs(af_sum) < EPS,
                         jnp.where(af_sum < 0.0, -EPS, EPS), af_sum)
    inv_af = pl.reciprocal(safe_sum, approx=True)                # EUP, not VALU
    for i in range(N_PAIRS):
        logits = logits + jnp.dot(wblk(1 + i),
                                  (svipds[i] * inv_af).astype(jnp.bfloat16),
                                  preferred_element_type=jnp.float32)

    # --- directional power ratio (DPR): loop over grid directions, only (F,TT)
    #     accumulators live (per-direction power + running power-sum) ---
    c_real = re_ref[...]
    c_imag = im_ref[...]
    wr = wr_ref[...]
    wi = wi_ref[...]
    powers = []
    pow_sum = jnp.zeros((ENC_DIM, tt), jnp.float32)
    for g in range(N_GRID):
        ar = jnp.zeros((ENC_DIM, tt), jnp.float32)
        ai = jnp.zeros((ENC_DIM, tt), jnp.float32)
        for m in range(N_MIC):
            wrg = wr[m, g]                          # (F, 1)
            wig = wi[m, g]
            ar = ar + wrg * c_real[m] - wig * c_imag[m]
            ai = ai + wrg * c_imag[m] + wig * c_real[m]
        p = ar * ar + ai * ai                       # dpr * conj(dpr)
        powers.append(p)
        pow_sum = pow_sum + p
    inv_pow = pl.reciprocal(pow_sum + EPS, approx=True)
    for g in range(N_GRID):
        logits = logits + jnp.dot(wblk(1 + N_PAIRS + g),
                                  (powers[g] * inv_pow).astype(jnp.bfloat16),
                                  preferred_element_type=jnp.float32)

    # --- sigmoid masks -> mask encoder output -> decode frames ---
    # TODO(synk): models.TCN is an external, undefined module; replaced by the single
    # bias-free 1x1 projection above (mask/sigmoid/decode hot path is kept).
    masks = jax.nn.sigmoid(logits)
    masked = enc * masks
    out_ref[...] = jnp.dot(wdect_ref[...].astype(jnp.bfloat16),
                           masked.astype(jnp.bfloat16),
                           preferred_element_type=jnp.float32)   # (WIN, TT)


def tasnet_fused_call(frames, c_re, c_im, ph, sv, inv_freq,
                      w_real, w_imag, w_enc, w_tcn_blk, w_dec_t):
    B = frames.shape[0]
    t_pad = frames.shape[-1]
    n_t = t_pad // TILE_T

    lane4 = lambda b, t: (b, 0, 0, t)
    in_specs = [
        pl.BlockSpec((None, WIN, TILE_T), lambda b, t: (b, 0, t)),               # frames
        pl.BlockSpec((None, N_MIC, ENC_DIM, TILE_T), lane4),                     # re
        pl.BlockSpec((None, N_MIC, ENC_DIM, TILE_T), lane4),                     # im
        pl.BlockSpec((None, N_MIC, ENC_DIM, TILE_T), lane4),                     # ph
        pl.BlockSpec((None, N_PAIRS, ENC_DIM, 1), lambda b, t: (b, 0, 0, 0)),    # sv (per-batch)
        pl.BlockSpec((ENC_DIM, 1), lambda b, t: (0, 0)),                         # 1/(f+1)
        pl.BlockSpec((N_MIC, N_GRID, ENC_DIM, 1), lambda b, t: (0, 0, 0, 0)),    # w real
        pl.BlockSpec((N_MIC, N_GRID, ENC_DIM, 1), lambda b, t: (0, 0, 0, 0)),    # w imag
        pl.BlockSpec((ENC_DIM, WIN), lambda b, t: (0, 0)),                       # encoder W
        pl.BlockSpec((ENC_DIM * NUM_SPK, N_BLOCKS, ENC_DIM), lambda b, t: (0, 0, 0)),  # TCN W blocks
        pl.BlockSpec((WIN, ENC_DIM), lambda b, t: (0, 0)),                       # decoder W^T
    ]
    out_specs = pl.BlockSpec((None, WIN, TILE_T), lambda b, t: (b, 0, t))

    return pl.pallas_call(
        _tasnet_fused_kernel,
        out_shape=jax.ShapeDtypeStruct((B, WIN, t_pad), jnp.float32),
        grid_spec=pltpu.PrefetchScalarGridSpec(
            num_scalar_prefetch=0,
            grid=(B, n_t),
            in_specs=in_specs,
            out_specs=out_specs),
        compiler_params=pltpu.CompilerParams(
            dimension_semantics=("parallel", "parallel"),
            vmem_limit_bytes=32 * 1024 * 1024),
    )(frames, c_re, c_im, ph, sv, inv_freq, w_real, w_imag, w_enc, w_tcn_blk, w_dec_t)


# ------------------------------- glue (plain JAX) ----------------------------
def pad_signal(x):
    B, _, nsample = x.shape
    rest = WIN - (STRIDE + nsample % WIN) % WIN
    if rest > 0:
        x = jnp.concatenate([x, jnp.zeros((B, N_MIC, rest), x.dtype)], axis=2)
    pad_aux = jnp.zeros((B, N_MIC, STRIDE), x.dtype)
    x = jnp.concatenate([pad_aux, x, pad_aux], axis=2)
    return x, rest


def synthetic_stft(x, n_frames):
    # TODO(synk): the STFT class is an external, undefined module; approximated
    # here by a Hann-windowed DFT (plain JAX glue) producing ENC_DIM bins.
    n_fft, hop = 32, STRIDE
    need = (n_frames - 1) * hop + n_fft
    x = jnp.pad(x, ((0, 0), (0, max(0, need - x.shape[-1]))))
    idx = jnp.arange(n_frames)[:, None] * hop + jnp.arange(n_fft)[None, :]
    frames = x[:, idx]                                           # (BC, n_frames, n_fft)
    window = 0.5 - 0.5 * jnp.cos(2.0 * jnp.pi * jnp.arange(n_fft) / n_fft)
    frames = frames * window
    n = jnp.arange(n_fft)[:, None].astype(jnp.float32)
    k = jnp.arange(ENC_DIM)[None, :].astype(jnp.float32)
    cos_m = jnp.cos(2.0 * jnp.pi * n * k / n_fft)
    sin_m = -jnp.sin(2.0 * jnp.pi * n * k / n_fft)
    re = jnp.einsum('btn,nk->bkt', frames, cos_m)
    im = jnp.einsum('btn,nk->bkt', frames, sin_m)
    ph = jnp.arctan2(im, re)
    return re, im, ph                    # re/im feed DPR directly; ph feeds IPD


def _pad_lanes(x, t_pad):
    extra = t_pad - x.shape[-1]
    if extra > 0:
        x = jnp.pad(x, [(0, 0)] * (x.ndim - 1) + [(0, extra)])
    return x


def tasnet_forward(inp, angle, params):
    # NOTE: the reference forward contains print(...)/exit() mid-way; the full
    # intended pipeline is implemented here instead.
    B, _, nsample = inp.shape
    padded, rest = pad_signal(inp)
    T = (padded.shape[-1] - WIN) // STRIDE + 1
    t_pad = ((T + TILE_T - 1) // TILE_T) * TILE_T

    # STFT real/imag/phase, padded by one zero frame (as in the reference)
    re, im, ph = synthetic_stft(inp.reshape(B * N_MIC, nsample), T - 1)
    zero = jnp.zeros(re.shape[:-1] + (1,), re.dtype)
    re = jnp.concatenate([re, zero], axis=-1).reshape(B, N_MIC, ENC_DIM, T)
    im = jnp.concatenate([im, zero], axis=-1).reshape(B, N_MIC, ENC_DIM, T)
    ph = jnp.concatenate([ph, zero], axis=-1).reshape(B, N_MIC, ENC_DIM, T)
    re = _pad_lanes(re, t_pad)
    im = _pad_lanes(im, t_pad)
    ph = _pad_lanes(ph, t_pad)

    # encoder input: Conv1d(1, ENC_DIM, WIN, stride=STRIDE) on the first channel
    idx = jnp.arange(T)[:, None] * STRIDE + jnp.arange(WIN)[None, :]
    frames = padded[:, 0][:, idx]                                 # (B, T, WIN)
    frames = _pad_lanes(jnp.transpose(frames, (0, 2, 1)), t_pad)  # (B, WIN, t_pad)

    sv = steering_vector_real(angle)[..., None]                   # (B, N_PAIRS, F, 1)
    inv_freq = jnp.asarray(1.0 / (FREQ + 1.0), jnp.float32).reshape(ENC_DIM, 1)

    # one fused, tiled kernel: encoder + IPD/AF/cos + DPR + masked TCN proj + decode
    dec_out = tasnet_fused_call(frames, re, im, ph, sv, inv_freq,
                                params['w_real'], params['w_imag'],
                                params['w_enc'], params['w_tcn_blk'],
                                params['w_dec_t'])                # (B, WIN, t_pad)

    # ConvTranspose1d(ENC_DIM, 1, WIN, stride=STRIDE): dense reshape-based
    # overlap-add (WIN == 2*STRIDE), then trim — no duplicate-index scatter.
    dec = jnp.transpose(dec_out[:, :, :T], (0, 2, 1))             # (B, T, WIN)
    first = dec[:, :, :STRIDE]                                    # (B, T, STRIDE)
    second = dec[:, :, STRIDE:]                                   # (B, T, STRIDE)
    zpad = jnp.zeros((B, 1, STRIDE), jnp.float32)
    out = (jnp.concatenate([first, zpad], axis=1) +
           jnp.concatenate([zpad, second], axis=1)).reshape(B, (T + 1) * STRIDE)
    out = out[:, STRIDE:-(rest + STRIDE)]
    return out.reshape(B, NUM_SPK, -1)


# ------------------------------------ main -----------------------------------
if __name__ == "__main__":
    key = jax.random.PRNGKey(0)
    k1, k2, k3, k4, k5 = jax.random.split(key, 5)

    w_real, w_imag = build_w()
    w_tcn = (jax.random.normal(k2, (ENC_DIM * NUM_SPK, TCN_DIM), jnp.float32)
             / jnp.sqrt(float(TCN_DIM)))
    params = {
        'w_enc': jax.random.normal(k1, (ENC_DIM, WIN), jnp.float32) * 0.1,
        # pre-split TCN projection into per-feature column blocks (F_out, N_BLOCKS, F)
        'w_tcn_blk': w_tcn.reshape(ENC_DIM * NUM_SPK, N_BLOCKS, ENC_DIM),
        'w_dec_t': (jax.random.normal(k3, (ENC_DIM, WIN), jnp.float32) * 0.1).T,
        'w_real': w_real,
        'w_imag': w_imag,
    }

    x = jax.random.normal(k4, (2, N_MIC, 40), jnp.float32)        # (batch, mics, samples)
    angle = jax.random.uniform(k5, (2,), jnp.float32, 0.0, 2.0 * float(np.pi))

    out = tasnet_forward(x, angle, params)
    out = jax.block_until_ready(out)
    assert out.shape == (2, NUM_SPK, 40), out.shape
    assert bool(jnp.all(jnp.isfinite(out))), "non-finite values in output"
    print("KERNEL_OK")
</pallas_src>

<mosaic_0001>
module attributes {stable_mosaic.version = 11 : i64} {
  func.func @_tasnet_fused_kernel(%arg0: i32, %arg1: i32, %arg2: memref<1x8x128xf32, #tpu.memory_space<vmem>>, %arg3: memref<1x6x16x128xf32, #tpu.memory_space<vmem>>, %arg4: memref<1x6x16x128xf32, #tpu.memory_space<vmem>>, %arg5: memref<1x6x16x128xf32, #tpu.memory_space<vmem>>, %arg6: memref<1x6x16x1xf32, #tpu.memory_space<vmem>>, %arg7: memref<16x1xf32, #tpu.memory_space<vmem>>, %arg8: memref<6x4x16x1xf32, #tpu.memory_space<vmem>>, %arg9: memref<6x4x16x1xf32, #tpu.memory_space<vmem>>, %arg10: memref<16x8xf32, #tpu.memory_space<vmem>>, %arg11: memref<16x17x16xf32, #tpu.memory_space<vmem>>, %arg12: memref<8x16xf32, #tpu.memory_space<vmem>>, %arg13: memref<1x8x128xf32, #tpu.memory_space<vmem>>) attributes {dimension_semantics = [#tpu.dimension_semantics<parallel>, #tpu.dimension_semantics<parallel>], iteration_bounds = array<i64: 2, 1>, scalar_prefetch = 0 : i64, scratch_operands = 0 : i64, tpu.core_type = #tpu.core_type<tc>, window_params = [{transform_indices = @transform_0, window_bounds = array<i64: 1, 8, 128>}, {transform_indices = @transform_1, window_bounds = array<i64: 1, 6, 16, 128>}, {transform_indices = @transform_2, window_bounds = array<i64: 1, 6, 16, 128>}, {transform_indices = @transform_3, window_bounds = array<i64: 1, 6, 16, 128>}, {transform_indices = @transform_4, window_bounds = array<i64: 1, 6, 16, 1>}, {pipeline_mode = #tpu.pipeline_mode<synchronous>, transform_indices = @transform_5, window_bounds = array<i64: 16, 1>}, {pipeline_mode = #tpu.pipeline_mode<synchronous>, transform_indices = @transform_6, window_bounds = array<i64: 6, 4, 16, 1>}, {pipeline_mode = #tpu.pipeline_mode<synchronous>, transform_indices = @transform_7, window_bounds = array<i64: 6, 4, 16, 1>}, {pipeline_mode = #tpu.pipeline_mode<synchronous>, transform_indices = @transform_8, window_bounds = array<i64: 16, 8>}, {pipeline_mode = #tpu.pipeline_mode<synchronous>, transform_indices = @transform_9, window_bounds = array<i64: 16, 17, 16>}, {pipeline_mode = #tpu.pipeline_mode<synchronous>, transform_indices = @transform_10, window_bounds = array<i64: 8, 16>}, {transform_indices = @transform_11, window_bounds = array<i64: 1, 8, 128>}]} {
    %c0 = arith.constant 0 : index
    %c0_0 = arith.constant 0 : index
    %0 = vector.load %arg10[%c0, %c0_0] : memref<16x8xf32, #tpu.memory_space<vmem>>, vector<16x8xf32>
    %1 = arith.truncf %0 : vector<16x8xf32> to vector<16x8xbf16>
    %c0_1 = arith.constant 0 : index
    %c0_2 = arith.constant 0 : index
    %c0_3 = arith.constant 0 : index
    %2 = vector.load %arg2[%c0_1, %c0_2, %c0_3] : memref<1x8x128xf32, #tpu.memory_space<vmem>>, vector<1x8x128xf32>
    %3 = vector.shape_cast %2 : vector<1x8x128xf32> to vector<8x128xf32>
    %4 = arith.truncf %3 : vector<8x128xf32> to vector<8x128xbf16>
    %cst = arith.constant dense<0.000000e+00> : vector<16x128xf32>
    %5 = tpu.matmul %1, %4, %cst {dimension_numbers = #tpu.dot_dimension_numbers<[1], [0], [0], [1], [0, 0, 1, 1], [], []>} : vector<16x8xbf16>, vector<8x128xbf16>, vector<16x128xf32> -> vector<16x128xf32>
    %c0_4 = arith.constant 0 : index
    %c0_5 = arith.constant 0 : index
    %c0_6 = arith.constant 0 : index
    %6 = vector.load %arg11[%c0_4, %c0_5, %c0_6] : memref<16x17x16xf32, #tpu.memory_space<vmem>>, vector<16x1x16xf32>
    %7 = vector.shape_cast %6 : vector<16x1x16xf32> to vector<16x16xf32>
    %8 = arith.truncf %7 : vector<16x16xf32> to vector<16x16xbf16>
    %9 = arith.truncf %5 : vector<16x128xf32> to vector<16x128xbf16>
    %cst_7 = arith.constant dense<0.000000e+00> : vector<16x128xf32>
    %10 = tpu.matmul %8, %9, %cst_7 {dimension_numbers = #tpu.dot_dimension_numbers<[1], [0], [0], [1], [0, 0, 1, 1], [], []>} : vector<16x16xbf16>, vector<16x128xbf16>, vector<16x128xf32> -> vector<16x128xf32>
    %c0_8 = arith.constant 0 : index
    %c0_9 = arith.constant 0 : index
    %c0_10 = arith.constant 0 : index
    %c0_11 = arith.constant 0 : index
    %11 = vector.load %arg5[%c0_8, %c0_9, %c0_10, %c0_11] : memref<1x6x16x128xf32, #tpu.memory_space<vmem>>, vector<1x6x16x128xf32>
    %12 = vector.shape_cast %11 : vector<1x6x16x128xf32> to vector<6x16x128xf32>
    %c0_12 = arith.constant 0 : index
    %c0_13 = arith.constant 0 : index
    %13 = vector.load %arg7[%c0_12, %c0_13] : memref<16x1xf32, #tpu.memory_space<vmem>>, vector<16x1xf32>
    %c0_14 = arith.constant 0 : index
    %c0_15 = arith.constant 0 : index
    %c0_16 = arith.constant 0 : index
    %c0_17 = arith.constant 0 : index
    %14 = vector.load %arg6[%c0_14, %c0_15, %c0_16, %c0_17] : memref<1x6x16x1xf32, #tpu.memory_space<vmem>>, vector<1x6x16x1xf32>
    %15 = vector.shape_cast %14 : vector<1x6x16x1xf32> to vector<6x16x1xf32>
    %cst_18 = arith.constant 0.000000e+00 : f32
    %16 = vector.broadcast %cst_18 : f32 to vector<16x128xf32>
    %17 = vector.extract_strided_slice %12 {offsets = [0, 0, 0], sizes = [1, 16, 128], strides = [1, 1, 1]} : vector<6x16x128xf32> to vector<1x16x128xf32>
    %18 = vector.shape_cast %17 : vector<1x16x128xf32> to vector<16x128xf32>
    %19 = vector.extract_strided_slice %12 {offsets = [3, 0, 0], sizes = [1, 16, 128], strides = [1, 1, 1]} : vector<6x16x128xf32> to vector<1x16x128xf32>
    %20 = vector.shape_cast %19 : vector<1x16x128xf32> to vector<16x128xf32>
    %21 = arith.subf %18, %20 : vector<16x128xf32>
    %cst_19 = arith.constant 3.14159274 : f32
    %22 = vector.broadcast %cst_19 : f32 to vector<16x128xf32>
    %23 = arith.cmpf ogt, %21, %22 : vector<16x128xf32>
    %cst_20 = arith.constant 6.28318548 : f32
    %24 = vector.broadcast %cst_20 : f32 to vector<16x128xf32>
    %25 = arith.subf %21, %24 : vector<16x128xf32>
    %26 = arith.select %23, %25, %21 : vector<16x128xi1>, vector<16x128xf32>
    %cst_21 = arith.constant -3.14159274 : f32
    %27 = vector.broadcast %cst_21 : f32 to vector<16x128xf32>
    %28 = arith.cmpf ole, %26, %27 : vector<16x128xf32>
    %cst_22 = arith.constant 6.28318548 : f32
    %29 = vector.broadcast %cst_22 : f32 to vector<16x128xf32>
    %30 = arith.addf %26, %29 : vector<16x128xf32>
    %31 = arith.select %28, %30, %26 : vector<16x128xi1>, vector<16x128xf32>
    %32 = vector.broadcast %13 : vector<16x1xf32> to vector<16x128xf32>
    %33 = arith.mulf %31, %32 : vector<16x128xf32>
    %cst_23 = arith.constant 0.000000e+00 : f32
    %34 = vector.broadcast %cst_23 : f32 to vector<16x128xf32>
    %35 = arith.cmpf olt, %33, %34 : vector<16x128xf32>
    %cst_24 = arith.constant 3.14159274 : f32
    %36 = vector.broadcast %cst_24 : f32 to vector<16x128xf32>
    %37 = arith.addf %33, %36 : vector<16x128xf32>
    %38 = arith.select %35, %37, %33 : vector<16x128xi1>, vector<16x128xf32>
    %cst_25 = arith.constant 3.14159274 : f32
    %39 = vector.broadcast %cst_25 : f32 to vector<16x128xf32>
    %40 = arith.cmpf oge, %38, %39 : vector<16x128xf32>
    %cst_26 = arith.constant 3.14159274 : f32
    %41 = vector.broadcast %cst_26 : f32 to vector<16x128xf32>
    %42 = arith.subf %38, %41 : vector<16x128xf32>
    %43 = arith.select %40, %42, %38 : vector<16x128xi1>, vector<16x128xf32>
    %44 = vector.extract_strided_slice %15 {offsets = [0, 0, 0], sizes = [1, 16, 1], strides = [1, 1, 1]} : vector<6x16x1xf32> to vector<1x16x1xf32>
    %45 = vector.shape_cast %44 : vector<1x16x1xf32> to vector<16x1xf32>
    %46 = vector.broadcast %45 : vector<16x1xf32> to vector<16x128xf32>
    %47 = arith.mulf %46, %43 : vector<16x128xf32>
    %48 = arith.addf %16, %47 : vector<16x128xf32>
    %c0_27 = arith.constant 0 : index
    %c11 = arith.constant 11 : index
    %c0_28 = arith.constant 0 : index
    %49 = vector.load %arg11[%c0_27, %c11, %c0_28] : memref<16x17x16xf32, #tpu.memory_space<vmem>>, vector<16x1x16xf32>
    %50 = vector.shape_cast %49 : vector<16x1x16xf32> to vector<16x16xf32>
    %51 = arith.truncf %50 : vector<16x16xf32> to vector<16x16xbf16>
    %52 = math.cos %43 : vector<16x128xf32>
    %53 = arith.truncf %52 : vector<16x128xf32> to vector<16x128xbf16>
    %cst_29 = arith.constant dense<0.000000e+00> : vector<16x128xf32>
    %54 = tpu.matmul %51, %53, %cst_29 {dimension_numbers = #tpu.dot_dimension_numbers<[1], [0], [0], [1], [0, 0, 1, 1], [], []>} : vector<16x16xbf16>, vector<16x128xbf16>, vector<16x128xf32> -> vector<16x128xf32>
    %55 = arith.addf %10, %54 : vector<16x128xf32>
    %56 = vector.extract_strided_slice %12 {offsets = [1, 0, 0], sizes = [1, 16, 128], strides = [1, 1, 1]} : vector<6x16x128xf32> to vector<1x16x128xf32>
    %57 = vector.shape_cast %56 : vector<1x16x128xf32> to vector<16x128xf32>
    %58 = vector.extract_strided_slice %12 {offsets = [4, 0, 0], sizes = [1, 16, 128], strides = [1, 1, 1]} : vector<6x16x128xf32> to vector<1x16x128xf32>
    %59 = vector.shape_cast %58 : vector<1x16x128xf32> to vector<16x128xf32>
    %60 = arith.subf %57, %59 : vector<16x128xf32>
    %cst_30 = arith.constant 3.14159274 : f32
    %61 = vector.broadcast %cst_30 : f32 to vector<16x128xf32>
    %62 = arith.cmpf ogt, %60, %61 : vector<16x128xf32>
    %cst_31 = arith.constant 6.28318548 : f32
    %63 = vector.broadcast %cst_31 : f32 to vector<16x128xf32>
    %64 = arith.subf %60, %63 : vector<16x128xf32>
    %65 = arith.select %62, %64, %60 : vector<16x128xi1>, vector<16x128xf32>
    %cst_32 = arith.constant -3.14159274 : f32
    %66 = vector.broadcast %cst_32 : f32 to vector<16x128xf32>
    %67 = arith.cmpf ole, %65, %66 : vector<16x128xf32>
    %cst_33 = arith.constant 6.28318548 : f32
    %68 = vector.broadcast %cst_33 : f32 to vector<16x128xf32>
    %69 = arith.addf %65, %68 : vector<16x128xf32>
    %70 = arith.select %67, %69, %65 : vector<16x128xi1>, vector<16x128xf32>
    %71 = vector.broadcast %13 : vector<16x1xf32> to vector<16x128xf32>
    %72 = arith.mulf %70, %71 : vector<16x128xf32>
    %cst_34 = arith.constant 0.000000e+00 : f32
    %73 = vector.broadcast %cst_34 : f32 to vector<16x128xf32>
    %74 = arith.cmpf olt, %72, %73 : vector<16x128xf32>
    %cst_35 = arith.constant 3.14159274 : f32
    %75 = vector.broadcast %cst_35 : f32 to vector<16x128xf32>
    %76 = arith.addf %72, %75 : vector<16x128xf32>
    %77 = arith.select %74, %76, %72 : vector<16x128xi1>, vector<16x128xf32>
    %cst_36 = arith.constant 3.14159274 : f32
    %78 = vector.broadcast %cst_36 : f32 to vector<16x128xf32>
    %79 = arith.cmpf oge, %77, %78 : vector<16x128xf32>
    %cst_37 = arith.constant 3.14159274 : f32
    %80 = vector.broadcast %cst_37 : f32 to vector<16x128xf32>
    %81 = arith.subf %77, %80 : vector<16x128xf32>
    %82 = arith.select %79, %81, %77 : vector<16x128xi1>, vector<16x128xf32>
    %83 = vector.extract_strided_slice %15 {offsets = [1, 0, 0], sizes = [1, 16, 1], strides = [1, 1, 1]} : vector<6x16x1xf32> to vector<1x16x1xf32>
    %84 = vector.shape_cast %83 : vector<1x16x1xf32> to vector<16x1xf32>
    %85 = vector.broadcast %84 : vector<16x1xf32> to vector<16x128xf32>
    %86 = arith.mulf %85, %82 : vector<16x128xf32>
    %87 = arith.addf %48, %86 : vector<16x128xf32>
    %c0_38 = arith.constant 0 : index
    %c12 = arith.constant 12 : index
    %c0_39 = arith.constant 0 : index
    %88 = vector.load %arg11[%c0_38, %c12, %c0_39] : memref<16x17x16xf32, #tpu.memory_space<vmem>>, vector<16x1x16xf32>
    %89 = vector.shape_cast %88 : vector<16x1x16xf32> to vector<16x16xf32>
    %90 = arith.truncf %89 : vector<16x16xf32> to vector<16x16xbf16>
    %91 = math.cos %82 : vector<16x128xf32>
    %92 = arith.truncf %91 : vector<16x128xf32> to vector<16x128xbf16>
    %cst_40 = arith.constant dense<0.000000e+00> : vector<16x128xf32>
    %93 = tpu.matmul %90, %92, %cst_40 {dimension_numbers = #tpu.dot_dimension_numbers<[1], [0], [0], [1], [0, 0, 1, 1], [], []>} : vector<16x16xbf16>, vector<16x128xbf16>, vector<16x128xf32> -> vector<16x128xf32>
    %94 = arith.addf %55, %93 : vector<16x128xf32>
    %95 = vector.extract_strided_slice %12 {offsets = [2, 0, 0], sizes = [1, 16, 128], strides = [1, 1, 1]} : vector<6x16x128xf32> to vector<1x16x128xf32>
    %96 = vector.shape_cast %95 : vector<1x16x128xf32> to vector<16x128xf32>
    %97 = vector.extract_strided_slice %12 {offsets = [5, 0, 0], sizes = [1, 16, 128], strides = [1, 1, 1]} : vector<6x16x128xf32> to vector<1x16x128xf32>
    %98 = vector.shape_cast %97 : vector<1x16x128xf32> to vector<16x128xf32>
    %99 = arith.subf %96, %98 : vector<16x128xf32>
    %cst_41 = arith.constant 3.14159274 : f32
    %100 = vector.broadcast %cst_41 : f32 to vector<16x128xf32>
    %101 = arith.cmpf ogt, %99, %100 : vector<16x128xf32>
    %cst_42 = arith.constant 6.28318548 : f32
    %102 = vector.broadcast %cst_42 : f32 to vector<16x128xf32>
    %103 = arith.subf %99, %102 : vector<16x128xf32>
    %104 = arith.select %101, %103, %99 : vector<16x128xi1>, vector<16x128xf32>
    %cst_43 = arith.constant -3.14159274 : f32
    %105 = vector.broadcast %cst_43 : f32 to vector<16x128xf32>
    %106 = arith.cmpf ole, %104, %105 : vector<16x128xf32>
    %cst_44 = arith.constant 6.28318548 : f32
    %107 = vector.broadcast %cst_44 : f32 to vector<16x128xf32>
    %108 = arith.addf %104, %107 : vector<16x128xf32>
    %109 = arith.select %106, %108, %104 : vector<16x128xi1>, vector<16x128xf32>
    %110 = vector.broadcast %13 : vector<16x1xf32> to vector<16x128xf32>
    %111 = arith.mulf %109, %110 : vector<16x128xf32>
    %cst_45 = arith.constant 0.000000e+00 : f32
    %112 = vector.broadcast %cst_45 : f32 to vector<16x128xf32>
    %113 = arith.cmpf olt, %111, %112 : vector<16x128xf32>
    %cst_46 = arith.constant 3.14159274 : f32
    %114 = vector.broadcast %cst_46 : f32 to vector<16x128xf32>
    %115 = arith.addf %111, %114 : vector<16x128xf32>
    %116 = arith.select %113, %115, %111 : vector<16x128xi1>, vector<16x128xf32>
    %cst_47 = arith.constant 3.14159274 : f32
    %117 = vector.broadcast %cst_47 : f32 to vector<16x128xf32>
    %118 = arith.cmpf oge, %116, %117 : vector<16x128xf32>
    %cst_48 = arith.constant 3.14159274 : f32
    %119 = vector.broadcast %cst_48 : f32 to vector<16x128xf32>
    %120 = arith.subf %116, %119 : vector<16x128xf32>
    %121 = arith.select %118, %120, %116 : vector<16x128xi1>, vector<16x128xf32>
    %122 = vector.extract_strided_slice %15 {offsets = [2, 0, 0], sizes = [1, 16, 1], strides = [1, 1, 1]} : vector<6x16x1xf32> to vector<1x16x1xf32>
    %123 = vector.shape_cast %122 : vector<1x16x1xf32> to vector<16x1xf32>
    %124 = vector.broadcast %123 : vector<16x1xf32> to vector<16x128xf32>
    %125 = arith.mulf %124, %121 : vector<16x128xf32>
    %126 = arith.addf %87, %125 : vector<16x128xf32>
    %c0_49 = arith.constant 0 : index
    %c13 = arith.constant 13 : index
    %c0_50 = arith.constant 0 : index
    %127 = vector.load %arg11[%c0_49, %c13, %c0_50] : memref<16x17x16xf32, #tpu.memory_space<vmem>>, vector<16x1x16xf32>
    %128 = vector.shape_cast %127 : vector<16x1x16xf32> to vector<16x16xf32>
    %129 = arith.truncf %128 : vector<16x16xf32> to vector<16x16xbf16>
    %130 = math.cos %121 : vector<16x128xf32>
    %131 = arith.truncf %130 : vector<16x128xf32> to vector<16x128xbf16>
    %cst_51 = arith.constant dense<0.000000e+00> : vector<16x128xf32>
    %132 = tpu.matmul %129, %131, %cst_51 {dimension_numbers = #tpu.dot_dimension_numbers<[1], [0], [0], [1], [0, 0, 1, 1], [], []>} : vector<16x16xbf16>, vector<16x128xbf16>, vector<16x128xf32> -> vector<16x128xf32>
    %133 = arith.addf %94, %132 : vector<16x128xf32>
    %134 = vector.extract_strided_slice %12 {offsets = [0, 0, 0], sizes = [1, 16, 128], strides = [1, 1, 1]} : vector<6x16x128xf32> to vector<1x16x128xf32>
    %135 = vector.shape_cast %134 : vector<1x16x128xf32> to vector<16x128xf32>
    %136 = vector.extract_strided_slice %12 {offsets = [1, 0, 0], sizes = [1, 16, 128], strides = [1, 1, 1]} : vector<6x16x128xf32> to vector<1x16x128xf32>
    %137 = vector.shape_cast %136 : vector<1x16x128xf32> to vector<16x128xf32>
    %138 = arith.subf %135, %137 : vector<16x128xf32>
    %cst_52 = arith.constant 3.14159274 : f32
    %139 = vector.broadcast %cst_52 : f32 to vector<16x128xf32>
    %140 = arith.cmpf ogt, %138, %139 : vector<16x128xf32>
    %cst_53 = arith.constant 6.28318548 : f32
    %141 = vector.broadcast %cst_53 : f32 to vector<16x128xf32>
    %142 = arith.subf %138, %141 : vector<16x128xf32>
    %143 = arith.select %140, %142, %138 : vector<16x128xi1>, vector<16x128xf32>
    %cst_54 = arith.constant -3.14159274 : f32
    %144 = vector.broadcast %cst_54 : f32 to vector<16x128xf32>
    %145 = arith.cmpf ole, %143, %144 : vector<16x128xf32>
    %cst_55 = arith.constant 6.28318548 : f32
    %146 = vector.broadcast %cst_55 : f32 to vector<16x128xf32>
    %147 = arith.addf %143, %146 : vector<16x128xf32>
    %148 = arith.select %145, %147, %143 : vector<16x128xi1>, vector<16x128xf32>
    %149 = vector.broadcast %13 : vector<16x1xf32> to vector<16x128xf32>
    %150 = arith.mulf %148, %149 : vector<16x128xf32>
    %cst_56 = arith.constant 0.000000e+00 : f32
    %151 = vector.broadcast %cst_56 : f32 to vector<16x128xf32>
    %152 = arith.cmpf olt, %150, %151 : vector<16x128xf32>
    %cst_57 = arith.constant 3.14159274 : f32
    %153 = vector.broadcast %cst_57 : f32 to vector<16x128xf32>
    %154 = arith.addf %150, %153 : vector<16x128xf32>
    %155 = arith.select %152, %154, %150 : vector<16x128xi1>, vector<16x128xf32>
    %cst_58 = arith.constant 3.14159274 : f32
    %156 = vector.broadcast %cst_58 : f32 to vector<16x128xf32>
    %157 = arith.cmpf oge, %155, %156 : vector<16x128xf32>
    %cst_59 = arith.constant 3.14159274 : f32
    %158 = vector.broadcast %cst_59 : f32 to vector<16x128xf32>
    %159 = arith.subf %155, %158 : vector<16x128xf32>
    %160 = arith.select %157, %159, %155 : vector<16x128xi1>, vector<16x128xf32>
    %161 = vector.extract_strided_slice %15 {offsets = [3, 0, 0], sizes = [1, 16, 1], strides = [1, 1, 1]} : vector<6x16x1xf32> to vector<1x16x1xf32>
    %162 = vector.shape_cast %161 : vector<1x16x1xf32> to vector<16x1xf32>
    %163 = vector.broadcast %162 : vector<16x1xf32> to vector<16x128xf32>
    %164 = arith.mulf %163, %160 : vector<16x128xf32>
    %165 = arith.addf %126, %164 : vector<16x128xf32>
    %c0_60 = arith.constant 0 : index
    %c14 = arith.constant 14 : index
    %c0_61 = arith.constant 0 : index
    %166 = vector.load %arg11[%c0_60, %c14, %c0_61] : memref<16x17x16xf32, #tpu.memory_space<vmem>>, vector<16x1x16xf32>
    %167 = vector.shape_cast %166 : vector<16x1x16xf32> to vector<16x16xf32>
    %168 = arith.truncf %167 : vector<16x16xf32> to vector<16x16xbf16>
    %169 = math.cos %160 : vector<16x128xf32>
    %170 = arith.truncf %169 : vector<16x128xf32> to vector<16x128xbf16>
    %cst_62 = arith.constant dense<0.000000e+00> : vector<16x128xf32>
    %171 = tpu.matmul %168, %170, %cst_62 {dimension_numbers = #tpu.dot_dimension_numbers<[1], [0], [0], [1], [0, 0, 1, 1], [], []>} : vector<16x16xbf16>, vector<16x128xbf16>, vector<16x128xf32> -> vector<16x128xf32>
    %172 = arith.addf %133, %171 : vector<16x128xf32>
    %173 = vector.extract_strided_slice %12 {offsets = [2, 0, 0], sizes = [1, 16, 128], strides = [1, 1, 1]} : vector<6x16x128xf32> to vector<1x16x128xf32>
    %174 = vector.shape_cast %173 : vector<1x16x128xf32> to vector<16x128xf32>
    %175 = vector.extract_strided_slice %12 {offsets = [3, 0, 0], sizes = [1, 16, 128], strides = [1, 1, 1]} : vector<6x16x128xf32> to vector<1x16x128xf32>
    %176 = vector.shape_cast %175 : vector<1x16x128xf32> to vector<16x128xf32>
    %177 = arith.subf %174, %176 : vector<16x128xf32>
    %cst_63 = arith.constant 3.14159274 : f32
    %178 = vector.broadcast %cst_63 : f32 to vector<16x128xf32>
    %179 = arith.cmpf ogt, %177, %178 : vector<16x128xf32>
    %cst_64 = arith.constant 6.28318548 : f32
    %180 = vector.broadcast %cst_64 : f32 to vector<16x128xf32>
    %181 = arith.subf %177, %180 : vector<16x128xf32>
    %182 = arith.select %179, %181, %177 : vector<16x128xi1>, vector<16x128xf32>
    %cst_65 = arith.constant -3.14159274 : f32
    %183 = vector.broadcast %cst_65 : f32 to vector<16x128xf32>
    %184 = arith.cmpf ole, %182, %183 : vector<16x128xf32>
    %cst_66 = arith.constant 6.28318548 : f32
    %185 = vector.broadcast %cst_66 : f32 to vector<16x128xf32>
    %186 = arith.addf %182, %185 : vector<16x128xf32>
    %187 = arith.select %184, %186, %182 : vector<16x128xi1>, vector<16x128xf32>
    %188 = vector.broadcast %13 : vector<16x1xf32> to vector<16x128xf32>
    %189 = arith.mulf %187, %188 : vector<16x128xf32>
    %cst_67 = arith.constant 0.000000e+00 : f32
    %190 = vector.broadcast %cst_67 : f32 to vector<16x128xf32>
    %191 = arith.cmpf olt, %189, %190 : vector<16x128xf32>
    %cst_68 = arith.constant 3.14159274 : f32
    %192 = vector.broadcast %cst_68 : f32 to vector<16x128xf32>
    %193 = arith.addf %189, %192 : vector<16x128xf32>
    %194 = arith.select %191, %193, %189 : vector<16x128xi1>, vector<16x128xf32>
    %cst_69 = arith.constant 3.14159274 : f32
    %195 = vector.broadcast %cst_69 : f32 to vector<16x128xf32>
    %196 = arith.cmpf oge, %194, %195 : vector<16x128xf32>
    %cst_70 = arith.constant 3.14159274 : f32
    %197 = vector.broadcast %cst_70 : f32 to vector<16x128xf32>
    %198 = arith.subf %194, %197 : vector<16x128xf32>
    %199 = arith.select %196, %198, %194 : vector<16x128xi1>, vector<16x128xf32>
    %200 = vector.extract_strided_slice %15 {offsets = [4, 0, 0], sizes = [1, 16, 1], strides = [1, 1, 1]} : vector<6x16x1xf32> to vector<1x16x1xf32>
    %201 = vector.shape_cast %200 : vector<1x16x1xf32> to vector<16x1xf32>
    %202 = vector.broadcast %201 : vector<16x1xf32> to vector<16x128xf32>
    %203 = arith.mulf %202, %199 : vector<16x128xf32>
    %204 = arith.addf %165, %203 : vector<16x128xf32>
    %c0_71 = arith.constant 0 : index
    %c15 = arith.constant 15 : index
    %c0_72 = arith.constant 0 : index
    %205 = vector.load %arg11[%c0_71, %c15, %c0_72] : memref<16x17x16xf32, #tpu.memory_space<vmem>>, vector<16x1x16xf32>
    %206 = vector.shape_cast %205 : vector<16x1x16xf32> to vector<16x16xf32>
    %207 = arith.truncf %206 : vector<16x16xf32> to vector<16x16xbf16>
    %208 = math.cos %199 : vector<16x128xf32>
    %209 = arith.truncf %208 : vector<16x128xf32> to vector<16x128xbf16>
    %cst_73 = arith.constant dense<0.000000e+00> : vector<16x128xf32>
    %210 = tpu.matmul %207, %209, %cst_73 {dimension_numbers = #tpu.dot_dimension_numbers<[1], [0], [0], [1], [0, 0, 1, 1], [], []>} : vector<16x16xbf16>, vector<16x128xbf16>, vector<16x128xf32> -> vector<16x128xf32>
    %211 = arith.addf %172, %210 : vector<16x128xf32>
    %212 = vector.extract_strided_slice %12 {offsets = [4, 0, 0], sizes = [1, 16, 128], strides = [1, 1, 1]} : vector<6x16x128xf32> to vector<1x16x128xf32>
    %213 = vector.shape_cast %212 : vector<1x16x128xf32> to vector<16x128xf32>
    %214 = vector.extract_strided_slice %12 {offsets = [5, 0, 0], sizes = [1, 16, 128], strides = [1, 1, 1]} : vector<6x16x128xf32> to vector<1x16x128xf32>
    %215 = vector.shape_cast %214 : vector<1x16x128xf32> to vector<16x128xf32>
    %216 = arith.subf %213, %215 : vector<16x128xf32>
    %cst_74 = arith.constant 3.14159274 : f32
    %217 = vector.broadcast %cst_74 : f32 to vector<16x128xf32>
    %218 = arith.cmpf ogt, %216, %217 : vector<16x128xf32>
    %cst_75 = arith.constant 6.28318548 : f32
    %219 = vector.broadcast %cst_75 : f32 to vector<16x128xf32>
    %220 = arith.subf %216, %219 : vector<16x128xf32>
    %221 = arith.select %218, %220, %216 : vector<16x128xi1>, vector<16x128xf32>
    %cst_76 = arith.constant -3.14159274 : f32
    %222 = vector.broadcast %cst_76 : f32 to vector<16x128xf32>
    %223 = arith.cmpf ole, %221, %222 : vector<16x128xf32>
    %cst_77 = arith.constant 6.28318548 : f32
    %224 = vector.broadcast %cst_77 : f32 to vector<16x128xf32>
    %225 = arith.addf %221, %224 : vector<16x128xf32>
    %226 = arith.select %223, %225, %221 : vector<16x128xi1>, vector<16x128xf32>
    %227 = vector.broadcast %13 : vector<16x1xf32> to vector<16x128xf32>
    %228 = arith.mulf %226, %227 : vector<16x128xf32>
    %cst_78 = arith.constant 0.000000e+00 : f32
    %229 = vector.broadcast %cst_78 : f32 to vector<16x128xf32>
    %230 = arith.cmpf olt, %228, %229 : vector<16x128xf32>
    %cst_79 = arith.constant 3.14159274 : f32
    %231 = vector.broadcast %cst_79 : f32 to vector<16x128xf32>
    %232 = arith.addf %228, %231 : vector<16x128xf32>
    %233 = arith.select %230, %232, %228 : vector<16x128xi1>, vector<16x128xf32>
    %cst_80 = arith.constant 3.14159274 : f32
    %234 = vector.broadcast %cst_80 : f32 to vector<16x128xf32>
    %235 = arith.cmpf oge, %233, %234 : vector<16x128xf32>
    %cst_81 = arith.constant 3.14159274 : f32
    %236 = vector.broadcast %cst_81 : f32 to vector<16x128xf32>
    %237 = arith.subf %233, %236 : vector<16x128xf32>
    %238 = arith.select %235, %237, %233 : vector<16x128xi1>, vector<16x128xf32>
    %239 = vector.extract_strided_slice %15 {offsets = [5, 0, 0], sizes = [1, 16, 1], strides = [1, 1, 1]} : vector<6x16x1xf32> to vector<1x16x1xf32>
    %240 = vector.shape_cast %239 : vector<1x16x1xf32> to vector<16x1xf32>
    %241 = vector.broadcast %240 : vector<16x1xf32> to vector<16x128xf32>
    %242 = arith.mulf %241, %238 : vector<16x128xf32>
    %243 = arith.addf %204, %242 : vector<16x128xf32>
    %c0_82 = arith.constant 0 : index
    %c16 = arith.constant 16 : index
    %c0_83 = arith.constant 0 : index
    %244 = vector.load %arg11[%c0_82, %c16, %c0_83] : memref<16x17x16xf32, #tpu.memory_space<vmem>>, vector<16x1x16xf32>
    %245 = vector.shape_cast %244 : vector<16x1x16xf32> to vector<16x16xf32>
    %246 = arith.truncf %245 : vector<16x16xf32> to vector<16x16xbf16>
    %247 = math.cos %238 : vector<16x128xf32>
    %248 = arith.truncf %247 : vector<16x128xf32> to vector<16x128xbf16>
    %cst_84 = arith.constant dense<0.000000e+00> : vector<16x128xf32>
    %249 = tpu.matmul %246, %248, %cst_84 {dimension_numbers = #tpu.dot_dimension_numbers<[1], [0], [0], [1], [0, 0, 1, 1], [], []>} : vector<16x16xbf16>, vector<16x128xbf16>, vector<16x128xf32> -> vector<16x128xf32>
    %250 = arith.addf %211, %249 : vector<16x128xf32>
    %251 = math.absf %243 : vector<16x128xf32>
    %cst_85 = arith.constant 9.99999993E-9 : f32
    %252 = vector.broadcast %cst_85 : f32 to vector<16x128xf32>
    %253 = arith.cmpf olt, %251, %252 : vector<16x128xf32>
    %cst_86 = arith.constant 0.000000e+00 : f32
    %254 = vector.broadcast %cst_86 : f32 to vector<16x128xf32>
    %255 = arith.cmpf olt, %243, %254 : vector<16x128xf32>
    %cst_87 = arith.constant -9.99999993E-9 : f32
    %cst_88 = arith.constant 9.99999993E-9 : f32
    %256 = vector.broadcast %cst_87 : f32 to vector<16x128xf32>
    %257 = vector.broadcast %cst_88 : f32 to vector<16x128xf32>
    %258 = arith.select %255, %256, %257 : vector<16x128xi1>, vector<16x128xf32>
    %259 = arith.select %253, %258, %243 : vector<16x128xi1>, vector<16x128xf32>
    %260 = tpu.reciprocal %259 {approx = true} : vector<16x128xf32> -> vector<16x128xf32>
    %c0_89 = arith.constant 0 : index
    %c1 = arith.constant 1 : index
    %c0_90 = arith.constant 0 : index
    %261 = vector.load %arg11[%c0_89, %c1, %c0_90] : memref<16x17x16xf32, #tpu.memory_space<vmem>>, vector<16x1x16xf32>
    %262 = vector.shape_cast %261 : vector<16x1x16xf32> to vector<16x16xf32>
    %263 = arith.truncf %262 : vector<16x16xf32> to vector<16x16xbf16>
    %264 = arith.mulf %47, %260 : vector<16x128xf32>
    %265 = arith.truncf %264 : vector<16x128xf32> to vector<16x128xbf16>
    %cst_91 = arith.constant dense<0.000000e+00> : vector<16x128xf32>
    %266 = tpu.matmul %263, %265, %cst_91 {dimension_numbers = #tpu.dot_dimension_numbers<[1], [0], [0], [1], [0, 0, 1, 1], [], []>} : vector<16x16xbf16>, vector<16x128xbf16>, vector<16x128xf32> -> vector<16x128xf32>
    %267 = arith.addf %250, %266 : vector<16x128xf32>
    %c0_92 = arith.constant 0 : index
    %c2 = arith.constant 2 : index
    %c0_93 = arith.constant 0 : index
    %268 = vector.load %arg11[%c0_92, %c2, %c0_93] : memref<16x17x16xf32, #tpu.memory_space<vmem>>, vector<16x1x16xf32>
    %269 = vector.shape_cast %268 : vector<16x1x16xf32> to vector<16x16xf32>
    %270 = arith.truncf %269 : vector<16x16xf32> to vector<16x16xbf16>
    %271 = arith.mulf %86, %260 : vector<16x128xf32>
    %272 = arith.truncf %271 : vector<16x128xf32> to vector<16x128xbf16>
    %cst_94 = arith.constant dense<0.000000e+00> : vector<16x128xf32>
    %273 = tpu.matmul %270, %272, %cst_94 {dimension_numbers = #tpu.dot_dimension_numbers<[1], [0], [0], [1], [0, 0, 1, 1], [], []>} : vector<16x16xbf16>, vector<16x128xbf16>, vector<16x128xf32> -> vector<16x128xf32>
    %274 = arith.addf %267, %273 : vector<16x128xf32>
    %c0_95 = arith.constant 0 : index
    %c3 = arith.constant 3 : index
    %c0_96 = arith.constant 0 : index
    %275 = vector.load %arg11[%c0_95, %c3, %c0_96] : memref<16x17x16xf32, #tpu.memory_space<vmem>>, vector<16x1x16xf32>
    %276 = vector.shape_cast %275 : vector<16x1x16xf32> to vector<16x16xf32>
    %277 = arith.truncf %276 : vector<16x16xf32> to vector<16x16xbf16>
    %278 = arith.mulf %125, %260 : vector<16x128xf32>
    %279 = arith.truncf %278 : vector<16x128xf32> to vector<16x128xbf16>
    %cst_97 = arith.constant dense<0.000000e+00> : vector<16x128xf32>
    %280 = tpu.matmul %277, %279, %cst_97 {dimension_numbers = #tpu.dot_dimension_numbers<[1], [0], [0], [1], [0, 0, 1, 1], [], []>} : vector<16x16xbf16>, vector<16x128xbf16>, vector<16x128xf32> -> vector<16x128xf32>
    %281 = arith.addf %274, %280 : vector<16x128xf32>
    %c0_98 = arith.constant 0 : index
    %c4 = arith.constant 4 : index
    %c0_99 = arith.constant 0 : index
    %282 = vector.load %arg11[%c0_98, %c4, %c0_99] : memref<16x17x16xf32, #tpu.memory_space<vmem>>, vector<16x1x16xf32>
    %283 = vector.shape_cast %282 : vector<16x1x16xf32> to vector<16x16xf32>
    %284 = arith.truncf %283 : vector<16x16xf32> to vector<16x16xbf16>
    %285 = arith.mulf %164, %260 : vector<16x128xf32>
    %286 = arith.truncf %285 : vector<16x128xf32> to vector<16x128xbf16>
    %cst_100 = arith.constant dense<0.000000e+00> : vector<16x128xf32>
    %287 = tpu.matmul %284, %286, %cst_100 {dimension_numbers = #tpu.dot_dimension_numbers<[1], [0], [0], [1], [0, 0, 1, 1], [], []>} : vector<16x16xbf16>, vector<16x128xbf16>, vector<16x128xf32> -> vector<16x128xf32>
    %288 = arith.addf %281, %287 : vector<16x128xf32>
    %c0_101 = arith.constant 0 : index
    %c5 = arith.constant 5 : index
    %c0_102 = arith.constant 0 : index
    %289 = vector.load %arg11[%c0_101, %c5, %c0_102] : memref<16x17x16xf32, #tpu.memory_space<vmem>>, vector<16x1x16xf32>
    %290 = vector.shape_cast %289 : vector<16x1x16xf32> to vector<16x16xf32>
    %291 = arith.truncf %290 : vector<16x16xf32> to vector<16x16xbf16>
    %292 = arith.mulf %203, %260 : vector<16x128xf32>
    %293 = arith.truncf %292 : vector<16x128xf32> to vector<16x128xbf16>
    %cst_103 = arith.constant dense<0.000000e+00> : vector<16x128xf32>
    %294 = tpu.matmul %291, %293, %cst_103 {dimension_numbers = #tpu.dot_dimension_numbers<[1], [0], [0], [1], [0, 0, 1, 1], [], []>} : vector<16x16xbf16>, vector<16x128xbf16>, vector<16x128xf32> -> vector<16x128xf32>
    %295 = arith.addf %288, %294 : vector<16x128xf32>
    %c0_104 = arith.constant 0 : index
    %c6 = arith.constant 6 : index
    %c0_105 = arith.constant 0 : index
    %296 = vector.load %arg11[%c0_104, %c6, %c0_105] : memref<16x17x16xf32, #tpu.memory_space<vmem>>, vector<16x1x16xf32>
    %297 = vector.shape_cast %296 : vector<16x1x16xf32> to vector<16x16xf32>
    %298 = arith.truncf %297 : vector<16x16xf32> to vector<16x16xbf16>
    %299 = arith.mulf %242, %260 : vector<16x128xf32>
    %300 = arith.truncf %299 : vector<16x128xf32> to vector<16x128xbf16>
    %cst_106 = arith.constant dense<0.000000e+00> : vector<16x128xf32>
    %301 = tpu.matmul %298, %300, %cst_106 {dimension_numbers = #tpu.dot_dimension_numbers<[1], [0], [0], [1], [0, 0, 1, 1], [], []>} : vector<16x16xbf16>, vector<16x128xbf16>, vector<16x128xf32> -> vector<16x128xf32>
    %302 = arith.addf %295, %301 : vector<16x128xf32>
    %c0_107 = arith.constant 0 : index
    %c0_108 = arith.constant 0 : index
    %c0_109 = arith.constant 0 : index
    %c0_110 = arith.constant 0 : index
    %303 = vector.load %arg3[%c0_107, %c0_108, %c0_109, %c0_110] : memref<1x6x16x128xf32, #tpu.memory_space<vmem>>, vector<1x6x16x128xf32>
    %304 = vector.shape_cast %303 : vector<1x6x16x128xf32> to vector<6x16x128xf32>
    %c0_111 = arith.constant 0 : index
    %c0_112 = arith.constant 0 : index
    %c0_113 = arith.constant 0 : index
    %c0_114 = arith.constant 0 : index
    %305 = vector.load %arg4[%c0_111, %c0_112, %c0_113, %c0_114] : memref<1x6x16x128xf32, #tpu.memory_space<vmem>>, vector<1x6x16x128xf32>
    %306 = vector.shape_cast %305 : vector<1x6x16x128xf32> to vector<6x16x128xf32>
    %c0_115 = arith.constant 0 : index
    %c0_116 = arith.constant 0 : index
    %c0_117 = arith.constant 0 : index
    %c0_118 = arith.constant 0 : index
    %307 = vector.load %arg8[%c0_115, %c0_116, %c0_117, %c0_118] : memref<6x4x16x1xf32, #tpu.memory_space<vmem>>, vector<6x4x16x1xf32>
    %c0_119 = arith.constant 0 : index
    %c0_120 = arith.constant 0 : index
    %c0_121 = arith.constant 0 : index
    %c0_122 = arith.constant 0 : index
    %308 = vector.load %arg9[%c0_119, %c0_120, %c0_121, %c0_122] : memref<6x4x16x1xf32, #tpu.memory_space<vmem>>, vector<6x4x16x1xf32>
    %cst_123 = arith.constant 0.000000e+00 : f32
    %309 = vector.broadcast %cst_123 : f32 to vector<16x128xf32>
    %cst_124 = arith.constant 0.000000e+00 : f32
    %310 = vector.broadcast %cst_124 : f32 to vector<16x128xf32>
    %cst_125 = arith.constant 0.000000e+00 : f32
    %311 = vector.broadcast %cst_125 : f32 to vector<16x128xf32>
    %312 = vector.extract_strided_slice %307 {offsets = [0, 0, 0, 0], sizes = [1, 1, 16, 1], strides = [1, 1, 1, 1]} : vector<6x4x16x1xf32> to vector<1x1x16x1xf32>
    %313 = vector.shape_cast %312 : vector<1x1x16x1xf32> to vector<16x1xf32>
    %314 = vector.extract_strided_slice %308 {offsets = [0, 0, 0, 0], sizes = [1, 1, 16, 1], strides = [1, 1, 1, 1]} : vector<6x4x16x1xf32> to vector<1x1x16x1xf32>
    %315 = vector.shape_cast %314 : vector<1x1x16x1xf32> to vector<16x1xf32>
    %316 = vector.extract_strided_slice %304 {offsets = [0, 0, 0], sizes = [1, 16, 128], strides = [1, 1, 1]} : vector<6x16x128xf32> to vector<1x16x128xf32>
    %317 = vector.shape_cast %316 : vector<1x16x128xf32> to vector<16x128xf32>
    %318 = vector.broadcast %313 : vector<16x1xf32> to vector<16x128xf32>
    %319 = arith.mulf %318, %317 : vector<16x128xf32>
    %320 = arith.addf %310, %319 : vector<16x128xf32>
    %321 = vector.extract_strided_slice %306 {offsets = [0, 0, 0], sizes = [1, 16, 128], strides = [1, 1, 1]} : vector<6x16x128xf32> to vector<1x16x128xf32>
    %322 = vector.shape_cast %321 : vector<1x16x128xf32> to vector<16x128xf32>
    %323 = vector.broadcast %315 : vector<16x1xf32> to vector<16x128xf32>
    %324 = arith.mulf %323, %322 : vector<16x128xf32>
    %325 = arith.subf %320, %324 : vector<16x128xf32>
    %326 = vector.extract_strided_slice %306 {offsets = [0, 0, 0], sizes = [1, 16, 128], strides = [1, 1, 1]} : vector<6x16x128xf32> to vector<1x16x128xf32>
    %327 = vector.shape_cast %326 : vector<1x16x128xf32> to vector<16x128xf32>
    %328 = vector.broadcast %313 : vector<16x1xf32> to vector<16x128xf32>
    %329 = arith.mulf %328, %327 : vector<16x128xf32>
    %330 = arith.addf %311, %329 : vector<16x128xf32>
    %331 = vector.extract_strided_slice %304 {offsets = [0, 0, 0], sizes = [1, 16, 128], strides = [1, 1, 1]} : vector<6x16x128xf32> to vector<1x16x128xf32>
    %332 = vector.shape_cast %331 : vector<1x16x128xf32> to vector<16x128xf32>
    %333 = vector.broadcast %315 : vector<16x1xf32> to vector<16x128xf32>
    %334 = arith.mulf %333, %332 : vector<16x128xf32>
    %335 = arith.addf %330, %334 : vector<16x128xf32>
    %336 = vector.extract_strided_slice %307 {offsets = [1, 0, 0, 0], sizes = [1, 1, 16, 1], strides = [1, 1, 1, 1]} : vector<6x4x16x1xf32> to vector<1x1x16x1xf32>
    %337 = vector.shape_cast %336 : vector<1x1x16x1xf32> to vector<16x1xf32>
    %338 = vector.extract_strided_slice %308 {offsets = [1, 0, 0, 0], sizes = [1, 1, 16, 1], strides = [1, 1, 1, 1]} : vector<6x4x16x1xf32> to vector<1x1x16x1xf32>
    %339 = vector.shape_cast %338 : vector<1x1x16x1xf32> to vector<16x1xf32>
    %340 = vector.extract_strided_slice %304 {offsets = [1, 0, 0], sizes = [1, 16, 128], strides = [1, 1, 1]} : vector<6x16x128xf32> to vector<1x16x128xf32>
    %341 = vector.shape_cast %340 : vector<1x16x128xf32> to vector<16x128xf32>
    %342 = vector.broadcast %337 : vector<16x1xf32> to vector<16x128xf32>
    %343 = arith.mulf %342, %341 : vector<16x128xf32>
    %344 = arith.addf %325, %343 : vector<16x128xf32>
    %345 = vector.extract_strided_slice %306 {offsets = [1, 0, 0], sizes = [1, 16, 128], strides = [1, 1, 1]} : vector<6x16x128xf32> to vector<1x16x128xf32>
    %346 = vector.shape_cast %345 : vector<1x16x128xf32> to vector<16x128xf32>
    %347 = vector.broadcast %339 : vector<16x1xf32> to vector<16x128xf32>
    %348 = arith.mulf %347, %346 : vector<16x128xf32>
    %349 = arith.subf %344, %348 : vector<16x128xf32>
    %350 = vector.extract_strided_slice %306 {offsets = [1, 0, 0], sizes = [1, 16, 128], strides = [1, 1, 1]} : vector<6x16x128xf32> to vector<1x16x128xf32>
    %351 = vector.shape_cast %350 : vector<1x16x128xf32> to vector<16x128xf32>
    %352 = vector.broadcast %337 : vector<16x1xf32> to vector<16x128xf32>
    %353 = arith.mulf %352, %351 : vector<16x128xf32>
    %354 = arith.addf %335, %353 : vector<16x128xf32>
    %355 = vector.extract_strided_slice %304 {offsets = [1, 0, 0], sizes = [1, 16, 128], strides = [1, 1, 1]} : vector<6x16x128xf32> to vector<1x16x128xf32>
    %356 = vector.shape_cast %355 : vector<1x16x128xf32> to vector<16x128xf32>
    %357 = vector.broadcast %339 : vector<16x1xf32> to vector<16x128xf32>
    %358 = arith.mulf %357, %356 : vector<16x128xf32>
    %359 = arith.addf %354, %358 : vector<16x128xf32>
    %360 = vector.extract_strided_slice %307 {offsets = [2, 0, 0, 0], sizes = [1, 1, 16, 1], strides = [1, 1, 1, 1]} : vector<6x4x16x1xf32> to vector<1x1x16x1xf32>
    %361 = vector.shape_cast %360 : vector<1x1x16x1xf32> to vector<16x1xf32>
    %362 = vector.extract_strided_slice %308 {offsets = [2, 0, 0, 0], sizes = [1, 1, 16, 1], strides = [1, 1, 1, 1]} : vector<6x4x16x1xf32> to vector<1x1x16x1xf32>
    %363 = vector.shape_cast %362 : vector<1x1x16x1xf32> to vector<16x1xf32>
    %364 = vector.extract_strided_slice %304 {offsets = [2, 0, 0], sizes = [1, 16, 128], strides = [1, 1, 1]} : vector<6x16x128xf32> to vector<1x16x128xf32>
    %365 = vector.shape_cast %364 : vector<1x16x128xf32> to vector<16x128xf32>
    %366 = vector.broadcast %361 : vector<16x1xf32> to vector<16x128xf32>
    %367 = arith.mulf %366, %365 : vector<16x128xf32>
    %368 = arith.addf %349, %367 : vector<16x128xf32>
    %369 = vector.extract_strided_slice %306 {offsets = [2, 0, 0], sizes = [1, 16, 128], strides = [1, 1, 1]} : vector<6x16x128xf32> to vector<1x16x128xf32>
    %370 = vector.shape_cast %369 : vector<1x16x128xf32> to vector<16x128xf32>
    %371 = vector.broadcast %363 : vector<16x1xf32> to vector<16x128xf32>
    %372 = arith.mulf %371, %370 : vector<16x128xf32>
    %373 = arith.subf %368, %372 : vector<16x128xf32>
    %374 = vector.extract_strided_slice %306 {offsets = [2, 0, 0], sizes = [1, 16, 128], strides = [1, 1, 1]} : vector<6x16x128xf32> to vector<1x16x128xf32>
    %375 = vector.shape_cast %374 : vector<1x16x128xf32> to vector<16x128xf32>
    %376 = vector.broadcast %361 : vector<16x1xf32> to vector<16x128xf32>
    %377 = arith.mulf %376, %375 : vector<16x128xf32>
    %378 = arith.addf %359, %377 : vector<16x128xf32>
    %379 = vector.extract_strided_slice %304 {offsets = [2, 0, 0], sizes = [1, 16, 128], strides = [1, 1, 1]} : vector<6x16x128xf32> to vector<1x16x128xf32>
    %380 = vector.shape_cast %379 : vector<1x16x128xf32> to vector<16x128xf32>
    %381 = vector.broadcast %363 : vector<16x1xf32> to vector<16x128xf32>
    %382 = arith.mulf %381, %380 : vector<16x128xf32>
    %383 = arith.addf %378, %382 : vector<16x128xf32>
    %384 = vector.extract_strided_slice %307 {offsets = [3, 0, 0, 0], sizes = [1, 1, 16, 1], strides = [1, 1, 1, 1]} : vector<6x4x16x1xf32> to vector<1x1x16x1xf32>
    %385 = vector.shape_cast %384 : vector<1x1x16x1xf32> to vector<16x1xf32>
    %386 = vector.extract_strided_slice %308 {offsets = [3, 0, 0, 0], sizes = [1, 1, 16, 1], strides = [1, 1, 1, 1]} : vector<6x4x16x1xf32> to vector<1x1x16x1xf32>
    %387 = vector.shape_cast %386 : vector<1x1x16x1xf32> to vector<16x1xf32>
    %388 = vector.extract_strided_slice %304 {offsets = [3, 0, 0], sizes = [1, 16, 128], strides = [1, 1, 1]} : vector<6x16x128xf32> to vector<1x16x128xf32>
    %389 = vector.shape_cast %388 : vector<1x16x128xf32> to vector<16x128xf32>
    %390 = vector.broadcast %385 : vector<16x1xf32> to vector<16x128xf32>
    %391 = arith.mulf %390, %389 : vector<16x128xf32>
    %392 = arith.addf %373, %391 : vector<16x128xf32>
    %393 = vector.extract_strided_slice %306 {offsets = [3, 0, 0], sizes = [1, 16, 128], strides = [1, 1, 1]} : vector<6x16x128xf32> to vector<1x16x128xf32>
    %394 = vector.shape_cast %393 : vector<1x16x128xf32> to vector<16x128xf32>
    %395 = vector.broadcast %387 : vector<16x1xf32> to vector<16x128xf32>
    %396 = arith.mulf %395, %394 : vector<16x128xf32>
    %397 = arith.subf %392, %396 : vector<16x128xf32>
    %398 = vector.extract_strided_slice %306 {offsets = [3, 0, 0], sizes = [1, 16, 128], strides = [1, 1, 1]} : vector<6x16x128xf32> to vector<1x16x128xf32>
    %399 = vector.shape_cast %398 : vector<1x16x128xf32> to vector<16x128xf32>
    %400 = vector.broadcast %385 : vector<16x1xf32> to vector<16x128xf32>
    %401 = arith.mulf %400, %399 : vector<16x128xf32>
    %402 = arith.addf %383, %401 : vector<16x128xf32>
    %403 = vector.extract_strided_slice %304 {offsets = [3, 0, 0], sizes = [1, 16, 128], strides = [1, 1, 1]} : vector<6x16x128xf32> to vector<1x16x128xf32>
    %404 = vector.shape_cast %403 : vector<1x16x128xf32> to vector<16x128xf32>
    %405 = vector.broadcast %387 : vector<16x1xf32> to vector<16x128xf32>
    %406 = arith.mulf %405, %404 : vector<16x128xf32>
    %407 = arith.addf %402, %406 : vector<16x128xf32>
    %408 = vector.extract_strided_slice %307 {offsets = [4, 0, 0, 0], sizes = [1, 1, 16, 1], strides = [1, 1, 1, 1]} : vector<6x4x16x1xf32> to vector<1x1x16x1xf32>
    %409 = vector.shape_cast %408 : vector<1x1x16x1xf32> to vector<16x1xf32>
    %410 = vector.extract_strided_slice %308 {offsets = [4, 0, 0, 0], sizes = [1, 1, 16, 1], strides = [1, 1, 1, 1]} : vector<6x4x16x1xf32> to vector<1x1x16x1xf32>
    %411 = vector.shape_cast %410 : vector<1x1x16x1xf32> to vector<16x1xf32>
    %412 = vector.extract_strided_slice %304 {offsets = [4, 0, 0], sizes = [1, 16, 128], strides = [1, 1, 1]} : vector<6x16x128xf32> to vector<1x16x128xf32>
    %413 = vector.shape_cast %412 : vector<1x16x128xf32> to vector<16x128xf32>
    %414 = vector.broadcast %409 : vector<16x1xf32> to vector<16x128xf32>
    %415 = arith.mulf %414, %413 : vector<16x128xf32>
    %416 = arith.addf %397, %415 : vector<16x128xf32>
    %417 = vector.extract_strided_slice %306 {offsets = [4, 0, 0], sizes = [1, 16, 128], strides = [1, 1, 1]} : vector<6x16x128xf32> to vector<1x16x128xf32>
    %418 = vector.shape_cast %417 : vector<1x16x128xf32> to vector<16x128xf32>
    %419 = vector.broadcast %411 : vector<16x1xf32> to vector<16x128xf32>
    %420 = arith.mulf %419, %418 : vector<16x128xf32>
    %421 = arith.subf %416, %420 : vector<16x128xf32>
    %422 = vector.extract_strided_slice %306 {offsets = [4, 0, 0], sizes = [1, 16, 128], strides = [1, 1, 1]} : vector<6x16x128xf32> to vector<1x16x128xf32>
    %423 = vector.shape_cast %422 : vector<1x16x128xf32> to vector<16x128xf32>
    %424 = vector.broadcast %409 : vector<16x1xf32> to vector<16x128xf32>
    %425 = arith.mulf %424, %423 : vector<16x128xf32>
    %426 = arith.addf %407, %425 : vector<16x128xf32>
    %427 = vector.extract_strided_slice %304 {offsets = [4, 0, 0], sizes = [1, 16, 128], strides = [1, 1, 1]} : vector<6x16x128xf32> to vector<1x16x128xf32>
    %428 = vector.shape_cast %427 : vector<1x16x128xf32> to vector<16x128xf32>
    %429 = vector.broadcast %411 : vector<16x1xf32> to vector<16x128xf32>
    %430 = arith.mulf %429, %428 : vector<16x128xf32>
    %431 = arith.addf %426, %430 : vector<16x128xf32>
    %432 = vector.extract_strided_slice %307 {offsets = [5, 0, 0, 0], sizes = [1, 1, 16, 1], strides = [1, 1, 1, 1]} : vector<6x4x16x1xf32> to vector<1x1x16x1xf32>
    %433 = vector.shape_cast %432 : vector<1x1x16x1xf32> to vector<16x1xf32>
    %434 = vector.extract_strided_slice %308 {offsets = [5, 0, 0, 0], sizes = [1, 1, 16, 1], strides = [1, 1, 1, 1]} : vector<6x4x16x1xf32> to vector<1x1x16x1xf32>
    %435 = vector.shape_cast %434 : vector<1x1x16x1xf32> to vector<16x1xf32>
    %436 = vector.extract_strided_slice %304 {offsets = [5, 0, 0], sizes = [1, 16, 128], strides = [1, 1, 1]} : vector<6x16x128xf32> to vector<1x16x128xf32>
    %437 = vector.shape_cast %436 : vector<1x16x128xf32> to vector<16x128xf32>
    %438 = vector.broadcast %433 : vector<16x1xf32> to vector<16x128xf32>
    %439 = arith.mulf %438, %437 : vector<16x128xf32>
    %440 = arith.addf %421, %439 : vector<16x128xf32>
    %441 = vector.extract_strided_slice %306 {offsets = [5, 0, 0], sizes = [1, 16, 128], strides = [1, 1, 1]} : vector<6x16x128xf32> to vector<1x16x128xf32>
    %442 = vector.shape_cast %441 : vector<1x16x128xf32> to vector<16x128xf32>
    %443 = vector.broadcast %435 : vector<16x1xf32> to vector<16x128xf32>
    %444 = arith.mulf %443, %442 : vector<16x128xf32>
    %445 = arith.subf %440, %444 : vector<16x128xf32>
    %446 = vector.extract_strided_slice %306 {offsets = [5, 0, 0], sizes = [1, 16, 128], strides = [1, 1, 1]} : vector<6x16x128xf32> to vector<1x16x128xf32>
    %447 = vector.shape_cast %446 : vector<1x16x128xf32> to vector<16x128xf32>
    %448 = vector.broadcast %433 : vector<16x1xf32> to vector<16x128xf32>
    %449 = arith.mulf %448, %447 : vector<16x128xf32>
    %450 = arith.addf %431, %449 : vector<16x128xf32>
    %451 = vector.extract_strided_slice %304 {offsets = [5, 0, 0], sizes = [1, 16, 128], strides = [1, 1, 1]} : vector<6x16x128xf32> to vector<1x16x128xf32>
    %452 = vector.shape_cast %451 : vector<1x16x128xf32> to vector<16x128xf32>
    %453 = vector.broadcast %435 : vector<16x1xf32> to vector<16x128xf32>
    %454 = arith.mulf %453, %452 : vector<16x128xf32>
    %455 = arith.addf %450, %454 : vector<16x128xf32>
    %456 = arith.mulf %445, %445 : vector<16x128xf32>
    %457 = arith.mulf %455, %455 : vector<16x128xf32>
    %458 = arith.addf %456, %457 : vector<16x128xf32>
    %459 = arith.addf %309, %458 : vector<16x128xf32>
    %cst_126 = arith.constant 0.000000e+00 : f32
    %460 = vector.broadcast %cst_126 : f32 to vector<16x128xf32>
    %cst_127 = arith.constant 0.000000e+00 : f32
    %461 = vector.broadcast %cst_127 : f32 to vector<16x128xf32>
    %462 = vector.extract_strided_slice %307 {offsets = [0, 1, 0, 0], sizes = [1, 1, 16, 1], strides = [1, 1, 1, 1]} : vector<6x4x16x1xf32> to vector<1x1x16x1xf32>
    %463 = vector.shape_cast %462 : vector<1x1x16x1xf32> to vector<16x1xf32>
    %464 = vector.extract_strided_slice %308 {offsets = [0, 1, 0, 0], sizes = [1, 1, 16, 1], strides = [1, 1, 1, 1]} : vector<6x4x16x1xf32> to vector<1x1x16x1xf32>
    %465 = vector.shape_cast %464 : vector<1x1x16x1xf32> to vector<16x1xf32>
    %466 = vector.extract_strided_slice %304 {offsets = [0, 0, 0], sizes = [1, 16, 128], strides = [1, 1, 1]} : vector<6x16x128xf32> to vector<1x16x128xf32>
    %467 = vector.shape_cast %466 : vector<1x16x128xf32> to vector<16x128xf32>
    %468 = vector.broadcast %463 : vector<16x1xf32> to vector<16x128xf32>
    %469 = arith.mulf %468, %467 : vector<16x128xf32>
    %470 = arith.addf %460, %469 : vector<16x128xf32>
    %471 = vector.extract_strided_slice %306 {offsets = [0, 0, 0], sizes = [1, 16, 128], strides = [1, 1, 1]} : vector<6x16x128xf32> to vector<1x16x128xf32>
    %472 = vector.shape_cast %471 : vector<1x16x128xf32> to vector<16x128xf32>
    %473 = vector.broadcast %465 : vector<16x1xf32> to vector<16x128xf32>
    %474 = arith.mulf %473, %472 : vector<16x128xf32>
    %475 = arith.subf %470, %474 : vector<16x128xf32>
    %476 = vector.extract_strided_slice %306 {offsets = [0, 0, 0], sizes = [1, 16, 128], strides = [1, 1, 1]} : vector<6x16x128xf32> to vector<1x16x128xf32>
    %477 = vector.shape_cast %476 : vector<1x16x128xf32> to vector<16x128xf32>
    %478 = vector.broadcast %463 : vector<16x1xf32> to vector<16x128xf32>
    %479 = arith.mulf %478, %477 : vector<16x128xf32>
    %480 = arith.addf %461, %479 : vector<16x128xf32>
    %481 = vector.extract_strided_slice %304 {offsets = [0, 0, 0], sizes = [1, 16, 128], strides = [1, 1, 1]} : vector<6x16x128xf32> to vector<1x16x128xf32>
    %482 = vector.shape_cast %481 : vector<1x16x128xf32> to vector<16x128xf32>
    %483 = vector.broadcast %465 : vector<16x1xf32> to vector<16x128xf32>
    %484 = arith.mulf %483, %482 : vector<16x128xf32>
    %485 = arith.addf %480, %484 : vector<16x128xf32>
    %486 = vector.extract_strided_slice %307 {offsets = [1, 1, 0, 0], sizes = [1, 1, 16, 1], strides = [1, 1, 1, 1]} : vector<6x4x16x1xf32> to vector<1x1x16x1xf32>
    %487 = vector.shape_cast %486 : vector<1x1x16x1xf32> to vector<16x1xf32>
    %488 = vector.extract_strided_slice %308 {offsets = [1, 1, 0, 0], sizes = [1, 1, 16, 1], strides = [1, 1, 1, 1]} : vector<6x4x16x1xf32> to vector<1x1x16x1xf32>
    %489 = vector.shape_cast %488 : vector<1x1x16x1xf32> to vector<16x1xf32>
    %490 = vector.extract_strided_slice %304 {offsets = [1, 0, 0], sizes = [1, 16, 128], strides = [1, 1, 1]} : vector<6x16x128xf32> to vector<1x16x128xf32>
    %491 = vector.shape_cast %490 : vector<1x16x128xf32> to vector<16x128xf32>
    %492 = vector.broadcast %487 : vector<16x1xf32> to vector<16x128xf32>
    %493 = arith.mulf %492, %491 : vector<16x128xf32>
    %494 = arith.addf %475, %493 : vector<16x128xf32>
    %495 = vector.extract_strided_slice %306 {offsets = [1, 0, 0], sizes = [1, 16, 128], strides = [1, 1, 1]} : vector<6x16x128xf32> to vector<1x16x128xf32>
    %496 = vector.shape_cast %495 : vector<1x16x128xf32> to vector<16x128xf32>
    %497 = vector.broadcast %489 : vector<16x1xf32> to vector<16x128xf32>
    %498 = arith.mulf %497, %496 : vector<16x128xf32>
    %499 = arith.subf %494, %498 : vector<16x128xf32>
    %500 = vector.extract_strided_slice %306 {offsets = [1, 0, 0], sizes = [1, 16, 128], strides = [1, 1, 1]} : vector<6x16x128xf32> to vector<1x16x128xf32>
    %501 = vector.shape_cast %500 : vector<1x16x128xf32> to vector<16x128xf32>
    %502 = vector.broadcast %487 : vector<16x1xf32> to vector<16x128xf32>
    %503 = arith.mulf %502, %501 : vector<16x128xf32>
    %504 = arith.addf %485, %503 : vector<16x128xf32>
    %505 = vector.extract_strided_slice %304 {offsets = [1, 0, 0], sizes = [1, 16, 128], strides = [1, 1, 1]} : vector<6x16x128xf32> to vector<1x16x128xf32>
    %506 = vector.shape_cast %505 : vector<1x16x128xf32> to vector<16x128xf32>
    %507 = vector.broadcast %489 : vector<16x1xf32> to vector<16x128xf32>
    %508 = arith.mulf %507, %506 : vector<16x128xf32>
    %509 = arith.addf %504, %508 : vector<16x128xf32>
    %510 = vector.extract_strided_slice %307 {offsets = [2, 1, 0, 0], sizes = [1, 1, 16, 1], strides = [1, 1, 1, 1]} : vector<6x4x16x1xf32> to vector<1x1x16x1xf32>
    %511 = vector.shape_cast %510 : vector<1x1x16x1xf32> to vector<16x1xf32>
    %512 = vector.extract_strided_slice %308 {offsets = [2, 1, 0, 0], sizes = [1, 1, 16, 1], strides = [1, 1, 1, 1]} : vector<6x4x16x1xf32> to vector<1x1x16x1xf32>
    %513 = vector.shape_cast %512 : vector<1x1x16x1xf32> to vector<16x1xf32>
    %514 = vector.extract_strided_slice %304 {offsets = [2, 0, 0], sizes = [1, 16, 128], strides = [1, 1, 1]} : vector<6x16x128xf32> to vector<1x16x128xf32>
    %515 = vector.shape_cast %514 : vector<1x16x128xf32> to vector<16x128xf32>
    %516 = vector.broadcast %511 : vector<16x1xf32> to vector<16x128xf32>
    %517 = arith.mulf %516, %515 : vector<16x128xf32>
    %518 = arith.addf %499, %517 : vector<16x128xf32>
    %519 = vector.extract_strided_slice %306 {offsets = [2, 0, 0], sizes = [1, 16, 128], strides = [1, 1, 1]} : vector<6x16x128xf32> to vector<1x16x128xf32>
    %520 = vector.shape_cast %519 : vector<1x16x128xf32> to vector<16x128xf32>
    %521 = vector.broadcast %513 : vector<16x1xf32> to vector<16x128xf32>
    %522 = arith.mulf %521, %520 : vector<16x128xf32>
    %523 = arith.subf %518, %522 : vector<16x128xf32>
    %524 = vector.extract_strided_slice %306 {offsets = [2, 0, 0], sizes = [1, 16, 128], strides = [1, 1, 1]} : vector<6x16x128xf32> to vector<1x16x128xf32>
    %525 = vector.shape_cast %524 : vector<1x16x128xf32> to vector<16x128xf32>
    %526 = vector.broadcast %511 : vector<16x1xf32> to vector<16x128xf32>
    %527 = arith.mulf %526, %525 : vector<16x128xf32>
    %528 = arith.addf %509, %527 : vector<16x128xf32>
    %529 = vector.extract_strided_slice %304 {offsets = [2, 0, 0], sizes = [1, 16, 128], strides = [1, 1, 1]} : vector<6x16x128xf32> to vector<1x16x128xf32>
    %530 = vector.shape_cast %529 : vector<1x16x128xf32> to vector<16x128xf32>
    %531 = vector.broadcast %513 : vector<16x1xf32> to vector<16x128xf32>
    %532 = arith.mulf %531, %530 : vector<16x128xf32>
    %533 = arith.addf %528, %532 : vector<16x128xf32>
    %534 = vector.extract_strided_slice %307 {offsets = [3, 1, 0, 0], sizes = [1, 1, 16, 1], strides = [1, 1, 1, 1]} : vector<6x4x16x1xf32> to vector<1x1x16x1xf32>
    %535 = vector.shape_cast %534 : vector<1x1x16x1xf32> to vector<16x1xf32>
    %536 = vector.extract_strided_slice %308 {offsets = [3, 1, 0, 0], sizes = [1, 1, 16, 1], strides = [1, 1, 1, 1]} : vector<6x4x16x1xf32> to vector<1x1x16x1xf32>
    %537 = vector.shape_cast %536 : vector<1x1x16x1xf32> to vector<16x1xf32>
    %538 = vector.extract_strided_slice %304 {offsets = [3, 0, 0], sizes = [1, 16, 128], strides = [1, 1, 1]} : vector<6x16x128xf32> to vector<1x16x128xf32>
    %539 = vector.shape_cast %538 : vector<1x16x128xf32> to vector<16x128xf32>
    %540 = vector.broadcast %535 : vector<16x1xf32> to vector<16x128xf32>
    %541 = arith.mulf %540, %539 : vector<16x128xf32>
    %542 = arith.addf %523, %541 : vector<16x128xf32>
    %543 = vector.extract_strided_slice %306 {offsets = [3, 0, 0], sizes = [1, 16, 128], strides = [1, 1, 1]} : vector<6x16x128xf32> to vector<1x16x128xf32>
    %544 = vector.shape_cast %543 : vector<1x16x128xf32> to vector<16x128xf32>
    %545 = vector.broadcast %537 : vector<16x1xf32> to vector<16x128xf32>
    %546 = arith.mulf %545, %544 : vector<16x128xf32>
    %547 = arith.subf %542, %546 : vector<16x128xf32>
    %548 = vector.extract_strided_slice %306 {offsets = [3, 0, 0], sizes = [1, 16, 128], strides = [1, 1, 1]} : vector<6x16x128xf32> to vector<1x16x128xf32>
    %549 = vector.shape_cast %548 : vector<1x16x128xf32> to vector<16x128xf32>
    %550 = vector.broadcast %535 : vector<16x1xf32> to vector<16x128xf32>
    %551 = arith.mulf %550, %549 : vector<16x128xf32>
    %552 = arith.addf %533, %551 : vector<16x128xf32>
    %553 = vector.extract_strided_slice %304 {offsets = [3, 0, 0], sizes = [1, 16, 128], strides = [1, 1, 1]} : vector<6x16x128xf32> to vector<1x16x128xf32>
    %554 = vector.shape_cast %553 : vector<1x16x128xf32> to vector<16x128xf32>
    %555 = vector.broadcast %537 : vector<16x1xf32> to vector<16x128xf32>
    %556 = arith.mulf %555, %554 : vector<16x128xf32>
    %557 = arith.addf %552, %556 : vector<16x128xf32>
    %558 = vector.extract_strided_slice %307 {offsets = [4, 1, 0, 0], sizes = [1, 1, 16, 1], strides = [1, 1, 1, 1]} : vector<6x4x16x1xf32> to vector<1x1x16x1xf32>
    %559 = vector.shape_cast %558 : vector<1x1x16x1xf32> to vector<16x1xf32>
    %560 = vector.extract_strided_slice %308 {offsets = [4, 1, 0, 0], sizes = [1, 1, 16, 1], strides = [1, 1, 1, 1]} : vector<6x4x16x1xf32> to vector<1x1x16x1xf32>
    %561 = vector.shape_cast %560 : vector<1x1x16x1xf32> to vector<16x1xf32>
    %562 = vector.extract_strided_slice %304 {offsets = [4, 0, 0], sizes = [1, 16, 128], strides = [1, 1, 1]} : vector<6x16x128xf32> to vector<1x16x128xf32>
    %563 = vector.shape_cast %562 : vector<1x16x128xf32> to vector<16x128xf32>
    %564 = vector.broadcast %559 : vector<16x1xf32> to vector<16x128xf32>
    %565 = arith.mulf %564, %563 : vector<16x128xf32>
    %566 = arith.addf %547, %565 : vector<16x128xf32>
    %567 = vector.extract_strided_slice %306 {offsets = [4, 0, 0], sizes = [1, 16, 128], strides = [1, 1, 1]} : vector<6x16x128xf32> to vector<1x16x128xf32>
    %568 = vector.shape_cast %567 : vector<1x16x128xf32> to vector<16x128xf32>
    %569 = vector.broadcast %561 : vector<16x1xf32> to vector<16x128xf32>
    %570 = arith.mulf %569, %568 : vector<16x128xf32>
    %571 = arith.subf %566, %570 : vector<16x128xf32>
    %572 = vector.extract_strided_slice %306 {offsets = [4, 0, 0], sizes = [1, 16, 128], strides = [1, 1, 1]} : vector<6x16x128xf32> to vector<1x16x128xf32>
    %573 = vector.shape_cast %572 : vector<1x16x128xf32> to vector<16x128xf32>
    %574 = vector.broadcast %559 : vector<16x1xf32> to vector<16x128xf32>
    %575 = arith.mulf %574, %573 : vector<16x128xf32>
    %576 = arith.addf %557, %575 : vector<16x128xf32>
    %577 = vector.extract_strided_slice %304 {offsets = [4, 0, 0], sizes = [1, 16, 128], strides = [1, 1, 1]} : vector<6x16x128xf32> to vector<1x16x128xf32>
    %578 = vector.shape_cast %577 : vector<1x16x128xf32> to vector<16x128xf32>
    %579 = vector.broadcast %561 : vector<16x1xf32> to vector<16x128xf32>
    %580 = arith.mulf %579, %578 : vector<16x128xf32>
    %581 = arith.addf %576, %580 : vector<16x128xf32>
    %582 = vector.extract_strided_slice %307 {offsets = [5, 1, 0, 0], sizes = [1, 1, 16, 1], strides = [1, 1, 1, 1]} : vector<6x4x16x1xf32> to vector<1x1x16x1xf32>
    %583 = vector.shape_cast %582 : vector<1x1x16x1xf32> to vector<16x1xf32>
    %584 = vector.extract_strided_slice %308 {offsets = [5, 1, 0, 0], sizes = [1, 1, 16, 1], strides = [1, 1, 1, 1]} : vector<6x4x16x1xf32> to vector<1x1x16x1xf32>
    %585 = vector.shape_cast %584 : vector<1x1x16x1xf32> to vector<16x1xf32>
    %586 = vector.extract_strided_slice %304 {offsets = [5, 0, 0], sizes = [1, 16, 128], strides = [1, 1, 1]} : vector<6x16x128xf32> to vector<1x16x128xf32>
    %587 = vector.shape_cast %586 : vector<1x16x128xf32> to vector<16x128xf32>
    %588 = vector.broadcast %583 : vector<16x1xf32> to vector<16x128xf32>
    %589 = arith.mulf %588, %587 : vector<16x128xf32>
    %590 = arith.addf %571, %589 : vector<16x128xf32>
    %591 = vector.extract_strided_slice %306 {offsets = [5, 0, 0], sizes = [1, 16, 128], strides = [1, 1, 1]} : vector<6x16x128xf32> to vector<1x16x128xf32>
    %592 = vector.shape_cast %591 : vector<1x16x128xf32> to vector<16x128xf32>
    %593 = vector.broadcast %585 : vector<16x1xf32> to vector<16x128xf32>
    %594 = arith.mulf %593, %592 : vector<16x128xf32>
    %595 = arith.subf %590, %594 : vector<16x128xf32>
    %596 = vector.extract_strided_slice %306 {offsets = [5, 0, 0], sizes = [1, 16, 128], strides = [1, 1, 1]} : vector<6x16x128xf32> to vector<1x16x128xf32>
    %597 = vector.shape_cast %596 : vector<1x16x128xf32> to vector<16x128xf32>
    %598 = vector.broadcast %583 : vector<16x1xf32> to vector<16x128xf32>
    %599 = arith.mulf %598, %597 : vector<16x128xf32>
    %600 = arith.addf %581, %599 : vector<16x128xf32>
    %601 = vector.extract_strided_slice %304 {offsets = [5, 0, 0], sizes = [1, 16, 128], strides = [1, 1, 1]} : vector<6x16x128xf32> to vector<1x16x128xf32>
    %602 = vector.shape_cast %601 : vector<1x16x128xf32> to vector<16x128xf32>
    %603 = vector.broadcast %585 : vector<16x1xf32> to vector<16x128xf32>
    %604 = arith.mulf %603, %602 : vector<16x128xf32>
    %605 = arith.addf %600, %604 : vector<16x128xf32>
    %606 = arith.mulf %595, %595 : vector<16x128xf32>
    %607 = arith.mulf %605, %605 : vector<16x128xf32>
    %608 = arith.addf %606, %607 : vector<16x128xf32>
    %609 = arith.addf %459, %608 : vector<16x128xf32>
    %cst_128 = arith.constant 0.000000e+00 : f32
    %610 = vector.broadcast %cst_128 : f32 to vector<16x128xf32>
    %cst_129 = arith.constant 0.000000e+00 : f32
    %611 = vector.broadcast %cst_129 : f32 to vector<16x128xf32>
    %612 = vector.extract_strided_slice %307 {offsets = [0, 2, 0, 0], sizes = [1, 1, 16, 1], strides = [1, 1, 1, 1]} : vector<6x4x16x1xf32> to vector<1x1x16x1xf32>
    %613 = vector.shape_cast %612 : vector<1x1x16x1xf32> to vector<16x1xf32>
    %614 = vector.extract_strided_slice %308 {offsets = [0, 2, 0, 0], sizes = [1, 1, 16, 1], strides = [1, 1, 1, 1]} : vector<6x4x16x1xf32> to vector<1x1x16x1xf32>
    %615 = vector.shape_cast %614 : vector<1x1x16x1xf32> to vector<16x1xf32>
    %616 = vector.extract_strided_slice %304 {offsets = [0, 0, 0], sizes = [1, 16, 128], strides = [1, 1, 1]} : vector<6x16x128xf32> to vector<1x16x128xf32>
    %617 = vector.shape_cast %616 : vector<1x16x128xf32> to vector<16x128xf32>
    %618 = vector.broadcast %613 : vector<16x1xf32> to vector<16x128xf32>
    %619 = arith.mulf %618, %617 : vector<16x128xf32>
    %620 = arith.addf %610, %619 : vector<16x128xf32>
    %621 = vector.extract_strided_slice %306 {offsets = [0, 0, 0], sizes = [1, 16, 128], strides = [1, 1, 1]} : vector<6x16x128xf32> to vector<1x16x128xf32>
    %622 = vector.shape_cast %621 : vector<1x16x128xf32> to vector<16x128xf32>
    %623 = vector.broadcast %615 : vector<16x1xf32> to vector<16x128xf32>
    %624 = arith.mulf %623, %622 : vector<16x128xf32>
    %625 = arith.subf %620, %624 : vector<16x128xf32>
    %626 = vector.extract_strided_slice %306 {offsets = [0, 0, 0], sizes = [1, 16, 128], strides = [1, 1, 1]} : vector<6x16x128xf32> to vector<1x16x128xf32>
    %627 = vector.shape_cast %626 : vector<1x16x128xf32> to vector<16x128xf32>
    %628 = vector.broadcast %613 : vector<16x1xf32> to vector<16x128xf32>
    %629 = arith.mulf %628, %627 : vector<16x128xf32>
    %630 = arith.addf %611, %629 : vector<16x128xf32>
    %631 = vector.extract_strided_slice %304 {offsets = [0, 0, 0], sizes = [1, 16, 128], strides = [1, 1, 1]} : vector<6x16x128xf32> to vector<1x16x128xf32>
    %632 = vector.shape_cast %631 : vector<1x16x128xf32> to vector<16x128xf32>
    %633 = vector.broadcast %615 : vector<16x1xf32> to vector<16x128xf32>
    %634 = arith.mulf %633, %632 : vector<16x128xf32>
    %635 = arith.addf %630, %634 : vector<16x128xf32>
    %636 = vector.extract_strided_slice %307 {offsets = [1, 2, 0, 0], sizes = [1, 1, 16, 1], strides = [1, 1, 1, 1]} : vector<6x4x16x1xf32> to vector<1x1x16x1xf32>
    %637 = vector.shape_cast %636 : vector<1x1x16x1xf32> to vector<16x1xf32>
    %638 = vector.extract_strided_slice %308 {offsets = [1, 2, 0, 0], sizes = [1, 1, 16, 1], strides = [1, 1, 1, 1]} : vector<6x4x16x1xf32> to vector<1x1x16x1xf32>
    %639 = vector.shape_cast %638 : vector<1x1x16x1xf32> to vector<16x1xf32>
    %640 = vector.extract_strided_slice %304 {offsets = [1, 0, 0], sizes = [1, 16, 128], strides = [1, 1, 1]} : vector<6x16x128xf32> to vector<1x16x128xf32>
    %641 = vector.shape_cast %640 : vector<1x16x128xf32> to vector<16x128xf32>
    %642 = vector.broadcast %637 : vector<16x1xf32> to vector<16x128xf32>
    %643 = arith.mulf %642, %641 : vector<16x128xf32>
    %644 = arith.addf %625, %643 : vector<16x128xf32>
    %645 = vector.extract_strided_slice %306 {offsets = [1, 0, 0], sizes = [1, 16, 128], strides = [1, 1, 1]} : vector<6x16x128xf32> to vector<1x16x128xf32>
    %646 = vector.shape_cast %645 : vector<1x16x128xf32> to vector<16x128xf32>
    %647 = vector.broadcast %639 : vector<16x1xf32> to vector<16x128xf32>
    %648 = arith.mulf %647, %646 : vector<16x128xf32>
    %649 = arith.subf %644, %648 : vector<16x128xf32>
    %650 = vector.extract_strided_slice %306 {offsets = [1, 0, 0], sizes = [1, 16, 128], strides = [1, 1, 1]} : vector<6x16x128xf32> to vector<1x16x128xf32>
    %651 = vector.shape_cast %650 : vector<1x16x128xf32> to vector<16x128xf32>
    %652 = vector.broadcast %637 : vector<16x1xf32> to vector<16x128xf32>
    %653 = arith.mulf %652, %651 : vector<16x128xf32>
    %654 = arith.addf %635, %653 : vector<16x128xf32>
    %655 = vector.extract_strided_slice %304 {offsets = [1, 0, 0], sizes = [1, 16, 128], strides = [1, 1, 1]} : vector<6x16x128xf32> to vector<1x16x128xf32>
    %656 = vector.shape_cast %655 : vector<1x16x128xf32> to vector<16x128xf32>
    %657 = vector.broadcast %639 : vector<16x1xf32> to vector<16x128xf32>
    %658 = arith.mulf %657, %656 : vector<16x128xf32>
    %659 = arith.addf %654, %658 : vector<16x128xf32>
    %660 = vector.extract_strided_slice %307 {offsets = [2, 2, 0, 0], sizes = [1, 1, 16, 1], strides = [1, 1, 1, 1]} : vector<6x4x16x1xf32> to vector<1x1x16x1xf32>
    %661 = vector.shape_cast %660 : vector<1x1x16x1xf32> to vector<16x1xf32>
    %662 = vector.extract_strided_slice %308 {offsets = [2, 2, 0, 0], sizes = [1, 1, 16, 1], strides = [1, 1, 1, 1]} : vector<6x4x16x1xf32> to vector<1x1x16x1xf32>
    %663 = vector.shape_cast %662 : vector<1x1x16x1xf32> to vector<16x1xf32>
    %664 = vector.extract_strided_slice %304 {offsets = [2, 0, 0], sizes = [1, 16, 128], strides = [1, 1, 1]} : vector<6x16x128xf32> to vector<1x16x128xf32>
    %665 = vector.shape_cast %664 : vector<1x16x128xf32> to vector<16x128xf32>
    %666 = vector.broadcast %661 : vector<16x1xf32> to vector<16x128xf32>
    %667 = arith.mulf %666, %665 : vector<16x128xf32>
    %668 = arith.addf %649, %667 : vector<16x128xf32>
    %669 = vector.extract_strided_slice %306 {offsets = [2, 0, 0], sizes = [1, 16, 128], strides = [1, 1, 1]} : vector<6x16x128xf32> to vector<1x16x128xf32>
    %670 = vector.shape_cast %669 : vector<1x16x128xf32> to vector<16x128xf32>
    %671 = vector.broadcast %663 : vector<16x1xf32> to vector<16x128xf32>
    %672 = arith.mulf %671, %670 : vector<16x128xf32>
    %673 = arith.subf %668, %672 : vector<16x128xf32>
    %674 = vector.extract_strided_slice %306 {offsets = [2, 0, 0], sizes = [1, 16, 128], strides = [1, 1, 1]} : vector<6x16x128xf32> to vector<1x16x128xf32>
    %675 = vector.shape_cast %674 : vector<1x16x128xf32> to vector<16x128xf32>
    %676 = vector.broadcast %661 : vector<16x1xf32> to vector<16x128xf32>
    %677 = arith.mulf %676, %675 : vector<16x128xf32>
    %678 = arith.addf %659, %677 : vector<16x128xf32>
    %679 = vector.extract_strided_slice %304 {offsets = [2, 0, 0], sizes = [1, 16, 128], strides = [1, 1, 1]} : vector<6x16x128xf32> to vector<1x16x128xf32>
    %680 = vector.shape_cast %679 : vector<1x16x128xf32> to vector<16x128xf32>
    %681 = vector.broadcast %663 : vector<16x1xf32> to vector<16x128xf32>
    %682 = arith.mulf %681, %680 : vector<16x128xf32>
    %683 = arith.addf %678, %682 : vector<16x128xf32>
    %684 = vector.extract_strided_slice %307 {offsets = [3, 2, 0, 0], sizes = [1, 1, 16, 1], strides = [1, 1, 1, 1]} : vector<6x4x16x1xf32> to vector<1x1x16x1xf32>
    %685 = vector.shape_cast %684 : vector<1x1x16x1xf32> to vector<16x1xf32>
    %686 = vector.extract_strided_slice %308 {offsets = [3, 2, 0, 0], sizes = [1, 1, 16, 1], strides = [1, 1, 1, 1]} : vector<6x4x16x1xf32> to vector<1x1x16x1xf32>
    %687 = vector.shape_cast %686 : vector<1x1x16x1xf32> to vector<16x1xf32>
    %688 = vector.extract_strided_slice %304 {offsets = [3, 0, 0], sizes = [1, 16, 128], strides = [1, 1, 1]} : vector<6x16x128xf32> to vector<1x16x128xf32>
    %689 = vector.shape_cast %688 : vector<1x16x128xf32> to vector<16x128xf32>
    %690 = vector.broadcast %685 : vector<16x1xf32> to vector<16x128xf32>
    %691 = arith.mulf %690, %689 : vector<16x128xf32>
    %692 = arith.addf %673, %691 : vector<16x128xf32>
    %693 = vector.extract_strided_slice %306 {offsets = [3, 0, 0], sizes = [1, 16, 128], strides = [1, 1, 1]} : vector<6x16x128xf32> to vector<1x16x128xf32>
    %694 = vector.shape_cast %693 : vector<1x16x128xf32> to vector<16x128xf32>
    %695 = vector.broadcast %687 : vector<16x1xf32> to vector<16x128xf32>
    %696 = arith.mulf %695, %694 : vector<16x128xf32>
    %697 = arith.subf %692, %696 : vector<16x128xf32>
    %698 = vector.extract_strided_slice %306 {offsets = [3, 0, 0], sizes = [1, 16, 128], strides = [1, 1, 1]} : vector<6x16x128xf32> to vector<1x16x128xf32>
    %699 = vector.shape_cast %698 : vector<1x16x128xf32> to vector<16x128xf32>
    %700 = vector.broadcast %685 : vector<16x1xf32> to vector<16x128xf32>
    %701 = arith.mulf %700, %699 : vector<16x128xf32>
    %702 = arith.addf %683, %701 : vector<16x128xf32>
    %703 = vector.extract_strided_slice %304 {offsets = [3, 0, 0], sizes = [1, 16, 128], strides = [1, 1, 1]} : vector<6x16x128xf32> to vector<1x16x128xf32>
    %704 = vector.shape_cast %703 : vector<1x16x128xf32> to vector<16x128xf32>
    %705 = vector.broadcast %687 : vector<16x1xf32> to vector<16x128xf32>
    %706 = arith.mulf %705, %704 : vector<16x128xf32>
    %707 = arith.addf %702, %706 : vector<16x128xf32>
    %708 = vector.extract_strided_slice %307 {offsets = [4, 2, 0, 0], sizes = [1, 1, 16, 1], strides = [1, 1, 1, 1]} : vector<6x4x16x1xf32> to vector<1x1x16x1xf32>
    %709 = vector.shape_cast %708 : vector<1x1x16x1xf32> to vector<16x1xf32>
    %710 = vector.extract_strided_slice %308 {offsets = [4, 2, 0, 0], sizes = [1, 1, 16, 1], strides = [1, 1, 1, 1]} : vector<6x4x16x1xf32> to vector<1x1x16x1xf32>
    %711 = vector.shape_cast %710 : vector<1x1x16x1xf32> to vector<16x1xf32>
    %712 = vector.extract_strided_slice %304 {offsets = [4, 0, 0], sizes = [1, 16, 128], strides = [1, 1, 1]} : vector<6x16x128xf32> to vector<1x16x128xf32>
    %713 = vector.shape_cast %712 : vector<1x16x128xf32> to vector<16x128xf32>
    %714 = vector.broadcast %709 : vector<16x1xf32> to vector<16x128xf32>
    %715 = arith.mulf %714, %713 : vector<16x128xf32>
    %716 = arith.addf %697, %715 : vector<16x128xf32>
    %717 = vector.extract_strided_slice %306 {offsets = [4, 0, 0], sizes = [1, 16, 128], strides = [1, 1, 1]} : vector<6x16x128xf32> to vector<1x16x128xf32>
    %718 = vector.shape_cast %717 : vector<1x16x128xf32> to vector<16x128xf32>
    %719 = vector.broadcast %711 : vector<16x1xf32> to vector<16x128xf32>
    %720 = arith.mulf %719, %718 : vector<16x128xf32>
    %721 = arith.subf %716, %720 : vector<16x128xf32>
    %722 = vector.extract_strided_slice %306 {offsets = [4, 0, 0], sizes = [1, 16, 128], strides = [1, 1, 1]} : vector<6x16x128xf32> to vector<1x16x128xf32>
    %723 = vector.shape_cast %722 : vector<1x16x128xf32> to vector<16x128xf32>
    %724 = vector.broadcast %709 : vector<16x1xf32> to vector<16x128xf32>
    %725 = arith.mulf %724, %723 : vector<16x128xf32>
    %726 = arith.addf %707, %725 : vector<16x128xf32>
    %727 = vector.extract_strided_slice %304 {offsets = [4, 0, 0], sizes = [1, 16, 128], strides = [1, 1, 1]} : vector<6x16x128xf32> to vector<1x16x128xf32>
    %728 = vector.shape_cast %727 : vector<1x16x128xf32> to vector<16x128xf32>
    %729 = vector.broadcast %711 : vector<16x1xf32> to vector<16x128xf32>
    %730 = arith.mulf %729, %728 : vector<16x128xf32>
    %731 = arith.addf %726, %730 : vector<16x128xf32>
    %732 = vector.extract_strided_slice %307 {offsets = [5, 2, 0, 0], sizes = [1, 1, 16, 1], strides = [1, 1, 1, 1]} : vector<6x4x16x1xf32> to vector<1x1x16x1xf32>
    %733 = vector.shape_cast %732 : vector<1x1x16x1xf32> to vector<16x1xf32>
    %734 = vector.extract_strided_slice %308 {offsets = [5, 2, 0, 0], sizes = [1, 1, 16, 1], strides = [1, 1, 1, 1]} : vector<6x4x16x1xf32> to vector<1x1x16x1xf32>
    %735 = vector.shape_cast %734 : vector<1x1x16x1xf32> to vector<16x1xf32>
    %736 = vector.extract_strided_slice %304 {offsets = [5, 0, 0], sizes = [1, 16, 128], strides = [1, 1, 1]} : vector<6x16x128xf32> to vector<1x16x128xf32>
    %737 = vector.shape_cast %736 : vector<1x16x128xf32> to vector<16x128xf32>
    %738 = vector.broadcast %733 : vector<16x1xf32> to vector<16x128xf32>
    %739 = arith.mulf %738, %737 : vector<16x128xf32>
    %740 = arith.addf %721, %739 : vector<16x128xf32>
    %741 = vector.extract_strided_slice %306 {offsets = [5, 0, 0], sizes = [1, 16, 128], strides = [1, 1, 1]} : vector<6x16x128xf32> to vector<1x16x128xf32>
    %742 = vector.shape_cast %741 : vector<1x16x128xf32> to vector<16x128xf32>
    %743 = vector.broadcast %735 : vector<16x1xf32> to vector<16x128xf32>
    %744 = arith.mulf %743, %742 : vector<16x128xf32>
    %745 = arith.subf %740, %744 : vector<16x128xf32>
    %746 = vector.extract_strided_slice %306 {offsets = [5, 0, 0], sizes = [1, 16, 128], strides = [1, 1, 1]} : vector<6x16x128xf32> to vector<1x16x128xf32>
    %747 = vector.shape_cast %746 : vector<1x16x128xf32> to vector<16x128xf32>
    %748 = vector.broadcast %733 : vector<16x1xf32> to vector<16x128xf32>
    %749 = arith.mulf %748, %747 : vector<16x128xf32>
    %750 = arith.addf %731, %749 : vector<16x128xf32>
    %751 = vector.extract_strided_slice %304 {offsets = [5, 0, 0], sizes = [1, 16, 128], strides = [1, 1, 1]} : vector<6x16x128xf32> to vector<1x16x128xf32>
    %752 = vector.shape_cast %751 : vector<1x16x128xf32> to vector<16x128xf32>
    %753 = vector.broadcast %735 : vector<16x1xf32> to vector<16x128xf32>
    %754 = arith.mulf %753, %752 : vector<16x128xf32>
    %755 = arith.addf %750, %754 : vector<16x128xf32>
    %756 = arith.mulf %745, %745 : vector<16x128xf32>
    %757 = arith.mulf %755, %755 : vector<16x128xf32>
    %758 = arith.addf %756, %757 : vector<16x128xf32>
    %759 = arith.addf %609, %758 : vector<16x128xf32>
    %cst_130 = arith.constant 0.000000e+00 : f32
    %760 = vector.broadcast %cst_130 : f32 to vector<16x128xf32>
    %cst_131 = arith.constant 0.000000e+00 : f32
    %761 = vector.broadcast %cst_131 : f32 to vector<16x128xf32>
    %762 = vector.extract_strided_slice %307 {offsets = [0, 3, 0, 0], sizes = [1, 1, 16, 1], strides = [1, 1, 1, 1]} : vector<6x4x16x1xf32> to vector<1x1x16x1xf32>
    %763 = vector.shape_cast %762 : vector<1x1x16x1xf32> to vector<16x1xf32>
    %764 = vector.extract_strided_slice %308 {offsets = [0, 3, 0, 0], sizes = [1, 1, 16, 1], strides = [1, 1, 1, 1]} : vector<6x4x16x1xf32> to vector<1x1x16x1xf32>
    %765 = vector.shape_cast %764 : vector<1x1x16x1xf32> to vector<16x1xf32>
    %766 = vector.extract_strided_slice %304 {offsets = [0, 0, 0], sizes = [1, 16, 128], strides = [1, 1, 1]} : vector<6x16x128xf32> to vector<1x16x128xf32>
    %767 = vector.shape_cast %766 : vector<1x16x128xf32> to vector<16x128xf32>
    %768 = vector.broadcast %763 : vector<16x1xf32> to vector<16x128xf32>
    %769 = arith.mulf %768, %767 : vector<16x128xf32>
    %770 = arith.addf %760, %769 : vector<16x128xf32>
    %771 = vector.extract_strided_slice %306 {offsets = [0, 0, 0], sizes = [1, 16, 128], strides = [1, 1, 1]} : vector<6x16x128xf32> to vector<1x16x128xf32>
    %772 = vector.shape_cast %771 : vector<1x16x128xf32> to vector<16x128xf32>
    %773 = vector.broadcast %765 : vector<16x1xf32> to vector<16x128xf32>
    %774 = arith.mulf %773, %772 : vector<16x128xf32>
    %775 = arith.subf %770, %774 : vector<16x128xf32>
    %776 = vector.extract_strided_slice %306 {offsets = [0, 0, 0], sizes = [1, 16, 128], strides = [1, 1, 1]} : vector<6x16x128xf32> to vector<1x16x128xf32>
    %777 = vector.shape_cast %776 : vector<1x16x128xf32> to vector<16x128xf32>
    %778 = vector.broadcast %763 : vector<16x1xf32> to vector<16x128xf32>
    %779 = arith.mulf %778, %777 : vector<16x128xf32>
    %780 = arith.addf %761, %779 : vector<16x128xf32>
    %781 = vector.extract_strided_slice %304 {offsets = [0, 0, 0], sizes = [1, 16, 128], strides = [1, 1, 1]} : vector<6x16x128xf32> to vector<1x16x128xf32>
    %782 = vector.shape_cast %781 : vector<1x16x128xf32> to vector<16x128xf32>
    %783 = vector.broadcast %765 : vector<16x1xf32> to vector<16x128xf32>
    %784 = arith.mulf %783, %782 : vector<16x128xf32>
    %785 = arith.addf %780, %784 : vector<16x128xf32>
    %786 = vector.extract_strided_slice %307 {offsets = [1, 3, 0, 0], sizes = [1, 1, 16, 1], strides = [1, 1, 1, 1]} : vector<6x4x16x1xf32> to vector<1x1x16x1xf32>
    %787 = vector.shape_cast %786 : vector<1x1x16x1xf32> to vector<16x1xf32>
    %788 = vector.extract_strided_slice %308 {offsets = [1, 3, 0, 0], sizes = [1, 1, 16, 1], strides = [1, 1, 1, 1]} : vector<6x4x16x1xf32> to vector<1x1x16x1xf32>
    %789 = vector.shape_cast %788 : vector<1x1x16x1xf32> to vector<16x1xf32>
    %790 = vector.extract_strided_slice %304 {offsets = [1, 0, 0], sizes = [1, 16, 128], strides = [1, 1, 1]} : vector<6x16x128xf32> to vector<1x16x128xf32>
    %791 = vector.shape_cast %790 : vector<1x16x128xf32> to vector<16x128xf32>
    %792 = vector.broadcast %787 : vector<16x1xf32> to vector<16x128xf32>
    %793 = arith.mulf %792, %791 : vector<16x128xf32>
    %794 = arith.addf %775, %793 : vector<16x128xf32>
    %795 = vector.extract_strided_slice %306 {offsets = [1, 0, 0], sizes = [1, 16, 128], strides = [1, 1, 1]} : vector<6x16x128xf32> to vector<1x16x128xf32>
    %796 = vector.shape_cast %795 : vector<1x16x128xf32> to vector<16x128xf32>
    %797 = vector.broadcast %789 : vector<16x1xf32> to vector<16x128xf32>
    %798 = arith.mulf %797, %796 : vector<16x128xf32>
    %799 = arith.subf %794, %798 : vector<16x128xf32>
    %800 = vector.extract_strided_slice %306 {offsets = [1, 0, 0], sizes = [1, 16, 128], strides = [1, 1, 1]} : vector<6x16x128xf32> to vector<1x16x128xf32>
    %801 = vector.shape_cast %800 : vector<1x16x128xf32> to vector<16x128xf32>
    %802 = vector.broadcast %787 : vector<16x1xf32> to vector<16x128xf32>
    %803 = arith.mulf %802, %801 : vector<16x128xf32>
    %804 = arith.addf %785, %803 : vector<16x128xf32>
    %805 = vector.extract_strided_slice %304 {offsets = [1, 0, 0], sizes = [1, 16, 128], strides = [1, 1, 1]} : vector<6x16x128xf32> to vector<1x16x128xf32>
    %806 = vector.shape_cast %805 : vector<1x16x128xf32> to vector<16x128xf32>
    %807 = vector.broadcast %789 : vector<16x1xf32> to vector<16x128xf32>
    %808 = arith.mulf %807, %806 : vector<16x128xf32>
    %809 = arith.addf %804, %808 : vector<16x128xf32>
    %810 = vector.extract_strided_slice %307 {offsets = [2, 3, 0, 0], sizes = [1, 1, 16, 1], strides = [1, 1, 1, 1]} : vector<6x4x16x1xf32> to vector<1x1x16x1xf32>
    %811 = vector.shape_cast %810 : vector<1x1x16x1xf32> to vector<16x1xf32>
    %812 = vector.extract_strided_slice %308 {offsets = [2, 3, 0, 0], sizes = [1, 1, 16, 1], strides = [1, 1, 1, 1]} : vector<6x4x16x1xf32> to vector<1x1x16x1xf32>
    %813 = vector.shape_cast %812 : vector<1x1x16x1xf32> to vector<16x1xf32>
    %814 = vector.extract_strided_slice %304 {offsets = [2, 0, 0], sizes = [1, 16, 128], strides = [1, 1, 1]} : vector<6x16x128xf32> to vector<1x16x128xf32>
    %815 = vector.shape_cast %814 : vector<1x16x128xf32> to vector<16x128xf32>
    %816 = vector.broadcast %811 : vector<16x1xf32> to vector<16x128xf32>
    %817 = arith.mulf %816, %815 : vector<16x128xf32>
    %818 = arith.addf %799, %817 : vector<16x128xf32>
    %819 = vector.extract_strided_slice %306 {offsets = [2, 0, 0], sizes = [1, 16, 128], strides = [1, 1, 1]} : vector<6x16x128xf32> to vector<1x16x128xf32>
    %820 = vector.shape_cast %819 : vector<1x16x128xf32> to vector<16x128xf32>
    %821 = vector.broadcast %813 : vector<16x1xf32> to vector<16x128xf32>
    %822 = arith.mulf %821, %820 : vector<16x128xf32>
    %823 = arith.subf %818, %822 : vector<16x128xf32>
    %824 = vector.extract_strided_slice %306 {offsets = [2, 0, 0], sizes = [1, 16, 128], strides = [1, 1, 1]} : vector<6x16x128xf32> to vector<1x16x128xf32>
    %825 = vector.shape_cast %824 : vector<1x16x128xf32> to vector<16x128xf32>
    %826 = vector.broadcast %811 : vector<16x1xf32> to vector<16x128xf32>
    %827 = arith.mulf %826, %825 : vector<16x128xf32>
    %828 = arith.addf %809, %827 : vector<16x128xf32>
    %829 = vector.extract_strided_slice %304 {offsets = [2, 0, 0], sizes = [1, 16, 128], strides = [1, 1, 1]} : vector<6x16x128xf32> to vector<1x16x128xf32>
    %830 = vector.shape_cast %829 : vector<1x16x128xf32> to vector<16x128xf32>
    %831 = vector.broadcast %813 : vector<16x1xf32> to vector<16x128xf32>
    %832 = arith.mulf %831, %830 : vector<16x128xf32>
    %833 = arith.addf %828, %832 : vector<16x128xf32>
    %834 = vector.extract_strided_slice %307 {offsets = [3, 3, 0, 0], sizes = [1, 1, 16, 1], strides = [1, 1, 1, 1]} : vector<6x4x16x1xf32> to vector<1x1x16x1xf32>
    %835 = vector.shape_cast %834 : vector<1x1x16x1xf32> to vector<16x1xf32>
    %836 = vector.extract_strided_slice %308 {offsets = [3, 3, 0, 0], sizes = [1, 1, 16, 1], strides = [1, 1, 1, 1]} : vector<6x4x16x1xf32> to vector<1x1x16x1xf32>
    %837 = vector.shape_cast %836 : vector<1x1x16x1xf32> to vector<16x1xf32>
    %838 = vector.extract_strided_slice %304 {offsets = [3, 0, 0], sizes = [1, 16, 128], strides = [1, 1, 1]} : vector<6x16x128xf32> to vector<1x16x128xf32>
    %839 = vector.shape_cast %838 : vector<1x16x128xf32> to vector<16x128xf32>
    %840 = vector.broadcast %835 : vector<16x1xf32> to vector<16x128xf32>
    %841 = arith.mulf %840, %839 : vector<16x128xf32>
    %842 = arith.addf %823, %841 : vector<16x128xf32>
    %843 = vector.extract_strided_slice %306 {offsets = [3, 0, 0], sizes = [1, 16, 128], strides = [1, 1, 1]} : vector<6x16x128xf32> to vector<1x16x128xf32>
    %844 = vector.shape_cast %843 : vector<1x16x128xf32> to vector<16x128xf32>
    %845 = vector.broadcast %837 : vector<16x1xf32> to vector<16x128xf32>
    %846 = arith.mulf %845, %844 : vector<16x128xf32>
    %847 = arith.subf %842, %846 : vector<16x128xf32>
    %848 = vector.extract_strided_slice %306 {offsets = [3, 0, 0], sizes = [1, 16, 128], strides = [1, 1, 1]} : vector<6x16x128xf32> to vector<1x16x128xf32>
    %849 = vector.shape_cast %848 : vector<1x16x128xf32> to vector<16x128xf32>
    %850 = vector.broadcast %835 : vector<16x1xf32> to vector<16x128xf32>
    %851 = arith.mulf %850, %849 : vector<16x128xf32>
    %852 = arith.addf %833, %851 : vector<16x128xf32>
    %853 = vector.extract_strided_slice %304 {offsets = [3, 0, 0], sizes = [1, 16, 128], strides = [1, 1, 1]} : vector<6x16x128xf32> to vector<1x16x128xf32>
    %854 = vector.shape_cast %853 : vector<1x16x128xf32> to vector<16x128xf32>
    %855 = vector.broadcast %837 : vector<16x1xf32> to vector<16x128xf32>
    %856 = arith.mulf %855, %854 : vector<16x128xf32>
    %857 = arith.addf %852, %856 : vector<16x128xf32>
    %858 = vector.extract_strided_slice %307 {offsets = [4, 3, 0, 0], sizes = [1, 1, 16, 1], strides = [1, 1, 1, 1]} : vector<6x4x16x1xf32> to vector<1x1x16x1xf32>
    %859 = vector.shape_cast %858 : vector<1x1x16x1xf32> to vector<16x1xf32>
    %860 = vector.extract_strided_slice %308 {offsets = [4, 3, 0, 0], sizes = [1, 1, 16, 1], strides = [1, 1, 1, 1]} : vector<6x4x16x1xf32> to vector<1x1x16x1xf32>
    %861 = vector.shape_cast %860 : vector<1x1x16x1xf32> to vector<16x1xf32>
    %862 = vector.extract_strided_slice %304 {offsets = [4, 0, 0], sizes = [1, 16, 128], strides = [1, 1, 1]} : vector<6x16x128xf32> to vector<1x16x128xf32>
    %863 = vector.shape_cast %862 : vector<1x16x128xf32> to vector<16x128xf32>
    %864 = vector.broadcast %859 : vector<16x1xf32> to vector<16x128xf32>
    %865 = arith.mulf %864, %863 : vector<16x128xf32>
    %866 = arith.addf %847, %865 : vector<16x128xf32>
    %867 = vector.extract_strided_slice %306 {offsets = [4, 0, 0], sizes = [1, 16, 128], strides = [1, 1, 1]} : vector<6x16x128xf32> to vector<1x16x128xf32>
    %868 = vector.shape_cast %867 : vector<1x16x128xf32> to vector<16x128xf32>
    %869 = vector.broadcast %861 : vector<16x1xf32> to vector<16x128xf32>
    %870 = arith.mulf %869, %868 : vector<16x128xf32>
    %871 = arith.subf %866, %870 : vector<16x128xf32>
    %872 = vector.extract_strided_slice %306 {offsets = [4, 0, 0], sizes = [1, 16, 128], strides = [1, 1, 1]} : vector<6x16x128xf32> to vector<1x16x128xf32>
    %873 = vector.shape_cast %872 : vector<1x16x128xf32> to vector<16x128xf32>
    %874 = vector.broadcast %859 : vector<16x1xf32> to vector<16x128xf32>
    %875 = arith.mulf %874, %873 : vector<16x128xf32>
    %876 = arith.addf %857, %875 : vector<16x128xf32>
    %877 = vector.extract_strided_slice %304 {offsets = [4, 0, 0], sizes = [1, 16, 128], strides = [1, 1, 1]} : vector<6x16x128xf32> to vector<1x16x128xf32>
    %878 = vector.shape_cast %877 : vector<1x16x128xf32> to vector<16x128xf32>
    %879 = vector.broadcast %861 : vector<16x1xf32> to vector<16x128xf32>
    %880 = arith.mulf %879, %878 : vector<16x128xf32>
    %881 = arith.addf %876, %880 : vector<16x128xf32>
    %882 = vector.extract_strided_slice %307 {offsets = [5, 3, 0, 0], sizes = [1, 1, 16, 1], strides = [1, 1, 1, 1]} : vector<6x4x16x1xf32> to vector<1x1x16x1xf32>
    %883 = vector.shape_cast %882 : vector<1x1x16x1xf32> to vector<16x1xf32>
    %884 = vector.extract_strided_slice %308 {offsets = [5, 3, 0, 0], sizes = [1, 1, 16, 1], strides = [1, 1, 1, 1]} : vector<6x4x16x1xf32> to vector<1x1x16x1xf32>
    %885 = vector.shape_cast %884 : vector<1x1x16x1xf32> to vector<16x1xf32>
    %886 = vector.extract_strided_slice %304 {offsets = [5, 0, 0], sizes = [1, 16, 128], strides = [1, 1, 1]} : vector<6x16x128xf32> to vector<1x16x128xf32>
    %887 = vector.shape_cast %886 : vector<1x16x128xf32> to vector<16x128xf32>
    %888 = vector.broadcast %883 : vector<16x1xf32> to vector<16x128xf32>
    %889 = arith.mulf %888, %887 : vector<16x128xf32>
    %890 = arith.addf %871, %889 : vector<16x128xf32>
    %891 = vector.extract_strided_slice %306 {offsets = [5, 0, 0], sizes = [1, 16, 128], strides = [1, 1, 1]} : vector<6x16x128xf32> to vector<1x16x128xf32>
    %892 = vector.shape_cast %891 : vector<1x16x128xf32> to vector<16x128xf32>
    %893 = vector.broadcast %885 : vector<16x1xf32> to vector<16x128xf32>
    %894 = arith.mulf %893, %892 : vector<16x128xf32>
    %895 = arith.subf %890, %894 : vector<16x128xf32>
    %896 = vector.extract_strided_slice %306 {offsets = [5, 0, 0], sizes = [1, 16, 128], strides = [1, 1, 1]} : vector<6x16x128xf32> to vector<1x16x128xf32>
    %897 = vector.shape_cast %896 : vector<1x16x128xf32> to vector<16x128xf32>
    %898 = vector.broadcast %883 : vector<16x1xf32> to vector<16x128xf32>
    %899 = arith.mulf %898, %897 : vector<16x128xf32>
    %900 = arith.addf %881, %899 : vector<16x128xf32>
    %901 = vector.extract_strided_slice %304 {offsets = [5, 0, 0], sizes = [1, 16, 128], strides = [1, 1, 1]} : vector<6x16x128xf32> to vector<1x16x128xf32>
    %902 = vector.shape_cast %901 : vector<1x16x128xf32> to vector<16x128xf32>
    %903 = vector.broadcast %885 : vector<16x1xf32> to vector<16x128xf32>
    %904 = arith.mulf %903, %902 : vector<16x128xf32>
    %905 = arith.addf %900, %904 : vector<16x128xf32>
    %906 = arith.mulf %895, %895 : vector<16x128xf32>
    %907 = arith.mulf %905, %905 : vector<16x128xf32>
    %908 = arith.addf %906, %907 : vector<16x128xf32>
    %909 = arith.addf %759, %908 : vector<16x128xf32>
    %cst_132 = arith.constant 9.99999993E-9 : f32
    %910 = vector.broadcast %cst_132 : f32 to vector<16x128xf32>
    %911 = arith.addf %909, %910 : vector<16x128xf32>
    %912 = tpu.reciprocal %911 {approx = true} : vector<16x128xf32> -> vector<16x128xf32>
    %c0_133 = arith.constant 0 : index
    %c7 = arith.constant 7 : index
    %c0_134 = arith.constant 0 : index
    %913 = vector.load %arg11[%c0_133, %c7, %c0_134] : memref<16x17x16xf32, #tpu.memory_space<vmem>>, vector<16x1x16xf32>
    %914 = vector.shape_cast %913 : vector<16x1x16xf32> to vector<16x16xf32>
    %915 = arith.truncf %914 : vector<16x16xf32> to vector<16x16xbf16>
    %916 = arith.mulf %458, %912 : vector<16x128xf32>
    %917 = arith.truncf %916 : vector<16x128xf32> to vector<16x128xbf16>
    %cst_135 = arith.constant dense<0.000000e+00> : vector<16x128xf32>
    %918 = tpu.matmul %915, %917, %cst_135 {dimension_numbers = #tpu.dot_dimension_numbers<[1], [0], [0], [1], [0, 0, 1, 1], [], []>} : vector<16x16xbf16>, vector<16x128xbf16>, vector<16x128xf32> -> vector<16x128xf32>
    %919 = arith.addf %302, %918 : vector<16x128xf32>
    %c0_136 = arith.constant 0 : index
    %c8 = arith.constant 8 : index
    %c0_137 = arith.constant 0 : index
    %920 = vector.load %arg11[%c0_136, %c8, %c0_137] : memref<16x17x16xf32, #tpu.memory_space<vmem>>, vector<16x1x16xf32>
    %921 = vector.shape_cast %920 : vector<16x1x16xf32> to vector<16x16xf32>
    %922 = arith.truncf %921 : vector<16x16xf32> to vector<16x16xbf16>
    %923 = arith.mulf %608, %912 : vector<16x128xf32>
    %924 = arith.truncf %923 : vector<16x128xf32> to vector<16x128xbf16>
    %cst_138 = arith.constant dense<0.000000e+00> : vector<16x128xf32>
    %925 = tpu.matmul %922, %924, %cst_138 {dimension_numbers = #tpu.dot_dimension_numbers<[1], [0], [0], [1], [0, 0, 1, 1], [], []>} : vector<16x16xbf16>, vector<16x128xbf16>, vector<16x128xf32> -> vector<16x128xf32>
    %926 = arith.addf %919, %925 : vector<16x128xf32>
    %c0_139 = arith.constant 0 : index
    %c9 = arith.constant 9 : index
    %c0_140 = arith.constant 0 : index
    %927 = vector.load %arg11[%c0_139, %c9, %c0_140] : memref<16x17x16xf32, #tpu.memory_space<vmem>>, vector<16x1x16xf32>
    %928 = vector.shape_cast %927 : vector<16x1x16xf32> to vector<16x16xf32>
    %929 = arith.truncf %928 : vector<16x16xf32> to vector<16x16xbf16>
    %930 = arith.mulf %758, %912 : vector<16x128xf32>
    %931 = arith.truncf %930 : vector<16x128xf32> to vector<16x128xbf16>
    %cst_141 = arith.constant dense<0.000000e+00> : vector<16x128xf32>
    %932 = tpu.matmul %929, %931, %cst_141 {dimension_numbers = #tpu.dot_dimension_numbers<[1], [0], [0], [1], [0, 0, 1, 1], [], []>} : vector<16x16xbf16>, vector<16x128xbf16>, vector<16x128xf32> -> vector<16x128xf32>
    %933 = arith.addf %926, %932 : vector<16x128xf32>
    %c0_142 = arith.constant 0 : index
    %c10 = arith.constant 10 : index
    %c0_143 = arith.constant 0 : index
    %934 = vector.load %arg11[%c0_142, %c10, %c0_143] : memref<16x17x16xf32, #tpu.memory_space<vmem>>, vector<16x1x16xf32>
    %935 = vector.shape_cast %934 : vector<16x1x16xf32> to vector<16x16xf32>
    %936 = arith.truncf %935 : vector<16x16xf32> to vector<16x16xbf16>
    %937 = arith.mulf %908, %912 : vector<16x128xf32>
    %938 = arith.truncf %937 : vector<16x128xf32> to vector<16x128xbf16>
    %cst_144 = arith.constant dense<0.000000e+00> : vector<16x128xf32>
    %939 = tpu.matmul %936, %938, %cst_144 {dimension_numbers = #tpu.dot_dimension_numbers<[1], [0], [0], [1], [0, 0, 1, 1], [], []>} : vector<16x16xbf16>, vector<16x128xbf16>, vector<16x128xf32> -> vector<16x128xf32>
    %940 = arith.addf %933, %939 : vector<16x128xf32>
    %941 = arith.negf %940 : vector<16x128xf32>
    %942 = math.exp %941 : vector<16x128xf32>
    %cst_145 = arith.constant 1.000000e+00 : f32
    %943 = vector.broadcast %cst_145 : f32 to vector<16x128xf32>
    %944 = arith.addf %943, %942 : vector<16x128xf32>
    %945 = arith.divf %943, %944 : vector<16x128xf32>
    %946 = arith.mulf %5, %945 : vector<16x128xf32>
    %c0_146 = arith.constant 0 : index
    %c0_147 = arith.constant 0 : index
    %947 = vector.load %arg12[%c0_146, %c0_147] : memref<8x16xf32, #tpu.memory_space<vmem>>, vector<8x16xf32>
    %948 = arith.truncf %947 : vector<8x16xf32> to vector<8x16xbf16>
    %949 = arith.truncf %946 : vector<16x128xf32> to vector<16x128xbf16>
    %cst_148 = arith.constant dense<0.000000e+00> : vector<8x128xf32>
    %950 = tpu.matmul %948, %949, %cst_148 {dimension_numbers = #tpu.dot_dimension_numbers<[1], [0], [0], [1], [0, 0, 1, 1], [], []>} : vector<8x16xbf16>, vector<16x128xbf16>, vector<8x128xf32> -> vector<8x128xf32>
    %c0_149 = arith.constant 0 : index
    %c0_150 = arith.constant 0 : index
    %c0_151 = arith.constant 0 : index
    %951 = vector.load %arg13[%c0_149, %c0_150, %c0_151] : memref<1x8x128xf32, #tpu.memory_space<vmem>>, vector<1x8x128xf32>
    %952 = vector.shape_cast %951 : vector<1x8x128xf32> to vector<8x128xf32>
    %953 = vector.shape_cast %950 : vector<8x128xf32> to vector<1x8x128xf32>
    tpu.vector_store %arg13[%c0_149, %c0_150, %c0_151], %953 {strides = array<i32>} : memref<1x8x128xf32, #tpu.memory_space<vmem>>, vector<1x8x128xf32>,
    return
  }
  func.func @transform_0(%arg0: i32, %arg1: i32) -> (i32, i32, i32) {
    %c0_i32 = arith.constant 0 : i32
    %c0_i32_0 = arith.constant 0 : i32
    return %arg0, %c0_i32, %arg1 : i32, i32, i32
  }
  func.func @transform_1(%arg0: i32, %arg1: i32) -> (i32, i32, i32, i32) {
    %c0_i32 = arith.constant 0 : i32
    %c0_i32_0 = arith.constant 0 : i32
    %c0_i32_1 = arith.constant 0 : i32
    return %arg0, %c0_i32, %c0_i32_0, %arg1 : i32, i32, i32, i32
  }
  func.func @transform_2(%arg0: i32, %arg1: i32) -> (i32, i32, i32, i32) {
    %c0_i32 = arith.constant 0 : i32
    %c0_i32_0 = arith.constant 0 : i32
    %c0_i32_1 = arith.constant 0 : i32
    return %arg0, %c0_i32, %c0_i32_0, %arg1 : i32, i32, i32, i32
  }
  func.func @transform_3(%arg0: i32, %arg1: i32) -> (i32, i32, i32, i32) {
    %c0_i32 = arith.constant 0 : i32
    %c0_i32_0 = arith.constant 0 : i32
    %c0_i32_1 = arith.constant 0 : i32
    return %arg0, %c0_i32, %c0_i32_0, %arg1 : i32, i32, i32, i32
  }
  func.func @transform_4(%arg0: i32, %arg1: i32) -> (i32, i32, i32, i32) {
    %c0_i32 = arith.constant 0 : i32
    %c0_i32_0 = arith.constant 0 : i32
    %c0_i32_1 = arith.constant 0 : i32
    %c0_i32_2 = arith.constant 0 : i32
    return %arg0, %c0_i32, %c0_i32_0, %c0_i32_1 : i32, i32, i32, i32
  }
  func.func @transform_5(%arg0: i32, %arg1: i32) -> (i32, i32) {
    %c0_i32 = arith.constant 0 : i32
    %c0_i32_0 = arith.constant 0 : i32
    %c0_i32_1 = arith.constant 0 : i32
    return %c0_i32, %c0_i32_0 : i32, i32
  }
  func.func @transform_6(%arg0: i32, %arg1: i32) -> (i32, i32, i32, i32) {
    %c0_i32 = arith.constant 0 : i32
    %c0_i32_0 = arith.constant 0 : i32
    %c0_i32_1 = arith.constant 0 : i32
    %c0_i32_2 = arith.constant 0 : i32
    %c0_i32_3 = arith.constant 0 : i32
    return %c0_i32, %c0_i32_0, %c0_i32_1, %c0_i32_2 : i32, i32, i32, i32
  }
  func.func @transform_7(%arg0: i32, %arg1: i32) -> (i32, i32, i32, i32) {
    %c0_i32 = arith.constant 0 : i32
    %c0_i32_0 = arith.constant 0 : i32
    %c0_i32_1 = arith.constant 0 : i32
    %c0_i32_2 = arith.constant 0 : i32
    %c0_i32_3 = arith.constant 0 : i32
    return %c0_i32, %c0_i32_0, %c0_i32_1, %c0_i32_2 : i32, i32, i32, i32
  }
  func.func @transform_8(%arg0: i32, %arg1: i32) -> (i32, i32) {
    %c0_i32 = arith.constant 0 : i32
    %c0_i32_0 = arith.constant 0 : i32
    %c0_i32_1 = arith.constant 0 : i32
    return %c0_i32, %c0_i32_0 : i32, i32
  }
  func.func @transform_9(%arg0: i32, %arg1: i32) -> (i32, i32, i32) {
    %c0_i32 = arith.constant 0 : i32
    %c0_i32_0 = arith.constant 0 : i32
    %c0_i32_1 = arith.constant 0 : i32
    %c0_i32_2 = arith.constant 0 : i32
    return %c0_i32, %c0_i32_0, %c0_i32_1 : i32, i32, i32
  }
  func.func @transform_10(%arg0: i32, %arg1: i32) -> (i32, i32) {
    %c0_i32 = arith.constant 0 : i32
    %c0_i32_0 = arith.constant 0 : i32
    %c0_i32_1 = arith.constant 0 : i32
    return %c0_i32, %c0_i32_0 : i32, i32
  }
  func.func @transform_11(%arg0: i32, %arg1: i32) -> (i32, i32, i32) {
    %c0_i32 = arith.constant 0 : i32
    %c0_i32_0 = arith.constant 0 : i32
    return %arg0, %c0_i32, %arg1 : i32, i32, i32
  }
}

</mosaic_0001>

<bundles_post_ra>
// kernel: tpu_custom_call.1
= control target key start
LH: loop header
LB: loop body
LE: loop exit
PB: predicated region body
PF: predicated region fallthrough
CT: control target
= control target key end

     0   :  { %s10623_s0 = inlined_call_operand.vmem [shape: f32[2,8,128], index: 0, kind: input, shape index: {}]   ;;  %s10624_s1 = inlined_call_operand.vmem [shape: f32[2,6,16,128], index: 1, kind: input, shape index: {}]   ;;  %s10625_s2 = inlined_call_operand.vmem [shape: f32[2,6,16,128], index: 2, kind: input, shape index: {}]   ;;  %s10626_s3 = inlined_call_operand.vmem [shape: f32[2,6,16,128], index: 3, kind: input, shape index: {}]   ;;  %s10627_s4 = inlined_call_operand.vmem [shape: f32[2,6,16,1], index: 4, kind: input, shape index: {}]   ;;  %s10628_s5 = inlined_call_operand.vmem [shape: f32[16,1], index: 5, kind: input, shape index: {}]   ;;  %s10629_s6 = inlined_call_operand.vmem [shape: f32[6,4,16,1], index: 6, kind: input, shape index: {}]   ;;  %s10630_s7 = inlined_call_operand.vmem [shape: f32[6,4,16,1], index: 7, kind: input, shape index: {}]   ;;  %s10631_s8 = inlined_call_operand.vmem [shape: f32[16,8], index: 8, kind: input, shape index: {}]   ;;  %s10632_s9 = inlined_call_operand.vmem [shape: f32[16,17,16], index: 9, kind: input, shape index: {}]   ;;  %s10633_s10 = inlined_call_operand.vmem [shape: f32[8,16], index: 10, kind: input, shape index: {}]   ;;  %s10634_s11 = inlined_call_operand.hbm [shape: f32[2,8,128], index: 11, kind: output, shape index: {}]  }
   0x1   :  { %10714 = sst [smem:[#allocation48_spill]] %s10627_s4 }
   0x2   :  { %10715 = sst [smem:[#allocation49_spill]] %s10628_s5 }
   0x3   :  { %16 = vsyncpa [#allocation3], 0 }
   0x4   :  { %18 = vsyncpa [#allocation3 + $0x1], 0  ;;  %s6236_s17 = smov 0   ;;  %s6238_s18 = smov 0  }
   0x5   :  { %s6240_s19 = smov 0   ;;  %s6242_s20 = smov 0  }
   0x6   :  { %s6244_s21 = smov 0   ;;  %s6246_s22 = smov 0  }
   0x7 LB: > { %10716 = sst [smem:[#allocation5_spill]] %s6162_s21  ;;  %s5875_s23 = sadd.s32 4294967295, %s6166_s22   ;;  %s6166_s22 = sphi %s6246_s22, %s24_s22   ;;  %s6162_s21 = sphi %s6244_s21, %s10994_s21   ;;  %s6158_s20 = sphi %s6242_s20, %s10993_s20   ;;  %s6154_s19 = sphi %s6240_s19, %s10997_s19   ;;  %s6150_s18 = sphi %s6238_s18, %s10996_s18   ;;  %s6146_s17 = sphi %s6236_s17, %s10995_s17  }
   0x8   : > { %s5876_s24 = sadd.s32 4294967294, %s6166_s22   ;;  %s36_s25 = sadd.s32 1, %s6162_s21 }
   0x9   : > { %s309_s26 = sadd.s32 1, %s6154_s19  ;;  %p38_p0 = scmp.ge.s32.totalorder %s36_s25, 2 }
   0xa   : > { %p319_p1 = scmp.ne.s32.totalorder %s6154_s19, %s6150_s18  ;;  %p320_p2 = scmp.eq.s32.totalorder %s5875_s23, 1 }
   0xb   : > { %p325_p3 = scmp.ne.s32.totalorder %s6150_s18, %s6146_s17  ;;  %s10999_s25 = smov (%p38_p0, %s36_s25), 0 }
   0xc   : > { %10717 = sst [smem:[#allocation6_spill]] %s10999_s25  ;;  %p6276_p4 = por %p320_p2, %p319_p1 }
   0xd   : > { %p326_p5 = scmp.eq.s32.totalorder %s5876_s24, 1  ;;  %s304_s28 = ssub.s32 %s6162_s21, %s10999_s25 }
   0xe   : > { %p5879_p6 = scmp.ge.s32.totalorder %s6166_s22, 1  ;;  %p307_p7 = scmp.eq.s32.totalorder %s304_s28, 0 }
   0xf   : > { %p6283_p8 = por %p326_p5, %p325_p3  ;;  %p413_p9 = scmp.lt.s32.totalorder %s6166_s22, 3 }
  0x10   : > { %s6289_s30 = scalar_select %p307_p7, %s6154_s19, %s309_s26  }
  0x11   : > { %p414_p10 = pnand %p5879_p6, %p413_p9 }
  0x12   : > { %10720 = sst [smem:[#allocation7_spill]] %s6289_s30 }
  0x13   : > { %417 = sbr.rel (%p414_p10) target bundleno = 1351 (0x547), region = 64 }
  0x18   : > { %s10721_s5 = sld [smem:[#allocation49_spill]]  ;;  %p484_p11 = scmp.lt.s32.totalorder %s6158_s20, 1  ;;  %v10637_v1 = vmov 0   ;;  %v4205_v14 = vld [vmem:[%s10629_s6] sm:$0xff]  ;;  %v4206_v16 = vld [vmem:[%s10629_s6 + $0x8] sm:$0xff]  ;;  %vm530_vm0 = vcmask 1043456  }
  0x19   : > { %6035 = vset.pattern.permute.xlu0 %v10637_v1  ;;  %6037 = vset.pattern.permute.xlu2 %v10637_v1  ;;  %s10722_s4 = sld [smem:[#allocation48_spill]]  ;;  %v4254_v17 = vld [vmem:[%s10630_s7 + $0x8] sm:$0xff]  ;;  %v4253_v18 = vld [vmem:[%s10630_s7] sm:$0xff]  ;;  %vm526_vm1 = vcmask 64512   ;;  %s6108_s30 = scalar_lea.hbm %s10634_s11, 16 }
  0x1a   : > { %6036 = vset.pattern.permute.xlu1 %v10637_v1  ;;  %s6299_s14 = scalar_select %p484_p11, %s6158_s20, 1  ;;  %v4213_v19 = vld [vmem:[%s10629_s6 + $0x40] sm:$0xff]  ;;  %v4214_v21 = vld [vmem:[%s10629_s6 + $0x48] sm:$0xff] }
  0x1b   : > { %v4261_v20 = vld [vmem:[%s10630_s7 + $0x40] sm:$0xff]  ;;  %v4262_v24 = vld [vmem:[%s10630_s7 + $0x48] sm:$0xff] }
  0x1c   : > { %s6302_s15 = smul.u32 96, %s6299_s14  ;;  %v521_v26 = vld [vmem:[%s10631_s8] sm:$0xff]  ;;  %v522_v27 = vld [vmem:[%s10631_s8 + $0x8] sm:$0xff] }
  0x1d   : > { %v523_v28 = vpack.c.bf16 %v522_v27, %v521_v26  ;;  %v4222_v29 = vld [vmem:[%s10629_s6 + $0x88] sm:$0xff]  ;;  %v4221_v30 = vld [vmem:[%s10629_s6 + $0x80] sm:$0xff] }
  0x1e   : > { %v593_v0 = vld [vmem:[%s10721_s5] sm:$0xff]  ;;  %v594_v4 = vld [vmem:[%s10721_s5 + $0x8] sm:$0xff]  ;;  %s6367_s12 = scalar_lea.vmem %s10626_s3, %s6302_s15  ;;  %s6495_s28 = scalar_lea.vmem %s10624_s1, %s6302_s15 }
  0x1f   : > { %623 = vperm.xlu0 %6035, %v593_v0   ;;  %s519_s24 = scalar_lea.vmem %s10722_s4, %s6302_s15  ;;  %v4269_v31 = vld [vmem:[%s10630_s7 + $0x80] sm:$0xff]  ;;  %v4270_v33 = vld [vmem:[%s10630_s7 + $0x88] sm:$0xff]  ;;  %v583_v38 = vld [vmem:[%s6367_s12 + $0x10] sm:$0xff]  ;;  %s6501_s21 = scalar_lea.vmem %s10625_s2, %s6302_s15 }
  0x20   : > { %v597_v2 = vld [vmem:[%s519_s24 + $0x10] sm:$0xff]  ;;  %v595_v3 = vld [vmem:[%s519_s24] sm:$0xff]  ;;  %v598_v5 = vld [vmem:[%s519_s24 + $0x18] sm:$0xff] }
  0x21   : > { %1194 = vperm.xlu2 %6037, %v597_v2   ;;  %647 = vperm.xlu1 %6036, %v595_v3   ;;  %v596_v6 = vld [vmem:[%s519_s24 + $0x8] sm:$0xff]  ;;  %v599_v7 = vld [vmem:[%s519_s24 + $0x20] sm:$0xff]  ;;  %v601_v8 = vld [vmem:[%s519_s24 + $0x30] sm:$0xff] }
  0x22   : > { %v600_v9 = vld [vmem:[%s519_s24 + $0x28] sm:$0xff]  ;;  %v602_v10 = vld [vmem:[%s519_s24 + $0x38] sm:$0xff]  ;;  %v603_v12 = vld [vmem:[%s519_s24 + $0x40] sm:$0xff] }
  0x23   : > { %v604_v11 = vld [vmem:[%s519_s24 + $0x48] sm:$0xff]  ;;  %v605_v13 = vld [vmem:[%s519_s24 + $0x50] sm:$0xff]  ;;  %v606_v15 = vld [vmem:[%s519_s24 + $0x58] sm:$0xff]  ;;  %s5881_s24 = sshll.u32 %s6299_s14, 3  ;;  %s481_s14 = sand.u32 1, %s6150_s18  }
  0x24   : > { %s490_s16 = scalar_lea.vmem %s10623_s0, %s5881_s24  ;;  %v4229_v32 = vld [vmem:[%s10629_s6 + $0xc0] sm:$0xff]  ;;  %v4230_v34 = vld [vmem:[%s10629_s6 + $0xc8] sm:$0xff]  ;;  %v587_v40 = vld [vmem:[%s6367_s12 + $0x30] sm:$0xff]  ;;  %s5968_s24 = sshll.u32 %s6158_s20, 3 }
  0x25   : > { %v524_v22 = vld [vmem:[%s490_s16] sm:$0xff]  ;;  %v4278_v35 = vld [vmem:[%s10630_s7 + $0xc8] sm:$0xff]  ;;  %v591_v42 = vld [vmem:[%s6367_s12 + $0x50] sm:$0xff]  ;;  %s5880_s13 = sshll.u32 %s481_s14, 3  ;;  %s5733_s26 = scalar_lea.hbm %s10634_s11, %s5968_s24 }
  0x26   : > { %v525_v23 = vpack.c.bf16 %v524_v22, %v524_v22  ;;  %v4277_v36 = vld [vmem:[%s10630_s7 + $0xc0] sm:$0xff]  ;;  %v4238_v48 = vld [vmem:[%s10629_s6 + $0x108] sm:$0xff]  ;;  %v584_v51 = vld [vmem:[%s6367_s12 + $0x18] sm:$0xff]  ;;  %s5737_s5 = sshll.u32 %s5733_s26, 4  ;;  %s5738_s5 = int_to_ptr.hbm [resolvable:$true] %s5737_s5 }
  0x27   : > { %628 = vperm.xlu0 %6035, %v594_v4   ;;  %v581_v37 = vld [vmem:[%s6367_s12] sm:$0xff]  ;;  %v4286_v49 = vld [vmem:[%s10630_s7 + $0x108] sm:$0xff]  ;;  %v588_v53 = vld [vmem:[%s6367_s12 + $0x38] sm:$0xff]  ;;  %s6102_s25 = sshra.s32 %s5738_s5, 4  ;;  %s6103_s25 = int_to_ptr.hbm [resolvable:$true] %s6102_s25 }
  0x28   : > { %v532_v25 = vsel %vm530_vm0, %v525_v23, 0  ;;  %v585_v39 = vld [vmem:[%s6367_s12 + $0x20] sm:$0xff]  ;;  %v2090_v43 = vsub.f32 %v581_v37, %v583_v38  ;;  %v6394_v50 = vld [vmem:[%s6367_s12 + $0x8] sm:$0xff]  ;;  %v592_v59 = vld [vmem:[%s6367_s12 + $0x58] sm:$0xff]  ;;  %v607_v61 = vsub.f32 %v581_v37, %v587_v40  ;;  %s6104_s15 = scalar_lea.hbm %s6103_s25, 8  ;;  %p6109_p1 = scmp.lt.s32.totalorder %s6103_s25, %s10634_s11 }
  0x29   : > { %1199 = vperm.xlu2 %6037, %v598_v5   ;;  %652 = vperm.xlu1 %6036, %v596_v6   ;;  %v589_v41 = vld [vmem:[%s6367_s12 + $0x40] sm:$0xff]  ;;  %v2553_v44 = vsub.f32 %v585_v39, %v587_v40  ;;  %v586_v52 = vld [vmem:[%s6367_s12 + $0x28] sm:$0xff]  ;;  %v6400_v54 = vsub.f32 %v6394_v50, %v584_v51  ;;  %v1627_v63 = vsub.f32 %v585_v39, %v591_v42  ;;  %v4207_v4 = vld [vmem:[%s10629_s6 + $0x10] sm:$0xff]  ;;  %p6105_p12 = scmp.ne.s32.totalorder %s6103_s25, %s6104_s15  ;;  %p6110_p2 = scmp.lt.s32.totalorder %s6108_s30, %s6104_s15 }
  0x2a   : > { %541 = vmatpush.bf16.msra.mxu0 %v532_v25  ;;  %v4237_v45 = vld [vmem:[%s10629_s6 + $0x100] sm:$0xff]  ;;  %v3016_v46 = vsub.f32 %v589_v41, %v591_v42  ;;  %v6402_v55 = vsub.f32 %v586_v52, %v588_v53  ;;  %v4246_v56 = vld [vmem:[%s10629_s6 + $0x148] sm:$0xff]  ;;  %v1164_v62 = vsub.f32 %v583_v38, %v589_v41  ;;  %v5887_v3 = vadd.f32 -6.2831855, %v607_v61  ;;  %v4215_v25 = vld [vmem:[%s10629_s6 + $0x50] sm:$0xff] }
  0x2b   : > { %v4285_v47 = vld [vmem:[%s10630_s7 + $0x100] sm:$0xff]  ;;  %v590_v58 = vld [vmem:[%s6367_s12 + $0x48] sm:$0xff]  ;;  %vm609_vm2 = vcmp.gt.f32.partialorder %v607_v61, 3.1415927  ;;  %vm1629_vm4 = vcmp.gt.f32.partialorder %v1627_v63, 3.1415927  ;;  %p6106_p13 = pnand %p6105_p12, %p6276_p4  ;;  %p6111_p3 = por %p6110_p2, %p6109_p1 }
  0x2c   : > { %v4245_v57 = vld [vmem:[%s10629_s6 + $0x140] sm:$0xff]  ;;  %v6415_v0 = vsub.f32 %v590_v58, %v592_v59  ;;  %v4294_v5 = vld [vmem:[%s10630_s7 + $0x148] sm:$0xff]  ;;  %v5899_v6 = vadd.f32 -6.2831855, %v1164_v62  ;;  %vm1166_vm3 = vcmp.gt.f32.partialorder %v1164_v62, 3.1415927  ;;  %v1165_v22 = vsub.f32 %v584_v51, %v590_v58 }
  0x2d   : > { %5886 = vmatmul.msk.bf16.vlgmr.msra.gmra.mxu0 %vm526_vm1, %v523_v28  ;;  %v4293_v60 = vld [vmem:[%s10630_s7 + $0x140] sm:$0xff]  ;;  %vm2092_vm5 = vcmp.gt.f32.partialorder %v2090_v43, 3.1415927  ;;  %vm2555_vm6 = vcmp.gt.f32.partialorder %v2553_v44, 3.1415927  ;;  %s5722_s12 = scalar_lea.sflag [#allocation3], %s481_s14  ;;  %p6107_p0 = pneg %p6106_p13 }
  0x2e   : > { %vm3018_vm7 = vcmp.gt.f32.partialorder %v3016_v46, 3.1415927  ;;  %vm1167_vm14 = vcmp.gt.f32.partialorder %v1165_v22, 3.1415927  ;;  %vm2093_vm15 = vcmp.gt.f32.partialorder %v6400_v54, 3.1415927 }
  0x2f   : > { %1657 = vperm.xlu0 %6035, %v599_v7   ;;  %v5910_v7 = vadd.f32 -6.2831855, %v1627_v63  ;;  %vm2556_vm1 = vcmp.gt.f32.partialorder %v6402_v55, 3.1415927  ;;  %p6112_p5 = pnand %p6111_p3, %p6107_p0 }
  0x31   : > { %2120 = vperm.xlu2 %6037, %v601_v8   ;;  %1662 = vperm.xlu1 %6036, %v600_v9   ;;  %v5921_v8 = vadd.f32 -6.2831855, %v2090_v43  ;;  %v5932_v9 = vadd.f32 -6.2831855, %v2553_v44 }
  0x37   : > { %2125 = vperm.xlu0 %6035, %v602_v10   ;;  %v4208_v10 = vld [vmem:[%s10629_s6 + $0x18] sm:$0xff] }
  0x39   : > { %2588 = vperm.xlu2 %6037, %v604_v11   ;;  %2583 = vperm.xlu1 %6036, %v603_v12   ;;  %v613_v11 = vsel %vm609_vm2, %v5887_v3, %v607_v61  ;;  %v5943_v12 = vadd.f32 -6.2831855, %v3016_v46  ;;  %vm3019_vm2 = vcmp.gt.f32.partialorder %v6415_v0, 3.1415927 }
  0x3a   : > { %vm615_vm8 = vcmp.le.f32.partialorder %v613_v11, -3.1415927 }
  0x3f   : > { %3046 = vperm.xlu0 %6035, %v605_v13   ;;  %v1170_v13 = vsel %vm1166_vm3, %v5899_v6, %v1164_v62 }
  0x40   : > { %vm1172_vm9 = vcmp.le.f32.partialorder %v1170_v13, -3.1415927  ;;  %v1174_v23 = vadd.f32 6.2831855, %v1170_v13 }
  0x41   : > { %4303 = vperm.xlu2 %6037, %v4205_v14   ;;  %3051 = vperm.xlu1 %6036, %v606_v15   ;;  %v1633_v14 = vsel %vm1629_vm4, %v5910_v7, %v1627_v63  ;;  %v2096_v15 = vsel %vm2092_vm5, %v5921_v8, %v2090_v43 }
  0x42   : > { %vm1635_vm10 = vcmp.le.f32.partialorder %v1633_v14, -3.1415927  ;;  %vm2098_vm11 = vcmp.le.f32.partialorder %v2096_v15, -3.1415927  ;;  %v1637_v26 = vadd.f32 6.2831855, %v1633_v14  ;;  %v1176_v38 = vsel %vm1172_vm9, %v1174_v23, %v1170_v13 }
  0x43   : > { %v2100_v27 = vadd.f32 6.2831855, %v2096_v15 }
  0x44   : > { %v1639_v39 = vsel %vm1635_vm10, %v1637_v26, %v1633_v14  ;;  %v4258_v14 = vld [vmem:[%s10630_s7 + $0x28] sm:$0xff]  ;;  %v6517_v26 = vld [vmem:[%s6495_s28] sm:$0xff] }
  0x45   : > { %v2102_v40 = vsel %vm2098_vm11, %v2100_v27, %v2096_v15  ;;  %v4257_v15 = vld [vmem:[%s10630_s7 + $0x20] sm:$0xff] }
  0x46   : > { %v6520_v27 = vld [vmem:[%s6501_s21] sm:$0xff] }
  0x47   : > { %4308 = vperm.xlu0 %6035, %v4206_v16  }
  0x49   : > { %4322 = vperm.xlu2 %6037, %v4254_v17   ;;  %4317 = vperm.xlu1 %6036, %v4253_v18   ;;  %v2559_v17 = vsel %vm2555_vm6, %v5932_v9, %v2553_v44  ;;  %v4256_v18 = vld [vmem:[%s10630_s7 + $0x18] sm:$0xff] }
  0x4a   : > { %vm2561_vm12 = vcmp.le.f32.partialorder %v2559_v17, -3.1415927  ;;  %v2563_v28 = vadd.f32 6.2831855, %v2559_v17 }
  0x4c   : > { %v2565_v41 = vsel %vm2561_vm12, %v2563_v28, %v2559_v17 }
  0x4f   : > { %4339 = vperm.xlu0 %6035, %v4213_v19   ;;  %v4255_v19 = vld [vmem:[%s10630_s7 + $0x10] sm:$0xff] }
  0x51   : > { %4353 = vperm.xlu2 %6037, %v4261_v20   ;;  %4344 = vperm.xlu1 %6036, %v4214_v21   ;;  %v617_v20 = vadd.f32 6.2831855, %v613_v11  ;;  %v3022_v21 = vsel %vm3018_vm7, %v5943_v12, %v3016_v46 }
  0x52   : > { %vm3024_vm13 = vcmp.le.f32.partialorder %v3022_v21, -3.1415927 }
  0x57   : > { %4358 = vperm.xlu0 %6035, %v4262_v24   ;;  %v1628_v24 = vsub.f32 %v586_v52, %v592_v59  ;;  %v4209_v52 = vld [vmem:[%s10629_s6 + $0x20] sm:$0xff] }
  0x59   : > { %4380 = vperm.xlu2 %6037, %v4222_v29   ;;  %4375 = vperm.xlu1 %6036, %v4221_v30   ;;  %v3026_v29 = vadd.f32 6.2831855, %v3022_v21  ;;  %v608_v30 = vsub.f32 %v6394_v50, %v588_v53  ;;  %vm1630_vm0 = vcmp.gt.f32.partialorder %v1628_v24, 3.1415927  ;;  %v4216_v53 = vld [vmem:[%s10629_s6 + $0x58] sm:$0xff] }
  0x5b   : > { %v3028_v42 = vsel %vm3024_vm13, %v3026_v29, %v3022_v21  ;;  %v5888_v43 = vadd.f32 -6.2831855, %v608_v30  ;;  %vm610_vm3 = vcmp.gt.f32.partialorder %v608_v30, 3.1415927 }
  0x5f   : > { %4389 = vperm.xlu0 %6035, %v4269_v31   ;;  %v5922_v31 = vadd.f32 -6.2831855, %v6400_v54 }
  0x61   : > { %4411 = vperm.xlu2 %6037, %v4229_v32   ;;  %4394 = vperm.xlu1 %6036, %v4270_v33   ;;  %v5900_v32 = vadd.f32 -6.2831855, %v1165_v22  ;;  %v5911_v33 = vadd.f32 -6.2831855, %v1628_v24  ;;  %v2097_v44 = vsel %vm2093_vm15, %v5922_v31, %v6400_v54 }
  0x62   : > { %v2101_v59 = vadd.f32 6.2831855, %v2097_v44  ;;  %vm2099_vm6 = vcmp.le.f32.partialorder %v2097_v44, -3.1415927 }
  0x63   : > { %v1171_v46 = vsel %vm1167_vm14, %v5900_v32, %v1165_v22 }
  0x64   : > { %vm1173_vm4 = vcmp.le.f32.partialorder %v1171_v46, -3.1415927  ;;  %v1175_v61 = vadd.f32 6.2831855, %v1171_v46 }
  0x66   : > { %v1177_v8 = vsel %vm1173_vm4, %v1175_v61, %v1171_v46 }
  0x67   : > { %4416 = vperm.xlu0 %6035, %v4230_v34   ;;  %v5933_v34 = vadd.f32 -6.2831855, %v6402_v55 }
  0x69   : > { %4430 = vperm.xlu2 %6037, %v4278_v35   ;;  %4425 = vperm.xlu1 %6036, %v4277_v36   ;;  %v619_v35 = vsel %vm615_vm8, %v617_v20, %v613_v11  ;;  %v5944_v36 = vadd.f32 -6.2831855, %v6415_v0  ;;  %v2103_v11 = vsel %vm2099_vm6, %v2101_v59, %v2097_v44 }
  0x6b   : > { %v3023_v54 = vsel %vm3019_vm2, %v5944_v36, %v6415_v0 }
  0x6c   : > { %v3027_v3 = vadd.f32 6.2831855, %v3023_v54  ;;  %vm3025_vm8 = vcmp.le.f32.partialorder %v3023_v54, -3.1415927 }
  0x6e   : > { %v3029_v13 = vsel %vm3025_vm8, %v3027_v3, %v3023_v54  ;;  %v4212_v3 = vld [vmem:[%s10629_s6 + $0x38] sm:$0xff] }
  0x6f   : > { %4447 = vperm.xlu0 %6035, %v4237_v45  }
  0x71   : > { %4461 = vperm.xlu2 %6037, %v4285_v47   ;;  %4452 = vperm.xlu1 %6036, %v4238_v48   ;;  %v1634_v47 = vsel %vm1630_vm0, %v5911_v33, %v1628_v24  ;;  %v2560_v48 = vsel %vm2556_vm1, %v5933_v34, %v6402_v55  ;;  %v4210_v55 = vld [vmem:[%s10629_s6 + $0x28] sm:$0xff] }
  0x72   : > { %v1638_v62 = vadd.f32 6.2831855, %v1634_v47  ;;  %vm1636_vm5 = vcmp.le.f32.partialorder %v1634_v47, -3.1415927  ;;  %v2564_v63 = vadd.f32 6.2831855, %v2560_v48 }
  0x73   : > { %vm2562_vm7 = vcmp.le.f32.partialorder %v2560_v48, -3.1415927 }
  0x74   : > { %v1640_v9 = vsel %vm1636_vm5, %v1638_v62, %v1634_v47  ;;  %v2566_v12 = vsel %vm2562_vm7, %v2564_v63, %v2560_v48  ;;  %v6553_v48 = vld [vmem:[%s6495_s28 + $0x8] sm:$0xff] }
  0x77   : > { %4466 = vperm.xlu0 %6035, %v4286_v49  }
  0x79   : > { %4488 = vperm.xlu2 %6037, %v4246_v56   ;;  %4483 = vperm.xlu1 %6036, %v4245_v57  }
  0x7b   : > { %v6417_v2 = vpop.permute.xlu2 %1194 }
  0x7f   : > { %4497 = vperm.xlu0 %6035, %v4293_v60   ;;  %v614_v60 = vsel %vm610_vm3, %v5888_v43, %v608_v30 }
  0x80   : > { %v618_v7 = vadd.f32 6.2831855, %v614_v60  ;;  %vm616_vm11 = vcmp.le.f32.partialorder %v614_v60, -3.1415927 }
  0x81   : > { %4527 = vperm.xlu2 %6037, %v4207_v4   ;;  %4502 = vperm.xlu1 %6036, %v4294_v5  }
  0x82   : > { %v620_v21 = vsel %vm616_vm11, %v618_v7, %v614_v60 }
  0x83   : > { %v6428_v16 = vpop.permute.xlu2 %1199 }
  0x87   : > { %4532 = vperm.xlu0 %6035, %v4208_v10  }
  0x89   : > { %4546 = vperm.xlu2 %6037, %v4256_v18   ;;  %4541 = vperm.xlu1 %6036, %v4255_v19  }
  0x8b   : > { %v6446_v37 = vpop.permute.xlu2 %2120 }
  0x8f   : > { %4563 = vperm.xlu0 %6035, %v4215_v25   ;;  %v4263_v25 = vld [vmem:[%s10630_s7 + $0x50] sm:$0xff] }
  0x91   : > { %v624_v45 = vpop.permute.xlu0 %623  ;;  %4751 = vperm.xlu2 %6037, %v4209_v52   ;;  %4568 = vperm.xlu1 %6036, %v4216_v53  }
  0x92   : > { %v1178_v49 = vmul.f32 %v1176_v38, %v624_v45  ;;  %v6462_v50 = vmul.f32 %v1639_v39, %v624_v45  ;;  %v6464_v51 = vmul.f32 %v2102_v40, %v624_v45  ;;  %v631_v56 = vmul.f32 %v624_v45, %v619_v35  ;;  %v4217_v40 = vld [vmem:[%s10629_s6 + $0x60] sm:$0xff] }
  0x93   : > { %v6473_v57 = vmul.f32 %v2565_v41, %v624_v45  ;;  %v6475_v58 = vmul.f32 %v3028_v42, %v624_v45  ;;  %v6480_v4 = vpop.permute.xlu2 %2588  ;;  %v6482_v5 = vpop.permute.xlu1 %647  ;;  %v4264_v41 = vld [vmem:[%s10630_s7 + $0x58] sm:$0xff]  ;;  %v4218_v45 = vld [vmem:[%s10629_s6 + $0x68] sm:$0xff] }
  0x94   : > { %v1182_v0 = vadd.f32 3.1415927, %v1178_v49  ;;  %v635_v6 = vadd.f32 3.1415927, %v631_v56  ;;  %vm1180_vm9 = vcmp.lt.f32.partialorder %v1178_v49, 0.0  ;;  %vm633_vm10 = vcmp.lt.f32.partialorder %v631_v56, 0.0 }
  0x95   : > { %v1645_v35 = vadd.f32 3.1415927, %v6462_v50  ;;  %vm1643_vm14 = vcmp.lt.f32.partialorder %v6462_v50, 0.0  ;;  %v2108_v43 = vadd.f32 3.1415927, %v6464_v51  ;;  %vm2106_vm0 = vcmp.lt.f32.partialorder %v6464_v51, 0.0 }
  0x96   : > { %v637_v17 = vsel %vm633_vm10, %v635_v6, %v631_v56  ;;  %v1184_v18 = vsel %vm1180_vm9, %v1182_v0, %v1178_v49  ;;  %v6556_v49 = vld [vmem:[%s6501_s21 + $0x8] sm:$0xff]  ;;  %vm2569_vm5 = vcmp.lt.f32.partialorder %v6473_v57, 0.0  ;;  %vm3032_vm11 = vcmp.lt.f32.partialorder %v6475_v58, 0.0 }
  0x97   : > { %4756 = vperm.xlu0 %6035, %v4210_v55   ;;  %v5889_v28 = vadd.f32 -3.1415927, %v637_v17  ;;  %v5901_v29 = vadd.f32 -3.1415927, %v1184_v18  ;;  %vm639_vm12 = vcmp.ge.f32.partialorder %v637_v17, 3.1415927  ;;  %v1647_v44 = vsel %vm1643_vm14, %v1645_v35, %v6462_v50 }
  0x98   : > { %vm1186_vm13 = vcmp.ge.f32.partialorder %v1184_v18, 3.1415927  ;;  %v5912_v53 = vadd.f32 -3.1415927, %v1647_v44  ;;  %v2110_v56 = vsel %vm2106_vm0, %v2108_v43, %v6464_v51  ;;  %vm1649_vm1 = vcmp.ge.f32.partialorder %v1647_v44, 3.1415927 }
  0x99   : > { %v629_v10 = vpop.permute.xlu0 %628  ;;  %4770 = vperm.xlu2 %6037, %v4258_v14   ;;  %4765 = vperm.xlu1 %6036, %v4257_v15   ;;  %v6534_v38 = vsel %vm639_vm12, %v5889_v28, %v637_v17  ;;  %v6536_v39 = vsel %vm1186_vm13, %v5901_v29, %v1184_v18  ;;  %v4211_v51 = vld [vmem:[%s10629_s6 + $0x30] sm:$0xff]  ;;  %v5923_v0 = vadd.f32 -3.1415927, %v2110_v56  ;;  %vm2112_vm4 = vcmp.ge.f32.partialorder %v2110_v56, 3.1415927 }
  0x9a   : > { %v6503_v19 = vmul.f32 %v1177_v8, %v629_v10  ;;  %v6505_v20 = vmul.f32 %v1640_v9, %v629_v10  ;;  %v6507_v22 = vmul.f32 %v2103_v11, %v629_v10  ;;  %v6509_v23 = vmul.f32 %v2566_v12, %v629_v10  ;;  %v4259_v8 = vld [vmem:[%s10630_s7 + $0x30] sm:$0xff] }
  0x9b   : > { %v6511_v24 = vmul.f32 %v3029_v13, %v629_v10  ;;  %v632_v30 = vmul.f32 %v629_v10, %v620_v21  ;;  %v4304_v31 = vpop.permute.xlu2 %4303  ;;  %v6522_v32 = vpop.permute.xlu1 %652  ;;  %v694_v46 = vand.u32 2139095040, %v6534_v38  ;;  %v1241_v47 = vand.u32 2139095040, %v6536_v39  ;;  %v6594_v21 = vld [vmem:[%s6495_s28 + $0x10] sm:$0xff] }
  0x9c   : > { %v6525_v33 = vmul.f32 %v4304_v31, %v6517_v26  ;;  %v6528_v34 = vmul.f32 %v4304_v31, %v6520_v27  ;;  %v1183_v6 = vadd.f32 3.1415927, %v6503_v19  ;;  %v6576_v7 = vsel %vm1649_vm1, %v5912_v53, %v1647_v44 }
  0x9d   : > { %v636_v42 = vadd.f32 3.1415927, %v632_v30  ;;  %vm634_vm15 = vcmp.lt.f32.partialorder %v632_v30, 0.0  ;;  %v695_v60 = vshrl.u32 %v694_v46, 23  ;;  %v1242_v61 = vshrl.u32 %v1241_v47, 23  ;;  %10723 = vst [vmem:[#allocation8_spill] sm:$0xff] %v6576_v7 }
  0x9e   : > { %vm1181_vm3 = vcmp.lt.f32.partialorder %v6503_v19, 0.0  ;;  %v1704_v12 = vand.u32 2139095040, %v6576_v7  ;;  %v2571_v13 = vadd.f32 3.1415927, %v6473_v57  ;;  %v6589_v14 = vmul.f32 %v6417_v2, %v6536_v39  ;;  %v4260_v46 = vld [vmem:[%s10630_s7 + $0x38] sm:$0xff] }
  0x9f   : > { %4577 = vperm.xlu0 %6035, %v4263_v25   ;;  %v638_v52 = vsel %vm634_vm15, %v636_v42, %v632_v30  ;;  %v5891_v9 = vadd.s32 4294967169, %v695_v60  ;;  %v5903_v10 = vadd.s32 4294967169, %v1242_v61  ;;  %v1185_v15 = vsel %vm1181_vm3, %v1183_v6, %v6503_v19  ;;  %v6597_v25 = vld [vmem:[%s6501_s21 + $0x10] sm:$0xff] }
  0xa0   : > { %v5890_v63 = vadd.f32 -3.1415927, %v638_v52  ;;  %vm640_vm2 = vcmp.ge.f32.partialorder %v638_v52, 3.1415927  ;;  %10724 = vst [vmem:[#allocation9_spill] sm:$0xff] %v6589_v14  ;;  %v6600_v29 = vsel %vm2112_vm4, %v5923_v0, %v2110_v56  ;;  %v6604_v30 = vmul.f32 %v6482_v5, %v6534_v38  ;;  %v4224_v56 = vld [vmem:[%s10629_s6 + $0x98] sm:$0xff] }
  0xa1   : > { %v6531_v36 = vpop.permute.xlu0 %1657  ;;  %4787 = vperm.xlu2 %6037, %v4217_v40   ;;  %4582 = vperm.xlu1 %6036, %v4264_v41   ;;  %v1646_v17 = vadd.f32 3.1415927, %v6505_v20  ;;  %10725 = vst [vmem:[#allocation10_spill] sm:$0xff] %v6600_v29  ;;  %vm2570_vm6 = vcmp.lt.f32.partialorder %v6509_v23, 0.0  ;;  %v2572_v2 = vadd.f32 3.1415927, %v6509_v23 }
  0xa2   : > { %v6582_v11 = vsel %vm640_vm2, %v5890_v63, %v638_v52  ;;  %10726 = vst [vmem:[#allocation11_spill] sm:$0xff] %v6604_v30  ;;  %vm1644_vm7 = vcmp.lt.f32.partialorder %v6505_v20, 0.0  ;;  %v701_v19 = vadd.s32 1, %v5891_v9  ;;  %v1248_v31 = vadd.s32 1, %v5903_v10 }
  0xa3   : > { %v4323_v50 = vpop.permute.xlu2 %4322  ;;  %v6558_v54 = vpop.permute.xlu1 %1662  ;;  %v848_v35 = vand.u32 2139095040, %v6582_v11  ;;  %v6612_v40 = vmul.f32 %v6531_v36, %v6576_v7  ;;  %v5902_v42 = vadd.f32 -3.1415927, %v1185_v15  ;;  %v1705_v43 = vshrl.u32 %v1704_v12, 23 }
  0xa4   : > { %v6562_v55 = vmul.f32 %v4323_v50, %v6556_v49  ;;  %v6565_v59 = vmul.f32 %v4323_v50, %v6553_v48  ;;  %vm1187_vm8 = vcmp.ge.f32.partialorder %v1185_v15, 3.1415927  ;;  %v1648_v36 = vsel %vm1644_vm7, %v1646_v17, %v6505_v20 }
  0xa5   : > { %10727 = vst [vmem:[#allocation12_spill] sm:$0xff] %v6612_v40  ;;  %v2109_v47 = vadd.f32 3.1415927, %v6507_v22  ;;  %v2573_v52 = vsel %vm2569_vm5, %v2571_v13, %v6473_v57  ;;  %v1204_v53 = vadd.f32 %v6589_v14, %v6604_v30  ;;  %vm2107_vm9 = vcmp.lt.f32.partialorder %v6507_v22, 0.0  ;;  %v6777_v14 = vld [vmem:[%s6495_s28 + $0x30] sm:$0xff]  ;;  %v4225_v30 = vld [vmem:[%s10629_s6 + $0xa0] sm:$0xff] }
  0xa6   : > { %vm2575_vm10 = vcmp.ge.f32.partialorder %v2573_v52, 3.1415927  ;;  %v5934_v50 = vadd.f32 -3.1415927, %v2573_v52  ;;  %v6642_v20 = vsel %vm2570_vm6, %v2572_v2, %v6509_v23  ;;  %v849_v60 = vshrl.u32 %v848_v35, 23 }
  0xa7   : > { %4792 = vperm.xlu0 %6035, %v4218_v45   ;;  %v4223_v45 = vld [vmem:[%s10629_s6 + $0x90] sm:$0xff]  ;;  %v3034_v57 = vadd.f32 3.1415927, %v6475_v58  ;;  %v6646_v61 = vsel %vm1187_vm8, %v5902_v42, %v1185_v15  ;;  %v1667_v63 = vadd.f32 %v6612_v40, %v1204_v53  ;;  %vm1249_vm12 = vcmp.gt.s32.totalorder %v1248_v31, 0  ;;  %v4265_v42 = vld [vmem:[%s10630_s7 + $0x60] sm:$0xff] }
  0xa8   : > { %10728 = vst [vmem:[#allocation13_spill] sm:$0xff] %v6646_v61  ;;  %vm1650_vm13 = vcmp.ge.f32.partialorder %v1648_v36, 3.1415927  ;;  %v2111_v23 = vsel %vm2107_vm9, %v2109_v47, %v6507_v22  ;;  %v6653_v0 = vsel %vm2575_vm10, %v5934_v50, %v2573_v52  ;;  %vm702_vm14 = vcmp.gt.s32.totalorder %v701_v19, 0  ;;  %v4219_v53 = vld [vmem:[%s10629_s6 + $0x70] sm:$0xff] }
  0xa9   : > { %v6567_v62 = vpop.permute.xlu0 %2125  ;;  %4980 = vperm.xlu2 %6037, %v4212_v3   ;;  %4975 = vperm.xlu1 %6036, %v4211_v51   ;;  %v5914_v3 = vadd.s32 4294967169, %v1705_v43  ;;  %v5913_v51 = vadd.f32 -3.1415927, %v1648_v36  ;;  %v6659_v9 = vmul.f32 %v6446_v37, %v6600_v29  ;;  %v3036_v12 = vsel %vm3032_vm11, %v3034_v57, %v6475_v58  ;;  %v6677_v37 = vld [vmem:[%s6495_s28 + $0x28] sm:$0xff] }
  0xaa   : > { %v6669_v22 = vmul.f32 %v6522_v32, %v6582_v11  ;;  %v5894_v13 = vadd.s32 4294967169, %v849_v60  ;;  %v6673_v15 = vmul.f32 %v6428_v16, %v6646_v61  ;;  %v1395_v17 = vand.u32 2139095040, %v6646_v61  ;;  %v4266_v16 = vld [vmem:[%s10630_s7 + $0x68] sm:$0xff]  ;;  %v6843_v61 = vld [vmem:[%s6501_s21 + $0x40] sm:$0xff] }
  0xab   : > { %v4354_v18 = vpop.permute.xlu2 %4353  ;;  %v2584_v28 = vpop.permute.xlu1 %2583  ;;  %10729 = vst [vmem:[#allocation14_spill] sm:$0xff] %v6659_v9  ;;  %v1711_v2 = vadd.s32 1, %v5914_v3  ;;  %v6685_v58 = vsel %vm1650_vm13, %v5913_v51, %v1648_v36  ;;  %v5924_v35 = vadd.f32 -3.1415927, %v2111_v23  ;;  %v2130_v32 = vadd.f32 %v6659_v9, %v1667_v63 }
  0xac   : > { %v6617_v5 = vmul.f32 %v4354_v18, %v6597_v25  ;;  %v6620_v44 = vmul.f32 %v4354_v18, %v6594_v21  ;;  %v6662_v10 = vmul.f32 %v2584_v28, %v6653_v0  ;;  %10731 = vst [vmem:[#allocation16_spill] sm:$0xff] %v6669_v22  ;;  %v6680_v18 = vld [vmem:[%s6501_s21 + $0x28] sm:$0xff]  ;;  %v6696_v43 = vmul.f32 %v6558_v54, %v6685_v58 }
  0xad   : > { %10732 = vst [vmem:[#allocation17_spill] sm:$0xff] %v6673_v15  ;;  %vm2113_vm15 = vcmp.ge.f32.partialorder %v2111_v23, 3.1415927  ;;  %vm3038_vm0 = vcmp.ge.f32.partialorder %v3036_v12, 3.1415927  ;;  %v1250_v54 = vsel %vm1249_vm12, %v1248_v31, 0 }
  0xae   : > { %10730 = vst [vmem:[#allocation15_spill] sm:$0xff] %v6662_v10  ;;  %v2593_v36 = vadd.f32 %v6662_v10, %v2130_v32  ;;  %v5935_v50 = vadd.f32 -3.1415927, %v6642_v20  ;;  %v855_v60 = vadd.s32 1, %v5894_v13  ;;  %v1396_v57 = vshrl.u32 %v1395_v17, 23  ;;  %v4272_v10 = vld [vmem:[%s10630_s7 + $0x98] sm:$0xff] }
  0xaf   : > { %4989 = vperm.xlu0 %6035, %v4259_v8   ;;  %10733 = vst [vmem:[#allocation18_spill] sm:$0xff] %v6685_v58  ;;  %v6716_v63 = vsel %vm2113_vm15, %v5924_v35, %v2111_v23  ;;  %vm1712_vm1 = vcmp.gt.s32.totalorder %v1711_v2, 0  ;;  %vm2576_vm2 = vcmp.ge.f32.partialorder %v6642_v20, 3.1415927  ;;  %vm3033_vm3 = vcmp.lt.f32.partialorder %v6511_v24, 0.0 }
  0xb0   : > { %10734 = vst [vmem:[#allocation19_spill] sm:$0xff] %v6696_v43  ;;  %v6735_v23 = vshrl.u32 %v1250_v54, 5  ;;  %v6737_v35 = vand.u32 31, %v1250_v54  ;;  %vm856_vm4 = vcmp.gt.s32.totalorder %v855_v60, 0 }
  0xb1   : > { %v6614_v41 = vpop.permute.xlu0 %3046  ;;  %4599 = vperm.xlu2 %6037, %v4223_v45   ;;  %4994 = vperm.xlu1 %6036, %v4260_v46   ;;  %v5945_v45 = vadd.f32 -3.1415927, %v3036_v12  ;;  %v703_v46 = vsel %vm702_vm14, %v701_v19, 0  ;;  %10736 = vst [vmem:[#allocation21_spill] sm:$0xff] %v6716_v63 }
  0xb2   : > { %v6722_v51 = vand.u32 31, %v703_v46  ;;  %10738 = vst [vmem:[#allocation23_spill] sm:$0xff] %v6735_v23 }
  0xb3   : > { %v4381_v6 = vpop.permute.xlu2 %4380  ;;  %v6655_v8 = vpop.permute.xlu1 %3051  ;;  %v6713_v19 = vsel %vm3038_vm0, %v5945_v45, %v3036_v12  ;;  %10739 = vst [vmem:[#allocation24_spill] sm:$0xff] %v6737_v35  ;;  %v1713_v45 = vsel %vm1712_vm1, %v1711_v2, 0 }
  0xb4   : > { %v6701_v47 = vmul.f32 %v4381_v6, %v6677_v37  ;;  %v6704_v52 = vmul.f32 %v4381_v6, %v6680_v18  ;;  %10735 = vst [vmem:[#allocation20_spill] sm:$0xff] %v6713_v19  ;;  %v6720_v3 = vmul.f32 %v6614_v41, %v6713_v19  ;;  %v6727_v6 = vmul.f32 %v6567_v62, %v6716_v63  ;;  %v6846_v19 = vld [vmem:[%s6495_s28 + $0x40] sm:$0xff] }
  0xb5   : > { %v3035_v41 = vadd.f32 3.1415927, %v6511_v24  ;;  %v6760_v2 = vsub.s32 32, %v6722_v51 }
  0xb6   : > { %10737 = vst [vmem:[#allocation22_spill] sm:$0xff] %v6727_v6  ;;  %v6730_v17 = vadd.f32 %v6720_v3, %v2593_v36  ;;  %v4271_v36 = vld [vmem:[%s10630_s7 + $0x90] sm:$0xff] }
  0xb7   : > { %4604 = vperm.xlu0 %6035, %v4224_v56   ;;  %v1205_v56 = vadd.f32 %v6673_v15, %v6669_v22  ;;  %v6802_v22 = vld [vmem:[%s6501_s21 + $0x38] sm:$0xff] }
  0xb8   : > { %v3479_v54 = vand.u32 2147483647, %v6730_v17  ;;  %vm3483_vm5 = vcmp.lt.f32.partialorder %v6730_v17, 0.0 }
  0xb9   : > { %v6682_v28 = vpop.permute.xlu0 %4308  ;;  %4806 = vperm.xlu2 %6037, %v4266_v16   ;;  %4801 = vperm.xlu1 %6036, %v4265_v42   ;;  %v1668_v31 = vadd.f32 %v6696_v43, %v1205_v56  ;;  %v6743_v16 = vshrl.u32 %v703_v46, 5  ;;  %v5906_v42 = vadd.s32 4294967169, %v1396_v57  ;;  %v6754_v56 = vsel %vm2576_vm2, %v5935_v50, %v6642_v20 }
  0xba   : > { %v6741_v62 = vmul.f32 %v6682_v28, %v6553_v48  ;;  %10740 = vst [vmem:[#allocation25_spill] sm:$0xff] %v6754_v56  ;;  %v3037_v46 = vsel %vm3033_vm3, %v3035_v41, %v6511_v24  ;;  %v857_v20 = vsel %vm856_vm4, %v855_v60, 0  ;;  %v6768_v57 = vshrl.u32 %v1713_v45, 5  ;;  %v6780_v60 = vld [vmem:[%s6501_s21 + $0x30] sm:$0xff] }
  0xbb   : > { %v4412_v12 = vpop.permute.xlu2 %4411  ;;  %v4318_v13 = vpop.permute.xlu1 %4317  ;;  %v2131_v1 = vadd.f32 %v6727_v6, %v1668_v31  ;;  %vm3039_vm6 = vcmp.ge.f32.partialorder %v3037_v46, 3.1415927  ;;  %v5946_v24 = vadd.f32 -3.1415927, %v3037_v46  ;;  %v1402_v41 = vadd.s32 1, %v5906_v42 }
  0xbc   : > { %10741 = vst [vmem:[#allocation26_spill] sm:$0xff] %v6768_v57  ;;  %v6772_v9 = vmul.f32 %v6480_v4, %v6754_v56  ;;  %v4330_v31 = vmul.f32 %v6682_v28, %v6556_v49  ;;  %v6782_v50 = vand.u32 31, %v1713_v45  ;;  %vm6784_vm7 = vcmp.lt.f32.partialorder %v3479_v54, 1e-08  ;;  %v4196_v57 = vld [vmem:[%s6501_s21 + $0x18] sm:$0xff] }
  0xbd   : > { %v6169_v42 = vmov 1e-08   ;;  %v6790_v4 = vsel %vm3039_vm6, %v5946_v24, %v3037_v46  ;;  %v6792_v15 = vshrl.u32 %v857_v20, 5  ;;  %v6794_v43 = vand.u32 31, %v857_v20 }
  0xbe   : > { %10742 = vst [vmem:[#allocation27_spill] sm:$0xff] %v6772_v9  ;;  %v2594_v45 = vadd.f32 %v6772_v9, %v2131_v1  ;;  %v6799_v54 = vmul.f32 %v6655_v8, %v6790_v4  ;;  %v4336_v40 = vadd.f32 %v6565_v59, %v4330_v31  ;;  %v6809_v46 = vmul.f32 %v4412_v12, %v6780_v60  ;;  %v6819_v31 = vld [vmem:[%s6495_s28 + $0x38] sm:$0xff] }
  0xbf   : > { %5011 = vperm.xlu0 %6035, %v4219_v53   ;;  %v4220_v53 = vld [vmem:[%s10629_s6 + $0x78] sm:$0xff]  ;;  %10745 = vst [vmem:[#allocation28_spill] sm:$0xff] %v6790_v4  ;;  %v4325_v20 = vmul.f32 %v4318_v13, %v6520_v27  ;;  %v1858_v1 = vand.u32 2139095040, %v6685_v58  ;;  %v4333_v59 = vmul.f32 %v4318_v13, %v6517_v26  ;;  %vm1403_vm8 = vcmp.gt.s32.totalorder %v1402_v41, 0 }
  0xc0   : > { %v3057_v9 = vadd.f32 %v6799_v54, %v2594_v45  ;;  %v4184_v13 = vld [vmem:[%s6495_s28 + $0x18] sm:$0xff]  ;;  %vm723_vm12 = vcmp.lt.s32.totalorder %v6743_v16, 1  ;;  %vm726_vm13 = vcmp.lt.s32.totalorder %v6743_v16, 4  ;;  %vm725_vm14 = vcmp.lt.s32.totalorder %v6743_v16, 3 }
  0xc1   : > { %v4340_v32 = vpop.permute.xlu0 %4339  ;;  %4613 = vperm.xlu2 %6037, %v4271_v36   ;;  %5016 = vperm.xlu1 %6036, %v4220_v53   ;;  %v3485_v53 = vsel %vm3483_vm5, -1e-08, %v6169_v42  ;;  %v4327_v4 = vsub.f32 %v6525_v33, %v4325_v20  ;;  %v4335_v58 = vadd.f32 %v4333_v59, %v6528_v34  ;;  %v4267_v33 = vld [vmem:[%s10630_s7 + $0x70] sm:$0xff]  ;;  %v1859_v23 = vshrl.u32 %v1858_v1, 23 }
  0xc2   : > { %v3487_v8 = vsel %vm6784_vm7, %v3485_v53, %v6730_v17  ;;  %v4347_v36 = vmul.f32 %v4340_v32, %v6594_v21  ;;  %v4365_v17 = vmul.f32 %v4340_v32, %v6597_v25  ;;  %v3480_v45 = vand.u32 2147483647, %v3057_v9 }
  0xc3   : > { %v4431_v6 = vpop.permute.xlu2 %4430  ;;  %v4345_v28 = vpop.permute.xlu1 %4344  ;;  %vm3484_vm9 = vcmp.lt.f32.partialorder %v3057_v9, 0.0  ;;  %6038 = vrcp.f32 %v3487_v8  ;;  %vm724_vm15 = vcmp.lt.s32.totalorder %v6743_v16, 2  ;;  %vm877_vm6 = vcmp.lt.s32.totalorder %v6792_v15, 1 }
  0xc4   : > { %v6831_v53 = vmul.f32 %v4431_v6, %v6802_v22  ;;  %v3486_v20 = vsel %vm3484_vm9, -1e-08, %v6169_v42  ;;  %v4349_v7 = vadd.f32 %v4347_v36, %v4327_v4  ;;  %v6840_v32 = vmul.f32 %v4431_v6, %v6819_v31 }
  0xc5   : > { %vm3482_vm10 = vcmp.lt.f32.partialorder %v3480_v45, 1e-08  ;;  %v4367_v34 = vadd.f32 %v4365_v17, %v4335_v58  ;;  %v4348_v59 = vmul.f32 %v4345_v28, %v4184_v13  ;;  %v4366_v35 = vmul.f32 %v4345_v28, %v4196_v57  ;;  %v4185_v58 = vld [vmem:[%s6495_s28 + $0x20] sm:$0xff] }
  0xc6   : > { %v3488_v56 = vsel %vm3482_vm10, %v3486_v20, %v3057_v9  ;;  %v4197_v17 = vld [vmem:[%s6501_s21 + $0x20] sm:$0xff]  ;;  %v6858_v9 = vsub.s32 32, %v6782_v50  ;;  %vm880_vm7 = vcmp.lt.s32.totalorder %v6792_v15, 4  ;;  %vm878_vm9 = vcmp.lt.s32.totalorder %v6792_v15, 2 }
  0xc7   : > { %4618 = vperm.xlu0 %6035, %v4272_v10   ;;  %v6806_v10 = vmul.f32 %v4412_v12, %v6777_v14  ;;  %v4226_v12 = vld [vmem:[%s10629_s6 + $0xa8] sm:$0xff]  ;;  %6040 = vrcp.f32 %v3488_v56  ;;  %v5917_v56 = vadd.s32 4294967169, %v1859_v23  ;;  %v4371_v45 = vadd.f32 %v6620_v44, %v4367_v34 }
  0xc9   : > { %v4359_v24 = vpop.permute.xlu0 %4358  ;;  %4828 = vperm.xlu2 %6037, %v4226_v12   ;;  %4823 = vperm.xlu1 %6036, %v4225_v30   ;;  %v1404_v12 = vsel %vm1403_vm8, %v1402_v41, 0  ;;  %v10746_v30 = vsub.f32 %v6741_v62, %v6562_v55  ;;  %vm879_vm8 = vcmp.lt.s32.totalorder %v6792_v15, 3 }
  0xca   : > { %v4362_v8 = vmul.f32 %v4359_v24, %v4196_v57  ;;  %v4370_v42 = vmul.f32 %v4359_v24, %v4184_v13  ;;  %v4368_v57 = vadd.f32 %v4366_v35, %v4336_v40  ;;  %v4363_v24 = vsub.f32 %v4349_v7, %v6617_v5  ;;  %v4268_v40 = vld [vmem:[%s10630_s7 + $0x78] sm:$0xff]  ;;  %v6873_v35 = vpop.eup %6038 }
  0xcb   : > { %v4462_v4 = vpop.permute.xlu2 %4461  ;;  %v4376_v6 = vpop.permute.xlu1 %4375  ;;  %v4350_v1 = vadd.f32 %v4348_v59, %v10746_v30  ;;  %v10747_v13 = vand.u32 2139095040, %v6600_v29  ;;  %10748 = vst [vmem:[#allocation29_spill] sm:$0xff] %v6873_v35  ;;  %v6876_v59 = vsub.s32 32, %v6794_v43  ;;  %v6878_v44 = vshrl.u32 %v1404_v12, 5 }
  0xcc   : > { %v6853_v36 = vmul.f32 %v4462_v4, %v6843_v61  ;;  %v6861_v28 = vmul.f32 %v4462_v4, %v6846_v19  ;;  %v4372_v7 = vadd.f32 %v4370_v42, %v4368_v57  ;;  %v4383_v5 = vmul.f32 %v4376_v6, %v4185_v58  ;;  %v6887_v42 = vld [vmem:[%s6495_s28 + $0x58] sm:$0xff] }
  0xcd   : > { %v2168_v55 = vshrl.u32 %v10747_v13, 23  ;;  %v4364_v62 = vsub.f32 %v4350_v1, %v4362_v8  ;;  %v4401_v23 = vmul.f32 %v4376_v6, %v4197_v17  ;;  %v4232_v8 = vld [vmem:[%s10629_s6 + $0xd8] sm:$0xff]  ;;  %v6884_v30 = vand.u32 31, %v1404_v12  ;;  %v6893_v57 = vpop.eup %6040 }
  0xce   : > { %v4385_v1 = vadd.f32 %v4383_v5, %v4363_v24  ;;  %v6890_v6 = vld [vmem:[%s6501_s21 + $0x58] sm:$0xff]  ;;  %10749 = vst [vmem:[#allocation30_spill] sm:$0xff] %v6893_v57  ;;  %v6904_v12 = vmul.f32 %v6893_v57, %v6799_v54 }
  0xcf   : > { %5025 = vperm.xlu0 %6035, %v4267_v33   ;;  %v4231_v33 = vld [vmem:[%s10629_s6 + $0xd0] sm:$0xff]  ;;  %v4386_v4 = vadd.f32 %v6701_v47, %v4364_v62  ;;  %v4403_v13 = vadd.f32 %v4401_v23, %v4371_v45  ;;  %v5925_v29 = vadd.s32 4294967169, %v2168_v55  ;;  %v6900_v47 = vmul.f32 %v6873_v35, %v6720_v3 }
  0xd0   : > { %10751 = vst [vmem:[#allocation32_spill] sm:$0xff] %v6904_v12 }
  0xd1   : > { %v4390_v41 = vpop.permute.xlu0 %4389  ;;  %4635 = vperm.xlu2 %6037, %v4231_v33   ;;  %5030 = vperm.xlu1 %6036, %v4268_v40   ;;  %10750 = vst [vmem:[#allocation31_spill] sm:$0xff] %v6900_v47  ;;  %v6914_v40 = vpop.f32.mrf.mxu0 }
  0xd2   : > { %v4397_v20 = vmul.f32 %v4390_v41, %v4197_v17  ;;  %v4405_v34 = vmul.f32 %v4390_v41, %v4185_v58  ;;  %v4404_v17 = vadd.f32 %v6704_v52, %v4372_v7  ;;  %v6895_v58 = vadd.s32 1, %v5917_v56  ;;  %10752 = vst [vmem:[#allocation33_spill] sm:$0xff] %v6914_v40 }
  0xd3   : > { %v4489_v45 = vpop.permute.xlu2 %4488  ;;  %v4395_v52 = vpop.permute.xlu1 %4394 }
  0xd4   : > { %v4399_v24 = vsub.f32 %v4385_v1, %v4397_v20  ;;  %v4407_v62 = vadd.f32 %v4405_v34, %v4403_v13  ;;  %v6907_v33 = vmul.f32 %v4489_v45, %v6887_v42  ;;  %v6910_v56 = vmul.f32 %v4489_v45, %v6890_v6  ;;  %v4273_v13 = vld [vmem:[%s10630_s7 + $0xa0] sm:$0xff] }
  0xd5   : > { %v4398_v55 = vmul.f32 %v4395_v52, %v6680_v18  ;;  %v4406_v3 = vmul.f32 %v4395_v52, %v6677_v37  ;;  %v10668_v20 = vand.u32 2147483647, %v6534_v38  ;;  %v4274_v37 = vld [vmem:[%s10630_s7 + $0xa8] sm:$0xff]  ;;  %v6929_v45 = vadd.s32 1, %v5925_v29 }
  0xd6   : > { %v4421_v5 = vadd.f32 %v6806_v10, %v4399_v24  ;;  %v4439_v23 = vadd.f32 %v6809_v46, %v4407_v62  ;;  %v10673_v10 = vmov 683565275   ;;  %v10666_v29 = vmov 2131351028  }
  0xd7   : > { %4640 = vperm.xlu0 %6035, %v4232_v8   ;;  %v4400_v34 = vsub.f32 %v4386_v4, %v4398_v55  ;;  %v4408_v8 = vadd.f32 %v4406_v3, %v4404_v17  ;;  %v708_v46 = vshll.u32 %v10673_v10, %v6722_v51  ;;  %v712_v52 = vshrl.u32 %v10666_v29, %v6760_v2 }
  0xd8   : > { %v714_v55 = vshll.u32 %v10666_v29, %v6722_v51  ;;  %vm1866_vm11 = vcmp.gt.s32.totalorder %v6895_v58, 0  ;;  %vm2175_vm4 = vcmp.gt.s32.totalorder %v6929_v45, 0 }
  0xd9   : > { %v4417_v7 = vpop.permute.xlu0 %4416  ;;  %4842 = vperm.xlu2 %6037, %v4274_v37   ;;  %4837 = vperm.xlu1 %6036, %v4273_v13  }
  0xda   : > { %v4420_v1 = vmul.f32 %v4417_v7, %v6819_v31  ;;  %v4438_v18 = vmul.f32 %v4417_v7, %v6802_v22  ;;  %v4227_v22 = vld [vmem:[%s10629_s6 + $0xb0] sm:$0xff]  ;;  %v10669_v31 = vmov 2475754826  }
  0xdb   : > { %v709_v24 = vshrl.u32 %v10669_v31, %v6760_v2  ;;  %v711_v62 = vshll.u32 %v10669_v31, %v6722_v51  ;;  %v4426_v37 = vpop.permute.xlu1 %4425 }
  0xdc   : > { %v6933_v4 = vadd.f32 %v4420_v1, %v4400_v34  ;;  %v4440_v17 = vadd.f32 %v4438_v18, %v4408_v8  ;;  %v6953_v34 = vand.u32 8388607, %v10668_v20  ;;  %v10671_v8 = vmov 2102212464   ;;  %v4528_v18 = vpop.permute.xlu2 %4527 }
  0xdd   : > { %v715_v1 = vshrl.u32 %v10671_v8, %v6760_v2  ;;  %v6957_v13 = vor.u32 %v709_v24, %v708_v46  ;;  %v6959_v54 = vor.u32 %v712_v52, %v711_v62  ;;  %v717_v29 = vshll.u32 %v10671_v8, %v6722_v51  ;;  %v6973_v62 = vpop.f32.mrf.mxu0 }
  0xde   : > { %v6949_v7 = vadd.f32 %v6840_v32, %v4440_v17  ;;  %v10678_v32 = vmov 920167782   ;;  %v6966_v20 = vmul.f32 %v4528_v18, %v6517_v26  ;;  %v6969_v31 = vmul.f32 %v4528_v18, %v6520_v27  ;;  %10753 = vst [vmem:[#allocation34_spill] sm:$0xff] %v6973_v62 }
  0xdf   : > { %5047 = vperm.xlu0 %6035, %v4227_v22   ;;  %v718_v17 = vshrl.u32 %v10678_v32, %v6760_v2  ;;  %v4433_v22 = vmul.f32 %v4426_v37, %v6780_v60  ;;  %v4441_v46 = vmul.f32 %v4426_v37, %v6777_v14  ;;  %v716_v52 = vor.u32 %v715_v1, %v714_v55  ;;  %v4279_v14 = vld [vmem:[%s10630_s7 + $0xd0] sm:$0xff]  ;;  %v4228_v60 = vld [vmem:[%s10629_s6 + $0xb8] sm:$0xff]  ;;  %v4202_v1 = vld [vmem:[%s6501_s21 + $0x48] sm:$0xff] }
  0xe0   : > { %v720_v8 = vshll.u32 %v10678_v32, %v6722_v51  ;;  %v699_v51 = vor.u32 8388608, %v6953_v34  ;;  %v580_v55 = vpack.c.bf16 %v6973_v62, %v6914_v40  ;;  %v4190_v34 = vld [vmem:[%s6495_s28 + $0x48] sm:$0xff] }
  0xe1   : > { %v4448_v24 = vpop.permute.xlu0 %4447  ;;  %v719_v3 = vor.u32 %v718_v17, %v717_v29  ;;  %v4435_v10 = vsub.f32 %v4421_v5, %v4433_v22  ;;  %v4443_v41 = vadd.f32 %v4441_v46, %v4439_v23  ;;  %v10676_v5 = vmov 1326507024   ;;  %v4280_v29 = vld [vmem:[%s10630_s7 + $0xd8] sm:$0xff]  ;;  %4649 = vperm.xlu2 %6037, %v4279_v14   ;;  %5052 = vperm.xlu1 %6036, %v4228_v60  }
  0xe2   : > { %v4455_v47 = vmul.f32 %v4448_v24, %v6846_v19  ;;  %v4473_v18 = vmul.f32 %v4448_v24, %v6843_v61  ;;  %v721_v19 = vshrl.u32 %v10676_v5, %v6760_v2  ;;  %1157 = vmatpush.bf16.msra.mxu2 %v580_v55  ;;  %v10754_v22 = vand.u32 2139095040, %v6716_v63 }
  0xe3   : > { %v7038_v5 = vshll.u32 %v699_v51, 8  ;;  %v728_v51 = vsel %vm726_vm13, %v716_v52, 2102212464 }
  0xe4   : > { %v6990_v61 = vadd.f32 %v4455_v47, %v4435_v10  ;;  %v4475_v23 = vadd.f32 %v4473_v18, %v4443_v41  ;;  %v722_v37 = vor.u32 %v721_v19, %v720_v8  ;;  %v731_v41 = vsel %vm723_vm12, %v6957_v13, %v6959_v54  ;;  %v4547_v24 = vpop.permute.xlu2 %4546  ;;  %v4453_v18 = vpop.permute.xlu1 %4452 }
  0xe5   : > { %v732_v47 = vsel %vm726_vm13, %v719_v3, 920167782  ;;  %v7017_v46 = vshrl.u32 %v10754_v22, 23  ;;  %v7029_v19 = vmul.f32 %v4547_v24, %v6556_v49  ;;  %v4474_v55 = vmul.f32 %v4453_v18, %v4202_v1 }
  0xe6   : > { %v7010_v17 = vadd.f32 %v6861_v28, %v4475_v23  ;;  %v733_v8 = vsel %vm725_vm14, %v716_v52, %v732_v47  ;;  %v735_v28 = vsel %vm723_vm12, %v6959_v54, %v716_v52  ;;  %v736_v60 = vsel %vm726_vm13, %v722_v37, 1326507024 }
  0xe7   : > { %4654 = vperm.xlu0 %6035, %v4280_v29   ;;  %v7021_v14 = vsel %vm724_vm15, %v731_v41, %v733_v8  ;;  %10755 = vst [vmem:[#allocation35_spill] sm:$0xff] %v7029_v19  ;;  %v7032_v23 = vmul.f32 %v4547_v24, %v6553_v48  ;;  %v4456_v29 = vmul.f32 %v4453_v18, %v4190_v34  ;;  %v10756_v22 = vmov 683565275   ;;  %v4275_v18 = vld [vmem:[%s10630_s7 + $0xb0] sm:$0xff] }
  0xe8   : > { %v707_v41 = vshrl.u32 %v10756_v22, %v6760_v2  ;;  %v737_v8 = vsel %vm725_vm14, %v719_v3, %v736_v60  ;;  %v765_v32 = vshrl.u32 %v7021_v14, 16  ;;  %v10757_v37 = vsub.f32 %v6933_v4, %v6831_v53  ;;  %v4234_v2 = vld [vmem:[%s10629_s6 + $0xe8] sm:$0xff]  ;;  %v4233_v3 = vld [vmem:[%s10629_s6 + $0xe0] sm:$0xff] }
  0xe9   : > { %v4467_v47 = vpop.permute.xlu0 %4466  ;;  %v4476_v24 = vadd.f32 %v4474_v55, %v6949_v7  ;;  %v738_v53 = vsel %vm724_vm15, %v735_v28, %v737_v8  ;;  %v740_v4 = vand.u32 65535, %v7038_v5  ;;  %v764_v7 = vand.u32 65535, %v7021_v14  ;;  %4864 = vperm.xlu2 %6037, %v4234_v2   ;;  %4859 = vperm.xlu1 %6036, %v4233_v3   ;;  %v4191_v28 = vld [vmem:[%s6495_s28 + $0x50] sm:$0xff] }
  0xea   : > { %v4458_v10 = vadd.f32 %v4456_v29, %v10757_v37  ;;  %v4470_v62 = vmul.f32 %v4467_v47, %v4202_v1  ;;  %v4478_v40 = vmul.f32 %v4467_v47, %v4190_v34  ;;  %v742_v60 = vand.u32 65535, %v738_v53  ;;  %v4203_v47 = vld [vmem:[%s6501_s21 + $0x50] sm:$0xff] }
  0xeb   : > { %v743_v29 = vshrl.u32 %v738_v53, 16  ;;  %v7063_v55 = vsel %vm1866_vm11, %v6895_v58, 0  ;;  %v7078_v58 = vsel %vm723_vm12, %v707_v41, %v6957_v13  ;;  %v7083_v2 = vsel %vm725_vm14, %v6959_v54, %v728_v51 }
  0xec   : > { %v4472_v34 = vsub.f32 %v4458_v10, %v4470_v62  ;;  %v4480_v1 = vadd.f32 %v4478_v40, %v4476_v24  ;;  %v741_v62 = vshrl.u32 %v7038_v5, 16  ;;  %v7069_v40 = vmul.u32 %v765_v32, %v740_v4  ;;  %v4752_v37 = vpop.permute.xlu2 %4751  ;;  %v4484_v24 = vpop.permute.xlu1 %4483 }
  0xed   : > { %v745_v8 = vmul.u32 %v743_v29, %v740_v4  ;;  %v7093_v13 = vmul.f32 %v4752_v37, %v6520_v27  ;;  %v4491_v41 = vmul.f32 %v4484_v24, %v4191_v28  ;;  %v10760_v51 = vsub.f32 %v6990_v61, %v6853_v36  ;;  %v4240_v61 = vld [vmem:[%s10629_s6 + $0x118] sm:$0xff] }
  0xee   : > { %v4494_v10 = vadd.f32 %v6907_v33, %v4472_v34  ;;  %v7073_v14 = vadd.f32 %v6910_v56, %v4480_v1  ;;  %v7085_v3 = vmul.u32 %v742_v60, %v741_v62  ;;  %v766_v33 = vmul.u32 %v764_v7, %v740_v4 }
  0xef   : > { %5061 = vperm.xlu0 %6035, %v4275_v18   ;;  %v7087_v53 = vmul.u32 %v764_v7, %v741_v62  ;;  %v7090_v56 = vmul.f32 %v4752_v37, %v6517_v26  ;;  %10759 = vst [vmem:[#allocation37_spill] sm:$0xff] %v7093_v13  ;;  %v4509_v34 = vmul.f32 %v4484_v24, %v4203_v47  ;;  %v748_v52 = vshll.u32 %v745_v8, 16  ;;  %v4239_v37 = vld [vmem:[%s10629_s6 + $0x110] sm:$0xff] }
  0xf0   : > { %v744_v18 = vmul.u32 %v742_v60, %v740_v4  ;;  %v770_v12 = vshll.u32 %v7069_v40, 16  ;;  %v4493_v7 = vadd.f32 %v4491_v41, %v10760_v51  ;;  %v4276_v4 = vld [vmem:[%s10630_s7 + $0xb8] sm:$0xff]  ;;  %v747_v60 = vmul.u32 %v743_v29, %v741_v62 }
  0xf1   : > { %10758 = vst [vmem:[#allocation36_spill] sm:$0xff] %v7090_v56  ;;  %v4498_v1 = vpop.permute.xlu0 %4497  ;;  %v4511_v57 = vadd.f32 %v4509_v34, %v7010_v17  ;;  %v750_v24 = vshll.u32 %v7085_v3, 16  ;;  %v10761_v17 = vmov 0   ;;  %4671 = vperm.xlu2 %6037, %v4239_v37   ;;  %5066 = vperm.xlu1 %6036, %v4276_v4   ;;  %v749_v41 = vshrl.u32 %v745_v8, 16 }
  0xf2   : > { %v4505_v35 = vmul.f32 %v4498_v1, %v4203_v47  ;;  %v4513_v56 = vmul.f32 %v4498_v1, %v4191_v28  ;;  %vm752_vm0 = vc.u32 %v744_v18, %v748_v52  ;;  %v754_v54 = vadd.s32 %v748_v52, %v744_v18 }
  0xf3   : > { %v753_v28 = vsel %vm752_vm0, 1, %v10761_v17  ;;  %v769_v47 = vmul.u32 %v765_v32, %v741_v62  ;;  %vm774_vm2 = vc.u32 %v766_v33, %v770_v12  ;;  %v772_v18 = vshll.u32 %v7087_v53, 16 }
  0xf4   : > { %v4507_v13 = vsub.f32 %v4493_v7, %v4505_v35  ;;  %v4515_v36 = vadd.f32 %v4513_v56, %v4511_v57  ;;  %v755_v34 = vadd.s32 %v753_v28, %v747_v60  ;;  %vm756_vm1 = vc.u32 %v754_v54, %v750_v24  ;;  %v4771_v57 = vpop.permute.xlu2 %4770  ;;  %v4503_v52 = vpop.permute.xlu1 %4502 }
  0xf5   : > { %v757_v51 = vsel %vm756_vm1, 1, %v10761_v17  ;;  %v775_v35 = vsel %vm774_vm2, 1, %v10761_v17  ;;  %v776_v7 = vadd.s32 %v770_v12, %v766_v33  ;;  %v7118_v8 = vmul.f32 %v4771_v57, %v6556_v49 }
  0xf6   : > { %v4517_v29 = vmul.f32 %v4507_v13, %v4507_v13  ;;  %v4519_v1 = vmul.f32 %v4515_v36, %v4515_v36  ;;  %v759_v56 = vadd.s32 %v757_v51, %v755_v34  ;;  %v777_v32 = vadd.s32 %v775_v35, %v769_v47  ;;  %v4235_v34 = vld [vmem:[%s10629_s6 + $0xf0] sm:$0xff] }
  0xf7   : > { %4676 = vperm.xlu0 %6035, %v4240_v61   ;;  %10763 = vst [vmem:[#allocation39_spill] sm:$0xff] %v7118_v8  ;;  %v7121_v13 = vmul.f32 %v4771_v57, %v6553_v48  ;;  %v4506_v54 = vmul.f32 %v4503_v52, %v6890_v6  ;;  %v4514_v37 = vmul.f32 %v4503_v52, %v6887_v42  ;;  %v751_v60 = vshrl.u32 %v7085_v3, 16  ;;  %v4282_v61 = vld [vmem:[%s10630_s7 + $0xe8] sm:$0xff]  ;;  %v4281_v6 = vld [vmem:[%s10630_s7 + $0xe0] sm:$0xff] }
  0xf8   : > { %v7115_v62 = vadd.f32 %v4519_v1, %v4517_v29  ;;  %v760_v24 = vadd.s32 %v759_v56, %v749_v41  ;;  %vm778_vm3 = vc.u32 %v776_v7, %v772_v18  ;;  %v7155_v29 = vshrl.u32 %v7063_v55, 5 }
  0xf9   : > { %10764 = vst [vmem:[#allocation40_spill] sm:$0xff] %v7121_v13  ;;  %v4533_v4 = vpop.permute.xlu0 %4532  ;;  %v4508_v36 = vsub.f32 %v4494_v10, %v4506_v54  ;;  %v779_v42 = vsel %vm778_vm3, 1, %v10761_v17  ;;  %v4516_v3 = vadd.f32 %v4514_v37, %v7073_v14  ;;  %4878 = vperm.xlu2 %6037, %v4282_v61   ;;  %4873 = vperm.xlu1 %6036, %v4281_v6   ;;  %v10767_v1 = vand.u32 2147483647, %v6582_v11 }
  0xfa   : > { %10762 = vst [vmem:[#allocation38_spill] sm:$0xff] %v7115_v62  ;;  %v7127_v12 = vmul.f32 %v4533_v4, %v6553_v48  ;;  %v4554_v33 = vmul.f32 %v4533_v4, %v6556_v49  ;;  %v730_v48 = vsel %vm724_vm15, %v7078_v58, %v7083_v2  ;;  %v771_v49 = vshrl.u32 %v7069_v40, 16 }
  0xfb   : > { %v781_v10 = vadd.s32 %v779_v42, %v777_v32  ;;  %v4518_v28 = vmul.f32 %v4508_v36, %v4508_v36  ;;  %v7152_v14 = vadd.s32 %v760_v24, %v751_v60  ;;  %v4520_v16 = vmul.f32 %v4516_v3, %v4516_v3 }
  0xfc   : > { %10765 = vst [vmem:[#allocation41_spill] sm:$0xff] %v7127_v12  ;;  %v7147_v41 = vadd.f32 %v7032_v23, %v4554_v33  ;;  %v773_v40 = vshrl.u32 %v7087_v53, 16  ;;  %v7158_v2 = vadd.s32 %v776_v7, %v772_v18  ;;  %v784_v23 = vmul.u32 %v7038_v5, %v730_v48  ;;  %v4542_v56 = vpop.permute.xlu1 %4541 }
  0xfd   : > { %v782_v58 = vadd.s32 %v781_v10, %v771_v49  ;;  %v852_v51 = vand.u32 8388607, %v10767_v1  ;;  %v10768_v35 = vmov 2475754826   ;;  %v7165_v52 = vadd.f32 %v4520_v16, %v4518_v28 }
  0xfe   : > { %10766 = vst [vmem:[#allocation42_spill] sm:$0xff] %v7147_v41  ;;  %v863_v57 = vshrl.u32 %v10768_v35, %v6876_v59  ;;  %v862_v54 = vshll.u32 %v10756_v22, %v6794_v43  ;;  %v10770_v53 = vmov 2131351028   ;;  %v4549_v7 = vmul.f32 %v4542_v56, %v6520_v27 }
  0xff   : > { %10769 = vst [vmem:[#allocation43_spill] sm:$0xff] %v7165_v52  ;;  %5083 = vperm.xlu0 %6035, %v4235_v34   ;;  %v783_v32 = vadd.s32 %v782_v58, %v773_v40  ;;  %v866_v18 = vshrl.u32 %v10770_v53, %v6876_v59  ;;  %v4557_v5 = vmul.f32 %v4542_v56, %v6517_v26  ;;  %v10771_v33 = vmov 2102212464  }
 0x100   : > { %vm786_vm5 = vc.u32 %v7152_v14, %v7158_v2  ;;  %v865_v37 = vshll.u32 %v10768_v35, %v6794_v43  ;;  %v864_v24 = vor.u32 %v863_v57, %v862_v54  ;;  %v868_v36 = vshll.u32 %v10770_v53, %v6794_v43 }
 0x101   : > { %v4564_v4 = vpop.permute.xlu0 %4563  ;;  %v787_v60 = vadd.s32 1, %v783_v32  ;;  %v869_v61 = vshrl.u32 %v10771_v33, %v6876_v59  ;;  %v4551_v6 = vsub.f32 %v6966_v20, %v4549_v7  ;;  %v4559_v27 = vadd.f32 %v4557_v5, %v6969_v31 }
 0x102   : > { %v4571_v26 = vmul.f32 %v4564_v4, %v6594_v21  ;;  %v4589_v42 = vmul.f32 %v4564_v4, %v6597_v25  ;;  %v867_v48 = vor.u32 %v866_v18, %v865_v37  ;;  %v871_v49 = vshll.u32 %v10771_v33, %v6794_v43 }
 0x103   : > { %v788_v3 = vsel %vm786_vm5, %v787_v60, %v783_v32  ;;  %v10772_v10 = vmov 920167782   ;;  %v870_v20 = vor.u32 %v869_v61, %v868_v36  ;;  %v853_v58 = vor.u32 8388608, %v852_v51 }
 0x104   : > { %v872_v28 = vshrl.u32 %v10772_v10, %v6876_v59  ;;  %v7189_v34 = vadd.f32 %v4571_v26, %v4551_v6  ;;  %v7191_v16 = vadd.f32 %v4589_v42, %v4559_v27  ;;  %v789_v40 = vadd.s32 %v788_v3, %v784_v23 }
 0x105   : > { %v874_v21 = vshll.u32 %v10772_v10, %v6794_v43  ;;  %v10775_v25 = vmov 1326507024   ;;  %v2176_v57 = vsel %vm2175_vm4, %v6929_v45, 0  ;;  %v885_v23 = vsel %vm877_vm6, %v864_v24, %v867_v48 }
 0x106   : > { %10773 = vst [vmem:[#allocation44_spill] sm:$0xff] %v7189_v34  ;;  %v873_v31 = vor.u32 %v872_v28, %v871_v49  ;;  %v875_v1 = vshrl.u32 %v10775_v25, %v6876_v59  ;;  %v790_v56 = vadd.s32 536870912, %v789_v40  ;;  %v889_v54 = vsel %vm877_vm6, %v867_v48, %v870_v20 }
 0x107   : > { %10774 = vst [vmem:[#allocation45_spill] sm:$0xff] %v7191_v16  ;;  %v5928_v18 = vadd.s32 4294967169, %v7017_v46  ;;  %v7219_v37 = vshll.u32 %v853_v58, 8  ;;  %v7222_v4 = vand.u32 31, %v7063_v55  ;;  %v7224_v60 = vshrl.u32 %v2176_v57, 5 }
 0x108   : > { %v876_v32 = vor.u32 %v875_v1, %v874_v21  ;;  %v886_v43 = vsel %vm880_vm7, %v873_v31, 920167782  ;;  %v7207_v51 = vshrl.u32 %v790_v56, 30  ;;  %v10777_v46 = vand.u32 2139095040, %v6653_v0 }
 0x109   : > { %v887_v45 = vsel %vm879_vm8, %v870_v20, %v886_v43  ;;  %10776 = vst [vmem:[#allocation46_spill] sm:$0xff] %v7224_v60  ;;  %v894_v49 = vand.u32 65535, %v7219_v37  ;;  %v2328_v58 = vadd.s32 1, %v5928_v18  ;;  %v7234_v21 = vand.u32 31, %v2176_v57 }
 0x10a   : > { %v888_v7 = vsel %vm878_vm9, %v885_v23, %v887_v45  ;;  %v890_v5 = vsel %vm880_vm7, %v876_v32, 1326507024  ;;  %v792_v36 = vshll.u32 %v7207_v51, 30  ;;  %v2631_v6 = vshrl.u32 %v10777_v46, 23 }
 0x10b   : > { %v891_v61 = vsel %vm879_vm8, %v873_v31, %v890_v5  ;;  %v918_v26 = vand.u32 65535, %v888_v7  ;;  %v919_v42 = vshrl.u32 %v888_v7, 16  ;;  %10778 = vst [vmem:[#allocation47_spill] sm:$0xff] %v7234_v21  ;;  %v882_v1 = vsel %vm880_vm7, %v870_v20, 2102212464 }
 0x10c   : > { %v892_v27 = vsel %vm878_vm9, %v889_v54, %v891_v61  ;;  %v793_v3 = vsub.s32 %v789_v40, %v792_v36  ;;  %v895_v31 = vshrl.u32 %v7219_v37, 16  ;;  %v861_v32 = vshrl.u32 %v10756_v22, %v6876_v59 }
 0x10d   : > { %v896_v55 = vand.u32 65535, %v892_v27  ;;  %v897_v28 = vshrl.u32 %v892_v27, 16  ;;  %v921_v23 = vmul.u32 %v919_v42, %v894_v49  ;;  %v5936_v43 = vadd.s32 4294967169, %v2631_v6 }
 0x10e   : > { %vm794_vm10 = vcmp.lt.s32.totalorder %v793_v3, 0  ;;  %v795_v56 = vsub.s32 0, %v793_v3  ;;  %v785_v40 = vadd.s32 %v7158_v2, %v7152_v14  ;;  %v881_v57 = vsel %vm877_vm6, %v861_v32, %v864_v24 }
 0x10f   : > { %v899_v45 = vmul.u32 %v897_v28, %v894_v49  ;;  %v900_v54 = vmul.u32 %v896_v55, %v895_v31  ;;  %v883_v20 = vsel %vm879_vm8, %v867_v48, %v882_v1  ;;  %v922_v7 = vmul.u32 %v918_v26, %v895_v31 }
 0x110   : > { %v796_v18 = vsel %vm794_vm10, %v795_v56, %v793_v3  ;;  %vm2329_vm11 = vcmp.gt.s32.totalorder %v2328_v58, 0  ;;  %v898_v36 = vmul.u32 %v896_v55, %v894_v49  ;;  %v920_v59 = vmul.u32 %v918_v26, %v894_v49 }
 0x111   : > { %v797_v5 = vclz %v796_v18  ;;  %v902_v61 = vshll.u32 %v899_v45, 16  ;;  %v901_v46 = vmul.u32 %v897_v28, %v895_v31  ;;  %v903_v6 = vshrl.u32 %v899_v45, 16 }
 0x112   : > { %v923_v27 = vmul.u32 %v919_v42, %v895_v31  ;;  %v924_v47 = vshll.u32 %v921_v23, 16  ;;  %v904_v2 = vshll.u32 %v900_v54, 16  ;;  %v926_v24 = vshll.u32 %v922_v7, 16 }
 0x113   : > { %v5892_v14 = vadd.s32 4294967294, %v797_v5  ;;  %vm906_vm12 = vc.u32 %v898_v36, %v902_v61  ;;  %v908_v56 = vadd.s32 %v902_v61, %v898_v36  ;;  %v905_v31 = vshrl.u32 %v900_v54, 16 }
 0x114   : > { %v907_v52 = vsel %vm906_vm12, 1, %v10761_v17  ;;  %vm928_vm13 = vc.u32 %v920_v59, %v924_v47  ;;  %v930_v32 = vadd.s32 %v924_v47, %v920_v59  ;;  %v925_v5 = vshrl.u32 %v921_v23, 16 }
 0x115   : > { %vm5893_vm14 = vcmp.lt.s32.totalorder %v5892_v14, 0  ;;  %v909_v48 = vadd.s32 %v907_v52, %v901_v46  ;;  %vm910_vm15 = vc.u32 %v908_v56, %v904_v2  ;;  %v929_v55 = vsel %vm928_vm13, 1, %v10761_v17  ;;  %v10779_v56 = vld [vmem:[#allocation24_spill] sm:$0xff] }
 0x116   : > { %v800_v1 = vsel %vm5893_vm14, 0, %v5892_v14  ;;  %v911_v26 = vsel %vm910_vm15, 1, %v10761_v17  ;;  %v931_v49 = vadd.s32 %v929_v55, %v923_v27  ;;  %vm932_vm0 = vc.u32 %v930_v32, %v926_v24 }
 0x117   : > { %v801_v42 = vsub.s32 32, %v800_v1  ;;  %v805_v28 = vsub.s32 4294967266, %v800_v1  ;;  %v913_v45 = vadd.s32 %v911_v26, %v909_v48  ;;  %v802_v18 = vshll.u32 %v793_v3, %v800_v1  ;;  %v10780_v1 = vld [vmem:[#allocation25_spill] sm:$0xff] }
 0x118   : > { %v933_v36 = vsel %vm932_vm0, 1, %v10761_v17  ;;  %v10689_v47 = vand.u32 2147483647, %v6536_v39  ;;  %v7253_v14 = vsub.s32 32, %v7222_v4  ;;  %v884_v27 = vsel %vm878_vm9, %v881_v57, %v883_v20 }
 0x119   : > { %v803_v61 = vshrl.u32 %v785_v40, %v801_v42  ;;  %v806_v52 = vadd.s32 127, %v805_v28  ;;  %v914_v59 = vadd.s32 %v913_v45, %v903_v6  ;;  %v935_v46 = vadd.s32 %v933_v36, %v931_v49 }
 0x11a   : > { %v927_v2 = vshrl.u32 %v922_v7, 16  ;;  %v7258_v54 = vsub.s32 32, %v10779_v56  ;;  %v7263_v40 = vsel %vm2329_vm11, %v2328_v58, 0  ;;  %v7265_v6 = vadd.s32 1, %v5936_v43 }
 0x11b   : > { %v804_v3 = vor.u32 %v803_v61, %v802_v18  ;;  %v807_v23 = vshll.u32 %v806_v52, 23  ;;  %v7260_v48 = vadd.s32 %v914_v59, %v905_v31  ;;  %v936_v55 = vadd.s32 %v935_v46, %v925_v5  ;;  %v10781_v46 = vld [vmem:[#allocation20_spill] sm:$0xff] }
 0x11c   : > { %v7268_v49 = vadd.s32 %v930_v32, %v926_v24  ;;  %v938_v20 = vmul.u32 %v7219_v37, %v884_v27  ;;  %v1245_v7 = vand.u32 8388607, %v10689_v47  ;;  %v1258_v58 = vshll.u32 %v10768_v35, %v10779_v56 }
 0x11d   : > { %v808_v15 = vor.u32 4788187, %v807_v23  ;;  %v937_v57 = vadd.s32 %v936_v55, %v927_v2  ;;  %v811_v42 = vcvt.s32.f32 %v804_v3  ;;  %v1259_v43 = vshrl.u32 %v10770_v53, %v7258_v54 }
 0x11e   : > { %vm940_vm1 = vc.u32 %v7260_v48, %v7268_v49  ;;  %v1261_v32 = vshll.u32 %v10770_v53, %v10779_v56  ;;  %v1262_v37 = vshrl.u32 %v10771_v33, %v7258_v54  ;;  %v1255_v31 = vshll.u32 %v10756_v22, %v10779_v56 }
 0x11f   : > { %v809_v28 = vand.u32 2147483647, %v808_v15  ;;  %v941_v24 = vadd.s32 1, %v937_v57  ;;  %v1264_v45 = vshll.u32 %v10771_v33, %v10779_v56  ;;  %v1265_v18 = vshrl.u32 %v10772_v10, %v7258_v54 }
 0x120   : > { %v1267_v5 = vshll.u32 %v10772_v10, %v10779_v56  ;;  %v1256_v52 = vshrl.u32 %v10768_v35, %v7258_v54  ;;  %v1268_v59 = vshrl.u32 %v10775_v25, %v7258_v54  ;;  %v7296_v3 = vor.u32 %v1259_v43, %v1258_v58  ;;  %v10785_v43 = vld [vmem:[#allocation23_spill] sm:$0xff] }
 0x121   : > { %v812_v36 = vmul.f32 %v811_v42, %v809_v28  ;;  %v942_v61 = vsel %vm940_vm1, %v941_v24, %v937_v57  ;;  %v7298_v23 = vor.u32 %v1262_v37, %v1261_v32  ;;  %v1246_v15 = vor.u32 8388608, %v1245_v7 }
 0x122   : > { %v943_v2 = vadd.s32 %v942_v61, %v938_v20  ;;  %v1266_v47 = vor.u32 %v1265_v18, %v1264_v45  ;;  %v1269_v26 = vor.u32 %v1268_v59, %v1267_v5  ;;  %v10782_v56 = vand.u32 2147483647, %v6534_v38 }
 0x123   : > { %v813_v55 = vxor.u32 2147483648, %v812_v36  ;;  %vm693_vm3 = vcmp.lt.s32.totalorder %v6534_v38, 0  ;;  %v815_v42 = vsub.s32 4, %v7207_v51  ;;  %v1257_v58 = vor.u32 %v1256_v52, %v1255_v31 }
 0x124   : > { %vm7302_vm2 = vcmp.le.f32.partialorder %v10782_v56, 0.7853982  ;;  %v944_v28 = vadd.s32 536870912, %v943_v2  ;;  %vm1270_vm4 = vcmp.lt.s32.totalorder %v10785_v43, 1  ;;  %vm1272_vm5 = vcmp.lt.s32.totalorder %v10785_v43, 3 }
 0x125   : > { %v814_v20 = vsel %vm693_vm3, %v813_v55, %v812_v36  ;;  %vm1273_vm6 = vcmp.lt.s32.totalorder %v10785_v43, 4  ;;  %v1282_v32 = vsel %vm1270_vm4, %v7296_v3, %v7298_v23  ;;  %v7330_v18 = vshll.u32 %v1246_v15, 8 }
 0x126   : > { %v7315_v7 = vsel %vm7302_vm2, %v6534_v38, %v814_v20  ;;  %v945_v24 = vshrl.u32 %v944_v28, 30  ;;  %v1279_v31 = vsel %vm1273_vm6, %v1266_v47, 920167782  ;;  %v1283_v45 = vsel %vm1273_vm6, %v1269_v26, 1326507024 }
 0x127   : > { %v7324_v37 = vmul.f32 %v7315_v7, %v7315_v7  ;;  %v7333_v5 = vshrl.u32 %v7263_v40, 5  ;;  %vm1271_vm7 = vcmp.lt.s32.totalorder %v10785_v43, 2  ;;  %v1284_v61 = vsel %vm1272_vm5, %v1266_v47, %v1283_v45 }
 0x128   : > { %v946_v36 = vshll.u32 %v945_v24, 30  ;;  %v7341_v52 = vsel %vm693_vm3, %v815_v42, %v7207_v51  ;;  %v1285_v55 = vsel %vm1271_vm7, %v1282_v32, %v1284_v61  ;;  %v1278_v56 = vsel %vm1270_vm4, %v1257_v58, %v7296_v3 }
 0x129   : > { %10786 = vst [vmem:[#allocation24_spill] sm:$0xff] %v7333_v5  ;;  %v820_v59 = vmul.f32 -0.001358992, %v7324_v37  ;;  %v827_v26 = vmul.f32 -0.00019511016, %v7324_v37  ;;  %v1280_v47 = vsel %vm1272_vm5, %v7298_v23, %v1279_v31  ;;  %v1289_v28 = vand.u32 65535, %v1285_v55 }
 0x12a   : > { %v7347_v15 = vsub.s32 %v943_v2, %v946_v36  ;;  %v1287_v20 = vand.u32 65535, %v7330_v18  ;;  %v1290_v45 = vshrl.u32 %v1285_v55, 16  ;;  %v1254_v2 = vshrl.u32 %v10756_v22, %v7258_v54 }
 0x12b   : > { %v821_v51 = vadd.f32 0.041655596, %v820_v59  ;;  %v828_v42 = vadd.f32 0.008332121, %v827_v26  ;;  %v1288_v36 = vshrl.u32 %v7330_v18, 16  ;;  %v7362_v61 = vand.u32 31, %v7263_v40 }
 0x12c   : > { %vm948_vm8 = vcmp.lt.s32.totalorder %v7347_v15, 0  ;;  %v949_v32 = vsub.s32 0, %v7347_v15  ;;  %v10787_v31 = vand.u32 2139095040, %v10780_v1  ;;  %v1292_v26 = vmul.u32 %v1290_v45, %v1287_v20 }
 0x12d   : > { %v822_v59 = vmul.f32 %v821_v51, %v7324_v37  ;;  %vm847_vm9 = vcmp.lt.s32.totalorder %v6582_v11, 0  ;;  %v1281_v62 = vsel %vm1271_vm7, %v1278_v56, %v1280_v47  ;;  %v1293_v54 = vmul.u32 %v1289_v28, %v1288_v36 }
 0x12e   : > { %v7366_v27 = vshrl.u32 %v10787_v31, 23  ;;  %v950_v55 = vsel %vm948_vm8, %v949_v32, %v7347_v15  ;;  %v818_v40 = vsel %vm7302_vm2, 0, %v7341_v52  ;;  %v829_v16 = vmul.f32 %v828_v42, %v7324_v37 }
 0x12f   : > { %v10788_v31 = vand.u32 2147483647, %v6582_v11  ;;  %v939_v51 = vadd.s32 %v7268_v49, %v7260_v48  ;;  %v951_v32 = vclz %v950_v55  ;;  %v969_v13 = vsub.s32 4, %v945_v24 }
 0x130   : > { %v1274_v56 = vsel %vm1270_vm4, %v1254_v2, %v1257_v58  ;;  %v1291_v47 = vmul.u32 %v1289_v28, %v1287_v20  ;;  %v1295_v8 = vshll.u32 %v1292_v26, 16  ;;  %v823_v57 = vadd.f32 -0.4999988, %v822_v59 }
 0x131   : > { %vm7379_vm10 = vcmp.le.f32.partialorder %v10788_v31, 0.7853982  ;;  %v5895_v52 = vadd.s32 4294967294, %v951_v32  ;;  %v1311_v41 = vand.u32 65535, %v1281_v62  ;;  %v1312_v42 = vshrl.u32 %v1281_v62, 16 }
 0x132   : > { %v1294_v19 = vmul.u32 %v1290_v45, %v1288_v36  ;;  %v1297_v12 = vshll.u32 %v1293_v54, 16  ;;  %vm1299_vm11 = vc.u32 %v1291_v47, %v1295_v8  ;;  %v1301_v31 = vadd.s32 %v1295_v8, %v1291_v47 }
 0x133   : > { %v830_v5 = vadd.f32 -0.16666654, %v829_v16  ;;  %vm5896_vm12 = vcmp.lt.s32.totalorder %v5895_v52, 0  ;;  %v1275_v48 = vsel %vm1273_vm6, %v7298_v23, 2102212464  ;;  %v1300_v49 = vsel %vm1299_vm11, 1, %v10761_v17 }
 0x134   : > { %v954_v55 = vsel %vm5896_vm12, 0, %v5895_v52  ;;  %v1302_v58 = vadd.s32 %v1300_v49, %v1294_v19  ;;  %vm1303_vm13 = vc.u32 %v1301_v31, %v1297_v12  ;;  %v1314_v28 = vmul.u32 %v1312_v42, %v1287_v20 }
 0x135   : > { %v955_v2 = vsub.s32 32, %v954_v55  ;;  %v970_v62 = vsel %vm847_vm9, %v969_v13, %v945_v24  ;;  %v1296_v45 = vshrl.u32 %v1292_v26, 16  ;;  %v1315_v59 = vmul.u32 %v1311_v41, %v1288_v36 }
 0x136   : > { %v824_v8 = vmul.f32 %v823_v57, %v7324_v37  ;;  %v959_v16 = vsub.s32 4294967266, %v954_v55  ;;  %v1304_v32 = vsel %vm1303_vm13, 1, %v10761_v17  ;;  %v1317_v47 = vshll.u32 %v1314_v28, 16 }
 0x137   : > { %v831_v23 = vmul.f32 %v830_v5, %v7324_v37  ;;  %v957_v63 = vshrl.u32 %v939_v51, %v955_v2  ;;  %v1306_v60 = vadd.s32 %v1304_v32, %v1302_v58  ;;  %v1313_v52 = vmul.u32 %v1311_v41, %v1287_v20 }
 0x138   : > { %v956_v19 = vshll.u32 %v7347_v15, %v954_v55  ;;  %v960_v12 = vadd.s32 127, %v959_v16  ;;  %v972_v31 = vsel %vm7379_vm10, 0, %v970_v62  ;;  %v1276_v13 = vsel %vm1272_vm5, %v7296_v3, %v1275_v48 }
 0x139   : > { %v1307_v24 = vadd.s32 %v1306_v60, %v1296_v45  ;;  %v1316_v26 = vmul.u32 %v1312_v42, %v1288_v36  ;;  %v1319_v57 = vshll.u32 %v1315_v59, 16  ;;  %vm1321_vm14 = vc.u32 %v1313_v52, %v1317_v47  ;;  %v10791_v42 = vld [vmem:[#allocation13_spill] sm:$0xff] }
 0x13a   : > { %v958_v49 = vor.u32 %v957_v63, %v956_v19  ;;  %v961_v21 = vshll.u32 %v960_v12, 23  ;;  %v1322_v37 = vsel %vm1321_vm14, 1, %v10761_v17  ;;  %v1323_v5 = vadd.s32 %v1317_v47, %v1313_v52 }
 0x13b   : > { %v7403_v41 = vadd.f32 1.0, %v824_v8  ;;  %v832_v15 = vadd.f32 1.0, %v831_v23  ;;  %v1298_v20 = vshrl.u32 %v1293_v54, 16  ;;  %v1324_v51 = vadd.s32 %v1322_v37, %v1316_v26 }
 0x13c   : > { %v7405_v55 = vand.u32 3, %v818_v40  ;;  %v962_v58 = vor.u32 4788187, %v961_v21  ;;  %v1277_v3 = vsel %vm1271_vm7, %v1274_v56, %v1276_v13  ;;  %vm1325_vm15 = vc.u32 %v1323_v5, %v1319_v57 }
 0x13d   : > { %v7409_v60 = vand.u32 3, %v972_v31  ;;  %v7411_v36 = vadd.s32 %v1307_v24, %v1298_v20  ;;  %v1326_v63 = vsel %vm1325_vm15, 1, %v10761_v17  ;;  %v1392_v48 = vand.u32 2147483647, %v10791_v42 }
 0x13e   : > { %v963_v2 = vand.u32 2147483647, %v962_v58  ;;  %v965_v62 = vcvt.s32.f32 %v958_v49  ;;  %v1318_v45 = vshrl.u32 %v1314_v28, 16  ;;  %v1328_v54 = vadd.s32 %v1326_v63, %v1324_v51 }
 0x13f   : > { %v7416_v40 = vmul.f32 %v832_v15, %v7315_v7  ;;  %v841_v21 = vxor.u32 2147483648, %v7403_v41  ;;  %v7419_v43 = vadd.s32 %v1323_v5, %v1319_v57  ;;  %v7422_v56 = vsub.s32 32, %v6884_v30 }
 0x140   : > { %v966_v8 = vmul.f32 %v965_v62, %v963_v2  ;;  %v1320_v16 = vshrl.u32 %v1315_v59, 16  ;;  %v1329_v32 = vadd.s32 %v1328_v54, %v1318_v45  ;;  %v1331_v47 = vmul.u32 %v7330_v18, %v1277_v3 }
 0x141   : > { %vm1333_vm0 = vc.u32 %v7411_v36, %v7419_v43  ;;  %v1399_v28 = vand.u32 8388607, %v1392_v48  ;;  %v1409_v7 = vshll.u32 %v10756_v22, %v6884_v30  ;;  %v1413_v23 = vshrl.u32 %v10770_v53, %v7422_v56 }
 0x142   : > { %v967_v52 = vxor.u32 2147483648, %v966_v8  ;;  %v1330_v19 = vadd.s32 %v1329_v32, %v1320_v16  ;;  %v1410_v59 = vshrl.u32 %v10768_v35, %v7422_v56  ;;  %v1416_v18 = vshrl.u32 %v10771_v33, %v7422_v56 }
 0x143   : > { %vm837_vm1 = vcmp.eq.s32.totalorder %v7405_v55, 0  ;;  %v1412_v12 = vshll.u32 %v10768_v35, %v6884_v30  ;;  %v1415_v31 = vshll.u32 %v10770_v53, %v6884_v30  ;;  %v1418_v13 = vshll.u32 %v10771_v33, %v6884_v30 }
 0x144   : > { %v1419_v24 = vshrl.u32 %v10772_v10, %v7422_v56  ;;  %v968_v26 = vsel %vm847_vm9, %v967_v52, %v966_v8  ;;  %v1334_v57 = vadd.s32 1, %v1330_v19  ;;  %v1421_v49 = vshll.u32 %v10772_v10, %v6884_v30 }
 0x145   : > { %v1422_v37 = vshrl.u32 %v10775_v25, %v7422_v56  ;;  %v7455_v5 = vsel %vm7379_vm10, %v6582_v11, %v968_v26  ;;  %v7457_v15 = vor.u32 %v1413_v23, %v1412_v12  ;;  %v7459_v20 = vor.u32 %v1416_v18, %v1415_v31 }
 0x146   : > { %v1420_v51 = vor.u32 %v1419_v24, %v1418_v13  ;;  %v973_v58 = vmul.f32 %v7455_v5, %v7455_v5  ;;  %v1335_v30 = vsel %vm1333_vm0, %v1334_v57, %v1330_v19  ;;  %v7466_v3 = vor.u32 %v1410_v59, %v1409_v7 }
 0x147   : > { %v1423_v63 = vor.u32 %v1422_v37, %v1421_v49  ;;  %v838_v2 = vxor.u32 2147483648, %v7416_v40  ;;  %v1336_v34 = vadd.s32 %v1335_v30, %v1331_v47  ;;  %v1400_v62 = vor.u32 8388608, %v1399_v28 }
 0x148   : > { %vm1424_vm2 = vcmp.lt.s32.totalorder %v6878_v44, 1  ;;  %v974_v45 = vmul.f32 -0.001358992, %v973_v58  ;;  %v981_v54 = vmul.f32 -0.00019511016, %v973_v58  ;;  %vm1426_vm3 = vcmp.lt.s32.totalorder %v6878_v44, 3 }
 0x149   : > { %vm1427_vm4 = vcmp.lt.s32.totalorder %v6878_v44, 4  ;;  %vm834_vm5 = vweird.f32 %v6534_v38  ;;  %v1337_v8 = vadd.s32 536870912, %v1336_v34  ;;  %v1436_v32 = vsel %vm1424_vm2, %v7457_v15, %v7459_v20 }
 0x14a   : > { %v1433_v16 = vsel %vm1427_vm4, %v1420_v51, 920167782  ;;  %v1437_v47 = vsel %vm1427_vm4, %v1423_v63, 1326507024  ;;  %v975_v28 = vadd.f32 0.041655596, %v974_v45  ;;  %v1432_v23 = vsel %vm1424_vm2, %v7466_v3, %v7457_v15 }
 0x14b   : > { %v982_v7 = vadd.f32 0.008332121, %v981_v54  ;;  %v1434_v52 = vsel %vm1426_vm3, %v7459_v20, %v1433_v16  ;;  %v7488_v19 = vshrl.u32 %v1337_v8, 30  ;;  %vm1425_vm6 = vcmp.lt.s32.totalorder %v6878_v44, 2 }
 0x14c   : > { %v1438_v59 = vsel %vm1426_vm3, %v1420_v51, %v1437_v47  ;;  %v7493_v18 = vshll.u32 %v1400_v62, 8  ;;  %v839_v12 = vsel %vm837_vm1, %v7403_v41, %v838_v2  ;;  %v976_v31 = vmul.f32 %v975_v28, %v973_v58 }
 0x14d   : > { %v983_v13 = vmul.f32 %v982_v7, %v973_v58  ;;  %v1439_v24 = vsel %vm1425_vm6, %v1436_v32, %v1438_v59  ;;  %vm836_vm7 = vcmp.lt.s32.totalorder %v7405_v55, 2  ;;  %vm840_vm8 = vcmp.eq.s32.totalorder %v7405_v55, 2 }
 0x14e   : > { %v1339_v26 = vshll.u32 %v7488_v19, 30  ;;  %v1435_v57 = vsel %vm1425_vm6, %v1432_v23, %v1434_v52  ;;  %v842_v49 = vsel %vm840_vm8, %v841_v21, %v7416_v40  ;;  %v977_v37 = vadd.f32 -0.4999988, %v976_v31 }
 0x14f   : > { %v984_v51 = vadd.f32 -0.16666654, %v983_v13  ;;  %v1444_v30 = vshrl.u32 %v1439_v24, 16  ;;  %v843_v41 = vsel %vm836_vm7, %v839_v12, %v842_v49  ;;  %vm991_vm9 = vcmp.eq.s32.totalorder %v7409_v60, 0 }
 0x150   : > { %v7507_v63 = vsub.s32 %v1336_v34, %v1339_v26  ;;  %v1441_v2 = vand.u32 65535, %v7493_v18  ;;  %v1443_v62 = vand.u32 65535, %v1439_v24  ;;  %v978_v45 = vmul.f32 %v977_v37, %v973_v58 }
 0x151   : > { %v985_v55 = vmul.f32 %v984_v51, %v973_v58  ;;  %vm990_vm10 = vcmp.lt.s32.totalorder %v7409_v60, 2  ;;  %v1442_v54 = vshrl.u32 %v7493_v18, 16  ;;  %v1465_v8 = vand.u32 65535, %v1435_v57 }
 0x152   : > { %vm988_vm11 = vweird.f32 %v6582_v11  ;;  %vm1341_vm12 = vcmp.lt.s32.totalorder %v7507_v63, 0  ;;  %v1342_v40 = vsub.s32 0, %v7507_v63  ;;  %v1446_v21 = vmul.u32 %v1444_v30, %v1441_v2 }
 0x153   : > { %v1466_v16 = vshrl.u32 %v1435_v57, 16  ;;  %v844_v34 = vsel %vm834_vm5, nan, %v843_v41  ;;  %v979_v32 = vadd.f32 1.0, %v978_v45  ;;  %v986_v47 = vadd.f32 1.0, %v985_v55 }
 0x154   : > { %vm994_vm13 = vcmp.eq.s32.totalorder %v7409_v60, 2  ;;  %v1332_v58 = vadd.s32 %v7419_v43, %v7411_v36  ;;  %v1343_v28 = vsel %vm1341_vm12, %v1342_v40, %v7507_v63  ;;  %v1445_v7 = vmul.u32 %v1443_v62, %v1441_v2 }
 0x155   : > { %v1447_v23 = vmul.u32 %v1443_v62, %v1442_v54  ;;  %v987_v52 = vmul.f32 %v986_v47, %v7455_v5  ;;  %v995_v59 = vxor.u32 2147483648, %v979_v32  ;;  %v1344_v12 = vclz %v1343_v28 }
 0x156   : > { %v1449_v31 = vshll.u32 %v1446_v21, 16  ;;  %v1408_v38 = vshrl.u32 %v10756_v22, %v7422_v56  ;;  %v1429_v13 = vsel %vm1427_vm4, %v7459_v20, 2102212464  ;;  %v1467_v24 = vmul.u32 %v1465_v8, %v1441_v2 }
 0x157   : > { %v1468_v26 = vmul.u32 %v1466_v16, %v1441_v2  ;;  %v992_v57 = vxor.u32 2147483648, %v987_v52  ;;  %v5904_v36 = vadd.s32 4294967294, %v1344_v12  ;;  %v1448_v43 = vmul.u32 %v1444_v30, %v1442_v54 }
 0x158   : > { %vm1453_vm14 = vc.u32 %v1445_v7, %v1449_v31  ;;  %v996_v49 = vsel %vm994_vm13, %v995_v59, %v987_v52  ;;  %v1451_v5 = vshll.u32 %v1447_v23, 16  ;;  %v1455_v51 = vadd.s32 %v1449_v31, %v1445_v7 }
 0x159   : > { %v1454_v37 = vsel %vm1453_vm14, 1, %v10761_v17  ;;  %v993_v56 = vsel %vm991_vm9, %v979_v32, %v992_v57  ;;  %vm5905_vm15 = vcmp.lt.s32.totalorder %v5904_v36, 0  ;;  %v1471_v62 = vshll.u32 %v1468_v26, 16 }
 0x15a   : > { %v1456_v41 = vadd.s32 %v1454_v37, %v1448_v43  ;;  %v997_v20 = vsel %vm990_vm10, %v993_v56, %v996_v49  ;;  %v1347_v2 = vsel %vm5905_vm15, 0, %v5904_v36  ;;  %vm1457_vm0 = vc.u32 %v1455_v51, %v1451_v5 }
 0x15b   : > { %v1469_v30 = vmul.u32 %v1465_v8, %v1442_v54  ;;  %v998_v45 = vsel %vm988_vm11, nan, %v997_v20  ;;  %v1348_v55 = vsub.s32 32, %v1347_v2  ;;  %v1352_v40 = vsub.s32 4294967266, %v1347_v2 }
 0x15c   : > { %v1450_v47 = vshrl.u32 %v1446_v21, 16  ;;  %v999_v28 = vpack.c.bf16 %v998_v45, %v844_v34  ;;  %v1349_v7 = vshll.u32 %v7507_v63, %v1347_v2  ;;  %v1458_v32 = vsel %vm1457_vm0, 1, %v10761_v17 }
 0x15d   : > { %v1470_v52 = vmul.u32 %v1466_v16, %v1442_v54  ;;  %v1350_v59 = vshrl.u32 %v1332_v58, %v1348_v55  ;;  %v1353_v12 = vadd.s32 127, %v1352_v40  ;;  %v1460_v31 = vadd.s32 %v1458_v32, %v1456_v41  ;;  %v10792_v58 = vld [vmem:[#allocation8_spill] sm:$0xff] }
 0x15e   : > { %vm1475_vm1 = vc.u32 %v1467_v24, %v1471_v62  ;;  %1079 = vmatpush.bf16.msra.mxu1 %v999_v28  ;;  %v1428_v60 = vsel %vm1424_vm2, %v1408_v38, %v7466_v3  ;;  %v1473_v11 = vshll.u32 %v1469_v30, 16  ;;  %v1477_v57 = vadd.s32 %v1471_v62, %v1467_v24 }
 0x15f   : > { %v1476_v8 = vsel %vm1475_vm1, 1, %v10761_v17  ;;  %v1351_v21 = vor.u32 %v1350_v59, %v1349_v7  ;;  %v1354_v34 = vshll.u32 %v1353_v12, 23  ;;  %v1461_v36 = vadd.s32 %v1460_v31, %v1450_v47 }
 0x160   : > { %v1478_v63 = vadd.s32 %v1476_v8, %v1470_v52  ;;  %v1430_v54 = vsel %vm1426_vm3, %v7457_v15, %v1429_v13  ;;  %v1452_v16 = vshrl.u32 %v1447_v23, 16  ;;  %vm1479_vm4 = vc.u32 %v1477_v57, %v1473_v11 }
 0x161   : > { %v1701_v43 = vand.u32 2147483647, %v10792_v58  ;;  %v10793_v49 = vand.u32 2139095040, %v10781_v46  ;;  %v10794_v3 = vand.u32 2147483647, %v6536_v39  ;;  %v1480_v37 = vsel %vm1479_vm4, 1, %v10761_v17 }
 0x162   : > { %v1355_v24 = vor.u32 4788187, %v1354_v34  ;;  %vm1240_vm5 = vcmp.lt.s32.totalorder %v6536_v39, 0  ;;  %v7558_v15 = vadd.s32 %v1461_v36, %v1452_v16  ;;  %v1472_v23 = vshrl.u32 %v1468_v26, 16 }
 0x163   : > { %v7548_v5 = vshrl.u32 %v10793_v49, 23  ;;  %vm7552_vm2 = vcmp.le.f32.partialorder %v10794_v3, 0.7853982  ;;  %v1482_v13 = vadd.s32 %v1480_v37, %v1478_v63  ;;  %v1358_v56 = vcvt.s32.f32 %v1351_v21 }
 0x164   : > { %v1356_v51 = vand.u32 2147483647, %v1355_v24  ;;  %v1431_v41 = vsel %vm1425_vm6, %v1428_v60, %v1430_v54  ;;  %v1474_v62 = vshrl.u32 %v1469_v30, 16  ;;  %v7562_v20 = vadd.s32 %v1477_v57, %v1473_v11 }
 0x165   : > { %v1483_v2 = vadd.s32 %v1482_v13, %v1472_v23  ;;  %v1708_v45 = vand.u32 8388607, %v1701_v43  ;;  %v1721_v55 = vshll.u32 %v10768_v35, %v6782_v50  ;;  %vm2638_vm3 = vcmp.gt.s32.totalorder %v7265_v6, 0 }
 0x166   : > { %v1359_v40 = vmul.f32 %v1358_v56, %v1356_v51  ;;  %v1722_v26 = vshrl.u32 %v10770_v53, %v6858_v9  ;;  %v1724_v44 = vshll.u32 %v10770_v53, %v6782_v50  ;;  %v1725_v30 = vshrl.u32 %v10771_v33, %v6858_v9 }
 0x167   : > { %v1484_v47 = vadd.s32 %v1483_v2, %v1474_v62  ;;  %vm1487_vm6 = vc.u32 %v7558_v15, %v7562_v20  ;;  %v1727_v28 = vshll.u32 %v10771_v33, %v6782_v50  ;;  %v1728_v7 = vshrl.u32 %v10772_v10, %v6858_v9 }
 0x168   : > { %v1360_v32 = vxor.u32 2147483648, %v1359_v40  ;;  %v1718_v52 = vshll.u32 %v10756_v22, %v6782_v50  ;;  %v1719_v59 = vshrl.u32 %v10768_v35, %v6858_v9  ;;  %v1730_v12 = vshll.u32 %v10772_v10, %v6782_v50 }
 0x169   : > { %v1362_v31 = vsub.s32 4, %v7488_v19  ;;  %v1488_v60 = vadd.s32 1, %v1484_v47  ;;  %v1729_v11 = vor.u32 %v1728_v7, %v1727_v28  ;;  %v1731_v8 = vshrl.u32 %v10775_v25, %v6858_v9 }
 0x16a   : > { %v1361_v57 = vsel %vm1240_vm5, %v1360_v32, %v1359_v40  ;;  %v1485_v21 = vmul.u32 %v7493_v18, %v1431_v41  ;;  %v7593_v34 = vor.u32 %v1722_v26, %v1721_v55  ;;  %v1726_v36 = vor.u32 %v1725_v30, %v1724_v44  ;;  %v10797_v18 = vld [vmem:[#allocation26_spill] sm:$0xff] }
 0x16b   : > { %v7598_v63 = vsel %vm7552_vm2, %v6536_v39, %v1361_v57  ;;  %v1489_v50 = vsel %vm1487_vm6, %v1488_v60, %v1484_v47  ;;  %v1709_v54 = vor.u32 8388608, %v1708_v45  ;;  %v1732_v16 = vor.u32 %v1731_v8, %v1730_v12 }
 0x16c   : > { %v1366_v49 = vmul.f32 %v7598_v63, %v7598_v63  ;;  %v1490_v3 = vadd.s32 %v1489_v50, %v1485_v21  ;;  %v7605_v24 = vor.u32 %v1719_v59, %v1718_v52  ;;  %vm1736_vm7 = vcmp.lt.s32.totalorder %v10797_v18, 4 }
 0x16d   : > { %vm1733_vm8 = vcmp.lt.s32.totalorder %v10797_v18, 1  ;;  %vm1735_vm9 = vcmp.lt.s32.totalorder %v10797_v18, 3  ;;  %v1742_v37 = vsel %vm1736_vm7, %v1729_v11, 920167782  ;;  %v1746_v23 = vsel %vm1736_vm7, %v1732_v16, 1326507024 }
 0x16e   : > { %v1367_v13 = vmul.f32 -0.001358992, %v1366_v49  ;;  %v1374_v51 = vmul.f32 -0.00019511016, %v1366_v49  ;;  %v1491_v56 = vadd.s32 536870912, %v1490_v3  ;;  %v1745_v41 = vsel %vm1733_vm8, %v7593_v34, %v1726_v36 }
 0x16f   : > { %v7618_v62 = vsub.s32 32, %v7362_v61  ;;  %v1363_v2 = vsel %vm1240_vm5, %v1362_v31, %v7488_v19  ;;  %v1747_v45 = vsel %vm1735_vm9, %v1729_v11, %v1746_v23  ;;  %v7625_v55 = vshll.u32 %v1709_v54, 8 }
 0x170   : > { %v1368_v40 = vadd.f32 0.041655596, %v1367_v13  ;;  %v1375_v26 = vadd.f32 0.008332121, %v1374_v51  ;;  %v1492_v44 = vshrl.u32 %v1491_v56, 30  ;;  %vm1734_vm10 = vcmp.lt.s32.totalorder %v10797_v18, 2 }
 0x171   : > { %v7631_v30 = vsel %vm2638_vm3, %v7265_v6, 0  ;;  %v1741_v19 = vsel %vm1733_vm8, %v7605_v24, %v7593_v34  ;;  %v1743_v47 = vsel %vm1735_vm9, %v1726_v36, %v1742_v37  ;;  %v1748_v28 = vsel %vm1734_vm10, %v1745_v41, %v1747_v45 }
 0x172   : > { %v7642_v7 = vadd.s32 4294967169, %v7366_v27  ;;  %v1369_v32 = vmul.f32 %v1368_v40, %v1366_v49  ;;  %v1376_v52 = vmul.f32 %v1375_v26, %v1366_v49  ;;  %v1493_v59 = vshll.u32 %v1492_v44, 30 }
 0x173   : > { %v1365_v6 = vsel %vm7552_vm2, 0, %v1363_v2  ;;  %v1750_v12 = vand.u32 65535, %v7625_v55  ;;  %v1752_v31 = vand.u32 65535, %v1748_v28  ;;  %v1753_v60 = vshrl.u32 %v1748_v28, 16 }
 0x174   : > { %v1377_v11 = vadd.f32 -0.16666654, %v1376_v52  ;;  %v1494_v8 = vsub.s32 %v1490_v3, %v1493_v59  ;;  %v1744_v57 = vsel %vm1734_vm10, %v1741_v19, %v1743_v47  ;;  %v1751_v21 = vshrl.u32 %v7625_v55, 16 }
 0x175   : > { %v7651_v27 = vand.u32 31, %v7631_v30  ;;  %v1370_v50 = vadd.f32 -0.4999988, %v1369_v32  ;;  %vm1394_vm11 = vcmp.lt.s32.totalorder %v10791_v42, 0  ;;  %v1755_v54 = vmul.u32 %v1753_v60, %v1750_v12 }
 0x176   : > { %v1378_v38 = vmul.f32 %v1377_v11, %v1366_v49  ;;  %vm1495_vm12 = vcmp.lt.s32.totalorder %v1494_v8, 0  ;;  %v1496_v16 = vsub.s32 0, %v1494_v8  ;;  %v1756_v37 = vmul.u32 %v1752_v31, %v1751_v21 }
 0x177   : > { %v7654_v23 = vand.u32 3, %v1365_v6  ;;  %v1717_v3 = vshrl.u32 %v10756_v22, %v6858_v9  ;;  %v1758_v13 = vshll.u32 %v1755_v54, 16  ;;  %v1775_v51 = vshrl.u32 %v1744_v57, 16 }
 0x178   : > { %v1486_v56 = vadd.s32 %v7562_v20, %v7558_v15  ;;  %v1497_v41 = vsel %vm1495_vm12, %v1496_v16, %v1494_v8  ;;  %v1754_v2 = vmul.u32 %v1752_v31, %v1750_v12  ;;  %v1774_v45 = vand.u32 65535, %v1744_v57 }
 0x179   : > { %v1371_v40 = vmul.f32 %v1370_v50, %v1366_v49  ;;  %v1498_v26 = vclz %v1497_v41  ;;  %v1516_v19 = vsub.s32 4, %v1492_v44  ;;  %v1738_v47 = vsel %vm1736_vm7, %v1726_v36, 2102212464 }
 0x17a   : > { %v1379_v28 = vadd.f32 1.0, %v1378_v38  ;;  %v1757_v32 = vmul.u32 %v1753_v60, %v1751_v21  ;;  %v1760_v52 = vshll.u32 %v1756_v37, 16  ;;  %vm1762_vm13 = vc.u32 %v1754_v2, %v1758_v13 }
 0x17b   : > { %v5907_v59 = vadd.s32 4294967294, %v1498_v26  ;;  %v1763_v9 = vsel %vm1762_vm13, 1, %v10761_v17  ;;  %v1764_v6 = vadd.s32 %v1758_v13, %v1754_v2  ;;  %v1777_v11 = vmul.u32 %v1775_v51, %v1750_v12 }
 0x17c   : > { %vm7665_vm14 = vcmp.le.f32.partialorder %v1392_v48, 0.7853982  ;;  %v1737_v20 = vsel %vm1733_vm8, %v1717_v3, %v7605_v24  ;;  %v1739_v36 = vsel %vm1735_vm9, %v7593_v34, %v1738_v47  ;;  %v1765_v49 = vadd.s32 %v1763_v9, %v1757_v32 }
 0x17d   : > { %v1778_v31 = vmul.u32 %v1774_v45, %v1751_v21  ;;  %vm1387_vm15 = vcmp.eq.s32.totalorder %v7654_v23, 2  ;;  %vm5908_vm0 = vcmp.lt.s32.totalorder %v5907_v59, 0  ;;  %vm1766_vm1 = vc.u32 %v1764_v6, %v1760_v52 }
 0x17e   : > { %v1776_v60 = vmul.u32 %v1774_v45, %v1750_v12  ;;  %v1780_v57 = vshll.u32 %v1777_v11, 16  ;;  %v7676_v48 = vadd.f32 1.0, %v1371_v40  ;;  %v1501_v50 = vsel %vm5908_vm0, 0, %v5907_v59 }
 0x17f   : > { %v7680_v38 = vsel %vm1394_vm11, %v1516_v19, %v1492_v44  ;;  %v1767_v24 = vsel %vm1766_vm1, 1, %v10761_v17  ;;  %v1380_v16 = vmul.f32 %v1379_v28, %v7598_v63  ;;  %v1502_v34 = vsub.s32 32, %v1501_v50 }
 0x180   : > { %v1506_v3 = vsub.s32 4294967266, %v1501_v50  ;;  %v1759_v13 = vshrl.u32 %v1755_v54, 16  ;;  %v1503_v41 = vshll.u32 %v1494_v8, %v1501_v50  ;;  %v1769_v2 = vadd.s32 %v1767_v24, %v1765_v49 }
 0x181   : > { %v1779_v26 = vmul.u32 %v1775_v51, %v1751_v21  ;;  %v1782_v47 = vshll.u32 %v1778_v31, 16  ;;  %v1504_v12 = vshrl.u32 %v1486_v56, %v1502_v34  ;;  %vm1784_vm4 = vc.u32 %v1776_v60, %v1780_v57  ;;  %v10800_v51 = vld [vmem:[#allocation18_spill] sm:$0xff] }
 0x182   : > { %v1507_v45 = vadd.s32 127, %v1506_v3  ;;  %v1786_v40 = vadd.s32 %v1780_v57, %v1776_v60  ;;  %v1388_v32 = vxor.u32 2147483648, %v7676_v48  ;;  %v1761_v52 = vshrl.u32 %v1756_v37, 16 }
 0x183   : > { %v1770_v44 = vadd.s32 %v1769_v2, %v1759_v13  ;;  %v1785_v19 = vsel %vm1784_vm4, 1, %v10761_v17  ;;  %v1505_v59 = vor.u32 %v1504_v12, %v1503_v41  ;;  %vm1384_vm5 = vcmp.eq.s32.totalorder %v7654_v23, 0 }
 0x184   : > { %v1508_v9 = vshll.u32 %v1507_v45, 23  ;;  %v1787_v63 = vadd.s32 %v1785_v19, %v1779_v26  ;;  %vm1788_vm2 = vc.u32 %v1786_v40, %v1782_v47  ;;  %v1740_v8 = vsel %vm1734_vm10, %v1737_v20, %v1739_v36 }
 0x185   : > { %v7689_v21 = vadd.s32 %v1770_v44, %v1761_v52  ;;  %v1789_v54 = vsel %vm1788_vm2, 1, %v10761_v17  ;;  %v1855_v56 = vand.u32 2147483647, %v10800_v51  ;;  %v1519_v37 = vsel %vm7665_vm14, 0, %v7680_v38 }
 0x186   : > { %v1509_v28 = vor.u32 4788187, %v1508_v9  ;;  %v1781_v6 = vshrl.u32 %v1777_v11, 16  ;;  %v1791_v49 = vadd.s32 %v1789_v54, %v1787_v63  ;;  %v1385_v60 = vxor.u32 2147483648, %v1380_v16 }
 0x187   : > { %v1389_v57 = vsel %vm1387_vm15, %v1388_v32, %v1380_v16  ;;  %v1783_v50 = vshrl.u32 %v1778_v31, 16  ;;  %v7698_v18 = vadd.s32 %v1786_v40, %v1782_v47  ;;  %v1512_v36 = vcvt.s32.f32 %v1505_v59 }
 0x188   : > { %v1510_v20 = vand.u32 2147483647, %v1509_v28  ;;  %v1792_v24 = vadd.s32 %v1791_v49, %v1781_v6  ;;  %v1794_v34 = vmul.u32 %v7625_v55, %v1740_v8  ;;  %vm1383_vm3 = vcmp.lt.s32.totalorder %v7654_v23, 2 }
 0x189   : > { %vm1796_vm6 = vc.u32 %v7689_v21, %v7698_v18  ;;  %v1862_v11 = vand.u32 8388607, %v1855_v56  ;;  %v1873_v38 = vshrl.u32 %v10768_v35, %v7253_v14  ;;  %v1876_v31 = vshrl.u32 %v10770_v53, %v7253_v14 }
 0x18a   : > { %v1513_v16 = vmul.f32 %v1512_v36, %v1510_v20  ;;  %v1793_v3 = vadd.s32 %v1792_v24, %v1783_v50  ;;  %v1872_v13 = vshll.u32 %v10756_v22, %v7222_v4  ;;  %v1879_v55 = vshrl.u32 %v10771_v33, %v7253_v14 }
 0x18b   : > { %v1875_v41 = vshll.u32 %v10768_v35, %v7222_v4  ;;  %v1878_v2 = vshll.u32 %v10770_v53, %v7222_v4  ;;  %v1881_v26 = vshll.u32 %v10771_v33, %v7222_v4  ;;  %v1882_v47 = vshrl.u32 %v10772_v10, %v7253_v14 }
 0x18c   : > { %v1514_v12 = vxor.u32 2147483648, %v1513_v16  ;;  %v1797_v45 = vadd.s32 1, %v1793_v3  ;;  %v1884_v40 = vshll.u32 %v10772_v10, %v7222_v4  ;;  %v1885_v32 = vshrl.u32 %v10775_v25, %v7253_v14 }
 0x18d   : > { %v7726_v52 = vor.u32 %v1873_v38, %v1872_v13  ;;  %v7728_v44 = vor.u32 %v1876_v31, %v1875_v41  ;;  %v1880_v19 = vor.u32 %v1879_v55, %v1878_v2  ;;  %v1883_v59 = vor.u32 %v1882_v47, %v1881_v26 }
 0x18e   : > { %v1386_v9 = vsel %vm1384_vm5, %v7676_v48, %v1385_v60  ;;  %v1515_v63 = vsel %vm1394_vm11, %v1514_v12, %v1513_v16  ;;  %v1798_v4 = vsel %vm1796_vm6, %v1797_v45, %v1793_v3  ;;  %v1886_v8 = vor.u32 %v1885_v32, %v1884_v40 }
 0x18f   : > { %v7741_v54 = vsel %vm7665_vm14, %v10791_v42, %v1515_v63  ;;  %v1799_v28 = vadd.s32 %v1798_v4, %v1794_v34  ;;  %v1863_v6 = vor.u32 8388608, %v1862_v11  ;;  %vm1890_vm7 = vcmp.lt.s32.totalorder %v7155_v29, 4 }
 0x190   : > { %v1520_v48 = vmul.f32 %v7741_v54, %v7741_v54  ;;  %vm1887_vm8 = vcmp.lt.s32.totalorder %v7155_v29, 1  ;;  %vm1889_vm9 = vcmp.lt.s32.totalorder %v7155_v29, 3  ;;  %v1896_v49 = vsel %vm1890_vm7, %v1883_v59, 920167782 }
 0x191   : > { %v1800_v60 = vadd.s32 536870912, %v1799_v28  ;;  %v1895_v15 = vsel %vm1887_vm8, %v7726_v52, %v7728_v44  ;;  %v1897_v50 = vsel %vm1889_vm9, %v1880_v19, %v1896_v49  ;;  %v1899_v20 = vsel %vm1887_vm8, %v7728_v44, %v1880_v19 }
 0x192   : > { %v1390_v36 = vsel %vm1383_vm3, %v1386_v9, %v1389_v57  ;;  %v1521_v24 = vmul.f32 -0.001358992, %v1520_v48  ;;  %v1528_v34 = vmul.f32 -0.00019511016, %v1520_v48  ;;  %v1900_v11 = vsel %vm1890_vm7, %v1886_v8, 1326507024 }
 0x193   : > { %v7763_v38 = vshrl.u32 %v1800_v60, 30  ;;  %vm1888_vm10 = vcmp.lt.s32.totalorder %v7155_v29, 2  ;;  %v1901_v31 = vsel %vm1889_vm9, %v1883_v59, %v1900_v11  ;;  %v7768_v16 = vshll.u32 %v1863_v6, 8 }
 0x194   : > { %v1522_v3 = vadd.f32 0.041655596, %v1521_v24  ;;  %v1529_v13 = vadd.f32 0.008332121, %v1528_v34  ;;  %v1898_v23 = vsel %vm1888_vm10, %v1895_v15, %v1897_v50  ;;  %v1902_v57 = vsel %vm1888_vm10, %v1899_v20, %v1901_v31 }
 0x195   : > { %v7775_v55 = vadd.s32 1, %v7642_v7  ;;  %vm1381_vm11 = vweird.f32 %v6536_v39  ;;  %v1536_v41 = vand.u32 3, %v1519_v37  ;;  %v1802_v2 = vshll.u32 %v7763_v38, 30 }
 0x196   : > { %v7779_v26 = vsel %vm1381_vm11, nan, %v1390_v36  ;;  %v1523_v47 = vmul.f32 %v1522_v3, %v1520_v48  ;;  %v1530_v12 = vmul.f32 %v1529_v13, %v1520_v48  ;;  %v1907_v45 = vshrl.u32 %v1902_v57, 16 }
 0x197   : > { %v7781_v40 = vsub.s32 %v1799_v28, %v1802_v2  ;;  %v1904_v32 = vand.u32 65535, %v7768_v16  ;;  %v1906_v59 = vand.u32 65535, %v1902_v57  ;;  %v1929_v9 = vshrl.u32 %v1898_v23, 16 }
 0x198   : > { %v1524_v63 = vadd.f32 -0.4999988, %v1523_v47  ;;  %v1531_v4 = vadd.f32 -0.16666654, %v1530_v12  ;;  %v1795_v7 = vadd.s32 %v7698_v18, %v7689_v21  ;;  %v1928_v39 = vand.u32 65535, %v1898_v23 }
 0x199   : > { %vm1538_vm12 = vcmp.eq.s32.totalorder %v1536_v41, 0  ;;  %vm1541_vm13 = vcmp.eq.s32.totalorder %v1536_v41, 2  ;;  %vm1804_vm14 = vcmp.lt.s32.totalorder %v7781_v40, 0  ;;  %v1805_v37 = vsub.s32 0, %v7781_v40 }
 0x19a   : > { %v1905_v8 = vshrl.u32 %v7768_v16, 16  ;;  %v1909_v28 = vmul.u32 %v1907_v45, %v1904_v32  ;;  %v1525_v6 = vmul.f32 %v1524_v63, %v1520_v48  ;;  %v1532_v49 = vmul.f32 %v1531_v4, %v1520_v48 }
 0x19b   : > { %vm1537_vm15 = vcmp.lt.s32.totalorder %v1536_v41, 2  ;;  %v1871_v60 = vshrl.u32 %v10756_v22, %v7253_v14  ;;  %v1892_v15 = vsel %vm1890_vm7, %v1880_v19, 2102212464  ;;  %vm1535_vm0 = vweird.f32 %v10791_v42 }
 0x19c   : > { %v1806_v21 = vsel %vm1804_vm14, %v1805_v37, %v7781_v40  ;;  %v1908_v18 = vmul.u32 %v1906_v59, %v1904_v32  ;;  %v7795_v50 = vmul.u32 %v1906_v59, %v1905_v8  ;;  %v7797_v20 = vmul.u32 %v1929_v9, %v1904_v32 }
 0x19d   : > { %v1526_v36 = vadd.f32 1.0, %v1525_v6  ;;  %v1533_v24 = vadd.f32 1.0, %v1532_v49  ;;  %v1807_v34 = vclz %v1806_v21  ;;  %v1912_v48 = vshll.u32 %v1909_v28, 16 }
 0x19e   : > { %v1891_v14 = vsel %vm1887_vm8, %v1871_v60, %v7726_v52  ;;  %v1893_v19 = vsel %vm1889_vm9, %v7728_v44, %v1892_v15  ;;  %v1911_v11 = vmul.u32 %v1907_v45, %v1905_v8  ;;  %v1930_v31 = vmul.u32 %v1928_v39, %v1904_v32 }
 0x19f   : > { %v1534_v3 = vmul.f32 %v1533_v24, %v7741_v54  ;;  %v1542_v13 = vxor.u32 2147483648, %v1526_v36  ;;  %v5915_v23 = vadd.s32 4294967294, %v1807_v34  ;;  %vm1916_vm1 = vc.u32 %v1908_v18, %v1912_v48 }
 0x1a0   : > { %v1914_v57 = vshll.u32 %v7795_v50, 16  ;;  %v1917_v2 = vsel %vm1916_vm1, 1, %v10761_v17  ;;  %v1918_v47 = vadd.s32 %v1912_v48, %v1908_v18  ;;  %v1934_v12 = vshll.u32 %v7797_v20, 16 }
 0x1a1   : > { %v1539_v59 = vxor.u32 2147483648, %v1534_v3  ;;  %vm5916_vm4 = vcmp.lt.s32.totalorder %v5915_v23, 0  ;;  %v1913_v52 = vshrl.u32 %v1909_v28, 16  ;;  %v1919_v63 = vadd.s32 %v1917_v2, %v1911_v11 }
 0x1a2   : > { %v1810_v4 = vsel %vm5916_vm4, 0, %v5915_v23  ;;  %vm1920_vm2 = vc.u32 %v1918_v47, %v1914_v57  ;;  %v1932_v44 = vmul.u32 %v1928_v39, %v1905_v8  ;;  %v1933_v45 = vmul.u32 %v1929_v9, %v1905_v8 }
 0x1a3   : > { %v1540_v54 = vsel %vm1538_vm12, %v1526_v36, %v1539_v59  ;;  %v1543_v32 = vsel %vm1541_vm13, %v1542_v13, %v1534_v3  ;;  %v1811_v37 = vsub.s32 32, %v1810_v4  ;;  %v1815_v6 = vsub.s32 4294967266, %v1810_v4 }
 0x1a4   : > { %v1544_v49 = vsel %vm1537_vm15, %v1540_v54, %v1543_v32  ;;  %v1812_v60 = vshll.u32 %v7781_v40, %v1810_v4  ;;  %v1921_v15 = vsel %vm1920_vm2, 1, %v10761_v17  ;;  %vm1938_vm5 = vc.u32 %v1930_v31, %v1934_v12 }
 0x1a5   : > { %v1545_v28 = vsel %vm1535_vm0, nan, %v1544_v49  ;;  %v1813_v21 = vshrl.u32 %v1795_v7, %v1811_v37  ;;  %v1816_v18 = vadd.s32 127, %v1815_v6  ;;  %v1923_v39 = vadd.s32 %v1921_v15, %v1919_v63 }
 0x1a6   : > { %v1546_v9 = vpack.c.bf16 %v1545_v28, %v7779_v26  ;;  %v1936_v8 = vshll.u32 %v1932_v44, 16  ;;  %v1939_v36 = vsel %vm1938_vm5, 1, %v10761_v17  ;;  %v1940_v24 = vadd.s32 %v1934_v12, %v1930_v31 }
 0x1a7   : > { %v1814_v34 = vor.u32 %v1813_v21, %v1812_v60  ;;  %v1817_v41 = vshll.u32 %v1816_v18, 23  ;;  %v1924_v48 = vadd.s32 %v1923_v39, %v1913_v52  ;;  %v1941_v11 = vadd.s32 %v1939_v36, %v1933_v45 }
 0x1a8   : > { %v7819_v40 = vshrl.u32 %v7631_v30, 5  ;;  %v7822_v3 = vsub.s32 32, %v7651_v27  ;;  %1618 = vmatpush.bf16.msra.mxu3 %v1546_v9  ;;  %vm1703_vm3 = vcmp.lt.s32.totalorder %v10792_v58, 0  ;;  %vm1942_vm6 = vc.u32 %v1940_v24, %v1936_v8 }
 0x1a9   : > { %vm2792_vm7 = vcmp.gt.s32.totalorder %v7775_v55, 0  ;;  %vm7828_vm8 = vcmp.le.f32.partialorder %v1701_v43, 0.7853982  ;;  %v1818_v26 = vor.u32 4788187, %v1817_v41  ;;  %v1915_v7 = vshrl.u32 %v7795_v50, 16 }
 0x1aa   : > { %v1943_v30 = vsel %vm1942_vm6, 1, %v10761_v17  ;;  %v1825_v31 = vsub.s32 4, %v7763_v38  ;;  %v1894_v13 = vsel %vm1888_vm10, %v1891_v14, %v1893_v19  ;;  %v1935_v23 = vshrl.u32 %v7797_v20, 16 }
 0x1ab   : > { %v1945_v57 = vadd.s32 %v1943_v30, %v1941_v11  ;;  %v1819_v2 = vand.u32 2147483647, %v1818_v26  ;;  %v1821_v47 = vcvt.s32.f32 %v1814_v34  ;;  %v7838_v12 = vadd.s32 %v1924_v48, %v1915_v7 }
 0x1ac   : > { %v1937_v43 = vshrl.u32 %v1932_v44, 16  ;;  %v7840_v59 = vadd.s32 %v1940_v24, %v1936_v8  ;;  %v2627_v50 = vand.u32 2147483647, %v6653_v0  ;;  %v2644_v63 = vshll.u32 %v10756_v22, %v7651_v27 }
 0x1ad   : > { %v1946_v52 = vadd.s32 %v1945_v57, %v1935_v23  ;;  %v1822_v4 = vmul.f32 %v1821_v47, %v1819_v2  ;;  %v2645_v29 = vshrl.u32 %v10768_v35, %v7822_v3  ;;  %v2647_v20 = vshll.u32 %v10768_v35, %v7651_v27 }
 0x1ae   : > { %v2648_v14 = vshrl.u32 %v10770_v53, %v7822_v3  ;;  %v2650_v44 = vshll.u32 %v10770_v53, %v7651_v27  ;;  %v2651_v45 = vshrl.u32 %v10771_v33, %v7822_v3  ;;  %v2653_v54 = vshll.u32 %v10771_v33, %v7651_v27 }
 0x1af   : > { %v1947_v19 = vadd.s32 %v1946_v52, %v1937_v43  ;;  %v1823_v32 = vxor.u32 2147483648, %v1822_v4  ;;  %vm1950_vm9 = vc.u32 %v7838_v12, %v7840_v59  ;;  %v2654_v37 = vshrl.u32 %v10772_v10, %v7822_v3 }
 0x1b0   : > { %v2656_v6 = vshll.u32 %v10772_v10, %v7651_v27  ;;  %v1948_v49 = vmul.u32 %v7768_v16, %v1894_v13  ;;  %v2634_v15 = vand.u32 8388607, %v2627_v50  ;;  %v2657_v28 = vshrl.u32 %v10775_v25, %v7822_v3 }
 0x1b1   : > { %v1951_v60 = vadd.s32 1, %v1947_v19  ;;  %v1824_v21 = vsel %vm1703_vm3, %v1823_v32, %v1822_v4  ;;  %v7870_v18 = vor.u32 %v2645_v29, %v2644_v63  ;;  %v7872_v39 = vor.u32 %v2648_v14, %v2647_v20 }
 0x1b2   : > { %v2655_v9 = vor.u32 %v2654_v37, %v2653_v54  ;;  %v7877_v27 = vsel %vm7828_vm8, %v10792_v58, %v1824_v21  ;;  %v2652_v8 = vor.u32 %v2651_v45, %v2650_v44  ;;  %v2658_v36 = vor.u32 %v2657_v28, %v2656_v6 }
 0x1b3   : > { %v1952_v16 = vsel %vm1950_vm9, %v1951_v60, %v1947_v19  ;;  %v5947_v24 = vadd.s32 4294967169, %v7548_v5  ;;  %v1829_v34 = vmul.f32 %v7877_v27, %v7877_v27  ;;  %vm2662_vm10 = vcmp.lt.s32.totalorder %v7819_v40, 4 }
 0x1b4   : > { %v1953_v41 = vadd.s32 %v1952_v16, %v1948_v49  ;;  %v2793_v48 = vsel %vm2792_vm7, %v7775_v55, 0  ;;  %v2635_v11 = vor.u32 8388608, %v2634_v15  ;;  %vm2659_vm11 = vcmp.lt.s32.totalorder %v7819_v40, 1 }
 0x1b5   : > { %v2668_v26 = vsel %vm2662_vm10, %v2655_v9, 920167782  ;;  %v1830_v7 = vmul.f32 -0.001358992, %v1829_v34  ;;  %v1837_v30 = vmul.f32 -0.00019511016, %v1829_v34  ;;  %v1826_v5 = vsel %vm1703_vm3, %v1825_v31, %v7763_v38 }
 0x1b6   : > { %v1954_v13 = vadd.s32 536870912, %v1953_v41  ;;  %vm2661_vm12 = vcmp.lt.s32.totalorder %v7819_v40, 3  ;;  %v2667_v55 = vsel %vm2659_vm11, %v7870_v18, %v7872_v39  ;;  %v2672_v57 = vsel %vm2662_vm10, %v2658_v36, 1326507024 }
 0x1b7   : > { %v2669_v23 = vsel %vm2661_vm12, %v2652_v8, %v2668_v26  ;;  %v1831_v2 = vadd.f32 0.041655596, %v1830_v7  ;;  %v1838_v47 = vadd.f32 0.008332121, %v1837_v30  ;;  %v2671_v52 = vsel %vm2659_vm11, %v7872_v39, %v2652_v8 }
 0x1b8   : > { %v7901_v43 = vshrl.u32 %v1954_v13, 30  ;;  %v7906_v38 = vadd.s32 1, %v5947_v24  ;;  %vm2660_vm13 = vcmp.lt.s32.totalorder %v7819_v40, 2  ;;  %v2673_v31 = vsel %vm2661_vm12, %v2655_v9, %v2672_v57 }
 0x1b9   : > { %v7911_v63 = vshll.u32 %v2635_v11, 8  ;;  %v1832_v4 = vmul.f32 %v1831_v2, %v1829_v34  ;;  %v1839_v29 = vmul.f32 %v1838_v47, %v1829_v34  ;;  %v2670_v14 = vsel %vm2660_vm13, %v2667_v55, %v2669_v23 }
 0x1ba   : > { %v1956_v20 = vshll.u32 %v7901_v43, 30  ;;  %v7916_v19 = vshrl.u32 %v2793_v48, 5  ;;  %v7918_v44 = vand.u32 31, %v2793_v48  ;;  %v1828_v45 = vsel %vm7828_vm8, 0, %v1826_v5 }
 0x1bb   : > { %v2674_v54 = vsel %vm2660_vm13, %v2671_v52, %v2673_v31  ;;  %v1833_v32 = vadd.f32 -0.4999988, %v1832_v4  ;;  %v1840_v37 = vadd.f32 -0.16666654, %v1839_v29  ;;  %v2643_v49 = vshrl.u32 %v10756_v22, %v7822_v3  ;;  %v10803_v3 = vld [vmem:[#allocation28_spill] sm:$0xff] }
 0x1bc   : > { %v7924_v6 = vsub.s32 %v1953_v41, %v1956_v20  ;;  %v2676_v60 = vand.u32 65535, %v7911_v63  ;;  %v2678_v15 = vand.u32 65535, %v2674_v54  ;;  %v2679_v28 = vshrl.u32 %v2674_v54, 16 }
 0x1bd   : > { %v2701_v21 = vshrl.u32 %v2670_v14, 16  ;;  %v1841_v9 = vmul.f32 %v1840_v37, %v1829_v34  ;;  %v2677_v16 = vshrl.u32 %v7911_v63, 16  ;;  %v1834_v36 = vmul.f32 %v1833_v32, %v1829_v34 }
 0x1be   : > { %vm1958_vm14 = vcmp.lt.s32.totalorder %v7924_v6, 0  ;;  %v1959_v42 = vsub.s32 0, %v7924_v6  ;;  %v7932_v24 = vand.u32 3, %v1828_v45  ;;  %v2664_v41 = vsel %vm2662_vm10, %v2652_v8, 2102212464 }
 0x1bf   : > { %v2681_v48 = vmul.u32 %v2679_v28, %v2676_v60  ;;  %v3247_v11 = vand.u32 2139095040, %v10803_v3  ;;  %v1842_v26 = vadd.f32 1.0, %v1841_v9  ;;  %v2682_v30 = vmul.u32 %v2678_v15, %v2677_v16 }
 0x1c0   : > { %v1960_v7 = vsel %vm1958_vm14, %v1959_v42, %v7924_v6  ;;  %v1949_v13 = vadd.s32 %v7840_v59, %v7838_v12  ;;  %v2700_v55 = vand.u32 65535, %v2670_v14  ;;  %v7940_v23 = vmul.u32 %v2701_v21, %v2676_v60 }
 0x1c1   : > { %v1961_v5 = vclz %v1960_v7  ;;  %v2663_v34 = vsel %vm2659_vm11, %v2643_v49, %v7870_v18  ;;  %v2665_v8 = vsel %vm2661_vm12, %v7872_v39, %v2664_v41  ;;  %v2680_v57 = vmul.u32 %v2678_v15, %v2676_v60 }
 0x1c2   : > { %v2684_v2 = vshll.u32 %v2681_v48, 16  ;;  %v1835_v47 = vadd.f32 1.0, %v1834_v36  ;;  %vm1847_vm15 = vcmp.eq.s32.totalorder %v7932_v24, 0  ;;  %vm1857_vm0 = vcmp.lt.s32.totalorder %v10800_v51, 0 }
 0x1c3   : > { %v5918_v12 = vadd.s32 4294967294, %v1961_v5  ;;  %v1979_v59 = vsub.s32 4, %v7901_v43  ;;  %v2683_v52 = vmul.u32 %v2679_v28, %v2677_v16  ;;  %v1843_v31 = vmul.f32 %v1842_v26, %v7877_v27 }
 0x1c4   : > { %vm1850_vm1 = vcmp.eq.s32.totalorder %v7932_v24, 2  ;;  %v2686_v18 = vshll.u32 %v2682_v30, 16  ;;  %vm2688_vm4 = vc.u32 %v2680_v57, %v2684_v2  ;;  %v2690_v4 = vadd.s32 %v2684_v2, %v2680_v57 }
 0x1c5   : > { %vm5919_vm2 = vcmp.lt.s32.totalorder %v5918_v12, 0  ;;  %v2689_v39 = vsel %vm2688_vm4, 1, %v10761_v17  ;;  %v2702_v29 = vmul.u32 %v2700_v55, %v2676_v60  ;;  %v2706_v20 = vshll.u32 %v7940_v23, 16 }
 0x1c6   : > { %vm1846_vm5 = vcmp.lt.s32.totalorder %v7932_v24, 2  ;;  %vm7958_vm3 = vcmp.le.f32.partialorder %v1855_v56, 0.7853982  ;;  %v1964_v27 = vsel %vm5919_vm2, 0, %v5918_v12  ;;  %v2691_v45 = vadd.s32 %v2689_v39, %v2683_v52 }
 0x1c7   : > { %vm2692_vm6 = vc.u32 %v2690_v4, %v2686_v18  ;;  %v2704_v54 = vmul.u32 %v2700_v55, %v2677_v16  ;;  %v1851_v32 = vxor.u32 2147483648, %v1835_v47  ;;  %v1965_v37 = vsub.s32 32, %v1964_v27 }
 0x1c8   : > { %v1969_v49 = vsub.s32 4294967266, %v1964_v27  ;;  %v2685_v15 = vshrl.u32 %v2681_v48, 16  ;;  %v1848_v28 = vxor.u32 2147483648, %v1843_v31  ;;  %v1966_v60 = vshll.u32 %v7924_v6, %v1964_v27 }
 0x1c9   : > { %v2693_v9 = vsel %vm2692_vm6, 1, %v10761_v17  ;;  %v2705_v42 = vmul.u32 %v2701_v21, %v2677_v16  ;;  %v1967_v36 = vshrl.u32 %v1949_v13, %v1965_v37  ;;  %vm2710_vm7 = vc.u32 %v2702_v29, %v2706_v20 }
 0x1ca   : > { %v1970_v41 = vadd.s32 127, %v1969_v49  ;;  %v2695_v56 = vadd.s32 %v2693_v9, %v2691_v45  ;;  %v2666_v26 = vsel %vm2660_vm13, %v2663_v34, %v2665_v8  ;;  %v2708_v7 = vshll.u32 %v2704_v54, 16 }
 0x1cb   : > { %v2711_v5 = vsel %vm2710_vm7, 1, %v10761_v17  ;;  %v2712_v55 = vadd.s32 %v2706_v20, %v2702_v29  ;;  %v1968_v57 = vor.u32 %v1967_v36, %v1966_v60  ;;  %v1849_v6 = vsel %vm1847_vm15, %v1835_v47, %v1848_v28 }
 0x1cc   : > { %v1971_v2 = vshll.u32 %v1970_v41, 23  ;;  %v2696_v48 = vadd.s32 %v2695_v56, %v2685_v15  ;;  %v2713_v12 = vadd.s32 %v2711_v5, %v2705_v42  ;;  %v1980_v21 = vsel %vm1857_vm0, %v1979_v59, %v7901_v43 }
 0x1cd   : > { %v2687_v16 = vshrl.u32 %v2682_v30, 16  ;;  %vm2714_vm8 = vc.u32 %v2712_v55, %v2708_v7  ;;  %v1852_v40 = vsel %vm1850_vm1, %v1851_v32, %v1843_v31  ;;  %v2781_v8 = vand.u32 2147483647, %v10780_v1 }
 0x1ce   : > { %v1972_v13 = vor.u32 4788187, %v1971_v2  ;;  %v2715_v34 = vsel %vm2714_vm8, 1, %v10761_v17  ;;  %v2707_v18 = vshrl.u32 %v7940_v23, 16  ;;  %v7978_v47 = vsub.s32 32, %v7918_v44 }
 0x1cf   : > { %v2697_v52 = vadd.s32 %v2696_v48, %v2687_v16  ;;  %v2717_v4 = vadd.s32 %v2715_v34, %v2713_v12  ;;  %v1853_v43 = vsel %vm1846_vm5, %v1849_v6, %v1852_v40  ;;  %v1975_v59 = vcvt.s32.f32 %v1968_v57 }
 0x1d0   : > { %v1973_v30 = vand.u32 2147483647, %v1972_v13  ;;  %v1982_v31 = vsel %vm7958_vm3, 0, %v1980_v21  ;;  %v2709_v39 = vshrl.u32 %v2704_v54, 16  ;;  %v2716_v29 = vadd.s32 %v2712_v55, %v2708_v7 }
 0x1d1   : > { %v2718_v20 = vadd.s32 %v2717_v4, %v2707_v18  ;;  %v2720_v27 = vmul.u32 %v7911_v63, %v2666_v26  ;;  %v2788_v23 = vand.u32 8388607, %v2781_v8  ;;  %v2802_v32 = vshrl.u32 %v10770_v53, %v7978_v47 }
 0x1d2   : > { %v1976_v45 = vmul.f32 %v1975_v59, %v1973_v30  ;;  %v2805_v24 = vshrl.u32 %v10771_v33, %v7978_v47  ;;  %vm2722_vm9 = vc.u32 %v2697_v52, %v2716_v29  ;;  %v2807_v49 = vshll.u32 %v10771_v33, %v7918_v44 }
 0x1d3   : > { %v2719_v37 = vadd.s32 %v2718_v20, %v2709_v39  ;;  %v2808_v54 = vshrl.u32 %v10772_v10, %v7978_v47  ;;  %v2799_v63 = vshrl.u32 %v10768_v35, %v7978_v47  ;;  %v2801_v28 = vshll.u32 %v10768_v35, %v7918_v44 }
 0x1d4   : > { %v1977_v15 = vxor.u32 2147483648, %v1976_v45  ;;  %v2804_v60 = vshll.u32 %v10770_v53, %v7918_v44  ;;  %v2810_v36 = vshll.u32 %v10772_v10, %v7918_v44  ;;  %v2811_v41 = vshrl.u32 %v10775_v25, %v7978_v47 }
 0x1d5   : > { %v2723_v9 = vadd.s32 1, %v2719_v37  ;;  %v2809_v42 = vor.u32 %v2808_v54, %v2807_v49  ;;  %v2798_v26 = vshll.u32 %v10756_v22, %v7918_v44  ;;  %v8009_v7 = vor.u32 %v2802_v32, %v2801_v28 }
 0x1d6   : > { %v1978_v56 = vsel %vm1857_vm0, %v1977_v15, %v1976_v45  ;;  %v2806_v5 = vor.u32 %v2805_v24, %v2804_v60  ;;  %v2789_v2 = vor.u32 8388608, %v2788_v23  ;;  %v2812_v48 = vor.u32 %v2811_v41, %v2810_v36 }
 0x1d7   : > { %v8014_v55 = vsel %vm7958_vm3, %v10800_v51, %v1978_v56  ;;  %v2724_v57 = vsel %vm2722_vm9, %v2723_v9, %v2719_v37  ;;  %v2800_v21 = vor.u32 %v2799_v63, %v2798_v26  ;;  %vm2816_vm10 = vcmp.lt.s32.totalorder %v7916_v19, 4 }
 0x1d8   : > { %v1983_v12 = vmul.f32 %v8014_v55, %v8014_v55  ;;  %v2725_v6 = vadd.s32 %v2724_v57, %v2720_v27  ;;  %vm2813_vm11 = vcmp.lt.s32.totalorder %v7916_v19, 1  ;;  %vm2815_vm12 = vcmp.lt.s32.totalorder %v7916_v19, 3 }
 0x1d9   : > { %v2822_v44 = vsel %vm2816_vm10, %v2809_v42, 920167782  ;;  %v2826_v14 = vsel %vm2816_vm10, %v2812_v48, 1326507024  ;;  %v2825_v34 = vsel %vm2813_vm11, %v8009_v7, %v2806_v5  ;;  %vm1844_vm13 = vweird.f32 %v10792_v58 }
 0x1da   : > { %v1984_v16 = vmul.f32 -0.001358992, %v1983_v12  ;;  %v1991_v40 = vmul.f32 -0.00019511016, %v1983_v12  ;;  %v2726_v13 = vadd.s32 536870912, %v2725_v6  ;;  %v8030_v18 = vand.u32 3, %v1982_v31 }
 0x1db   : > { %v2827_v4 = vsel %vm2815_vm12, %v2809_v42, %v2826_v14  ;;  %v8034_v30 = vshll.u32 %v2789_v2, 8  ;;  %vm2814_vm14 = vcmp.lt.s32.totalorder %v7916_v19, 2  ;;  %v8039_v27 = vsel %vm1844_vm13, nan, %v1853_v43 }
 0x1dc   : > { %v1985_v59 = vadd.f32 0.041655596, %v1984_v16  ;;  %v1992_v39 = vadd.f32 0.008332121, %v1991_v40  ;;  %v8036_v20 = vshrl.u32 %v2726_v13, 30  ;;  %v2821_v45 = vsel %vm2813_vm11, %v2800_v21, %v8009_v7 }
 0x1dd   : > { %v2823_v58 = vsel %vm2815_vm12, %v2806_v5, %v2822_v44  ;;  %v2828_v31 = vsel %vm2814_vm14, %v2825_v34, %v2827_v4  ;;  %v8048_v24 = vadd.s32 %v2716_v29, %v2697_v52  ;;  %v2830_v49 = vand.u32 65535, %v8034_v30 }
 0x1de   : > { %v1986_v23 = vmul.f32 %v1985_v59, %v1983_v12  ;;  %v1993_v32 = vmul.f32 %v1992_v39, %v1983_v12  ;;  %v2728_v37 = vshll.u32 %v8036_v20, 30  ;;  %v2831_v43 = vshrl.u32 %v8034_v30, 16 }
 0x1df   : > { %v2832_v54 = vand.u32 65535, %v2828_v31  ;;  %v2833_v15 = vshrl.u32 %v2828_v31, 16  ;;  %vm2004_vm15 = vcmp.eq.s32.totalorder %v8030_v18, 2  ;;  %v2824_v9 = vsel %vm2814_vm14, %v2821_v45, %v2823_v58 }
 0x1e0   : > { %v1987_v63 = vadd.f32 -0.4999988, %v1986_v23  ;;  %v1994_v28 = vadd.f32 -0.16666654, %v1993_v32  ;;  %v8054_v60 = vsub.s32 %v2725_v6, %v2728_v37  ;;  %vm2001_vm0 = vcmp.eq.s32.totalorder %v8030_v18, 0 }
 0x1e1   : > { %v2797_v52 = vshrl.u32 %v10756_v22, %v7978_v47  ;;  %v2818_v29 = vsel %vm2816_vm10, %v2806_v5, 2102212464  ;;  %v2835_v42 = vmul.u32 %v2833_v15, %v2830_v49  ;;  %v8063_v36 = vmul.u32 %v2832_v54, %v2831_v43 }
 0x1e2   : > { %v1988_v41 = vmul.f32 %v1987_v63, %v1983_v12  ;;  %v1995_v56 = vmul.f32 %v1994_v28, %v1983_v12  ;;  %vm2000_vm1 = vcmp.lt.s32.totalorder %v8030_v18, 2  ;;  %vm2730_vm4 = vcmp.lt.s32.totalorder %v8054_v60, 0 }
 0x1e3   : > { %v2731_v26 = vsub.s32 0, %v8054_v60  ;;  %vm1998_vm2 = vweird.f32 %v10800_v51  ;;  %v2817_v57 = vsel %vm2813_vm11, %v2797_v52, %v2800_v21  ;;  %v2838_v47 = vshll.u32 %v2835_v42, 16 }
 0x1e4   : > { %v2854_v2 = vand.u32 65535, %v2824_v9  ;;  %v2855_v48 = vshrl.u32 %v2824_v9, 16  ;;  %vm3101_vm5 = vcmp.gt.s32.totalorder %v7906_v38, 0  ;;  %v1989_v5 = vadd.f32 1.0, %v1988_v41 }
 0x1e5   : > { %v1996_v6 = vadd.f32 1.0, %v1995_v56  ;;  %v2732_v12 = vsel %vm2730_vm4, %v2731_v26, %v8054_v60  ;;  %v2834_v44 = vmul.u32 %v2832_v54, %v2830_v49  ;;  %v2751_v16 = vsub.s32 4, %v8036_v20 }
 0x1e6   : > { %v2733_v14 = vclz %v2732_v12  ;;  %v2819_v40 = vsel %vm2815_vm12, %v8009_v7, %v2818_v29  ;;  %v2837_v13 = vmul.u32 %v2833_v15, %v2831_v43  ;;  %v2005_v34 = vxor.u32 2147483648, %v1989_v5 }
 0x1e7   : > { %v1997_v21 = vmul.f32 %v1996_v6, %v8014_v55  ;;  %v2840_v4 = vshll.u32 %v8063_v36, 16  ;;  %vm2842_vm3 = vc.u32 %v2834_v44, %v2838_v47  ;;  %v2844_v45 = vadd.s32 %v2838_v47, %v2834_v44 }
 0x1e8   : > { %v5937_v59 = vadd.s32 4294967294, %v2733_v14  ;;  %v2843_v39 = vsel %vm2842_vm3, 1, %v10761_v17  ;;  %v2857_v58 = vmul.u32 %v2855_v48, %v2830_v49  ;;  %v2839_v23 = vshrl.u32 %v2835_v42, 16 }
 0x1e9   : > { %v2002_v31 = vxor.u32 2147483648, %v1997_v21  ;;  %v2845_v32 = vadd.s32 %v2843_v39, %v2837_v13  ;;  %v2856_v37 = vmul.u32 %v2854_v2, %v2830_v49  ;;  %v2006_v54 = vsel %vm2004_vm15, %v2005_v34, %v1997_v21 }
 0x1ea   : > { %vm5938_vm6 = vcmp.lt.s32.totalorder %v5937_v59, 0  ;;  %vm2846_vm7 = vc.u32 %v2844_v45, %v2840_v4  ;;  %v2860_v7 = vshll.u32 %v2857_v58, 16  ;;  %v2858_v28 = vmul.u32 %v2854_v2, %v2831_v43 }
 0x1eb   : > { %v2003_v55 = vsel %vm2001_vm0, %v1989_v5, %v2002_v31  ;;  %v2736_v15 = vsel %vm5938_vm6, 0, %v5937_v59  ;;  %v2847_v63 = vsel %vm2846_vm7, 1, %v10761_v17  ;;  %v2841_v49 = vshrl.u32 %v8063_v36, 16 }
 0x1ec   : > { %v2007_v9 = vsel %vm2000_vm1, %v2003_v55, %v2006_v54  ;;  %v2737_v52 = vsub.s32 32, %v2736_v15  ;;  %v2741_v29 = vsub.s32 4294967266, %v2736_v15  ;;  %v2738_v41 = vshll.u32 %v8054_v60, %v2736_v15 }
 0x1ed   : > { %v2008_v42 = vsel %vm1998_vm2, nan, %v2007_v9  ;;  %v2849_v56 = vadd.s32 %v2847_v63, %v2845_v32  ;;  %v2859_v26 = vmul.u32 %v2855_v48, %v2831_v43  ;;  %vm2864_vm8 = vc.u32 %v2856_v37, %v2860_v7  ;;  %v10806_v48 = vld [vmem:[#allocation10_spill] sm:$0xff] }
 0x1ee   : > { %v2009_v47 = vpack.c.bf16 %v2008_v42, %v8039_v27  ;;  %v2739_v5 = vshrl.u32 %v8048_v24, %v2737_v52  ;;  %v2742_v6 = vadd.s32 127, %v2741_v29  ;;  %v2862_v18 = vshll.u32 %v2858_v28, 16 }
 0x1ef   : > { %v2850_v2 = vadd.s32 %v2849_v56, %v2839_v23  ;;  %v2865_v12 = vsel %vm2864_vm8, 1, %v10761_v17  ;;  %v2866_v44 = vadd.s32 %v2860_v7, %v2856_v37  ;;  %v8097_v51 = vsel %vm3101_vm5, %v7906_v38, 0  ;;  %v10807_v23 = vld [vmem:[#allocation47_spill] sm:$0xff] }
 0x1f0   : > { %2081 = vmatpush.bf16.msrb.mxu0 %v2009_v47  ;;  %v2740_v60 = vor.u32 %v2739_v5, %v2738_v41  ;;  %v2743_v36 = vshll.u32 %v2742_v6, 23  ;;  %v2867_v43 = vadd.s32 %v2865_v12, %v2859_v26  ;;  %v8101_v27 = vshrl.u32 %v3247_v11, 23 }
 0x1f1   : > { %v8103_v24 = vadd.s32 %v2850_v2, %v2841_v49  ;;  %vm2868_vm9 = vc.u32 %v2866_v44, %v2862_v18  ;;  %v10700_v14 = vand.u32 2147483647, %v10806_v48  ;;  %vm2629_vm10 = vcmp.lt.s32.totalorder %v6653_v0, 0 }
 0x1f2   : > { %v2744_v13 = vor.u32 4788187, %v2743_v36  ;;  %v2820_v38 = vsel %vm2814_vm14, %v2817_v57, %v2819_v40  ;;  %v2869_v21 = vsel %vm2868_vm9, 1, %v10761_v17  ;;  %v2752_v34 = vsel %vm2629_vm10, %v2751_v16, %v8036_v20 }
 0x1f3   : > { %v2861_v4 = vshrl.u32 %v2857_v58, 16  ;;  %v8113_v11 = vadd.s32 %v2866_v44, %v2862_v18  ;;  %v2871_v59 = vadd.s32 %v2869_v21, %v2867_v43  ;;  %v2747_v45 = vcvt.s32.f32 %v2740_v60  ;;  %v10810_v60 = vld [vmem:[#allocation46_spill] sm:$0xff] }
 0x1f4   : > { %v2745_v39 = vand.u32 2147483647, %v2744_v13  ;;  %v2863_v31 = vshrl.u32 %v2858_v28, 16  ;;  %v2179_v32 = vsub.s32 32, %v10807_v23  ;;  %v2171_v19 = vand.u32 8388607, %v10700_v14 }
 0x1f5   : > { %v2872_v37 = vadd.s32 %v2871_v59, %v2861_v4  ;;  %vm2876_vm11 = vc.u32 %v8103_v24, %v8113_v11  ;;  %v2190_v57 = vshll.u32 %v10771_v33, %v10807_v23  ;;  %v2184_v16 = vshll.u32 %v10768_v35, %v10807_v23  ;;  %v4287_v14 = vld [vmem:[%s10630_s7 + $0x110] sm:$0xff] }
 0x1f6   : > { %v2748_v20 = vmul.f32 %v2747_v45, %v2745_v39  ;;  %v2185_v40 = vshrl.u32 %v10770_v53, %v2179_v32  ;;  %v2187_v58 = vshll.u32 %v10770_v53, %v10807_v23  ;;  %v2188_v7 = vshrl.u32 %v10771_v33, %v2179_v32  ;;  %4685 = vperm.xlu2 %6037, %v4287_v14  }
 0x1f7   : > { %v2873_v54 = vadd.s32 %v2872_v37, %v2863_v31  ;;  %v2191_v55 = vshrl.u32 %v10772_v10, %v2179_v32  ;;  %v2193_v15 = vshll.u32 %v10772_v10, %v10807_v23  ;;  %v2181_v28 = vshll.u32 %v10756_v22, %v10807_v23 }
 0x1f8   : > { %v2749_v63 = vxor.u32 2147483648, %v2748_v20  ;;  %v2182_v9 = vshrl.u32 %v10768_v35, %v2179_v32  ;;  %v2194_v52 = vshrl.u32 %v10775_v25, %v2179_v32  ;;  %vm8137_vm12 = vcmp.le.f32.partialorder %v2627_v50, 0.7853982 }
 0x1f9   : > { %v2874_v49 = vmul.u32 %v8034_v30, %v2820_v38  ;;  %v2877_v42 = vadd.s32 1, %v2873_v54  ;;  %v2192_v41 = vor.u32 %v2191_v55, %v2190_v57  ;;  %v8144_v26 = vor.u32 %v2185_v40, %v2184_v16 }
 0x1fa   : > { %v2750_v56 = vsel %vm2629_vm10, %v2749_v63, %v2748_v20  ;;  %v2189_v47 = vor.u32 %v2188_v7, %v2187_v58  ;;  %v2195_v5 = vor.u32 %v2194_v52, %v2193_v15  ;;  %v2754_v50 = vsel %vm8137_vm12, 0, %v2752_v34 }
 0x1fb   : > { %v2753_v6 = vsel %vm8137_vm12, %v6653_v0, %v2750_v56  ;;  %v2878_v30 = vsel %vm2876_vm11, %v2877_v42, %v2873_v54  ;;  %v2172_v2 = vor.u32 8388608, %v2171_v19  ;;  %v2183_v44 = vor.u32 %v2182_v9, %v2181_v28 }
 0x1fc   : > { %v2755_v18 = vmul.f32 %v2753_v6, %v2753_v6  ;;  %v2879_v12 = vadd.s32 %v2878_v30, %v2874_v49  ;;  %vm2199_vm13 = vcmp.lt.s32.totalorder %v10810_v60, 4  ;;  %vm2196_vm14 = vcmp.lt.s32.totalorder %v10810_v60, 1 }
 0x1fd   : > { %vm2198_vm15 = vcmp.lt.s32.totalorder %v10810_v60, 3  ;;  %v2205_v36 = vsel %vm2199_vm13, %v2192_v41, 920167782  ;;  %v2209_v43 = vsel %vm2199_vm13, %v2195_v5, 1326507024  ;;  %v2208_v34 = vsel %vm2196_vm14, %v8144_v26, %v2189_v47 }
 0x1fe   : > { %v2756_v13 = vmul.f32 -0.001358992, %v2755_v18  ;;  %v2763_v38 = vmul.f32 -0.00019511016, %v2755_v18  ;;  %v2880_v21 = vadd.s32 536870912, %v2879_v12  ;;  %v8164_v4 = vand.u32 3, %v2754_v50 }
 0x1ff   : > { %vm2783_vm0 = vcmp.lt.s32.totalorder %v10780_v1, 0  ;;  %v2210_v59 = vsel %vm2198_vm15, %v2192_v41, %v2209_v43  ;;  %v8169_v39 = vshll.u32 %v2172_v2, 8  ;;  %vm8173_vm1 = vcmp.le.f32.partialorder %v2781_v8, 0.7853982 }
 0x200   : > { %v2757_v45 = vadd.f32 0.041655596, %v2756_v13  ;;  %v2764_v31 = vadd.f32 0.008332121, %v2763_v38  ;;  %v2881_v37 = vshrl.u32 %v2880_v21, 30  ;;  %vm2197_vm4 = vcmp.lt.s32.totalorder %v10810_v60, 2 }
 0x201   : > { %v2180_v19 = vshrl.u32 %v10756_v22, %v2179_v32  ;;  %v2204_v57 = vsel %vm2196_vm14, %v2183_v44, %v8144_v26  ;;  %v2206_v20 = vsel %vm2198_vm15, %v2189_v47, %v2205_v36  ;;  %v2211_v16 = vsel %vm2197_vm4, %v2208_v34, %v2210_v59 }
 0x202   : > { %v2758_v40 = vmul.f32 %v2757_v45, %v2755_v18  ;;  %v2765_v8 = vmul.f32 %v2764_v31, %v2755_v18  ;;  %v2882_v58 = vshll.u32 %v2881_v37, 30  ;;  %v2905_v54 = vsub.s32 4, %v2881_v37 }
 0x203   : > { %v2213_v7 = vand.u32 65535, %v8169_v39  ;;  %v8188_v55 = vshrl.u32 %v8169_v39, 16  ;;  %v2215_v32 = vand.u32 65535, %v2211_v16  ;;  %v2216_v15 = vshrl.u32 %v2211_v16, 16 }
 0x204   : > { %v2759_v63 = vadd.f32 -0.4999988, %v2758_v40  ;;  %v2766_v28 = vadd.f32 -0.16666654, %v2765_v8  ;;  %v8190_v9 = vsub.s32 %v2879_v12, %v2882_v58  ;;  %v8194_v52 = vsel %vm2197_vm4, %v2204_v57, %v2206_v20 }
 0x205   : > { %v2906_v29 = vsel %vm2783_vm0, %v2905_v54, %v2881_v37  ;;  %v2201_v49 = vsel %vm2199_vm13, %v2189_v47, 2102212464  ;;  %v8200_v42 = vmul.u32 %v2216_v15, %v2213_v7  ;;  %v8203_v41 = vmul.u32 %v2215_v32, %v8188_v55 }
 0x206   : > { %v2760_v56 = vmul.f32 %v2759_v63, %v2755_v18  ;;  %v2767_v5 = vmul.f32 %v2766_v28, %v2755_v18  ;;  %vm2884_vm2 = vcmp.lt.s32.totalorder %v8190_v9, 0  ;;  %v2885_v50 = vsub.s32 0, %v8190_v9  ;;  %v549_v63 = vld [vmem:[%s10632_s9 + $0x18] sm:$0x1] }
 0x207   : > { %vm2776_vm5 = vcmp.eq.s32.totalorder %v8164_v4, 2  ;;  %v2200_v30 = vsel %vm2196_vm14, %v2180_v19, %v2183_v44  ;;  %v2221_v2 = vshll.u32 %v8200_v42, 16  ;;  %v10701_v47 = vshrl.u32 %v8194_v52, 16  ;;  %v557_v28 = vld [vmem:[%s10632_s9 + $0xd8] sm:$0x1] }
 0x208   : > { %v8212_v12 = vadd.f32 1.0, %v2760_v56  ;;  %v2768_v36 = vadd.f32 1.0, %v2767_v5  ;;  %v2886_v43 = vsel %vm2884_vm2, %v2885_v50, %v8190_v9  ;;  %v2217_v13 = vmul.u32 %v2215_v32, %v2213_v7  ;;  %v8262_v56 = vld [vmem:[%s10632_s9 + $0xf0] sm:$0x1] }
 0x209   : > { %v2887_v18 = vclz %v2886_v43  ;;  %v2908_v38 = vsel %vm8173_vm1, 0, %v2906_v29  ;;  %v2202_v21 = vsel %vm2198_vm15, %v8144_v26, %v2201_v49  ;;  %v2237_v44 = vand.u32 65535, %v8194_v52  ;;  %v550_v49 = vld [vmem:[%s10632_s9 + $0x30] sm:$0x1] }
 0x20a   : > { %v8221_v34 = vmul.f32 %v2768_v36, %v2753_v6  ;;  %v2220_v59 = vmul.u32 %v2216_v15, %v8188_v55  ;;  %v2223_v45 = vshll.u32 %v8203_v41, 16  ;;  %vm2225_vm3 = vc.u32 %v2217_v13, %v2221_v2 }
 0x20b   : > { %v2777_v31 = vxor.u32 2147483648, %v8212_v12  ;;  %v5940_v37 = vadd.s32 4294967294, %v2887_v18  ;;  %v2226_v19 = vsel %vm2225_vm3, 1, %v10761_v17  ;;  %v2227_v57 = vadd.s32 %v2221_v2, %v2217_v13  ;;  %v548_v13 = vld [vmem:[%s10632_s9] sm:$0x1] }
 0x20c   : > { %v2875_v20 = vadd.s32 %v8113_v11, %v8103_v24  ;;  %v8229_v16 = vand.u32 3, %v2908_v38  ;;  %v8233_v26 = vsel %vm2197_vm4, %v2200_v30, %v2202_v21  ;;  %v8237_v6 = vmul.u32 %v10701_v47, %v2213_v7  ;;  %v551_v18 = vld [vmem:[%s10632_s9 + $0x48] sm:$0x1]  ;;  %v552_v21 = vld [vmem:[%s10632_s9 + $0x60] sm:$0x1] }
 0x20d   : > { %vm5941_vm6 = vcmp.lt.s32.totalorder %v5940_v37, 0  ;;  %v2228_v8 = vadd.s32 %v2226_v19, %v2220_v59  ;;  %vm2229_vm7 = vc.u32 %v2227_v57, %v2223_v45  ;;  %v8246_v60 = vsel %vm2776_vm5, %v2777_v31, %v8221_v34 }
 0x20e   : > { %v2890_v54 = vsel %vm5941_vm6, 0, %v5940_v37  ;;  %v2230_v11 = vsel %vm2229_vm7, 1, %v10761_v17  ;;  %v8254_v29 = vmul.u32 %v2237_v44, %v2213_v7  ;;  %v565_v5 = vpack.c.bf16 %v549_v63, %v549_v63  ;;  %v562_v63 = vld [vmem:[%s10632_s9 + $0x150] sm:$0x1] }
 0x20f   : > { %v2891_v32 = vsub.s32 32, %v2890_v54  ;;  %v2895_v15 = vsub.s32 4294967266, %v2890_v54  ;;  %v573_v50 = vpack.c.bf16 %v557_v28, %v557_v28  ;;  %v8265_v30 = vmul.u32 %v2237_v44, %v8188_v55  ;;  %v559_v44 = vld [vmem:[%s10632_s9 + $0x108] sm:$0x1] }
 0x210   : > { %v2892_v36 = vshll.u32 %v8190_v9, %v2890_v54  ;;  %v8275_v38 = vadd.s32 %v2230_v11, %v2228_v8  ;;  %v556_v9 = vld [vmem:[%s10632_s9 + $0xc0] sm:$0x1]  ;;  %v564_v59 = vpack.c.bf16 %v548_v13, %v548_v13  ;;  %v566_v45 = vpack.c.bf16 %v550_v49, %v550_v49 }
 0x211   : > { %v2893_v7 = vshrl.u32 %v2875_v20, %v2891_v32  ;;  %v2896_v43 = vadd.s32 127, %v2895_v15  ;;  %v567_v31 = vpack.c.bf16 %v551_v18, %v551_v18  ;;  %v574_v37 = vpack.c.bf16 %v8262_v56, %v8262_v56  ;;  %v553_v20 = vld [vmem:[%s10632_s9 + $0x78] sm:$0x1]  ;;  %v560_v8 = vld [vmem:[%s10632_s9 + $0x120] sm:$0x1] }
 0x212   : > { %v1103_v54 = vunpack.c.l.b16 %v565_v5  ;;  %v8294_v11 = vunpack.c.l.b16 %v573_v50  ;;  %v554_v32 = vld [vmem:[%s10632_s9 + $0x90] sm:$0x1]  ;;  %v561_v15 = vld [vmem:[%s10632_s9 + $0x138] sm:$0x1]  ;;  %v568_v28 = vpack.c.bf16 %v552_v21, %v552_v21  ;;  %v569_v49 = vpack.c.bf16 %v553_v20, %v553_v20  ;;  %v555_v50 = vld [vmem:[%s10632_s9 + $0xa8] sm:$0x1] }
 0x213   : > { %v2894_v19 = vor.u32 %v2893_v7, %v2892_v36  ;;  %v2897_v57 = vshll.u32 %v2896_v43, 23  ;;  %v572_v56 = vpack.c.bf16 %v556_v9, %v556_v9  ;;  %v575_v36 = vpack.c.bf16 %v559_v44, %v559_v44  ;;  %v563_v43 = vld [vmem:[%s10632_s9 + $0x168] sm:$0x1]  ;;  %v4236_v21 = vld [vmem:[%s10629_s6 + $0xf8] sm:$0xff] }
 0x214   : > { %v576_v13 = vpack.c.bf16 %v560_v8, %v560_v8  ;;  %v1102_v18 = vunpack.c.l.b16 %v564_v59  ;;  %v570_v9 = vpack.c.bf16 %v554_v32, %v554_v32  ;;  %v571_v44 = vpack.c.bf16 %v555_v50, %v555_v50  ;;  %5088 = vperm.xlu1 %6036, %v4236_v21  }
 0x215   : > { %v2898_v7 = vor.u32 4788187, %v2897_v57  ;;  %v2901_v5 = vcvt.s32.f32 %v2894_v19  ;;  %v577_v19 = vpack.c.bf16 %v561_v15, %v561_v15  ;;  %v578_v57 = vpack.c.bf16 %v562_v63, %v562_v63 }
 0x216   : > { %v579_v24 = vpack.c.bf16 %v563_v43, %v563_v43  ;;  %vm1033_vm8 = vcmask 1041409   ;;  %vm1036_vm9 = vcmask 1042434   ;;  %vm1039_vm10 = vcmask 1043459  }
 0x217   : > { %v2899_v20 = vand.u32 2147483647, %v2898_v7  ;;  %vm1042_vm11 = vcmask 1044484   ;;  %vm10707_vm12 = vcmask 1045509   ;;  %vm10706_vm13 = vcmask 1046534  }
 0x218   : > { %vm10705_vm14 = vcmask 1047559   ;;  %v1104_v8 = vunpack.c.l.b16 %v566_v45  ;;  %v1105_v2 = vunpack.c.l.b16 %v567_v31  ;;  %v1106_v58 = vunpack.c.l.b16 %v568_v28 }
 0x219   : > { %v2902_v59 = vmul.f32 %v2901_v5, %v2899_v20  ;;  %v1107_v40 = vunpack.c.l.b16 %v569_v49  ;;  %v1108_v32 = vunpack.c.l.b16 %v570_v9  ;;  %v1109_v50 = vunpack.c.l.b16 %v571_v44 }
 0x21a   : > { %v1110_v15 = vunpack.c.l.b16 %v572_v56  ;;  %v1112_v7 = vunpack.c.l.b16 %v574_v37  ;;  %v1113_v14 = vunpack.c.l.b16 %v575_v36  ;;  %v1114_v21 = vunpack.c.l.b16 %v576_v13 }
 0x21b   : > { %v2903_v63 = vxor.u32 2147483648, %v2902_v59  ;;  %v1115_v43 = vunpack.c.l.b16 %v577_v19  ;;  %v1116_v47 = vunpack.c.l.b16 %v578_v57  ;;  %v1117_v3 = vunpack.c.l.b16 %v579_v24 }
 0x21c   : > { %v1118_v48 = vrot.slane %v1103_v54, 7  ;;  %vm2773_vm15 = vcmp.eq.s32.totalorder %v8164_v4, 0  ;;  %v1120_v45 = vrot.slane %v1104_v8, 6  ;;  %v1122_v31 = vrot.slane %v1105_v2, 5 }
 0x21d   : > { %v2904_v5 = vsel %vm2783_vm0, %v2903_v63, %v2902_v59  ;;  %v1124_v28 = vrot.slane %v1106_v58, 4  ;;  %v1126_v56 = vrot.slane %v1107_v40, 3  ;;  %v1128_v36 = vrot.slane %v1108_v32, 2 }
 0x21e   : > { %v8323_v49 = vsel %vm8173_vm1, %v10780_v1, %v2904_v5  ;;  %v1119_v37 = vsel %vm1033_vm8, %v1118_v48, %v1102_v18  ;;  %v1130_v13 = vrot.slane %v1109_v50, 1  ;;  %v1132_v9 = vrot.slane %v8294_v11, 7 }
 0x21f   : > { %v2909_v24 = vmul.f32 %v8323_v49, %v8323_v49  ;;  %v1121_v54 = vsel %vm1036_vm9, %v1120_v45, %v1119_v37  ;;  %vm2772_vm0 = vcmp.lt.s32.totalorder %v8164_v4, 2  ;;  %v1134_v2 = vrot.slane %v1112_v7, 6 }
 0x220   : > { %v1123_v58 = vsel %vm1039_vm10, %v1122_v31, %v1121_v54  ;;  %v1136_v23 = vrot.slane %v1113_v14, 5  ;;  %v1138_v44 = vrot.slane %v1114_v21, 4  ;;  %v1133_v40 = vsel %vm1033_vm8, %v1132_v9, %v1110_v15 }
 0x221   : > { %v2910_v19 = vmul.f32 -0.001358992, %v2909_v24  ;;  %v2917_v57 = vmul.f32 -0.00019511016, %v2909_v24  ;;  %v1125_v48 = vsel %vm1042_vm11, %v1124_v28, %v1123_v58  ;;  %v1135_v20 = vsel %vm1036_vm9, %v1134_v2, %v1133_v40 }
 0x222   : > { %v1127_v18 = vsel %vm10707_vm12, %v1126_v56, %v1125_v48  ;;  %v1140_v59 = vrot.slane %v1115_v43, 3  ;;  %v1142_v8 = vrot.slane %v1116_v47, 2  ;;  %vm2770_vm1 = vweird.f32 %v6653_v0 }
 0x223   : > { %v2911_v11 = vadd.f32 0.041655596, %v2910_v19  ;;  %v2918_v32 = vadd.f32 0.008332121, %v2917_v57  ;;  %v1129_v50 = vsel %vm10706_vm13, %v1128_v36, %v1127_v18  ;;  %v1137_v63 = vsel %vm1039_vm10, %v1136_v23, %v1135_v20  ;;  %v10819_v57 = vld [vmem:[#allocation21_spill] sm:$0xff] }
 0x224   : > { %v1131_v7 = vsel %vm10705_vm14, %v1130_v13, %v1129_v50  ;;  %v1139_v14 = vsel %vm1042_vm11, %v1138_v44, %v1137_v63  ;;  %v1144_v21 = vrot.slane %v1117_v3, 1  ;;  %v10813_v15 = vshrl.u32 %v8194_v52, 16 }
 0x225   : > { %v2912_v45 = vmul.f32 %v2911_v11, %v2909_v24  ;;  %v2919_v43 = vmul.f32 %v2918_v32, %v2909_v24  ;;  %v1141_v47 = vsel %vm10707_vm12, %v1140_v59, %v1139_v14  ;;  %v10814_v31 = vshrl.u32 %v8200_v42, 16 }
 0x226   : > { %v2242_v5 = vmul.u32 %v10813_v15, %v8188_v55  ;;  %v10815_v37 = vxor.u32 2147483648, %v8221_v34  ;;  %vm10704_vm4 = vcmask 130048   ;;  %v1143_v3 = vsel %vm10706_vm13, %v1142_v8, %v1141_v47 }
 0x227   : > { %v2233_v28 = vadd.s32 %v8275_v38, %v10814_v31  ;;  %v10816_v52 = vshll.u32 %v8237_v6, 16  ;;  %v2913_v55 = vadd.f32 -0.4999988, %v2912_v45  ;;  %v2920_v36 = vadd.f32 -0.16666654, %v2919_v43 }
 0x228   : > { %v2775_v56 = vsel %vm2773_vm15, %v8212_v12, %v10815_v37  ;;  %v1145_v54 = vsel %vm10705_vm14, %v1144_v21, %v1143_v3  ;;  %vm2927_vm5 = vcmp.eq.s32.totalorder %v8229_v16, 0  ;;  %v2245_v38 = vshll.u32 %v8265_v30, 16 }
 0x229   : > { %vm2247_vm2 = vc.u32 %v8254_v29, %v10816_v52  ;;  %v1146_v34 = vpack.c.b16 %v1145_v54, %v1131_v7  ;;  %v10817_v12 = vmov %v10816_v52  ;;  %v2779_v58 = vsel %vm2772_vm0, %v2775_v56, %v8246_v60 }
 0x22a   : > { %v2248_v42 = vsel %vm2247_vm2, 1, %v10761_v17  ;;  %v2249_v13 = vadd.s32 %v10817_v12, %v8254_v29  ;;  %v2914_v2 = vmul.f32 %v2913_v55, %v2909_v24  ;;  %v2921_v23 = vmul.f32 %v2920_v36, %v2909_v24 }
 0x22b   : > { %v2250_v9 = vadd.s32 %v2248_v42, %v2242_v5  ;;  %vm2926_vm3 = vcmp.lt.s32.totalorder %v8229_v16, 2  ;;  %v10818_v44 = vshrl.u32 %v8203_v41, 16  ;;  %vm2924_vm6 = vweird.f32 %v10780_v1  ;;  %5898 = vmatmul.msk.bf16.vlgmr.msra.gmra.mxu2 %vm10704_vm4, %v1146_v34 }
 0x22c   : > { %vm2930_vm7 = vcmp.eq.s32.totalorder %v8229_v16, 2  ;;  %v2244_v29 = vshrl.u32 %v8237_v6, 16  ;;  %vm2251_vm15 = vc.u32 %v2249_v13, %v2245_v38  ;;  %v2318_v4 = vand.u32 2147483647, %v10819_v57 }
 0x22d   : > { %v8370_v19 = vadd.s32 %v2233_v28, %v10818_v44  ;;  %v2915_v60 = vadd.f32 1.0, %v2914_v2  ;;  %v2922_v48 = vadd.f32 1.0, %v2921_v23  ;;  %v2252_v24 = vsel %vm2251_vm15, 1, %v10761_v17 }
 0x22e   : > { %v8378_v40 = vadd.s32 %v2249_v13, %v2245_v38  ;;  %v2780_v41 = vsel %vm2770_vm1, nan, %v2779_v58  ;;  %v2246_v18 = vshrl.u32 %v8265_v30, 16  ;;  %v2254_v20 = vadd.s32 %v2252_v24, %v2250_v9  ;;  %v10820_v38 = vld [vmem:[#allocation24_spill] sm:$0xff] }
 0x22f   : > { %v2335_v59 = vshll.u32 %v10756_v22, %v7362_v61  ;;  %v2923_v6 = vmul.f32 %v2922_v48, %v8323_v49  ;;  %v2931_v8 = vxor.u32 2147483648, %v2915_v60  ;;  %v2336_v11 = vshrl.u32 %v10768_v35, %v7618_v62 }
 0x230   : > { %vm2259_vm0 = vc.u32 %v8370_v19, %v8378_v40  ;;  %v2255_v32 = vadd.s32 %v2254_v20, %v2244_v29  ;;  %v2325_v0 = vand.u32 8388607, %v2318_v4  ;;  %v2338_v30 = vshll.u32 %v10768_v35, %v7362_v61 }
 0x231   : > { %v2339_v50 = vshrl.u32 %v10770_v53, %v7618_v62  ;;  %v2928_v63 = vxor.u32 2147483648, %v2923_v6  ;;  %v2932_v49 = vsel %vm2930_vm7, %v2931_v8, %v2923_v6  ;;  %v2341_v7 = vshll.u32 %v10770_v53, %v7362_v61 }
 0x232   : > { %v2342_v14 = vshrl.u32 %v10771_v33, %v7618_v62  ;;  %v2256_v21 = vadd.s32 %v2255_v32, %v2246_v18  ;;  %v2337_v15 = vor.u32 %v2336_v11, %v2335_v59  ;;  %v2344_v5 = vshll.u32 %v10771_v33, %v7362_v61 }
 0x233   : > { %v2345_v45 = vshrl.u32 %v10772_v10, %v7618_v62  ;;  %v2929_v43 = vsel %vm2927_vm5, %v2915_v60, %v2928_v63  ;;  %v2340_v47 = vor.u32 %v2339_v50, %v2338_v30  ;;  %v2347_v31 = vshll.u32 %v10772_v10, %v7362_v61 }
 0x234   : > { %v2348_v28 = vshrl.u32 %v10775_v25, %v7618_v62  ;;  %v2933_v37 = vsel %vm2926_vm3, %v2929_v43, %v2932_v49  ;;  %v2260_v56 = vadd.s32 1, %v2256_v21  ;;  %v2343_v3 = vor.u32 %v2342_v14, %v2341_v7 }
 0x235   : > { %v2346_v52 = vor.u32 %v2345_v45, %v2344_v5  ;;  %v2934_v55 = vsel %vm2924_vm6, nan, %v2933_v37  ;;  %v2257_v36 = vmul.u32 %v8169_v39, %v8233_v26  ;;  %v2326_v54 = vor.u32 8388608, %v2325_v0 }
 0x236   : > { %v2349_v42 = vor.u32 %v2348_v28, %v2347_v31  ;;  %v2935_v34 = vpack.c.bf16 %v2934_v55, %v2780_v41  ;;  %v2261_v61 = vsel %vm2259_vm0, %v2260_v56, %v2256_v21  ;;  %vm2350_vm1 = vcmp.lt.s32.totalorder %v10820_v38, 1 }
 0x237   : > { %vm2353_vm2 = vcmp.lt.s32.totalorder %v10820_v38, 4  ;;  %v2262_v16 = vadd.s32 %v2261_v61, %v2257_v36  ;;  %vm2352_vm5 = vcmp.lt.s32.totalorder %v10820_v38, 3  ;;  %v2358_v1 = vsel %vm2350_vm1, %v2337_v15, %v2340_v47 }
 0x238   : > { %v2359_v39 = vsel %vm2353_vm2, %v2346_v52, 920167782  ;;  %3007 = vmatpush.bf16.msrb.mxu2 %v2935_v34  ;;  %vm2351_vm3 = vcmp.lt.s32.totalorder %v10820_v38, 2  ;;  %v2362_v12 = vsel %vm2350_vm1, %v2340_v47, %v2343_v3  ;;  %v2363_v13 = vsel %vm2353_vm2, %v2349_v42, 1326507024 }
 0x239   : > { %v2360_v26 = vsel %vm2352_vm5, %v2343_v3, %v2359_v39  ;;  %v2263_v9 = vadd.s32 536870912, %v2262_v16  ;;  %v2364_v2 = vsel %vm2352_vm5, %v2346_v52, %v2363_v13  ;;  %v8441_v44 = vshll.u32 %v2326_v54, 8 }
 0x23a   : > { %v2361_v58 = vsel %vm2351_vm3, %v2358_v1, %v2360_v26  ;;  %v2365_v23 = vsel %vm2351_vm3, %v2362_v12, %v2364_v2  ;;  %v8444_v29 = vand.u32 31, %v8097_v51  ;;  %v5950_v41 = vadd.s32 4294967169, %v8101_v27 }
 0x23b   : > { %v8446_v60 = vshrl.u32 %v2263_v9, 30  ;;  %v2369_v48 = vand.u32 65535, %v2365_v23  ;;  %v2370_v24 = vshrl.u32 %v2365_v23, 16  ;;  %v2367_v18 = vand.u32 65535, %v8441_v44 }
 0x23c   : > { %v2368_v20 = vshrl.u32 %v8441_v44, 16  ;;  %v2392_v59 = vshrl.u32 %v2361_v58, 16  ;;  %v2355_v8 = vsel %vm2353_vm2, %v2343_v3, 2102212464  ;;  %v2391_v0 = vand.u32 65535, %v2361_v58 }
 0x23d   : > { %v2265_v6 = vshll.u32 %v8446_v60, 30  ;;  %v2372_v11 = vmul.u32 %v2370_v24, %v2367_v18  ;;  %v8455_v30 = vshrl.u32 %v8097_v51, 5  ;;  %v8458_v50 = vsub.s32 32, %v8444_v29 }
 0x23e   : > { %v2373_v32 = vmul.u32 %v2369_v48, %v2368_v20  ;;  %v2334_v63 = vshrl.u32 %v10756_v22, %v7618_v62  ;;  %v8462_v49 = vadd.s32 1, %v5950_v41  ;;  %v2371_v7 = vmul.u32 %v2369_v48, %v2367_v18 }
 0x23f   : > { %v2266_v27 = vsub.s32 %v2262_v16, %v2265_v6  ;;  %v2375_v14 = vshll.u32 %v2372_v11, 16  ;;  %v2394_v21 = vmul.u32 %v2392_v59, %v2367_v18  ;;  %v2356_v51 = vsel %vm2352_vm5, %v2340_v47, %v2355_v8 }
 0x240   : > { %v2354_v45 = vsel %vm2350_vm1, %v2334_v63, %v2337_v15  ;;  %v2377_v43 = vshll.u32 %v2373_v32, 16  ;;  %v2395_v28 = vmul.u32 %v2391_v0, %v2368_v20  ;;  %v2258_v62 = vadd.s32 %v8378_v40, %v8370_v19 }
 0x241   : > { %vm2267_vm6 = vcmp.lt.s32.totalorder %v2266_v27, 0  ;;  %v2268_v5 = vsub.s32 0, %v2266_v27  ;;  %vm2379_vm7 = vc.u32 %v2371_v7, %v2375_v14  ;;  %v2381_v31 = vadd.s32 %v2375_v14, %v2371_v7 }
 0x242   : > { %v2374_v56 = vmul.u32 %v2370_v24, %v2368_v20  ;;  %v2393_v3 = vmul.u32 %v2391_v0, %v2367_v18  ;;  %v2380_v55 = vsel %vm2379_vm7, 1, %v10761_v17  ;;  %v2397_v36 = vshll.u32 %v2394_v21, 16 }
 0x243   : > { %v2269_v37 = vsel %vm2267_vm6, %v2268_v5, %v2266_v27  ;;  %vm2383_vm15 = vc.u32 %v2381_v31, %v2377_v43  ;;  %v2357_v15 = vsel %vm2351_vm3, %v2354_v45, %v2356_v51  ;;  %v2396_v42 = vmul.u32 %v2392_v59, %v2368_v20 }
 0x244   : > { %v2270_v52 = vclz %v2269_v37  ;;  %v2382_v54 = vadd.s32 %v2380_v55, %v2374_v56  ;;  %v2384_v47 = vsel %vm2383_vm15, 1, %v10761_v17  ;;  %vm3255_vm0 = vcmp.gt.s32.totalorder %v8462_v49, 0 }
 0x245   : > { %v2399_v61 = vshll.u32 %v2395_v28, 16  ;;  %vm2401_vm1 = vc.u32 %v2393_v3, %v2397_v36  ;;  %v2403_v19 = vadd.s32 %v2397_v36, %v2393_v3  ;;  %v2376_v40 = vshrl.u32 %v2372_v11, 16 }
 0x246   : > { %v5926_v34 = vadd.s32 4294967294, %v2270_v52  ;;  %v2386_v16 = vadd.s32 %v2384_v47, %v2382_v54  ;;  %v2402_v1 = vsel %vm2401_vm1, 1, %v10761_v17  ;;  %v3090_v39 = vand.u32 2147483647, %v10781_v46 }
 0x247   : > { %v2378_v26 = vshrl.u32 %v2373_v32, 16  ;;  %v2404_v38 = vadd.s32 %v2402_v1, %v2396_v42  ;;  %vm2405_vm5 = vc.u32 %v2403_v19, %v2399_v61  ;;  %v2398_v9 = vshrl.u32 %v2394_v21, 16 }
 0x248   : > { %vm5927_vm2 = vcmp.lt.s32.totalorder %v5926_v34, 0  ;;  %v2387_v13 = vadd.s32 %v2386_v16, %v2376_v40  ;;  %v2406_v58 = vsel %vm2405_vm5, 1, %v10761_v17  ;;  %v2400_v48 = vshrl.u32 %v2395_v28, 16 }
 0x249   : > { %v2273_v12 = vsel %vm5927_vm2, 0, %v5926_v34  ;;  %v2408_v24 = vadd.s32 %v2406_v58, %v2404_v38  ;;  %v8480_v20 = vadd.s32 %v2403_v19, %v2399_v61  ;;  %v3110_v59 = vshll.u32 %v10768_v35, %v8444_v29  ;;  %v10821_v34 = vld [vmem:[#allocation10_spill] sm:$0xff] }
 0x24a   : > { %v2274_v2 = vsub.s32 32, %v2273_v12  ;;  %v2278_v23 = vsub.s32 4294967266, %v2273_v12  ;;  %v2275_v41 = vshll.u32 %v2266_v27, %v2273_v12  ;;  %v8478_v18 = vadd.s32 %v2387_v13, %v2378_v26 }
 0x24b   : > { %v2409_v11 = vadd.s32 %v2408_v24, %v2398_v9  ;;  %v3111_v32 = vshrl.u32 %v10770_v53, %v8458_v50  ;;  %v3097_v0 = vand.u32 8388607, %v3090_v39  ;;  %v3107_v63 = vshll.u32 %v10756_v22, %v8444_v29 }
 0x24c   : > { %v2276_v6 = vshrl.u32 %v2258_v62, %v2274_v2  ;;  %v2279_v8 = vadd.s32 127, %v2278_v23  ;;  %v3108_v27 = vshrl.u32 %v10768_v35, %v8458_v50  ;;  %v3113_v7 = vshll.u32 %v10770_v53, %v8444_v29 }
 0x24d   : > { %v2410_v5 = vadd.s32 %v2409_v11, %v2400_v48  ;;  %vm2413_vm3 = vc.u32 %v8478_v18, %v8480_v20  ;;  %v3114_v45 = vshrl.u32 %v10771_v33, %v8458_v50  ;;  %v3116_v51 = vshll.u32 %v10771_v33, %v8444_v29 }
 0x24e   : > { %v2277_v14 = vor.u32 %v2276_v6, %v2275_v41  ;;  %v2280_v21 = vshll.u32 %v2279_v8, 23  ;;  %v3117_v43 = vshrl.u32 %v10772_v10, %v8458_v50  ;;  %v3119_v31 = vshll.u32 %v10772_v10, %v8444_v29 }
 0x24f   : > { %v2414_v62 = vadd.s32 1, %v2410_v5  ;;  %v8504_v37 = vor.u32 %v3111_v32, %v3110_v59  ;;  %v3120_v56 = vshrl.u32 %v10775_v25, %v8458_v50  ;;  %v3256_v3 = vsel %vm3255_vm0, %v8462_v49, 0 }
 0x250   : > { %v2281_v28 = vor.u32 4788187, %v2280_v21  ;;  %v2411_v52 = vmul.u32 %v8441_v44, %v2357_v15  ;;  %v8512_v55 = vor.u32 %v3114_v45, %v3113_v7  ;;  %v3118_v36 = vor.u32 %v3117_v43, %v3116_v51 }
 0x251   : > { %v2284_v47 = vcvt.s32.f32 %v2277_v14  ;;  %v2415_v42 = vsel %vm2413_vm3, %v2414_v62, %v2410_v5  ;;  %v3121_v29 = vor.u32 %v3120_v56, %v3119_v31  ;;  %vm2166_vm6 = vcmp.lt.s32.totalorder %v10821_v34, 0 }
 0x252   : > { %v2282_v54 = vand.u32 2147483647, %v2281_v28  ;;  %v2416_v61 = vadd.s32 %v2415_v42, %v2411_v52  ;;  %v3098_v19 = vor.u32 8388608, %v3097_v0  ;;  %vm3122_vm7 = vcmp.lt.s32.totalorder %v8455_v30, 1 }
 0x253   : > { %v8516_v16 = vor.u32 %v3108_v27, %v3107_v63  ;;  %vm3125_vm15 = vcmp.lt.s32.totalorder %v8455_v30, 4  ;;  %v3134_v44 = vsel %vm3122_vm7, %v8504_v37, %v8512_v55  ;;  %vm3124_vm0 = vcmp.lt.s32.totalorder %v8455_v30, 3 }
 0x254   : > { %v2285_v40 = vmul.f32 %v2284_v47, %v2282_v54  ;;  %v2417_v49 = vadd.s32 536870912, %v2416_v61  ;;  %v3131_v15 = vsel %vm3125_vm15, %v3118_v36, 920167782  ;;  %v3135_v1 = vsel %vm3125_vm15, %v3121_v29, 1326507024 }
 0x255   : > { %v10822_v26 = vand.u32 2147483647, %v10821_v34  ;;  %vm3123_vm2 = vcmp.lt.s32.totalorder %v8455_v30, 2  ;;  %v3136_v13 = vsel %vm3124_vm0, %v3118_v36, %v3135_v1  ;;  %v2288_v9 = vsub.s32 4, %v8446_v60  ;;  %v10827_v30 = vld [vmem:[#allocation28_spill] sm:$0xff] }
 0x256   : > { %v2286_v12 = vxor.u32 2147483648, %v2285_v40  ;;  %v8538_v58 = vshrl.u32 %v2417_v49, 30  ;;  %v3137_v2 = vsel %vm3123_vm2, %v3134_v44, %v3136_v13  ;;  %v8542_v23 = vshll.u32 %v3098_v19, 8 }
 0x257   : > { %vm8530_vm1 = vcmp.le.f32.partialorder %v10822_v26, 0.7853982  ;;  %v3130_v24 = vsel %vm3122_vm7, %v8516_v16, %v8504_v37  ;;  %v3132_v41 = vsel %vm3124_vm0, %v8512_v55, %v3131_v15  ;;  %v3142_v59 = vshrl.u32 %v3137_v2, 16 }
 0x258   : > { %v2287_v48 = vsel %vm2166_vm6, %v2286_v12, %v2285_v40  ;;  %v2419_v8 = vshll.u32 %v8538_v58, 30  ;;  %v3139_v11 = vand.u32 65535, %v8542_v23  ;;  %v3141_v32 = vand.u32 65535, %v3137_v2 }
 0x259   : > { %v8556_v6 = vsel %vm8530_vm1, %v10821_v34, %v2287_v48  ;;  %v8560_v0 = vand.u32 31, %v3256_v3  ;;  %v3140_v7 = vshrl.u32 %v8542_v23, 16  ;;  %v8569_v21 = vshrl.u32 %v3256_v3, 5 }
 0x25a   : > { %v8564_v63 = vmul.f32 %v8556_v6, %v8556_v6  ;;  %v8566_v27 = vsub.s32 %v2416_v61, %v2419_v8  ;;  %v3144_v14 = vmul.u32 %v3142_v59, %v3139_v11  ;;  %v3133_v51 = vsel %vm3123_vm2, %v3130_v24, %v3132_v41 }
 0x25b   : > { %v8578_v43 = vsel %vm2166_vm6, %v2288_v9, %v8446_v60  ;;  %v8582_v28 = vmul.u32 %v3141_v32, %v3140_v7  ;;  %v8585_v62 = vsub.s32 32, %v8560_v0  ;;  %v3106_v54 = vshrl.u32 %v10756_v22, %v8458_v50 }
 0x25c   : > { %v2293_v5 = vmul.f32 -0.001358992, %v8564_v63  ;;  %v2300_v45 = vmul.f32 -0.00019511016, %v8564_v63  ;;  %vm2421_vm5 = vcmp.lt.s32.totalorder %v8566_v27, 0  ;;  %v2422_v31 = vsub.s32 0, %v8566_v27 }
 0x25d   : > { %v3147_v52 = vshll.u32 %v3144_v14, 16  ;;  %v3143_v47 = vmul.u32 %v3141_v32, %v3139_v11  ;;  %v3164_v60 = vshrl.u32 %v3133_v51, 16  ;;  %v2291_v42 = vsel %vm8530_vm1, 0, %v8578_v43 }
 0x25e   : > { %v2294_v56 = vadd.f32 0.041655596, %v2293_v5  ;;  %v2301_v3 = vadd.f32 0.008332121, %v2300_v45  ;;  %v2423_v36 = vsel %vm2421_vm5, %v2422_v31, %v8566_v27  ;;  %v3163_v19 = vand.u32 65535, %v3133_v51 }
 0x25f   : > { %v2424_v61 = vclz %v2423_v36  ;;  %vm2320_vm3 = vcmp.lt.s32.totalorder %v10819_v57, 0  ;;  %v3146_v40 = vmul.u32 %v3142_v59, %v3140_v7  ;;  %v3149_v44 = vshll.u32 %v8582_v28, 16 }
 0x260   : > { %v2302_v29 = vmul.f32 %v2301_v3, %v8564_v63  ;;  %vm3151_vm6 = vc.u32 %v3143_v47, %v3147_v52  ;;  %v3153_v49 = vadd.s32 %v3147_v52, %v3143_v47  ;;  %v2295_v15 = vmul.f32 %v2294_v56, %v8564_v63 }
 0x261   : > { %v5929_v50 = vadd.s32 4294967294, %v2424_v61  ;;  %v3127_v1 = vsel %vm3125_vm15, %v8512_v55, 2102212464  ;;  %v3152_v26 = vsel %vm3151_vm6, 1, %v10761_v17  ;;  %v3166_v13 = vmul.u32 %v3164_v60, %v3139_v11 }
 0x262   : > { %v2303_v38 = vadd.f32 -0.16666654, %v2302_v29  ;;  %v3154_v12 = vadd.s32 %v3152_v26, %v3146_v40  ;;  %vm3155_vm1 = vc.u32 %v3153_v49, %v3149_v44  ;;  %v2412_v9 = vadd.s32 %v8480_v20, %v8478_v18 }
 0x263   : > { %vm5930_vm5 = vcmp.lt.s32.totalorder %v5929_v50, 0  ;;  %v3126_v2 = vsel %vm3122_vm7, %v3106_v54, %v8516_v16  ;;  %v3156_v48 = vsel %vm3155_vm1, 1, %v10761_v17  ;;  %vm8609_vm4 = vcmp.le.f32.partialorder %v2318_v4, 0.7853982 }
 0x264   : > { %v2427_v24 = vsel %vm5930_vm5, 0, %v5929_v50  ;;  %v3158_v41 = vadd.s32 %v3156_v48, %v3154_v12  ;;  %v3167_v59 = vmul.u32 %v3163_v19, %v3140_v7  ;;  %v3169_v8 = vshll.u32 %v3166_v13, 16 }
 0x265   : > { %v2428_v32 = vsub.s32 32, %v2427_v24  ;;  %v2442_v18 = vsub.s32 4, %v8538_v58  ;;  %v3128_v20 = vsel %vm3124_vm0, %v8504_v37, %v3127_v1  ;;  %v3148_v16 = vshrl.u32 %v3144_v14, 16 }
 0x266   : > { %v2296_v5 = vadd.f32 -0.4999988, %v2295_v15  ;;  %v2304_v45 = vmul.f32 %v2303_v38, %v8564_v63  ;;  %v2432_v51 = vsub.s32 4294967266, %v2427_v24  ;;  %v3165_v4 = vmul.u32 %v3163_v19, %v3139_v11 }
 0x267   : > { %v2429_v43 = vshll.u32 %v8566_v27, %v2427_v24  ;;  %v2430_v31 = vshrl.u32 %v2412_v9, %v2428_v32  ;;  %v3159_v56 = vadd.s32 %v3158_v41, %v3148_v16  ;;  %v3168_v3 = vmul.u32 %v3164_v60, %v3140_v7 }
 0x268   : > { %v2433_v52 = vadd.s32 127, %v2432_v51  ;;  %v3171_v36 = vshll.u32 %v3167_v59, 16  ;;  %vm3173_vm7 = vc.u32 %v3165_v4, %v3169_v8  ;;  %v3175_v54 = vadd.s32 %v3169_v8, %v3165_v4 }
 0x269   : > { %v8622_v47 = vsel %vm2320_vm3, %v2442_v18, %v8538_v58  ;;  %v3129_v37 = vsel %vm3123_vm2, %v3126_v2, %v3128_v20  ;;  %v3150_v14 = vshrl.u32 %v8582_v28, 16  ;;  %v3174_v11 = vsel %vm3173_vm7, 1, %v10761_v17 }
 0x26a   : > { %v2431_v27 = vor.u32 %v2430_v31, %v2429_v43  ;;  %v2434_v29 = vshll.u32 %v2433_v52, 23  ;;  %v3176_v61 = vadd.s32 %v3174_v11, %v3168_v3  ;;  %vm3177_vm15 = vc.u32 %v3175_v54, %v3171_v36 }
 0x26b   : > { %v2297_v7 = vmul.f32 %v2296_v5, %v8564_v63  ;;  %v2305_v60 = vadd.f32 1.0, %v2304_v45  ;;  %v3170_v19 = vshrl.u32 %v3166_v13, 16  ;;  %v3178_v40 = vsel %vm3177_vm15, 1, %v10761_v17 }
 0x26c   : > { %v2435_v44 = vor.u32 4788187, %v2434_v29  ;;  %v8630_v58 = vadd.s32 %v3159_v56, %v3150_v14  ;;  %v3180_v49 = vadd.s32 %v3178_v40, %v3176_v61  ;;  %v3244_v15 = vand.u32 2147483647, %v10827_v30 }
 0x26d   : > { %v8633_v50 = vand.u32 3, %v2291_v42  ;;  %v2445_v28 = vsel %vm8609_vm4, 0, %v8622_v47  ;;  %v3172_v1 = vshrl.u32 %v3167_v59, 16  ;;  %v3183_v26 = vmul.u32 %v8542_v23, %v3129_v37 }
 0x26e   : > { %v2436_v63 = vand.u32 2147483647, %v2435_v44  ;;  %v2438_v38 = vcvt.s32.f32 %v2431_v27  ;;  %v8639_v12 = vadd.s32 %v3175_v54, %v3171_v36  ;;  %v3181_v13 = vadd.s32 %v3180_v49, %v3170_v19 }
 0x26f   : > { %v8641_v9 = vadd.f32 1.0, %v2297_v7  ;;  %v8644_v2 = vmul.f32 %v2305_v60, %v8556_v6  ;;  %v3262_v42 = vshrl.u32 %v10768_v35, %v8585_v62  ;;  %v3265_v48 = vshrl.u32 %v10770_v53, %v8585_v62 }
 0x270   : > { %v2439_v24 = vmul.f32 %v2438_v38, %v2436_v63  ;;  %v3182_v41 = vadd.s32 %v3181_v13, %v3172_v1  ;;  %vm3185_vm0 = vc.u32 %v8630_v58, %v8639_v12  ;;  %v3251_v23 = vand.u32 8388607, %v3244_v15 }
 0x271   : > { %v3261_v59 = vshll.u32 %v10756_v22, %v8560_v0  ;;  %v3264_v6 = vshll.u32 %v10768_v35, %v8560_v0  ;;  %v3267_v8 = vshll.u32 %v10770_v53, %v8560_v0  ;;  %v3268_v32 = vshrl.u32 %v10771_v33, %v8585_v62 }
 0x272   : > { %v2440_v18 = vxor.u32 2147483648, %v2439_v24  ;;  %v3186_v20 = vadd.s32 1, %v3182_v41  ;;  %v3270_v16 = vshll.u32 %v10771_v33, %v8560_v0  ;;  %v3271_v5 = vshrl.u32 %v10772_v10, %v8585_v62 }
 0x273   : > { %vm2310_vm2 = vcmp.eq.s32.totalorder %v8633_v50, 0  ;;  %v8667_v45 = vor.u32 %v3262_v42, %v3261_v59  ;;  %v8669_v51 = vor.u32 %v3265_v48, %v3264_v6  ;;  %v3273_v35 = vshll.u32 %v10772_v10, %v8560_v0 }
 0x274   : > { %v3274_v53 = vshrl.u32 %v10775_v25, %v8585_v62  ;;  %v2441_v4 = vsel %vm2320_vm3, %v2440_v18, %v2439_v24  ;;  %v3187_v33 = vsel %vm3185_vm0, %v3186_v20, %v3182_v41  ;;  %v8680_v43 = vor.u32 %v3268_v32, %v3267_v8 }
 0x275   : > { %v3272_v31 = vor.u32 %v3271_v5, %v3270_v16  ;;  %v8685_v56 = vsel %vm8609_vm4, %v10819_v57, %v2441_v4  ;;  %v3188_v3 = vadd.s32 %v3187_v33, %v3183_v26  ;;  %v3252_v10 = vor.u32 8388608, %v3251_v23 }
 0x276   : > { %v3275_v0 = vor.u32 %v3274_v53, %v3273_v35  ;;  %v2311_v25 = vxor.u32 2147483648, %v8644_v2  ;;  %v2314_v52 = vxor.u32 2147483648, %v8641_v9  ;;  %v2446_v36 = vmul.f32 %v8685_v56, %v8685_v56 }
 0x277   : > { %vm3279_vm3 = vcmp.lt.s32.totalorder %v8569_v21, 4  ;;  %v3189_v54 = vadd.s32 536870912, %v3188_v3  ;;  %vm3276_vm6 = vcmp.lt.s32.totalorder %v8569_v21, 1  ;;  %vm3278_vm1 = vcmp.lt.s32.totalorder %v8569_v21, 3 }
 0x278   : > { %v3285_v55 = vsel %vm3279_vm3, %v3272_v31, 920167782  ;;  %v2447_v47 = vmul.f32 -0.001358992, %v2446_v36  ;;  %v2454_v37 = vmul.f32 -0.00019511016, %v2446_v36  ;;  %v3284_v14 = vsel %vm3276_vm6, %v8667_v45, %v8669_v51 }
 0x279   : > { %v3288_v11 = vsel %vm3276_vm6, %v8669_v51, %v8680_v43  ;;  %v8704_v27 = vshrl.u32 %v3189_v54, 30  ;;  %v3286_v29 = vsel %vm3278_vm1, %v8680_v43, %v3285_v55  ;;  %v3289_v61 = vsel %vm3279_vm3, %v3275_v0, 1326507024 }
 0x27a   : > { %v8711_v7 = vshll.u32 %v3252_v10, 8  ;;  %vm2307_vm4 = vweird.f32 %v10821_v34  ;;  %v2448_v60 = vadd.f32 0.041655596, %v2447_v47  ;;  %v2455_v19 = vadd.f32 0.008332121, %v2454_v37 }
 0x27b   : > { %vm3277_vm5 = vcmp.lt.s32.totalorder %v8569_v21, 2  ;;  %v3290_v40 = vsel %vm3278_vm1, %v3272_v31, %v3289_v61  ;;  %vm2313_vm7 = vcmp.eq.s32.totalorder %v8633_v50, 2  ;;  %v2462_v44 = vand.u32 3, %v2445_v28  ;;  %v10841_v21 = vld [vmem:[#allocation9_spill] sm:$0xff] }
 0x27c   : > { %v3191_v49 = vshll.u32 %v8704_v27, 30  ;;  %v3291_v1 = vsel %vm3277_vm5, %v3288_v11, %v3290_v40  ;;  %v2312_v26 = vsel %vm2310_vm2, %v8641_v9, %v2311_v25  ;;  %v2449_v63 = vmul.f32 %v2448_v60, %v2446_v36 }
 0x27d   : > { %v2456_v38 = vmul.f32 %v2455_v19, %v2446_v36  ;;  %v3287_v13 = vsel %vm3277_vm5, %v3284_v14, %v3286_v29  ;;  %v3293_v48 = vand.u32 65535, %v8711_v7  ;;  %v3295_v24 = vand.u32 65535, %v3291_v1 }
 0x27e   : > { %v8726_v42 = vsub.s32 %v3188_v3, %v3191_v49  ;;  %v3296_v28 = vshrl.u32 %v3291_v1, 16  ;;  %vm2309_vm15 = vcmp.lt.s32.totalorder %v8633_v50, 2  ;;  %v2315_v41 = vsel %vm2313_vm7, %v2314_v52, %v8644_v2 }
 0x27f   : > { %v2450_v23 = vadd.f32 -0.4999988, %v2449_v63  ;;  %v2457_v59 = vadd.f32 -0.16666654, %v2456_v38  ;;  %vm2464_vm0 = vcmp.eq.s32.totalorder %v2462_v44, 0  ;;  %vm2467_vm14 = vcmp.eq.s32.totalorder %v2462_v44, 2 }
 0x280   : > { %vm3193_vm2 = vcmp.lt.s32.totalorder %v8726_v42, 0  ;;  %v3194_v9 = vsub.s32 0, %v8726_v42  ;;  %v3294_v6 = vshrl.u32 %v8711_v7, 16  ;;  %v3298_v8 = vmul.u32 %v3296_v28, %v3293_v48 }
 0x281   : > { %v2316_v32 = vsel %vm2309_vm15, %v2312_v26, %v2315_v41  ;;  %v2451_v18 = vmul.f32 %v2450_v23, %v2446_v36  ;;  %v2458_v20 = vmul.f32 %v2457_v59, %v2446_v36  ;;  %vm2463_vm13 = vcmp.lt.s32.totalorder %v2462_v44, 2 }
 0x282   : > { %v3317_v16 = vand.u32 65535, %v3287_v13  ;;  %vm2461_vm12 = vweird.f32 %v10819_v57  ;;  %v3195_v50 = vsel %vm3193_vm2, %v3194_v9, %v8726_v42  ;;  %v3297_v2 = vmul.u32 %v3295_v24, %v3293_v48 }
 0x283   : > { %v3299_v5 = vmul.u32 %v3295_v24, %v3294_v6  ;;  %v3318_v35 = vshrl.u32 %v3287_v13, 16  ;;  %v2452_v53 = vadd.f32 1.0, %v2451_v18  ;;  %v2459_v4 = vadd.f32 1.0, %v2458_v20 }
 0x284   : > { %v3196_v33 = vclz %v3195_v50  ;;  %v3301_v31 = vshll.u32 %v3298_v8, 16  ;;  %v2317_v3 = vsel %vm2307_vm4, nan, %v2316_v32  ;;  %v3184_v10 = vadd.s32 %v8639_v12, %v8630_v58 }
 0x285   : > { %v3300_v0 = vmul.u32 %v3296_v28, %v3294_v6  ;;  %v3302_v25 = vshrl.u32 %v3298_v8, 16  ;;  %v2460_v52 = vmul.f32 %v2459_v4, %v8685_v56  ;;  %v2468_v36 = vxor.u32 2147483648, %v2452_v53 }
 0x286   : > { %v5948_v54 = vadd.s32 4294967294, %v3196_v33  ;;  %vm3305_vm7 = vc.u32 %v3297_v2, %v3301_v31  ;;  %v3303_v55 = vshll.u32 %v3299_v5, 16  ;;  %v3307_v37 = vadd.s32 %v3301_v31, %v3297_v2 }
 0x287   : > { %v3306_v47 = vsel %vm3305_vm7, 1, %v10761_v17  ;;  %v3320_v14 = vmul.u32 %v3318_v35, %v3293_v48  ;;  %v2465_v11 = vxor.u32 2147483648, %v2460_v52  ;;  %v3319_v34 = vmul.u32 %v3317_v16, %v3293_v48 }
 0x288   : > { %vm5949_vm15 = vcmp.lt.s32.totalorder %v5948_v54, 0  ;;  %v3308_v29 = vadd.s32 %v3306_v47, %v3300_v0  ;;  %vm3309_vm4 = vc.u32 %v3307_v37, %v3303_v55  ;;  %v3321_v60 = vmul.u32 %v3317_v16, %v3294_v6  ;;  %v10830_v0 = vld [vmem:[#allocation12_spill] sm:$0xff]  ;;  %v10833_v55 = vld [vmem:[#allocation19_spill] sm:$0xff] }
 0x289   : > { %v3199_v61 = vsel %vm5949_vm15, 0, %v5948_v54  ;;  %v3323_v58 = vshll.u32 %v3320_v14, 16  ;;  %v2466_v12 = vsel %vm2464_vm0, %v2452_v53, %v2465_v11  ;;  %v2469_v56 = vsel %vm2467_vm14, %v2468_v36, %v2460_v52  ;;  %v10831_v36 = vld [vmem:[#allocation16_spill] sm:$0xff]  ;;  %v10832_v54 = vld [vmem:[#allocation30_spill] sm:$0xff] }
 0x28a   : > { %v3200_v19 = vsub.s32 32, %v3199_v61  ;;  %v3204_v40 = vsub.s32 4294967266, %v3199_v61  ;;  %v2470_v49 = vsel %vm2463_vm13, %v2466_v12, %v2469_v56  ;;  %v3201_v1 = vshll.u32 %v8726_v42, %v3199_v61 }
 0x28b   : > { %v3310_v26 = vsel %vm3309_vm4, 1, %v10761_v17  ;;  %v3322_v63 = vmul.u32 %v3318_v35, %v3294_v6  ;;  %v2471_v38 = vsel %vm2461_vm12, nan, %v2470_v49  ;;  %v3325_v41 = vshll.u32 %v3321_v60, 16 }
 0x28c   : > { %v3202_v13 = vshrl.u32 %v3184_v10, %v3200_v19  ;;  %v3205_v48 = vadd.s32 127, %v3204_v40  ;;  %v3312_v24 = vadd.s32 %v3310_v26, %v3308_v29  ;;  %v2472_v28 = vpack.c.bf16 %v2471_v38, %v2317_v3  ;;  %v10828_v3 = vld [vmem:[#allocation11_spill] sm:$0xff]  ;;  %v10829_v10 = vld [vmem:[#allocation29_spill] sm:$0xff] }
 0x28d   : > { %vm3327_vm0 = vc.u32 %v3319_v34, %v3323_v58  ;;  %v3329_v23 = vadd.s32 %v3323_v58, %v3319_v34  ;;  %v3260_v42 = vshrl.u32 %v10756_v22, %v8585_v62  ;;  %v3281_v57 = vsel %vm3279_vm3, %v8680_v43, 2102212464 }
 0x28e   : > { %v3203_v59 = vor.u32 %v3202_v13, %v3201_v1  ;;  %v3206_v9 = vshll.u32 %v3205_v48, 23  ;;  %v3313_v8 = vadd.s32 %v3312_v24, %v3302_v25  ;;  %v3328_v44 = vsel %vm3327_vm0, 1, %v10761_v17  ;;  %2544 = vmatpush.bf16.msrb.mxu1 %v2472_v28 }
 0x28f   : > { %v3330_v6 = vadd.s32 %v3328_v44, %v3322_v63  ;;  %vm3331_vm12 = vc.u32 %v3329_v23, %v3325_v41  ;;  %v3304_v18 = vshrl.u32 %v3299_v5, 16  ;;  %v3280_v16 = vsel %vm3276_vm6, %v3260_v42, %v8667_v45 }
 0x290   : > { %v3207_v32 = vor.u32 4788187, %v3206_v9  ;;  %v3332_v20 = vsel %vm3331_vm12, 1, %v10761_v17  ;;  %v3324_v50 = vshrl.u32 %v3320_v14, 16  ;;  %v3210_v53 = vcvt.s32.f32 %v3203_v59 }
 0x291   : > { %v3334_v2 = vadd.s32 %v3332_v20, %v3330_v6  ;;  %v3282_v22 = vsel %vm3278_vm1, %v8669_v51, %v3281_v57  ;;  %v3314_v62 = vadd.s32 %v3313_v8, %v3304_v18  ;;  %v3326_v43 = vshrl.u32 %v3321_v60, 16 }
 0x292   : > { %v3208_v35 = vand.u32 2147483647, %v3207_v32  ;;  %v3333_v31 = vadd.s32 %v3329_v23, %v3325_v41  ;;  %v3283_v17 = vsel %vm3277_vm5, %v3280_v16, %v3282_v22  ;;  %v3523_v45 = vmul.f32 %v10829_v10, %v10828_v3  ;;  %v4788_v16 = vpop.permute.xlu2 %4787 }
 0x293   : > { %v3335_v4 = vadd.s32 %v3334_v2, %v3324_v50  ;;  %v3753_v25 = vmul.f32 %v10829_v10, %v10830_v0  ;;  %v3524_v51 = vmul.f32 %v10832_v54, %v10831_v36  ;;  %v3754_v47 = vmul.f32 %v10832_v54, %v10833_v55  ;;  %v10840_v36 = vld [vmem:[#allocation22_spill] sm:$0xff] }
 0x294   : > { %v3211_v33 = vmul.f32 %v3210_v53, %v3208_v35  ;;  %vm3339_vm13 = vc.u32 %v3314_v62, %v3333_v31  ;;  %vm8774_vm14 = vcmp.le.f32.partialorder %v3090_v39, 0.7853982  ;;  %vm3092_vm3 = vcmp.lt.s32.totalorder %v10781_v46, 0 }
 0x295   : > { %v3336_v5 = vadd.s32 %v3335_v4, %v3326_v43  ;;  %v3337_v11 = vmul.u32 %v8711_v7, %v3283_v17  ;;  %v3525_v29 = vpack.c.bf16 %v3524_v51, %v3523_v45  ;;  %v3755_v34 = vpack.c.bf16 %v3754_v47, %v3753_v25  ;;  %v10836_v4 = vld [vmem:[#allocation27_spill] sm:$0xff]  ;;  %v10839_v45 = vld [vmem:[#allocation17_spill] sm:$0xff] }
 0x296   : > { %v3212_v52 = vxor.u32 2147483648, %v3211_v33  ;;  %v3214_v40 = vsub.s32 4, %v8704_v27  ;;  %vm3246_vm2 = vcmp.lt.s32.totalorder %v10827_v30, 0  ;;  %v3338_v35 = vadd.s32 %v3333_v31, %v3314_v62 }
 0x297   : > { %v3340_v37 = vadd.s32 1, %v3336_v5  ;;  %3597 = vmatpush.bf16.msra.mxu0 %v3525_v29  ;;  %3827 = vmatpush.bf16.msra.mxu2 %v3755_v34  ;;  %vm8800_vm15 = vcmp.le.f32.partialorder %v3244_v15, 0.7853982  ;;  %v8806_v0 = vmul.f32 %v10832_v54, %v10839_v45  ;;  %v8812_v51 = vmul.f32 %v10832_v54, %v10840_v36  ;;  %v8825_v29 = vld [vmem:[%s6501_s21 + $0x10] sm:$0xff] }
 0x298   : > { %v3213_v14 = vsel %vm3092_vm3, %v3212_v52, %v3211_v33  ;;  %v3215_v13 = vsel %vm3092_vm3, %v3214_v40, %v8704_v27  ;;  %v8796_v33 = vmul.f32 %v10832_v54, %v10836_v4  ;;  %10844 = vst [vmem:[#allocation23_spill] sm:$0xff] %v8825_v29  ;;  %v8828_v34 = vmul.f32 %v8825_v29, %v4788_v16  ;;  %v670_v45 = vld [vmem:[%s10632_s9 + $0x113] sm:$0x1] }
 0x299   : > { %v3216_v61 = vsel %vm8774_vm14, %v10781_v46, %v3213_v14  ;;  %v3341_v60 = vsel %vm3339_vm13, %v3340_v37, %v3336_v5  ;;  %v3217_v9 = vsel %vm8774_vm14, 0, %v3215_v13  ;;  %v8816_v37 = vmul.f32 %v10829_v10, %v10841_v21  ;;  %v8819_v14 = vld [vmem:[%s6495_s28 + $0x10] sm:$0xff]  ;;  %v8859_v13 = vld [vmem:[%s6495_s28 + $0x8] sm:$0xff]  ;;  %v673_v21 = vld [vmem:[%s10632_s9 + $0x15b] sm:$0x1] }
 0x29a   : > { %v3218_v58 = vmul.f32 %v3216_v61, %v3216_v61  ;;  %v3342_v39 = vadd.s32 %v3341_v60, %v3337_v11  ;;  %v3234_v32 = vand.u32 3, %v3217_v9  ;;  %10842 = vst [vmem:[#allocation25_spill] sm:$0xff] %v8819_v14  ;;  %v8822_v11 = vmul.f32 %v8819_v14, %v4788_v16  ;;  %v10847_v60 = vld [vmem:[#allocation15_spill] sm:$0xff]  ;;  %v662_v9 = vld [vmem:[%s10632_s9 + $0x53] sm:$0x1] }
 0x29b   : > { %10845 = vst [vmem:[#allocation13_spill] sm:$0xff] %v8828_v34  ;;  %vm3233_vm0 = vweird.f32 %v10781_v46  ;;  %v659_v46 = vld [vmem:[%s10632_s9 + $0xb] sm:$0x1]  ;;  %v678_v4 = vpack.c.bf16 %v662_v9, %v662_v9  ;;  %vm10852_vm14 = vcmask 1045509  }
 0x29c   : > { %v3219_v12 = vmul.f32 -0.001358992, %v3218_v58  ;;  %v3226_v56 = vmul.f32 -0.00019511016, %v3218_v58  ;;  %v3343_v19 = vadd.s32 536870912, %v3342_v39  ;;  %vm3236_vm5 = vcmp.eq.s32.totalorder %v3234_v32, 0 }
 0x29d   : > { %vm3239_vm7 = vcmp.eq.s32.totalorder %v3234_v32, 2  ;;  %vm3235_vm4 = vcmp.lt.s32.totalorder %v3234_v32, 2  ;;  %10843 = vst [vmem:[#allocation20_spill] sm:$0xff] %v8822_v11  ;;  %v675_v32 = vpack.c.bf16 %v659_v46, %v659_v46  ;;  %v689_v46 = vpack.c.bf16 %v673_v21, %v673_v21 }
 0x29e   : > { %v3220_v49 = vadd.f32 0.041655596, %v3219_v12  ;;  %v3227_v1 = vadd.f32 0.008332121, %v3226_v56  ;;  %v3344_v26 = vshrl.u32 %v3343_v19, 30  ;;  %v3640_v56 = vpack.c.bf16 %v8806_v0, %v8816_v37  ;;  %v4242_v0 = vld [vmem:[%s10629_s6 + $0x128] sm:$0xff] }
 0x29f   : > { %v1030_v5 = vunpack.c.l.b16 %v689_v46  ;;  %v4241_v37 = vld [vmem:[%s10629_s6 + $0x120] sm:$0xff]  ;;  %4900 = vperm.xlu2 %6037, %v4242_v0   ;;  %v1677_v0 = vld [vmem:[%s10632_s9 + $0xcd] sm:$0x1] }
 0x2a0   : > { %v3221_v7 = vmul.f32 %v3220_v49, %v3218_v58  ;;  %v3228_v63 = vmul.f32 %v3227_v1, %v3218_v58  ;;  %v3345_v38 = vshll.u32 %v3344_v26, 30  ;;  %v3368_v20 = vsub.s32 4, %v3344_v26  ;;  %v4288_v49 = vld [vmem:[%s10630_s7 + $0x118] sm:$0xff]  ;;  %v4569_v1 = vpop.permute.xlu1 %4568  ;;  %4895 = vperm.xlu1 %6036, %v4241_v37  }
 0x2a1   : > { %4690 = vperm.xlu0 %6035, %v4288_v49   ;;  %v686_v49 = vpack.c.bf16 %v670_v45, %v670_v45 }
 0x2a2   : > { %v3222_v48 = vadd.f32 -0.4999988, %v3221_v7  ;;  %v3229_v24 = vadd.f32 -0.16666654, %v3228_v63  ;;  %v3346_v28 = vsub.s32 %v3342_v39, %v3345_v38  ;;  %v3369_v43 = vsel %vm3246_vm2, %v3368_v20, %v3344_v26  ;;  %v660_v26 = vld [vmem:[%s10632_s9 + $0x23] sm:$0x1] }
 0x2a3   : > { %v3371_v52 = vsel %vm8800_vm15, 0, %v3369_v43  ;;  %v668_v43 = vld [vmem:[%s10632_s9 + $0xe3] sm:$0x1] }
 0x2a4   : > { %v3223_v41 = vmul.f32 %v3222_v48, %v3218_v58  ;;  %v3230_v23 = vmul.f32 %v3229_v24, %v3218_v58  ;;  %vm3347_vm6 = vcmp.lt.s32.totalorder %v3346_v28, 0  ;;  %v3348_v59 = vsub.s32 0, %v3346_v28  ;;  %v8865_v24 = vld [vmem:[%s6501_s21 + $0x8] sm:$0xff] }
 0x2a5   : > { %v8836_v58 = vmul.f32 %v10829_v10, %v10847_v60  ;;  %v8839_v12 = vand.u32 3, %v3371_v52  ;;  %v684_v60 = vpack.c.bf16 %v668_v43, %v668_v43  ;;  %v1027_v43 = vunpack.c.l.b16 %v686_v49 }
 0x2a6   : > { %v3231_v8 = vadd.f32 1.0, %v3230_v23  ;;  %v3349_v44 = vsel %vm3347_vm6, %v3348_v59, %v3346_v28  ;;  %v3224_v57 = vadd.f32 1.0, %v3223_v41  ;;  %v8871_v41 = vld [vmem:[%s6495_s28 + $0x18] sm:$0xff]  ;;  %vm10853_vm6 = vcmask 1046534  }
 0x2a7   : > { %v3350_v42 = vclz %v3349_v44  ;;  %v3985_v63 = vpack.c.bf16 %v8796_v33, %v8836_v58  ;;  %v4572_v23 = vmul.f32 %v8871_v41, %v4569_v1  ;;  %v661_v59 = vld [vmem:[%s10632_s9 + $0x3b] sm:$0x1]  ;;  %vm3393_vm12 = vcmp.eq.s32.totalorder %v8839_v12, 2  ;;  %v4250_v33 = vld [vmem:[%s10629_s6 + $0x168] sm:$0xff] }
 0x2a8   : > { %v3232_v6 = vmul.f32 %v3231_v8, %v3216_v61  ;;  %v3240_v50 = vxor.u32 2147483648, %v3224_v57  ;;  %v10846_v61 = vld [vmem:[#allocation14_spill] sm:$0xff]  ;;  %v8881_v8 = vld [vmem:[%s6501_s21 + $0x18] sm:$0xff]  ;;  %v677_v20 = vpack.c.bf16 %v661_v59, %v661_v59  ;;  %vm3390_vm13 = vcmp.eq.s32.totalorder %v8839_v12, 0 }
 0x2a9   : > { %v5951_v18 = vadd.s32 4294967294, %v3350_v42  ;;  %v8832_v54 = vmul.f32 %v10829_v10, %v10846_v61  ;;  %v4981_v10 = vpop.permute.xlu2 %4980  ;;  %v4590_v44 = vmul.f32 %v8881_v8, %v4569_v1  ;;  %v663_v42 = vld [vmem:[%s10632_s9 + $0x6b] sm:$0x1]  ;;  %vm3389_vm3 = vcmp.lt.s32.totalorder %v8839_v12, 2 }
 0x2aa   : > { %v3237_v27 = vxor.u32 2147483648, %v3232_v6  ;;  %v3241_v25 = vsel %vm3239_vm7, %v3240_v50, %v3232_v6  ;;  %v8862_v48 = vmul.f32 %v8859_v13, %v4981_v10  ;;  %v665_v6 = vld [vmem:[%s10632_s9 + $0x9b] sm:$0x1]  ;;  %v10849_v50 = vld [vmem:[#allocation35_spill] sm:$0xff]  ;;  %vm10856_vm7 = vmmov %vm10853_vm6 }
 0x2ab   : > { %vm5952_vm1 = vcmp.lt.s32.totalorder %v5951_v18, 0  ;;  %v3870_v7 = vpack.c.bf16 %v8812_v51, %v8832_v54  ;;  %v681_v36 = vpack.c.bf16 %v665_v6, %v665_v6  ;;  %v4290_v51 = vld [vmem:[%s10630_s7 + $0x128] sm:$0xff]  ;;  %v4289_v54 = vld [vmem:[%s10630_s7 + $0x120] sm:$0xff] }
 0x2ac   : > { %v3353_v2 = vsel %vm5952_vm1, 0, %v5951_v18  ;;  %v3238_v17 = vsel %vm3236_vm5, %v3224_v57, %v3237_v27  ;;  %v664_v57 = vld [vmem:[%s10632_s9 + $0x83] sm:$0x1]  ;;  %v676_v18 = vpack.c.bf16 %v660_v26, %v660_v26  ;;  %v10848_v27 = vld [vmem:[#allocation41_spill] sm:$0xff]  ;;  %vm3387_vm1 = vweird.f32 %v10827_v30 }
 0x2ad   : > { %v3354_v53 = vsub.s32 32, %v3353_v2  ;;  %v3358_v22 = vsub.s32 4294967266, %v3353_v2  ;;  %v3355_v62 = vshll.u32 %v3346_v28, %v3353_v2  ;;  %v3242_v15 = vsel %vm3235_vm4, %v3238_v17, %v3241_v25  ;;  %v671_v25 = vld [vmem:[%s10632_s9 + $0x12b] sm:$0x1] }
 0x2ae   : > { %v8843_v19 = vsel %vm3233_vm0, nan, %v3242_v15  ;;  %v8868_v28 = vmul.f32 %v8865_v24, %v4981_v10  ;;  %v10850_v2 = vsub.f32 %v10848_v27, %v10849_v50  ;;  %v679_v17 = vpack.c.bf16 %v663_v42, %v663_v42 }
 0x2af   : > { %v3356_v31 = vshrl.u32 %v3338_v35, %v3354_v53  ;;  %v3359_v3 = vadd.s32 127, %v3358_v22  ;;  %v666_v53 = vld [vmem:[%s10632_s9 + $0xb3] sm:$0x1]  ;;  %v667_v22 = vld [vmem:[%s10632_s9 + $0xcb] sm:$0x1]  ;;  %v680_v52 = vpack.c.bf16 %v664_v57, %v664_v57  ;;  %v687_v10 = vpack.c.bf16 %v671_v25, %v671_v25 }
 0x2b0   : > { %v8896_v35 = vadd.f32 %v4572_v23, %v10850_v2  ;;  %v682_v15 = vpack.c.bf16 %v666_v53, %v666_v53  ;;  %v683_v61 = vpack.c.bf16 %v667_v22, %v667_v22  ;;  %v1016_v23 = vunpack.c.l.b16 %v675_v32 }
 0x2b1   : > { %v3357_v55 = vor.u32 %v3356_v31, %v3355_v62  ;;  %v3360_v47 = vshll.u32 %v3359_v3, 23  ;;  %v10851_v62 = vld [vmem:[#allocation42_spill] sm:$0xff]  ;;  %v669_v3 = vld [vmem:[%s10632_s9 + $0xfb] sm:$0x1]  ;;  %v1017_v59 = vunpack.c.l.b16 %v676_v18  ;;  %v1019_v42 = vunpack.c.l.b16 %v678_v4  ;;  %v9034_v12 = vpop.permute.xlu2 %4599 }
 0x2b2   : > { %v8908_v31 = vadd.f32 %v4590_v44, %v10851_v62  ;;  %v1018_v44 = vunpack.c.l.b16 %v677_v20  ;;  %v1020_v57 = vunpack.c.l.b16 %v679_v17  ;;  %v1021_v27 = vunpack.c.l.b16 %v680_v52 }
 0x2b3   : > { %v3361_v39 = vor.u32 4788187, %v3360_v47  ;;  %v3364_v40 = vcvt.s32.f32 %v3357_v55  ;;  %v672_v47 = vld [vmem:[%s10632_s9 + $0x143] sm:$0x1]  ;;  %v1022_v50 = vunpack.c.l.b16 %v681_v36  ;;  %v1023_v2 = vunpack.c.l.b16 %v682_v15 }
 0x2b4   : > { %v688_v1 = vpack.c.bf16 %v672_v47, %v672_v47  ;;  %v1024_v53 = vunpack.c.l.b16 %v683_v61  ;;  %v1025_v22 = vunpack.c.l.b16 %v684_v60  ;;  %v1028_v62 = vunpack.c.l.b16 %v687_v10 }
 0x2b5   : > { %v3362_v38 = vand.u32 2147483647, %v3361_v39  ;;  %v685_v39 = vpack.c.bf16 %v669_v3, %v669_v3  ;;  %v1032_v20 = vrot.slane %v1017_v59, 7  ;;  %v1035_v4 = vrot.slane %v1018_v44, 6  ;;  %v1206_v44 = vld [vmem:[%s10632_s9 + $0xc] sm:$0x1] }
 0x2b6   : > { %v1029_v3 = vunpack.c.l.b16 %v688_v1  ;;  %v1041_v47 = vrot.slane %v1020_v57, 4  ;;  %v1044_v36 = vrot.slane %v1021_v27, 3  ;;  %v1047_v15 = vrot.slane %v1022_v50, 2 }
 0x2b7   : > { %v3365_v16 = vmul.f32 %v3364_v40, %v3362_v38  ;;  %v674_v40 = vld [vmem:[%s10632_s9 + $0x173] sm:$0x1]  ;;  %v1034_v52 = vsel %vm1033_vm8, %v1032_v20, %v1016_v23  ;;  %v1050_v21 = vrot.slane %v1023_v2, 1  ;;  %v1057_v1 = vrot.slane %v1027_v43, 5  ;;  %v1207_v2 = vld [vmem:[%s10632_s9 + $0x24] sm:$0x1] }
 0x2b8   : > { %v690_v38 = vpack.c.bf16 %v674_v40, %v674_v40  ;;  %v1053_v40 = vrot.slane %v1025_v22, 7  ;;  %v1059_v46 = vrot.slane %v1028_v62, 4  ;;  %v1061_v27 = vrot.slane %v1029_v3, 3  ;;  %v1210_v62 = vld [vmem:[%s10632_s9 + $0x6c] sm:$0x1] }
 0x2b9   : > { %v3366_v55 = vxor.u32 2147483648, %v3365_v16  ;;  %v1063_v50 = vrot.slane %v1030_v5, 2  ;;  %v1211_v3 = vld [vmem:[%s10632_s9 + $0x84] sm:$0x1]  ;;  %vm10854_vm5 = vcmask 1047559   ;;  %vm10858_vm4 = vcmask 130048  }
 0x2ba   : > { %v8937_v45 = vunpack.c.l.b16 %v690_v38  ;;  %v1054_v23 = vsel %vm1033_vm8, %v1053_v40, %v1024_v53  ;;  %v1208_v53 = vld [vmem:[%s10632_s9 + $0x3c] sm:$0x1] }
 0x2bb   : > { %v3367_v26 = vsel %vm3246_vm2, %v3366_v55, %v3365_v16  ;;  %v1026_v16 = vunpack.c.l.b16 %v685_v39  ;;  %v1038_v55 = vrot.slane %v1019_v42, 5  ;;  %v1037_v39 = vsel %vm1036_vm9, %v1035_v4, %v1034_v52  ;;  %v1212_v4 = vld [vmem:[%s10632_s9 + $0x9c] sm:$0x1]  ;;  %vm10855_vm2 = vmmov %vm10852_vm14 }
 0x2bc   : > { %v8933_v9 = vsel %vm8800_vm15, %v10827_v30, %v3367_v26  ;;  %v1065_v20 = vrot.slane %v8937_v45, 1  ;;  %v1215_v45 = vld [vmem:[%s10632_s9 + $0xe4] sm:$0x1]  ;;  %v1224_v40 = vpack.c.bf16 %v1208_v53, %v1208_v53  ;;  %vm10857_vm15 = vmmov %vm10854_vm5  ;;  %v4283_v30 = vld [vmem:[%s10630_s7 + $0xf0] sm:$0xff] }
 0x2bd   : > { %v3372_v6 = vmul.f32 %v8933_v9, %v8933_v9  ;;  %v1040_v49 = vsel %vm1039_vm10, %v1038_v55, %v1037_v39  ;;  %v1055_v10 = vrot.slane %v1026_v16, 6  ;;  %v1218_v39 = vld [vmem:[%s10632_s9 + $0x12c] sm:$0x1]  ;;  %v1231_v53 = vpack.c.bf16 %v1215_v45, %v1215_v45  ;;  %5097 = vperm.xlu0 %6035, %v4283_v30   ;;  %vm10859_vm0 = vmmov %vm10855_vm2 }
 0x2be   : > { %v1043_v59 = vsel %vm1042_vm11, %v1041_v47, %v1040_v49 }
 0x2bf   : > { %v3373_v32 = vmul.f32 -0.001358992, %v3372_v6  ;;  %v3380_v18 = vmul.f32 -0.00019511016, %v3372_v6  ;;  %v1046_v42 = vsel %vm10852_vm14, %v1044_v36, %v1043_v59  ;;  %v1056_v57 = vsel %vm1036_vm9, %v1055_v10, %v1054_v23  ;;  %v1214_v36 = vld [vmem:[%s10632_s9 + $0xcc] sm:$0x1]  ;;  %vm10862_vm14 = vmmov %vm10859_vm0 }
 0x2c0   : > { %v1049_v43 = vsel %vm10853_vm6, %v1047_v15, %v1046_v42  ;;  %v1223_v15 = vpack.c.bf16 %v1207_v2, %v1207_v2  ;;  %v1226_v10 = vpack.c.bf16 %v1210_v62, %v1210_v62  ;;  %v1220_v59 = vld [vmem:[%s10632_s9 + $0x15c] sm:$0x1]  ;;  %v1227_v23 = vpack.c.bf16 %v1211_v3, %v1211_v3  ;;  %v1221_v42 = vld [vmem:[%s10632_s9 + $0x174] sm:$0x1] }
 0x2c1   : > { %v3374_v17 = vadd.f32 0.041655596, %v3373_v32  ;;  %v3381_v25 = vadd.f32 0.008332121, %v3380_v18  ;;  %v1058_v32 = vsel %vm1039_vm10, %v1057_v1, %v1056_v57  ;;  %v1209_v18 = vld [vmem:[%s10632_s9 + $0x54] sm:$0x1]  ;;  %v1228_v57 = vpack.c.bf16 %v1212_v4, %v1212_v4 }
 0x2c2   : > { %v1060_v5 = vsel %vm1042_vm11, %v1059_v46, %v1058_v32  ;;  %v1225_v49 = vpack.c.bf16 %v1209_v18, %v1209_v18  ;;  %v1236_v18 = vpack.c.bf16 %v1220_v59, %v1220_v59  ;;  %v1237_v3 = vpack.c.bf16 %v1221_v42, %v1221_v42  ;;  %v9051_v59 = vld [vmem:[%s10632_s9 + $0x25] sm:$0x1] }
 0x2c3   : > { %v3375_v61 = vmul.f32 %v3374_v17, %v3372_v6  ;;  %v3382_v60 = vmul.f32 %v3381_v25, %v3372_v6  ;;  %v1213_v17 = vld [vmem:[%s10632_s9 + $0xb4] sm:$0x1]  ;;  %v1222_v25 = vpack.c.bf16 %v1206_v44, %v1206_v44  ;;  %v1062_v52 = vsel %vm10855_vm2, %v1061_v27, %v1060_v5 }
 0x2c4   : > { %v1229_v27 = vpack.c.bf16 %v1213_v17, %v1213_v17  ;;  %v1564_v5 = vunpack.c.l.b16 %v1223_v15  ;;  %v1565_v4 = vunpack.c.l.b16 %v1224_v40  ;;  %v1566_v17 = vunpack.c.l.b16 %v1225_v49 }
 0x2c5   : > { %v3376_v26 = vadd.f32 -0.4999988, %v3375_v61  ;;  %v3383_v38 = vadd.f32 -0.16666654, %v3382_v60  ;;  %v1216_v61 = vld [vmem:[%s10632_s9 + $0xfc] sm:$0x1]  ;;  %v9019_v45 = vunpack.c.l.b16 %v1228_v57  ;;  %v1686_v37 = vpack.c.bf16 %v9051_v59, %v9051_v59 }
 0x2c6   : > { %v1217_v60 = vld [vmem:[%s10632_s9 + $0x114] sm:$0x1] }
 0x2c7   : > { %v3377_v22 = vmul.f32 %v3376_v26, %v3372_v6  ;;  %v3384_v16 = vmul.f32 %v3383_v38, %v3372_v6  ;;  %v1052_v6 = vsel %vm10854_vm5, %v1050_v21, %v1049_v43  ;;  %v1064_v21 = vsel %vm10856_vm7, %v1063_v50, %v1062_v52  ;;  %v1219_v38 = vld [vmem:[%s10632_s9 + $0x144] sm:$0x1] }
 0x2c8   : > { %v1066_v26 = vsel %vm10857_vm15, %v1065_v20, %v1064_v21  ;;  %v1234_v43 = vpack.c.bf16 %v1218_v39, %v1218_v39  ;;  %v1235_v32 = vpack.c.bf16 %v1219_v38, %v1219_v38  ;;  %v1572_v21 = vunpack.c.l.b16 %v1231_v53  ;;  %vm10871_vm15 = vmmov %vm10859_vm0 }
 0x2c9   : > { %v3378_v55 = vadd.f32 1.0, %v3377_v22  ;;  %v3385_v47 = vadd.f32 1.0, %v3384_v16  ;;  %v1067_v44 = vpack.c.b16 %v1066_v26, %v1052_v6  ;;  %v1232_v22 = vpack.c.bf16 %v1216_v61, %v1216_v61 }
 0x2ca   : > { %v1233_v16 = vpack.c.bf16 %v1217_v60, %v1217_v60  ;;  %v1563_v6 = vunpack.c.l.b16 %v1222_v25  ;;  %v9023_v25 = vpop.permute.xlu0 %4756  ;;  %v9037_v60 = vpop.permute.xlu1 %4765  ;;  %v1575_v40 = vunpack.c.l.b16 %v1234_v43  ;;  %v1576_v49 = vunpack.c.l.b16 %v1235_v32 }
 0x2cb   : > { %v3386_v1 = vmul.f32 %v3385_v47, %v8933_v9  ;;  %v3394_v46 = vxor.u32 2147483648, %v3378_v55  ;;  %v1230_v9 = vpack.c.bf16 %v1214_v36, %v1214_v36  ;;  %5897 = vmatmul.msk.bf16.vlgmr.msra.gmra.mxu1 %vm10858_vm4, %v1067_v44  ;;  %v1567_v47 = vunpack.c.l.b16 %v1226_v10 }
 0x2cc   : > { %3712 = vmatpush.bf16.msra.mxu1 %v3640_v56  ;;  %v1568_v36 = vunpack.c.l.b16 %v1227_v23  ;;  %v1573_v61 = vunpack.c.l.b16 %v1232_v22  ;;  %v1574_v39 = vunpack.c.l.b16 %v1233_v16  ;;  %v9039_v10 = vunpack.c.l.b16 %v1236_v18  ;;  %v1672_v22 = vld [vmem:[%s10632_s9 + $0x55] sm:$0x1] }
 0x2cd   : > { %v3391_v50 = vxor.u32 2147483648, %v3386_v1  ;;  %v3395_v2 = vsel %vm3393_vm12, %v3394_v46, %v3386_v1  ;;  %v1571_v15 = vunpack.c.l.b16 %v1230_v9  ;;  %v9044_v1 = vld [vmem:[%s10632_s9 + $0xd] sm:$0x1]  ;;  %v1579_v46 = vrot.slane %v1564_v5, 7  ;;  %vm10860_vm12 = vmmov %vm10853_vm6 }
 0x2ce   : > { %v1581_v26 = vrot.slane %v1565_v4, 6  ;;  %v1583_v38 = vrot.slane %v1566_v17, 5  ;;  %v1585_v23 = vrot.slane %v1567_v47, 4  ;;  %v1587_v44 = vrot.slane %v1568_v36, 3  ;;  %v1674_v4 = vld [vmem:[%s10632_s9 + $0x85] sm:$0x1] }
 0x2cf   : > { %v3392_v62 = vsel %vm3390_vm13, %v3378_v55, %v3391_v50  ;;  %v9021_v55 = vunpack.c.l.b16 %v1229_v27  ;;  %v1589_v42 = vrot.slane %v9019_v45, 2  ;;  %v9058_v27 = vld [vmem:[%s10632_s9 + $0x3d] sm:$0x1]  ;;  %v1580_v9 = vsel %vm1033_vm8, %v1579_v46, %v1563_v6  ;;  %v1681_v46 = vld [vmem:[%s10632_s9 + $0x12d] sm:$0x1]  ;;  %vm10861_vm13 = vmmov %vm10854_vm5 }
 0x2d0   : > { %v3396_v20 = vsel %vm3389_vm3, %v3392_v62, %v3395_v2  ;;  %v1593_v50 = vrot.slane %v1572_v21, 7  ;;  %v1595_v2 = vrot.slane %v1573_v61, 6  ;;  %v1597_v53 = vrot.slane %v1574_v39, 5  ;;  %v1673_v62 = vld [vmem:[%s10632_s9 + $0x6d] sm:$0x1]  ;;  %vm10863_vm3 = vmmov %vm10853_vm6 }
 0x2d1   : > { %v3397_v52 = vsel %vm3387_vm1, nan, %v3396_v20  ;;  %v1591_v57 = vrot.slane %v9021_v55, 1  ;;  %v1582_v16 = vsel %vm1036_vm9, %v1581_v26, %v1580_v9  ;;  %v1599_v43 = vrot.slane %v1575_v40, 4  ;;  %v1675_v17 = vld [vmem:[%s10632_s9 + $0x9d] sm:$0x1]  ;;  %vm10864_vm6 = vmmov %vm10854_vm5 }
 0x2d2   : > { %v3398_v56 = vpack.c.bf16 %v3397_v52, %v8843_v19  ;;  %v9046_v19 = vunpack.c.l.b16 %v1237_v3  ;;  %v1601_v32 = vrot.slane %v1576_v49, 3  ;;  %v1603_v18 = vrot.slane %v9039_v10, 2  ;;  %v4247_v3 = vld [vmem:[%s10629_s6 + $0x150] sm:$0xff]  ;;  %v4284_v52 = vld [vmem:[%s10630_s7 + $0xf8] sm:$0xff]  ;;  %v1678_v61 = vld [vmem:[%s10632_s9 + $0xe5] sm:$0x1] }
 0x2d3   : > { %v1584_v6 = vsel %vm1039_vm10, %v1583_v38, %v1582_v16  ;;  %v1594_v5 = vsel %vm1033_vm8, %v1593_v50, %v1571_v15  ;;  %v1685_v47 = vpack.c.bf16 %v9044_v1, %v9044_v1  ;;  %v1676_v55 = vld [vmem:[%s10632_s9 + $0xb5] sm:$0x1]  ;;  %v1687_v30 = vpack.c.bf16 %v9058_v27, %v9058_v27  ;;  %v1679_v39 = vld [vmem:[%s10632_s9 + $0xfd] sm:$0x1]  ;;  %4707 = vperm.xlu2 %6037, %v4247_v3   ;;  %v1682_v26 = vld [vmem:[%s10632_s9 + $0x145] sm:$0x1] }
 0x2d4   : > { %3470 = vmatpush.bf16.msrb.mxu3 %v3398_v56  ;;  %v1605_v20 = vrot.slane %v9046_v19, 1  ;;  %v1586_v36 = vsel %vm1042_vm11, %v1585_v23, %v1584_v6  ;;  %v1596_v45 = vsel %vm1036_vm9, %v1595_v2, %v1594_v5  ;;  %v4248_v56 = vld [vmem:[%s10629_s6 + $0x158] sm:$0xff]  ;;  %v1680_v40 = vld [vmem:[%s10632_s9 + $0x115] sm:$0x1]  ;;  %v1688_v49 = vpack.c.bf16 %v1672_v22, %v1672_v22  ;;  %5102 = vperm.xlu1 %6036, %v4284_v52   ;;  %v9132_v22 = vpop.permute.xlu1 %4582  ;;  %vm10865_vm1 = vmmov %vm10858_vm4 }
 0x2d5   : > { %v1588_v15 = vsel %vm10859_vm0, %v1587_v44, %v1586_v36  ;;  %v1598_v21 = vsel %vm1039_vm10, %v1597_v53, %v1596_v45  ;;  %v1689_v10 = vpack.c.bf16 %v1673_v62, %v1673_v62  ;;  %v1683_v38 = vld [vmem:[%s10632_s9 + $0x15d] sm:$0x1]  ;;  %v1690_v59 = vpack.c.bf16 %v1674_v4, %v1674_v4  ;;  %v9123_v44 = vpop.permute.xlu0 %4577  ;;  %v1684_v50 = vld [vmem:[%s10632_s9 + $0x175] sm:$0x1]  ;;  %4712 = vperm.xlu0 %6035, %v4248_v56   ;;  %vm10866_vm5 = vmmov %vm10859_vm0 }
 0x2d6   : > { %v1590_v1 = vsel %vm10860_vm12, %v1589_v42, %v1588_v15  ;;  %v1600_v19 = vsel %vm1042_vm11, %v1599_v43, %v1598_v21  ;;  %v1691_v23 = vpack.c.bf16 %v1675_v17, %v1675_v17  ;;  %v9125_v42 = vpop.permute.xlu2 %4806  ;;  %v1692_v2 = vpack.c.bf16 %v1676_v55, %v1676_v55  ;;  %vm10867_vm2 = vmmov %vm10863_vm3 }
 0x2d7   : > { %v1592_v27 = vsel %vm10861_vm13, %v1591_v57, %v1590_v1  ;;  %v1602_v9 = vsel %vm10862_vm14, %v1601_v32, %v1600_v19  ;;  %v1693_v53 = vpack.c.bf16 %v1677_v0, %v1677_v0  ;;  %v1694_v43 = vpack.c.bf16 %v1678_v61, %v1678_v61  ;;  %vm10870_vm7 = vmmov %vm10864_vm6 }
 0x2d8   : > { %v1604_v16 = vsel %vm10863_vm3, %v1603_v18, %v1602_v9  ;;  %v1695_v62 = vpack.c.bf16 %v1679_v39, %v1679_v39  ;;  %v1696_v3 = vpack.c.bf16 %v1680_v40, %v1680_v40  ;;  %v1697_v5 = vpack.c.bf16 %v1681_v46, %v1681_v46  ;;  %vm10873_vm4 = vmmov %vm10867_vm2 }
 0x2d9   : > { %v1606_v6 = vsel %vm10864_vm6, %v1605_v20, %v1604_v16  ;;  %v1698_v57 = vpack.c.bf16 %v1682_v26, %v1682_v26  ;;  %v1699_v4 = vpack.c.bf16 %v1683_v38, %v1683_v38  ;;  %v1700_v17 = vpack.c.bf16 %v1684_v50, %v1684_v50  ;;  %vm10874_vm0 = vmmov %vm10864_vm6 }
 0x2da   : > { %v1607_v32 = vpack.c.b16 %v1606_v6, %v1592_v27  ;;  %v2026_v52 = vunpack.c.l.b16 %v1685_v47  ;;  %v2027_v36 = vunpack.c.l.b16 %v1686_v37  ;;  %v2028_v45 = vunpack.c.l.b16 %v1687_v30  ;;  %vm10880_vm12 = vmmov %vm10865_vm1 }
 0x2db   : > { %v2029_v55 = vunpack.c.l.b16 %v1688_v49  ;;  %v2030_v0 = vunpack.c.l.b16 %v1689_v10  ;;  %v2031_v56 = vunpack.c.l.b16 %v1690_v59  ;;  %v2032_v15 = vunpack.c.l.b16 %v1691_v23  ;;  %4914 = vperm.xlu2 %6037, %v4290_v51   ;;  %v4244_v51 = vld [vmem:[%s10629_s6 + $0x138] sm:$0xff]  ;;  %vm10882_vm13 = vmmov %vm10866_vm5 }
 0x2dc   : > { %5909 = vmatmul.msk.bf16.vlgmr.msra.gmra.mxu3 %vm10865_vm1, %v1607_v32  ;;  %v2033_v18 = vunpack.c.l.b16 %v1692_v2  ;;  %v2034_v21 = vunpack.c.l.b16 %v1693_v53  ;;  %v2035_v61 = vunpack.c.l.b16 %v1694_v43  ;;  %v2036_v39 = vunpack.c.l.b16 %v1695_v62  ;;  %4909 = vperm.xlu1 %6036, %v4289_v54   ;;  %v9155_v62 = vpop.permute.xlu1 %4975  ;;  %vm10884_vm14 = vmmov %vm10867_vm2 }
 0x2dd   : > { %v2037_v40 = vunpack.c.l.b16 %v1696_v3  ;;  %v2038_v20 = vunpack.c.l.b16 %v1697_v5  ;;  %v2039_v1 = vunpack.c.l.b16 %v1698_v57  ;;  %3942 = vmatpush.bf16.msra.mxu3 %v3870_v7  ;;  %v2040_v47 = vunpack.c.l.b16 %v1699_v4  ;;  %v9141_v9 = vpop.permute.xlu0 %4792  ;;  %v4243_v7 = vld [vmem:[%s10629_s6 + $0x130] sm:$0xff]  ;;  %vm10886_vm3 = vmmov %vm10874_vm0 }
 0x2de   : > { %v2041_v37 = vunpack.c.l.b16 %v1700_v17  ;;  %v2042_v30 = vrot.slane %v2027_v36, 7  ;;  %v2044_v49 = vrot.slane %v2028_v45, 6  ;;  %v2046_v10 = vrot.slane %v2029_v55, 5  ;;  %v9152_v50 = vpop.permute.xlu2 %4613  ;;  %5119 = vperm.xlu0 %6035, %v4243_v7   ;;  %v9170_v55 = vld [vmem:[%s6495_s28 + $0x20] sm:$0xff]  ;;  %vm10887_vm6 = vmmov %vm10866_vm5 }
 0x2df   : > { %v2048_v19 = vrot.slane %v2030_v0, 4  ;;  %v2050_v46 = vrot.slane %v2031_v56, 3  ;;  %v2052_v26 = vrot.slane %v2032_v15, 2  ;;  %v2054_v59 = vrot.slane %v2033_v18, 1  ;;  %v9177_v56 = vld [vmem:[%s6501_s21 + $0x20] sm:$0xff]  ;;  %vm10888_vm1 = vmmov %vm10867_vm2 }
 0x2e0   : > { %v2043_v38 = vsel %vm1033_vm8, %v2042_v30, %v2026_v52  ;;  %v2056_v23 = vrot.slane %v2035_v61, 7  ;;  %v2058_v27 = vrot.slane %v2036_v39, 6  ;;  %v2060_v53 = vrot.slane %v2037_v40, 5  ;;  %v10869_v39 = vld [vmem:[#allocation40_spill] sm:$0xff]  ;;  %v9205_v30 = vld [vmem:[%s6495_s28] sm:$0xff] }
 0x2e1   : > { %v2045_v2 = vsel %vm1036_vm9, %v2044_v49, %v2043_v38  ;;  %v2062_v16 = vrot.slane %v2038_v20, 4  ;;  %v2064_v43 = vrot.slane %v2039_v1, 3  ;;  %v2066_v5 = vrot.slane %v2040_v47, 2  ;;  %v9193_v20 = vld [vmem:[%s10632_s9 + $0xe] sm:$0x1]  ;;  %v9198_v47 = vld [vmem:[%s6501_s21] sm:$0xff] }
 0x2e2   : > { %v2047_v3 = vsel %vm1039_vm10, %v2046_v10, %v2045_v2  ;;  %v2057_v6 = vsel %vm1033_vm8, %v2056_v23, %v2034_v21  ;;  %v2068_v57 = vrot.slane %v2041_v37, 1  ;;  %v9163_v17 = vmul.f32 %v8859_v13, %v9023_v25  ;;  %v10868_v21 = vld [vmem:[#allocation39_spill] sm:$0xff]  ;;  %v2133_v10 = vld [vmem:[%s10632_s9 + $0x26] sm:$0x1]  ;;  %v2135_v23 = vld [vmem:[%s10632_s9 + $0x56] sm:$0x1] }
 0x2e3   : > { %v2049_v4 = vsel %vm1042_vm11, %v2048_v19, %v2047_v3  ;;  %v2059_v32 = vsel %vm1036_vm9, %v2058_v27, %v2057_v6  ;;  %v4778_v52 = vmul.f32 %v8865_v24, %v9023_v25  ;;  %v9174_v0 = vmul.f32 %v9170_v55, %v9034_v12  ;;  %v2134_v19 = vld [vmem:[%s10632_s9 + $0x3e] sm:$0x1]  ;;  %v2136_v27 = vld [vmem:[%s10632_s9 + $0x6e] sm:$0x1]  ;;  %v2139_v6 = vld [vmem:[%s10632_s9 + $0xb6] sm:$0x1] }
 0x2e4   : > { %v2051_v36 = vsel %vm10866_vm5, %v2050_v46, %v2049_v4  ;;  %v2061_v45 = vsel %vm1039_vm10, %v2060_v53, %v2059_v32  ;;  %v9181_v15 = vmul.f32 %v9177_v56, %v9034_v12  ;;  %v9202_v37 = vmul.f32 %v9198_v47, %v9037_v60  ;;  %v4295_v46 = vld [vmem:[%s10630_s7 + $0x150] sm:$0xff]  ;;  %v10876_v2 = vld [vmem:[#allocation37_spill] sm:$0xff]  ;;  %5124 = vperm.xlu1 %6036, %v4244_v51   ;;  %vm10889_vm5 = vmmov %vm10874_vm0 }
 0x2e5   : > { %v2053_v18 = vsel %vm10867_vm2, %v2052_v26, %v2051_v36  ;;  %v2063_v25 = vsel %vm1042_vm11, %v2062_v16, %v2061_v45  ;;  %v9188_v40 = vadd.f32 %v10869_v39, %v4778_v52  ;;  %v4781_v49 = vmul.f32 %v9205_v30, %v9037_v60  ;;  %v2138_v3 = vld [vmem:[%s10632_s9 + $0x9e] sm:$0x1]  ;;  %4721 = vperm.xlu2 %6037, %v4295_v46   ;;  %vm10890_vm2 = vmmov %vm10880_vm12 }
 0x2e6   : > { %v2055_v1 = vsel %vm10870_vm7, %v2054_v59, %v2053_v18  ;;  %v2065_v12 = vsel %vm10871_vm15, %v2064_v43, %v2063_v25  ;;  %10872 = vst [vmem:[#allocation8_spill] sm:$0xff] %v9202_v37  ;;  %v9221_v38 = vmul.f32 %v8825_v29, %v9123_v44  ;;  %v4593_v60 = vmul.f32 %v8819_v14, %v9123_v44  ;;  %v10875_v44 = vld [vmem:[#allocation36_spill] sm:$0xff]  ;;  %v2137_v43 = vld [vmem:[%s10632_s9 + $0x86] sm:$0x1]  ;;  %v10879_v52 = vld [vmem:[#allocation45_spill] sm:$0xff] }
 0x2e7   : > { %v2067_v26 = vsel %vm10873_vm4, %v2066_v5, %v2065_v12  ;;  %v9227_v59 = vmul.f32 %v8881_v8, %v9125_v42  ;;  %v9242_v53 = vadd.f32 %v4781_v49, %v10876_v2  ;;  %v9246_v16 = vmul.f32 %v8871_v41, %v9125_v42  ;;  %v9257_v5 = vpop.permute.xlu0 %4989  ;;  %v10878_v42 = vld [vmem:[#allocation44_spill] sm:$0xff]  ;;  %v2140_v18 = vld [vmem:[%s10632_s9 + $0xce] sm:$0x1]  ;;  %v2141_v25 = vld [vmem:[%s10632_s9 + $0xe6] sm:$0x1] }
 0x2e8   : > { %v2069_v54 = vsel %vm10874_vm0, %v2068_v57, %v2067_v26  ;;  %v9259_v57 = vpop.permute.xlu2 %4828  ;;  %v9264_v36 = vadd.f32 %v4593_v60, %v10879_v52  ;;  %v9268_v45 = vmul.f32 %v8881_v8, %v9132_v22  ;;  %v2142_v39 = vld [vmem:[%s10632_s9 + $0xfe] sm:$0x1]  ;;  %v4594_v12 = vmul.f32 %v8871_v41, %v9132_v22  ;;  %v2143_v49 = vld [vmem:[%s10632_s9 + $0x116] sm:$0x1]  ;;  %v2144_v26 = vld [vmem:[%s10632_s9 + $0x12e] sm:$0x1] }
 0x2e9   : > { %10877 = vst [vmem:[#allocation26_spill] sm:$0xff] %v9242_v53  ;;  %v2070_v4 = vpack.c.b16 %v2069_v54, %v2055_v1  ;;  %v9279_v1 = vpop.permute.xlu1 %4994  ;;  %v2148_v60 = vpack.c.bf16 %v9193_v20, %v9193_v20  ;;  %v2149_v54 = vpack.c.bf16 %v2133_v10, %v2133_v10  ;;  %v2150_v2 = vpack.c.bf16 %v2134_v19, %v2134_v19  ;;  %v4296_v46 = vld [vmem:[%s10630_s7 + $0x158] sm:$0xff]  ;;  %v2145_v52 = vld [vmem:[%s10632_s9 + $0x146] sm:$0x1]  ;;  %v2147_v10 = vld [vmem:[%s10632_s9 + $0x176] sm:$0x1] }
 0x2ea   : > { %v2146_v20 = vld [vmem:[%s10632_s9 + $0x15e] sm:$0x1]  ;;  %v2151_v19 = vpack.c.bf16 %v2135_v23, %v2135_v23  ;;  %v2152_v51 = vpack.c.bf16 %v2136_v27, %v2136_v27  ;;  %v2153_v7 = vpack.c.bf16 %v2137_v43, %v2137_v43  ;;  %v2154_v22 = vpack.c.bf16 %v2138_v3, %v2138_v3  ;;  %4726 = vperm.xlu0 %6035, %v4296_v46   ;;  %v4249_v3 = vld [vmem:[%s10629_s6 + $0x160] sm:$0xff]  ;;  %vm10903_vm7 = vmmov %vm10887_vm6 }
 0x2eb   : > { %5920 = vmatmul.msk.bf16.vlgmr.msrb.gmra.mxu0 %vm10880_vm12, %v2070_v4  ;;  %v9310_v4 = vadd.f32 %v4594_v12, %v8908_v31  ;;  %v2155_v61 = vpack.c.bf16 %v2139_v6, %v2139_v6  ;;  %v2156_v32 = vpack.c.bf16 %v2140_v18, %v2140_v18  ;;  %v2157_v14 = vpack.c.bf16 %v2141_v25, %v2141_v25  ;;  %vm10905_vm15 = vmmov %vm10888_vm1 }
 0x2ec   : > { %4057 = vmatpush.bf16.msrb.mxu0 %v3985_v63  ;;  %v2158_v34 = vpack.c.bf16 %v2142_v39, %v2142_v39  ;;  %v2159_v53 = vpack.c.bf16 %v2143_v49, %v2143_v49  ;;  %v2160_v29 = vpack.c.bf16 %v2144_v26, %v2144_v26  ;;  %v2161_v11 = vpack.c.bf16 %v2145_v52, %v2145_v52  ;;  %vm10906_vm4 = vmmov %vm10874_vm0 }
 0x2ed   : > { %v2162_v37 = vpack.c.bf16 %v2146_v20, %v2146_v20  ;;  %v2163_v23 = vpack.c.bf16 %v2147_v10, %v2147_v10  ;;  %v2489_v27 = vunpack.c.l.b16 %v2148_v60  ;;  %v2490_v58 = vunpack.c.l.b16 %v2149_v54  ;;  %4936 = vperm.xlu2 %6037, %v4250_v33   ;;  %4931 = vperm.xlu1 %6036, %v4249_v3   ;;  %vm10907_vm0 = vmmov %vm10887_vm6 }
 0x2ee   : > { %v2491_v63 = vunpack.c.l.b16 %v2150_v2  ;;  %v2492_v31 = vunpack.c.l.b16 %v2151_v19  ;;  %v2493_v43 = vunpack.c.l.b16 %v2152_v51  ;;  %v2494_v6 = vunpack.c.l.b16 %v2153_v7  ;;  %vm10908_vm12 = vmmov %vm10888_vm1 }
 0x2ef   : > { %v2495_v18 = vunpack.c.l.b16 %v2154_v22  ;;  %v2496_v25 = vunpack.c.l.b16 %v2155_v61  ;;  %v2497_v39 = vunpack.c.l.b16 %v2156_v32  ;;  %v9318_v12 = vpop.permute.xlu0 %4604  ;;  %v2498_v26 = vunpack.c.l.b16 %v2157_v14  ;;  %v4291_v61 = vld [vmem:[%s10630_s7 + $0x130] sm:$0xff] }
 0x2f0   : > { %v9320_v49 = vpop.permute.xlu2 %4635  ;;  %v2499_v60 = vunpack.c.l.b16 %v2158_v34  ;;  %v2500_v46 = vunpack.c.l.b16 %v2159_v53  ;;  %v2501_v52 = vunpack.c.l.b16 %v2160_v29  ;;  %v2502_v2 = vunpack.c.l.b16 %v2161_v11 }
 0x2f1   : > { %v9322_v54 = vpop.permute.xlu1 %4801  ;;  %v2503_v20 = vunpack.c.l.b16 %v2162_v37  ;;  %v2504_v10 = vunpack.c.l.b16 %v2163_v23  ;;  %v2505_v19 = vrot.slane %v2490_v58, 7  ;;  %v2507_v7 = vrot.slane %v2491_v63, 6 }
 0x2f2   : > { %10881 = vst [vmem:[#allocation18_spill] sm:$0xff] %v9322_v54  ;;  %v2509_v32 = vrot.slane %v2492_v31, 5  ;;  %v2511_v22 = vrot.slane %v2493_v43, 4  ;;  %v2513_v51 = vrot.slane %v2494_v6, 3  ;;  %v2515_v34 = vrot.slane %v2495_v18, 2  ;;  %5133 = vperm.xlu0 %6035, %v4291_v61   ;;  %v4297_v31 = vld [vmem:[%s10630_s7 + $0x160] sm:$0xff] }
 0x2f3   : > { %v2506_v14 = vsel %vm1033_vm8, %v2505_v19, %v2489_v27  ;;  %v2517_v29 = vrot.slane %v2496_v25, 1  ;;  %v2519_v53 = vrot.slane %v2498_v26, 7  ;;  %v2521_v11 = vrot.slane %v2499_v60, 6  ;;  %v4292_v25 = vld [vmem:[%s10630_s7 + $0x138] sm:$0xff] }
 0x2f4   : > { %v2508_v33 = vsel %vm1036_vm9, %v2507_v7, %v2506_v14  ;;  %v2523_v37 = vrot.slane %v2500_v46, 5  ;;  %v2525_v23 = vrot.slane %v2501_v52, 4  ;;  %v2527_v54 = vrot.slane %v2502_v2, 3 }
 0x2f5   : > { %v2510_v58 = vsel %vm1039_vm10, %v2509_v32, %v2508_v33  ;;  %v2520_v3 = vsel %vm1033_vm8, %v2519_v53, %v2497_v39  ;;  %v2529_v63 = vrot.slane %v2503_v20, 2  ;;  %v2531_v6 = vrot.slane %v2504_v10, 1  ;;  %4945 = vperm.xlu2 %6037, %v4297_v31   ;;  %5138 = vperm.xlu1 %6036, %v4292_v25   ;;  %v10892_v31 = vld [vmem:[#allocation31_spill] sm:$0xff] }
 0x2f6   : > { %v2512_v27 = vsel %vm1042_vm11, %v2511_v22, %v2510_v58  ;;  %v2522_v43 = vsel %vm1036_vm9, %v2521_v11, %v2520_v3  ;;  %v4796_v18 = vmul.f32 %v8871_v41, %v9141_v9  ;;  %v4814_v60 = vmul.f32 %v8881_v8, %v9141_v9 }
 0x2f7   : > { %v2514_v39 = vsel %vm10882_vm13, %v2513_v51, %v2512_v27  ;;  %v2524_v26 = vsel %vm1039_vm10, %v2523_v37, %v2522_v43  ;;  %v10883_v46 = vsub.f32 %v10878_v42, %v9221_v38  ;;  %v9349_v2 = vpop.permute.xlu0 %5011  ;;  %v10885_v61 = vsub.f32 %v9163_v17, %v10868_v21  ;;  %v4298_v17 = vld [vmem:[%s10630_s7 + $0x168] sm:$0xff]  ;;  %vm10909_vm13 = vmmov %vm10886_vm3 }
 0x2f8   : > { %v9351_v20 = vpop.permute.xlu2 %4842  ;;  %v2516_v10 = vsel %vm10884_vm14, %v2515_v34, %v2514_v39  ;;  %v2526_v19 = vsel %vm1042_vm11, %v2525_v23, %v2524_v26  ;;  %v4621_v9 = vmul.f32 %v9177_v56, %v9152_v50  ;;  %v4816_v42 = vadd.f32 %v4814_v60, %v9188_v40  ;;  %v9385_v23 = vld [vmem:[%s6495_s28 + $0x28] sm:$0xff]  ;;  %vm10910_vm14 = vmmov %vm10890_vm2 }
 0x2f9   : > { %v4609_v52 = vadd.f32 %v9174_v0, %v10883_v46  ;;  %v4798_v7 = vadd.f32 %v4796_v18, %v10885_v61  ;;  %v9360_v32 = vpop.permute.xlu1 %5016  ;;  %v2518_v0 = vsel %vm10886_vm3, %v2517_v29, %v2516_v10  ;;  %v2528_v38 = vsel %vm10887_vm6, %v2527_v54, %v2526_v19  ;;  %vm10911_vm3 = vmmov %vm10907_vm0 }
 0x2fa   : > { %v4627_v22 = vadd.f32 %v9181_v15, %v9264_v36  ;;  %v2530_v21 = vsel %vm10888_vm1, %v2529_v63, %v2528_v38  ;;  %v4629_v14 = vmul.f32 %v9170_v55, %v9152_v50  ;;  %v4983_v54 = vmul.f32 %v9205_v30, %v9155_v62  ;;  %4950 = vperm.xlu0 %6035, %v4298_v17   ;;  %v10891_v63 = vld [vmem:[#allocation32_spill] sm:$0xff]  ;;  %v10899_v38 = vld [vmem:[#allocation23_spill] sm:$0xff]  ;;  %vm10912_vm6 = vmmov %vm10888_vm1 }
 0x2fb   : > { %v4623_v51 = vsub.f32 %v4609_v52, %v4621_v9  ;;  %v2532_v40 = vsel %vm10889_vm5, %v2531_v6, %v2530_v21  ;;  %v5001_v15 = vmul.f32 %v9198_v47, %v9155_v62  ;;  %v4997_v36 = vmul.f32 %v9198_v47, %v9257_v5  ;;  %v9390_v47 = vld [vmem:[%s6501_s21 + $0x28] sm:$0xff]  ;;  %v9415_v6 = vld [vmem:[%s6495_s28 + $0x30] sm:$0xff]  ;;  %vm10913_vm1 = vmmov %vm10906_vm4 }
 0x2fc   : > { %v5005_v34 = vmul.f32 %v9205_v30, %v9257_v5  ;;  %v2533_v29 = vpack.c.b16 %v2532_v40, %v2518_v0  ;;  %v4631_v53 = vadd.f32 %v4629_v14, %v4627_v22  ;;  %v4812_v33 = vsub.f32 %v4798_v7, %v9227_v59  ;;  %v4252_v59 = vld [vmem:[%s10629_s6 + $0x178] sm:$0xff]  ;;  %v10897_v9 = vld [vmem:[#allocation20_spill] sm:$0xff]  ;;  %vm10914_vm5 = vmmov %vm10907_vm0 }
 0x2fd   : > { %v4820_v50 = vadd.f32 %v9246_v16, %v4816_v42  ;;  %v4999_v11 = vsub.f32 %v4983_v54, %v4997_v36  ;;  %v4832_v62 = vmul.f32 %v9385_v23, %v9259_v57  ;;  %v4850_v30 = vmul.f32 %v9390_v47, %v9259_v57  ;;  %v4251_v57 = vld [vmem:[%s10629_s6 + $0x170] sm:$0xff]  ;;  %5160 = vperm.xlu2 %6037, %v4252_v59   ;;  %v10902_v22 = vld [vmem:[#allocation25_spill] sm:$0xff] }
 0x2fe   : > { %v5007_v37 = vadd.f32 %v5005_v34, %v5001_v15  ;;  %5931 = vmatmul.msk.bf16.vlgmr.msrb.gmra.mxu1 %vm10890_vm2, %v2533_v29  ;;  %v4998_v16 = vmul.f32 %v8865_v24, %v9279_v1  ;;  %v5006_v5 = vmul.f32 %v8859_v13, %v9279_v1  ;;  %v4608_v58 = vmul.f32 %v9385_v23, %v9318_v12  ;;  %v9420_v1 = vld [vmem:[%s6501_s21 + $0x30] sm:$0xff]  ;;  %vm10915_vm2 = vmmov %vm10912_vm6 }
 0x2ff   : > { %v4626_v3 = vmul.f32 %v9390_v47, %v9318_v12  ;;  %v10893_v27 = vpack.c.bf16 %v10891_v63, %v10892_v31  ;;  %v9412_v43 = vadd.f32 %v4832_v62, %v4812_v33  ;;  %v4852_v24 = vadd.f32 %v4850_v30, %v4820_v50  ;;  %v4619_v18 = vpop.permute.xlu0 %4618  ;;  %5155 = vperm.xlu1 %6036, %v4251_v57   ;;  %v6068_v31 = vld [vmem:[%s6501_s21 + $0x10] sm:$0xff] }
 0x300   : > { %v4643_v13 = vmul.f32 %v9415_v6, %v9320_v49  ;;  %v4661_v12 = vmul.f32 %v9420_v1, %v9320_v49  ;;  %v4650_v25 = vpop.permute.xlu2 %4649  ;;  %v5000_v39 = vsub.f32 %v8862_v48, %v4998_v16  ;;  %v5008_v26 = vadd.f32 %v5006_v5, %v8868_v28  ;;  %v10895_v49 = vld [vmem:[#allocation8_spill] sm:$0xff]  ;;  %v10898_v48 = vld [vmem:[#allocation18_spill] sm:$0xff] }
 0x301   : > { %4172 = vmatpush.bf16.msrb.mxu1 %v10893_v27  ;;  %v10894_v60 = vsub.f32 %v8896_v35, %v9268_v45  ;;  %v4628_v52 = vadd.f32 %v4626_v3, %v9310_v4  ;;  %v4824_v10 = vpop.permute.xlu1 %4823  ;;  %v10896_v7 = vsub.f32 %v10875_v44, %v10895_v49  ;;  %v4809_v28 = vmul.f32 %v10899_v38, %v10898_v48  ;;  %v4299_v35 = vld [vmem:[%s10630_s7 + $0x170] sm:$0xff]  ;;  %v10900_v45 = vld [vmem:[#allocation26_spill] sm:$0xff]  ;;  %v10901_v4 = vld [vmem:[#allocation13_spill] sm:$0xff] }
 0x302   : > { %v9432_v19 = vadd.f32 %v4643_v13, %v4623_v51  ;;  %v4663_v61 = vadd.f32 %v4661_v12, %v4631_v53  ;;  %v4815_v42 = vadd.f32 %v10901_v4, %v10900_v45  ;;  %v4817_v17 = vmul.f32 %v10902_v22, %v10898_v48  ;;  %5169 = vperm.xlu0 %6035, %v4299_v35   ;;  %v6069_v12 = vld [vmem:[%s6495_s28 + $0x10] sm:$0xff]  ;;  %v9496_v35 = vld [vmem:[%s6495_s28 + $0x40] sm:$0xff] }
 0x303   : > { %v9429_v46 = vadd.f32 %v4608_v58, %v10894_v60  ;;  %v4797_v0 = vadd.f32 %v10897_v9, %v10896_v7  ;;  %v5019_v21 = vmul.f32 %v10902_v22, %v9349_v2  ;;  %v5037_v44 = vmul.f32 %v10899_v38, %v9349_v2  ;;  %v9485_v60 = vld [vmem:[%s6501_s21 + $0x38] sm:$0xff] }
 0x304   : > { %v4846_v14 = vmul.f32 %v9390_v47, %v9351_v20  ;;  %v4854_v54 = vmul.f32 %v9385_v23, %v9351_v20  ;;  %v5020_v40 = vmul.f32 %v8871_v41, %v9360_v32  ;;  %v4819_v15 = vadd.f32 %v4817_v17, %v4815_v42 }
 0x305   : > { %v4811_v51 = vsub.f32 %v4797_v0, %v4809_v28  ;;  %v9457_v36 = vadd.f32 %v5019_v21, %v4999_v11  ;;  %v5039_v34 = vadd.f32 %v5037_v44, %v5007_v37  ;;  %v5038_v29 = vmul.f32 %v8881_v8, %v9360_v32  ;;  %v4300_v32 = vld [vmem:[%s10630_s7 + $0x178] sm:$0xff] }
 0x306   : > { %v4848_v2 = vsub.f32 %v9412_v43, %v4846_v14  ;;  %v4856_v53 = vadd.f32 %v4854_v54, %v4852_v24  ;;  %v9462_v33 = vadd.f32 %v5020_v40, %v5000_v39  ;;  %v4622_v50 = vmul.f32 %v9390_v47, %v4619_v18 }
 0x307   : > { %v5040_v20 = vadd.f32 %v5038_v29, %v5008_v26  ;;  %v4630_v62 = vmul.f32 %v9385_v23, %v4619_v18  ;;  %v4657_v30 = vmul.f32 %v9420_v1, %v4650_v25  ;;  %v4665_v11 = vmul.f32 %v9415_v6, %v4650_v25  ;;  %v5026_v5 = vpop.permute.xlu0 %5025  ;;  %5174 = vperm.xlu1 %6036, %v4300_v32   ;;  %v9480_v25 = vld [vmem:[%s6495_s28 + $0x38] sm:$0xff] }
 0x308   : > { %v4624_v37 = vsub.f32 %v9429_v46, %v4622_v50  ;;  %v4831_v59 = vmul.f32 %v9170_v55, %v4824_v10  ;;  %v4849_v16 = vmul.f32 %v9177_v56, %v4824_v10  ;;  %v4865_v58 = vpop.permute.xlu2 %4864  ;;  %v5033_v27 = vmul.f32 %v6068_v31, %v5026_v5 }
 0x309   : > { %v4632_v3 = vadd.f32 %v4630_v62, %v4628_v52  ;;  %v4659_v57 = vsub.f32 %v9432_v19, %v4657_v30  ;;  %v4667_v63 = vadd.f32 %v4665_v11, %v4663_v61  ;;  %v5031_v43 = vpop.permute.xlu1 %5030  ;;  %v5041_v18 = vmul.f32 %v6069_v12, %v5026_v5 }
 0x30a   : > { %v9476_v24 = vadd.f32 %v4831_v59, %v4811_v51  ;;  %v4851_v13 = vadd.f32 %v4849_v16, %v4819_v15  ;;  %v4868_v39 = vmul.f32 %v9480_v25, %v4865_v58  ;;  %v5035_v26 = vsub.f32 %v9457_v36, %v5033_v27 }
 0x30b   : > { %v4886_v46 = vmul.f32 %v9485_v60, %v4865_v58  ;;  %v5034_v52 = vmul.f32 %v8881_v8, %v5031_v43  ;;  %v5042_v10 = vmul.f32 %v8871_v41, %v5031_v43  ;;  %v5043_v19 = vadd.f32 %v5041_v18, %v5039_v34  ;;  %v9500_v8 = vld [vmem:[%s6501_s21 + $0x40] sm:$0xff] }
 0x30c   : > { %v9490_v61 = vadd.f32 %v4868_v39, %v4848_v2 }
 0x30d   : > { %v4888_v49 = vadd.f32 %v4886_v46, %v4856_v53  ;;  %v5036_v7 = vsub.f32 %v9462_v33, %v5034_v52  ;;  %v5044_v9 = vadd.f32 %v5042_v10, %v5040_v20 }
 0x30f   : > { %v4641_v0 = vpop.permute.xlu0 %4640 }
 0x310   : > { %v4672_v48 = vpop.permute.xlu2 %4671  ;;  %v4644_v38 = vmul.f32 %v9480_v25, %v4641_v0  ;;  %v4662_v28 = vmul.f32 %v9485_v60, %v4641_v0 }
 0x311   : > { %v4679_v45 = vmul.f32 %v9496_v35, %v4672_v48  ;;  %v4697_v41 = vmul.f32 %v9500_v8, %v4672_v48  ;;  %v4838_v4 = vpop.permute.xlu1 %4837 }
 0x312   : > { %v4845_v42 = vmul.f32 %v9177_v56, %v4838_v4  ;;  %v4853_v22 = vmul.f32 %v9170_v55, %v4838_v4  ;;  %v9505_v17 = vadd.f32 %v4644_v38, %v4624_v37  ;;  %v4664_v21 = vadd.f32 %v4662_v28, %v4632_v3 }
 0x313   : > { %v9507_v44 = vadd.f32 %v4679_v45, %v4659_v57  ;;  %v4699_v51 = vadd.f32 %v4697_v41, %v4667_v63 }
 0x314   : > { %v4847_v14 = vsub.f32 %v9476_v24, %v4845_v42  ;;  %v4855_v54 = vadd.f32 %v4853_v22, %v4851_v13 }
 0x317   : > { %v5048_v40 = vpop.permute.xlu0 %5047 }
 0x318   : > { %v4879_v15 = vpop.permute.xlu2 %4878  ;;  %v5055_v36 = vmul.f32 %v9170_v55, %v5048_v40  ;;  %v5073_v34 = vmul.f32 %v9177_v56, %v5048_v40 }
 0x319   : > { %v4882_v29 = vmul.f32 %v9485_v60, %v4879_v15  ;;  %v4890_v2 = vmul.f32 %v9480_v25, %v4879_v15  ;;  %v5053_v53 = vpop.permute.xlu1 %5052 }
 0x31a   : > { %v5056_v33 = vmul.f32 %v9385_v23, %v5053_v53  ;;  %v5074_v50 = vmul.f32 %v9390_v47, %v5053_v53  ;;  %v9516_v20 = vadd.f32 %v5055_v36, %v5035_v26  ;;  %v5075_v62 = vadd.f32 %v5073_v34, %v5043_v19  ;;  %v9536_v19 = vld [vmem:[%s6495_s28 + $0x48] sm:$0xff] }
 0x31b   : > { %v4884_v30 = vsub.f32 %v9490_v61, %v4882_v29  ;;  %v4892_v11 = vadd.f32 %v4890_v2, %v4888_v49  ;;  %v9540_v49 = vld [vmem:[%s6501_s21 + $0x48] sm:$0xff] }
 0x31c   : > { %v9519_v32 = vadd.f32 %v5056_v33, %v5036_v7  ;;  %v5076_v37 = vadd.f32 %v5074_v50, %v5044_v9  ;;  %v2595_v53 = vld [vmem:[%s10632_s9 + $0xf] sm:$0x1]  ;;  %v2596_v33 = vld [vmem:[%s10632_s9 + $0x27] sm:$0x1]  ;;  %v2597_v50 = vld [vmem:[%s10632_s9 + $0x3f] sm:$0x1] }
 0x31f   : > { %v4655_v59 = vpop.permute.xlu0 %4654 }
 0x320   : > { %v4686_v16 = vpop.permute.xlu2 %4685  ;;  %v4658_v5 = vmul.f32 %v9485_v60, %v4655_v59  ;;  %v4666_v58 = vmul.f32 %v9480_v25, %v4655_v59  ;;  %v2601_v59 = vld [vmem:[%s10632_s9 + $0x9f] sm:$0x1] }
 0x321   : > { %v4693_v3 = vmul.f32 %v9500_v8, %v4686_v16  ;;  %v4701_v57 = vmul.f32 %v9496_v35, %v4686_v16  ;;  %v4860_v63 = vpop.permute.xlu1 %4859  ;;  %v2602_v16 = vld [vmem:[%s10632_s9 + $0xb7] sm:$0x1] }
 0x322   : > { %v4867_v31 = vmul.f32 %v9415_v6, %v4860_v63  ;;  %v4885_v27 = vmul.f32 %v9420_v1, %v4860_v63  ;;  %v4660_v43 = vsub.f32 %v9505_v17, %v4658_v5  ;;  %v4668_v24 = vadd.f32 %v4666_v58, %v4664_v21  ;;  %v9558_v17 = vld [vmem:[%s6495_s28 + $0x50] sm:$0xff]  ;;  %v2603_v5 = vld [vmem:[%s10632_s9 + $0xcf] sm:$0x1] }
 0x323   : > { %v4695_v13 = vsub.f32 %v9507_v44, %v4693_v3  ;;  %v4703_v12 = vadd.f32 %v4701_v57, %v4699_v51  ;;  %v9562_v21 = vld [vmem:[%s6501_s21 + $0x50] sm:$0xff]  ;;  %v2613_v58 = vpack.c.bf16 %v2597_v50, %v2597_v50 }
 0x324   : > { %v9529_v18 = vadd.f32 %v4867_v31, %v4847_v14  ;;  %v4887_v39 = vadd.f32 %v4885_v27, %v4855_v54 }
 0x327   : > { %v5062_v26 = vpop.permute.xlu0 %5061 }
 0x328   : > { %v4901_v46 = vpop.permute.xlu2 %4900  ;;  %v9532_v52 = vmul.f32 %v9177_v56, %v5062_v26  ;;  %v5077_v10 = vmul.f32 %v9170_v55, %v5062_v26  ;;  %v2618_v26 = vpack.c.bf16 %v2602_v16, %v2602_v16 }
 0x329   : > { %v4904_v61 = vmul.f32 %v9536_v19, %v4901_v46  ;;  %v4922_v7 = vmul.f32 %v9540_v49, %v4901_v46  ;;  %v5067_v9 = vpop.permute.xlu1 %5066 }
 0x32a   : > { %v9544_v0 = vmul.f32 %v9390_v47, %v5067_v9  ;;  %v5078_v48 = vmul.f32 %v9385_v23, %v5067_v9  ;;  %v5071_v56 = vsub.f32 %v9516_v20, %v9532_v52  ;;  %v5079_v55 = vadd.f32 %v5077_v10, %v5075_v62  ;;  %v2598_v20 = vld [vmem:[%s10632_s9 + $0x57] sm:$0x1]  ;;  %v2599_v62 = vld [vmem:[%s10632_s9 + $0x6f] sm:$0x1] }
 0x32b   : > { %v9549_v38 = vadd.f32 %v4904_v61, %v4884_v30  ;;  %v9551_v28 = vadd.f32 %v4922_v7, %v4892_v11  ;;  %v2600_v30 = vld [vmem:[%s10632_s9 + $0x87] sm:$0x1]  ;;  %v2611_v11 = vpack.c.bf16 %v2595_v53, %v2595_v53  ;;  %v2614_v3 = vpack.c.bf16 %v2598_v20, %v2598_v20  ;;  %v2607_v10 = vld [vmem:[%s10632_s9 + $0x12f] sm:$0x1]  ;;  %v2609_v7 = vld [vmem:[%s10632_s9 + $0x15f] sm:$0x1] }
 0x32c   : > { %v5072_v45 = vsub.f32 %v9519_v32, %v9544_v0  ;;  %v5080_v41 = vadd.f32 %v5078_v48, %v5076_v37  ;;  %v2612_v32 = vpack.c.bf16 %v2596_v33, %v2596_v33  ;;  %v2615_v57 = vpack.c.bf16 %v2599_v62, %v2599_v62  ;;  %v2608_v61 = vld [vmem:[%s10632_s9 + $0x147] sm:$0x1] }
 0x32d   : > { %v2616_v63 = vpack.c.bf16 %v2600_v30, %v2600_v30  ;;  %v2619_v9 = vpack.c.bf16 %v2603_v5, %v2603_v5  ;;  %v2624_v33 = vpack.c.bf16 %v2608_v61, %v2608_v61  ;;  %v2952_v30 = vunpack.c.l.b16 %v2611_v11 }
 0x32e   : > { %v2955_v16 = vunpack.c.l.b16 %v2614_v3  ;;  %v2956_v5 = vunpack.c.l.b16 %v2615_v57 }
 0x32f   : > { %v4677_v4 = vpop.permute.xlu0 %4676  ;;  %v9662_v57 = vunpack.c.l.b16 %v2624_v33 }
 0x330   : > { %v4708_v42 = vpop.permute.xlu2 %4707  ;;  %v4680_v22 = vmul.f32 %v9536_v19, %v4677_v4  ;;  %v4698_v47 = vmul.f32 %v9540_v49, %v4677_v4 }
 0x331   : > { %v4715_v23 = vmul.f32 %v9558_v17, %v4708_v42  ;;  %v4733_v44 = vmul.f32 %v9562_v21, %v4708_v42  ;;  %v4874_v51 = vpop.permute.xlu1 %4873 }
 0x332   : > { %v9566_v14 = vmul.f32 %v9420_v1, %v4874_v51  ;;  %v4889_v54 = vmul.f32 %v9415_v6, %v4874_v51  ;;  %v9569_v40 = vadd.f32 %v4680_v22, %v4660_v43  ;;  %v9571_v15 = vadd.f32 %v4698_v47, %v4668_v24  ;;  %v2604_v24 = vld [vmem:[%s10632_s9 + $0xe7] sm:$0x1]  ;;  %v2610_v22 = vld [vmem:[%s10632_s9 + $0x177] sm:$0x1] }
 0x333   : > { %v9573_v36 = vadd.f32 %v4715_v23, %v4695_v13  ;;  %v9575_v34 = vadd.f32 %v4733_v44, %v4703_v12  ;;  %v2605_v13 = vld [vmem:[%s10632_s9 + $0xff] sm:$0x1]  ;;  %v2606_v12 = vld [vmem:[%s10632_s9 + $0x117] sm:$0x1]  ;;  %v2620_v0 = vpack.c.bf16 %v2604_v24, %v2604_v24  ;;  %v2626_v50 = vpack.c.bf16 %v2610_v22, %v2610_v22 }
 0x334   : > { %v4883_v29 = vsub.f32 %v9529_v18, %v9566_v14  ;;  %v9579_v2 = vadd.f32 %v4889_v54, %v4887_v39  ;;  %v2617_v39 = vpack.c.bf16 %v2601_v59, %v2601_v59  ;;  %v2621_v47 = vpack.c.bf16 %v2605_v13, %v2605_v13 }
 0x335   : > { %v2622_v23 = vpack.c.bf16 %v2606_v12, %v2606_v12  ;;  %v2954_v59 = vunpack.c.l.b16 %v2613_v58  ;;  %v2961_v24 = vunpack.c.l.b16 %v2620_v0  ;;  %v2972_v22 = vrot.slane %v2955_v16, 5 }
 0x337   : > { %v5084_v37 = vpop.permute.xlu0 %5083  ;;  %v2963_v11 = vunpack.c.l.b16 %v2622_v23  ;;  %v2982_v14 = vrot.slane %v2961_v24, 7 }
 0x338   : > { %v5091_v31 = vmul.f32 %v9415_v6, %v5084_v37  ;;  %v5109_v27 = vmul.f32 %v9420_v1, %v5084_v37  ;;  %v4915_v42 = vpop.permute.xlu2 %4914  ;;  %v2953_v37 = vunpack.c.l.b16 %v2612_v32 }
 0x339   : > { %v5089_v43 = vpop.permute.xlu1 %5088  ;;  %v9638_v44 = vmul.f32 %v9540_v49, %v4915_v42  ;;  %v4926_v51 = vmul.f32 %v9536_v19, %v4915_v42 }
 0x33a   : > { %v5092_v46 = vmul.f32 %v9480_v25, %v5089_v43  ;;  %v5110_v52 = vmul.f32 %v9485_v60, %v5089_v43  ;;  %v9630_v48 = vadd.f32 %v5091_v31, %v5071_v56  ;;  %v9632_v4 = vadd.f32 %v5109_v27, %v5079_v55 }
 0x33b   : > { %v2623_v56 = vpack.c.bf16 %v2607_v10, %v2607_v10  ;;  %v2625_v55 = vpack.c.bf16 %v2609_v7, %v2609_v7  ;;  %v4920_v20 = vsub.f32 %v9549_v38, %v9638_v44  ;;  %v9648_v62 = vadd.f32 %v4926_v51, %v9551_v28 }
 0x33c   : > { %v9641_v54 = vadd.f32 %v5092_v46, %v5072_v45  ;;  %v9643_v53 = vadd.f32 %v5110_v52, %v5080_v41  ;;  %v2957_v31 = vunpack.c.l.b16 %v2616_v63  ;;  %v9650_v27 = vunpack.c.l.b16 %v2617_v39 }
 0x33d   : > { %v9652_v41 = vunpack.c.l.b16 %v2618_v26  ;;  %v2960_v43 = vunpack.c.l.b16 %v2619_v9  ;;  %v2962_v46 = vunpack.c.l.b16 %v2621_v47  ;;  %v9660_v3 = vunpack.c.l.b16 %v2623_v56 }
 0x33e   : > { %v9669_v52 = vunpack.c.l.b16 %v2625_v55  ;;  %v9671_v10 = vunpack.c.l.b16 %v2626_v50  ;;  %v2968_v42 = vrot.slane %v2953_v37, 7  ;;  %v2974_v47 = vrot.slane %v2956_v5, 4 }
 0x33f   : > { %v4691_v45 = vpop.permute.xlu0 %4690  ;;  %v2976_v56 = vrot.slane %v2957_v31, 3  ;;  %v2978_v33 = vrot.slane %v9650_v27, 2  ;;  %v2980_v18 = vrot.slane %v9652_v41, 1  ;;  %v2983_v5 = vsel %vm1033_vm8, %v2982_v14, %v2960_v43 }
 0x340   : > { %v9655_v13 = vmul.f32 %v9540_v49, %v4691_v45  ;;  %v4702_v12 = vmul.f32 %v9536_v19, %v4691_v45  ;;  %v4722_v26 = vpop.permute.xlu2 %4721  ;;  %v2969_v55 = vsel %vm1033_vm8, %v2968_v42, %v2952_v30  ;;  %v2992_v38 = vrot.slane %v9669_v52, 2 }
 0x341   : > { %v4896_v28 = vpop.permute.xlu1 %4895  ;;  %v4729_v61 = vmul.f32 %v9562_v21, %v4722_v26  ;;  %v4737_v7 = vmul.f32 %v9558_v17, %v4722_v26  ;;  %v3058_v26 = vld [vmem:[%s10632_s9 + $0x10] sm:$0x1]  ;;  %v2994_v44 = vrot.slane %v9671_v10, 1 }
 0x342   : > { %v4903_v32 = vmul.f32 %v9496_v35, %v4896_v28  ;;  %v4921_v58 = vmul.f32 %v9500_v8, %v4896_v28  ;;  %v4696_v63 = vsub.f32 %v9569_v40, %v9655_v13  ;;  %v9667_v39 = vadd.f32 %v4702_v12, %v9571_v15 }
 0x343   : > { %v2970_v15 = vrot.slane %v2954_v59, 6  ;;  %v4731_v23 = vsub.f32 %v9573_v36, %v4729_v61  ;;  %v4739_v51 = vadd.f32 %v4737_v7, %v9575_v34  ;;  %v2986_v59 = vrot.slane %v2963_v11, 5  ;;  %v3059_v61 = vld [vmem:[%s10632_s9 + $0x28] sm:$0x1] }
 0x344   : > { %v9678_v9 = vadd.f32 %v4903_v32, %v4883_v29  ;;  %v9681_v0 = vadd.f32 %v4921_v58, %v9579_v2  ;;  %v2984_v29 = vrot.slane %v2962_v46, 6  ;;  %v10904_v46 = vld [vmem:[#allocation38_spill] sm:$0xff]  ;;  %v9718_v32 = vld [vmem:[%s6501_s21 + $0x58] sm:$0xff] }
 0x345   : > { %v4741_v50 = vmul.f32 %v4731_v23, %v4731_v23  ;;  %v4743_v2 = vmul.f32 %v4739_v51, %v4739_v51  ;;  %v2971_v37 = vsel %vm1036_vm9, %v2970_v15, %v2969_v55  ;;  %v3061_v23 = vld [vmem:[%s10632_s9 + $0x58] sm:$0x1]  ;;  %v3063_v55 = vld [vmem:[%s10632_s9 + $0x88] sm:$0x1] }
 0x346   : > { %v2973_v30 = vsel %vm1039_vm10, %v2972_v22, %v2971_v37  ;;  %v2985_v43 = vsel %vm1036_vm9, %v2984_v29, %v2983_v5  ;;  %v2988_v22 = vrot.slane %v9660_v3, 4  ;;  %v2990_v3 = vrot.slane %v9662_v57, 3  ;;  %v3068_v5 = vld [vmem:[%s10632_s9 + $0x100] sm:$0x1] }
 0x347   : > { %v5098_v45 = vpop.permute.xlu0 %5097  ;;  %v9695_v31 = vadd.f32 %v4743_v2, %v4741_v50  ;;  %v2975_v24 = vsel %vm1042_vm11, %v2974_v47, %v2973_v30  ;;  %v2987_v15 = vsel %vm1039_vm10, %v2986_v59, %v2985_v43  ;;  %v3060_v47 = vld [vmem:[%s10632_s9 + $0x40] sm:$0x1]  ;;  %v3074_v57 = vpack.c.bf16 %v3058_v26, %v3058_v26  ;;  %v3066_v50 = vld [vmem:[%s10632_s9 + $0xd0] sm:$0x1] }
 0x348   : > { %v9690_v36 = vmul.f32 %v9420_v1, %v5098_v45  ;;  %v5113_v34 = vmul.f32 %v9415_v6, %v5098_v45  ;;  %v4937_v12 = vpop.permute.xlu2 %4936  ;;  %v2977_v28 = vsel %vm10903_vm7, %v2976_v56, %v2975_v24  ;;  %v2989_v14 = vsel %vm1042_vm11, %v2988_v22, %v2987_v15  ;;  %v3070_v24 = vld [vmem:[%s10632_s9 + $0x130] sm:$0x1]  ;;  %v3071_v15 = vld [vmem:[%s10632_s9 + $0x148] sm:$0x1]  ;;  %v3072_v22 = vld [vmem:[%s10632_s9 + $0x160] sm:$0x1] }
 0x349   : > { %v5103_v16 = vpop.permute.xlu1 %5102  ;;  %v9711_v11 = vadd.f32 %v9695_v31, %v10904_v46  ;;  %v4958_v58 = vmul.f32 %v9718_v32, %v4937_v12  ;;  %v2979_v42 = vsel %vm10905_vm15, %v2978_v33, %v2977_v28  ;;  %v3062_v33 = vld [vmem:[%s10632_s9 + $0x70] sm:$0x1]  ;;  %v2991_v29 = vsel %vm10907_vm0, %v2990_v3, %v2989_v14  ;;  %vm10916_vm7 = vmmov %vm10913_vm1 }
 0x34a   : > { %v9698_v27 = vmul.f32 %v9485_v60, %v5103_v16  ;;  %v5114_v41 = vmul.f32 %v9480_v25, %v5103_v16  ;;  %v5107_v1 = vsub.f32 %v9630_v48, %v9690_v36  ;;  %v9705_v6 = vadd.f32 %v5113_v34, %v9632_v4  ;;  %v9714_v60 = vld [vmem:[%s6495_s28 + $0x58] sm:$0xff]  ;;  %v3067_v34 = vld [vmem:[%s10632_s9 + $0xe8] sm:$0x1]  ;;  %vm10917_vm15 = vmmov %vm10910_vm14 }
 0x34b   : > { %v4940_v25 = vmul.f32 %v9714_v60, %v4937_v12  ;;  %v2981_v56 = vsel %vm10906_vm4, %v2980_v18, %v2979_v42  ;;  %v3075_v2 = vpack.c.bf16 %v3059_v61, %v3059_v61  ;;  %v3076_v52 = vpack.c.bf16 %v3060_v47, %v3060_v47  ;;  %vm10919_vm4 = vmmov %vm10907_vm0 }
 0x34c   : > { %v5108_v4 = vsub.f32 %v9641_v54, %v9698_v27  ;;  %v9730_v7 = vadd.f32 %v5114_v41, %v9643_v53  ;;  %v9747_v53 = vadd.f32 %v4958_v58, %v9648_v62  ;;  %v3065_v62 = vld [vmem:[%s10632_s9 + $0xb8] sm:$0x1]  ;;  %v3077_v45 = vpack.c.bf16 %v3061_v23, %v3061_v23  ;;  %v3495_v27 = vld [vmem:[%s10632_s9 + $0x61] sm:$0x1]  ;;  %vm10920_vm0 = vmmov %vm10915_vm2 }
 0x34d   : > { %v9744_v51 = vadd.f32 %v4940_v25, %v4920_v20  ;;  %v3064_v20 = vld [vmem:[%s10632_s9 + $0xa0] sm:$0x1]  ;;  %v2993_v59 = vsel %vm10908_vm12, %v2992_v38, %v2991_v29  ;;  %v3078_v16 = vpack.c.bf16 %v3062_v33, %v3062_v33  ;;  %v3069_v41 = vld [vmem:[%s10632_s9 + $0x118] sm:$0x1]  ;;  %v3079_v12 = vpack.c.bf16 %v3063_v55, %v3063_v55  ;;  %vm10921_vm12 = vmmov %vm10911_vm3 }
 0x34e   : > { %v2995_v30 = vsel %vm10909_vm13, %v2994_v44, %v2993_v59  ;;  %v3080_v28 = vpack.c.bf16 %v3064_v20, %v3064_v20  ;;  %v3081_v43 = vpack.c.bf16 %v3065_v62, %v3065_v62  ;;  %v3082_v47 = vpack.c.bf16 %v3066_v50, %v3066_v50  ;;  %vm10922_vm13 = vmmov %vm10913_vm1 }
 0x34f   : > { %v4713_v18 = vpop.permute.xlu0 %4712  ;;  %v2996_v42 = vpack.c.b16 %v2995_v30, %v2981_v56  ;;  %v3083_v56 = vpack.c.bf16 %v3067_v34, %v3067_v34  ;;  %v3084_v3 = vpack.c.bf16 %v3068_v5, %v3068_v5  ;;  %v3085_v33 = vpack.c.bf16 %v3069_v41, %v3069_v41 }
 0x350   : > { %v4716_v10 = vmul.f32 %v9714_v60, %v4713_v18  ;;  %v4734_v37 = vmul.f32 %v9718_v32, %v4713_v18  ;;  %v4946_v26 = vpop.permute.xlu2 %4945  ;;  %v3086_v55 = vpack.c.bf16 %v3070_v24, %v3070_v24  ;;  %v3087_v44 = vpack.c.bf16 %v3071_v15, %v3071_v15 }
 0x351   : > { %v4910_v61 = vpop.permute.xlu1 %4909  ;;  %v9801_v23 = vmul.f32 %v9562_v21, %v4946_v26  ;;  %v9804_v40 = vmul.f32 %v9558_v17, %v4946_v26  ;;  %5942 = vmatmul.msk.bf16.vlgmr.msrb.gmra.mxu2 %vm10910_vm14, %v2996_v42  ;;  %v3088_v20 = vpack.c.bf16 %v3072_v22, %v3072_v22  ;;  %v3415_v18 = vunpack.c.l.b16 %v3074_v57  ;;  %vm10923_vm14 = vmmov %vm10920_vm0 }
 0x352   : > { %v9789_v25 = vadd.f32 %v4716_v10, %v4696_v63  ;;  %v9792_v58 = vadd.f32 %v4734_v37, %v9667_v39  ;;  %v9807_v13 = vmul.f32 %v9500_v8, %v4910_v61  ;;  %v4925_v63 = vmul.f32 %v9496_v35, %v4910_v61  ;;  %v3073_v39 = vld [vmem:[%s10632_s9 + $0x178] sm:$0x1] }
 0x353   : > { %v3089_v62 = vpack.c.bf16 %v3073_v39, %v3073_v39  ;;  %v3416_v29 = vunpack.c.l.b16 %v3075_v2  ;;  %v3417_v50 = vunpack.c.l.b16 %v3076_v52  ;;  %v3418_v37 = vunpack.c.l.b16 %v3077_v45 }
 0x354   : > { %v4919_v14 = vsub.f32 %v9678_v9, %v9807_v13  ;;  %v9817_v38 = vadd.f32 %v4925_v63, %v9681_v0  ;;  %v3419_v59 = vunpack.c.l.b16 %v3078_v16  ;;  %v3420_v30 = vunpack.c.l.b16 %v3079_v12  ;;  %v3727_v9 = vld [vmem:[%s10632_s9 + $0x93] sm:$0x1]  ;;  %v3728_v13 = vld [vmem:[%s10632_s9 + $0xab] sm:$0x1] }
 0x355   : > { %v3421_v34 = vunpack.c.l.b16 %v3080_v28  ;;  %v3422_v24 = vunpack.c.l.b16 %v3081_v43  ;;  %v3423_v26 = vunpack.c.l.b16 %v3082_v47  ;;  %v3424_v61 = vunpack.c.l.b16 %v3083_v56 }
 0x356   : > { %v3425_v0 = vunpack.c.l.b16 %v3084_v3  ;;  %v3426_v42 = vunpack.c.l.b16 %v3085_v33  ;;  %v3427_v15 = vunpack.c.l.b16 %v3086_v55  ;;  %v3428_v52 = vunpack.c.l.b16 %v3087_v44 }
 0x357   : > { %v5120_v10 = vpop.permute.xlu0 %5119  ;;  %v3429_v45 = vunpack.c.l.b16 %v3088_v20  ;;  %v3430_v16 = vunpack.c.l.b16 %v3089_v62  ;;  %v3433_v12 = vrot.slane %v3417_v50, 6  ;;  %v3437_v28 = vrot.slane %v3419_v59, 4 }
 0x358   : > { %v5127_v5 = vmul.f32 %v9496_v35, %v5120_v10  ;;  %v5145_v41 = vmul.f32 %v9500_v8, %v5120_v10  ;;  %v3431_v35 = vrot.slane %v3416_v29, 7  ;;  %v3435_v8 = vrot.slane %v3418_v37, 5  ;;  %v5161_v63 = vpop.permute.xlu2 %5160 }
 0x359   : > { %v3439_v43 = vrot.slane %v3420_v30, 3  ;;  %v3441_v22 = vrot.slane %v3421_v34, 2  ;;  %v3443_v47 = vrot.slane %v3422_v24, 1  ;;  %v3445_v56 = vrot.slane %v3424_v61, 7  ;;  %v3491_v24 = vld [vmem:[%s10632_s9 + $0x1] sm:$0x1] }
 0x35a   : > { %v9824_v57 = vadd.f32 %v5127_v5, %v5107_v1  ;;  %v9827_v2 = vadd.f32 %v5145_v41, %v9705_v6  ;;  %v3432_v39 = vsel %vm1033_vm8, %v3431_v35, %v3415_v18  ;;  %v3447_v48 = vrot.slane %v3425_v0, 6  ;;  %v5125_v1 = vpop.permute.xlu1 %5124  ;;  %v3497_v35 = vld [vmem:[%s10632_s9 + $0x91] sm:$0x1] }
 0x35b   : > { %v3449_v36 = vrot.slane %v3426_v42, 5  ;;  %v3434_v6 = vsel %vm1036_vm9, %v3433_v12, %v3432_v39  ;;  %v3451_v3 = vrot.slane %v3427_v15, 4  ;;  %v3453_v33 = vrot.slane %v3428_v52, 3  ;;  %v3493_v42 = vld [vmem:[%s10632_s9 + $0x31] sm:$0x1] }
 0x35c   : > { %v3455_v55 = vrot.slane %v3429_v45, 2  ;;  %v3436_v44 = vsel %vm1039_vm10, %v3435_v8, %v3434_v6  ;;  %v3446_v20 = vsel %vm1033_vm8, %v3445_v56, %v3423_v26  ;;  %v3457_v62 = vrot.slane %v3430_v16, 1  ;;  %v3492_v26 = vld [vmem:[%s10632_s9 + $0x19] sm:$0x1]  ;;  %v3494_v15 = vld [vmem:[%s10632_s9 + $0x49] sm:$0x1] }
 0x35d   : > { %v9834_v29 = vmul.f32 %v9714_v60, %v5161_v63  ;;  %v3438_v18 = vsel %vm1042_vm11, %v3437_v28, %v3436_v44  ;;  %v3448_v10 = vsel %vm1036_vm9, %v3447_v48, %v3446_v20  ;;  %v9839_v37 = vmul.f32 %v9718_v32, %v5161_v63  ;;  %v3500_v28 = vld [vmem:[%s10632_s9 + $0xd9] sm:$0x1]  ;;  %v3502_v39 = vld [vmem:[%s10632_s9 + $0x109] sm:$0x1]  ;;  %v3503_v56 = vld [vmem:[%s10632_s9 + $0x121] sm:$0x1] }
 0x35e   : > { %v5128_v59 = vmul.f32 %v9536_v19, %v5125_v1  ;;  %v3440_v30 = vsel %vm10911_vm3, %v3439_v43, %v3438_v18  ;;  %v3450_v34 = vsel %vm1039_vm10, %v3449_v36, %v3448_v10  ;;  %v5146_v5 = vmul.f32 %v9540_v49, %v5125_v1  ;;  %vm10924_vm3 = vmmov %vm10913_vm1 }
 0x35f   : > { %v4727_v50 = vpop.permute.xlu0 %4726  ;;  %v3442_v61 = vsel %vm10912_vm6, %v3441_v22, %v3440_v30  ;;  %v3452_v19 = vsel %vm1042_vm11, %v3451_v3, %v3450_v34  ;;  %v3507_v43 = vpack.c.bf16 %v3491_v24, %v3491_v24  ;;  %v3508_v22 = vpack.c.bf16 %v3492_v26, %v3492_v26  ;;  %v3504_v3 = vld [vmem:[%s10632_s9 + $0x139] sm:$0x1]  ;;  %vm10925_vm6 = vmmov %vm10917_vm15 }
 0x360   : > { %v4730_v41 = vmul.f32 %v9718_v32, %v4727_v50  ;;  %v9857_v0 = vadd.f32 %v5128_v59, %v5108_v4  ;;  %v4738_v49 = vmul.f32 %v9714_v60, %v4727_v50  ;;  %v3444_v52 = vsel %vm10913_vm1, %v3443_v47, %v3442_v61  ;;  %v3496_v4 = vld [vmem:[%s10632_s9 + $0x79] sm:$0x1]  ;;  %vm10926_vm1 = vmmov %vm10919_vm4 }
 0x361   : > { %v3454_v45 = vsel %vm10914_vm5, %v3453_v33, %v3452_v19  ;;  %v9869_v16 = vadd.f32 %v5146_v5, %v9730_v7  ;;  %v3498_v7 = vld [vmem:[%s10632_s9 + $0xa9] sm:$0x1]  ;;  %v3509_v48 = vpack.c.bf16 %v3493_v42, %v3493_v42  ;;  %v3510_v36 = vpack.c.bf16 %v3494_v15, %v3494_v15  ;;  %v3505_v33 = vld [vmem:[%s10632_s9 + $0x151] sm:$0x1]  ;;  %vm10927_vm5 = vmmov %vm10920_vm0 }
 0x362   : > { %v4732_v54 = vsub.f32 %v9789_v25, %v4730_v41  ;;  %v3456_v12 = vsel %vm10915_vm2, %v3455_v55, %v3454_v45  ;;  %v4740_v8 = vadd.f32 %v4738_v49, %v9792_v58  ;;  %v3499_v25 = vld [vmem:[%s10632_s9 + $0xc1] sm:$0x1]  ;;  %v3501_v58 = vld [vmem:[%s10632_s9 + $0xf1] sm:$0x1]  ;;  %v3506_v55 = vld [vmem:[%s10632_s9 + $0x169] sm:$0x1]  ;;  %v3511_v44 = vpack.c.bf16 %v3495_v27, %v3495_v27 }
 0x363   : > { %v3458_v47 = vsel %vm10916_vm7, %v3457_v62, %v3456_v12  ;;  %v3512_v20 = vpack.c.bf16 %v3496_v4, %v3496_v4  ;;  %v3513_v62 = vpack.c.bf16 %v3497_v35, %v3497_v35  ;;  %v3514_v50 = vpack.c.bf16 %v3498_v7, %v3498_v7  ;;  %v10918_v19 = vld [vmem:[#allocation43_spill] sm:$0xff]  ;;  %vm10928_vm2 = vmmov %vm10924_vm3 }
 0x364   : > { %v4742_v63 = vmul.f32 %v4732_v54, %v4732_v54  ;;  %v3459_v1 = vpack.c.b16 %v3458_v47, %v3444_v52  ;;  %v4744_v6 = vmul.f32 %v4740_v8, %v4740_v8  ;;  %v3515_v18 = vpack.c.bf16 %v3499_v25, %v3499_v25  ;;  %vm10929_vm7 = vmmov %vm10926_vm1 }
 0x365   : > { %v3516_v10 = vpack.c.bf16 %v3500_v28, %v3500_v28  ;;  %v3517_v30 = vpack.c.bf16 %v3501_v58, %v3501_v58  ;;  %v3518_v34 = vpack.c.bf16 %v3502_v39, %v3502_v39  ;;  %v3519_v5 = vpack.c.bf16 %v3503_v56, %v3503_v56 }
 0x366   : > { %5953 = vmatmul.msk.bf16.vlgmr.msrb.gmra.mxu3 %vm10917_vm15, %v3459_v1  ;;  %v9912_v59 = vadd.f32 %v4744_v6, %v4742_v63  ;;  %v3520_v41 = vpack.c.bf16 %v3504_v3, %v3504_v3  ;;  %v3521_v24 = vpack.c.bf16 %v3505_v33, %v3505_v33  ;;  %v3522_v26 = vpack.c.bf16 %v3506_v55, %v3506_v55  ;;  %v3607_v3 = vld [vmem:[%s10632_s9 + $0x1a] sm:$0x1]  ;;  %vm10930_vm15 = vmmov %vm10920_vm0 }
 0x367   : > { %v3542_v61 = vunpack.c.l.b16 %v3507_v43  ;;  %v3543_v42 = vunpack.c.l.b16 %v3508_v22  ;;  %v3544_v15 = vunpack.c.l.b16 %v3509_v48  ;;  %v3545_v52 = vunpack.c.l.b16 %v3510_v36  ;;  %v3606_v22 = vld [vmem:[%s10632_s9 + $0x2] sm:$0x1] }
 0x368   : > { %v9916_v49 = vadd.f32 %v9912_v59, %v10918_v19  ;;  %v3546_v45 = vunpack.c.l.b16 %v3511_v44  ;;  %v3547_v54 = vunpack.c.l.b16 %v3512_v20  ;;  %v3548_v27 = vunpack.c.l.b16 %v3513_v62  ;;  %v3608_v62 = vld [vmem:[%s10632_s9 + $0x32] sm:$0x1] }
 0x369   : > { %v3549_v4 = vunpack.c.l.b16 %v3514_v50  ;;  %v3550_v35 = vunpack.c.l.b16 %v3515_v18  ;;  %v3551_v12 = vunpack.c.l.b16 %v3516_v10  ;;  %v3552_v8 = vunpack.c.l.b16 %v3517_v30 }
 0x36a   : > { %v3553_v7 = vunpack.c.l.b16 %v3518_v34  ;;  %v3554_v25 = vunpack.c.l.b16 %v3519_v5  ;;  %v3555_v28 = vunpack.c.l.b16 %v3520_v41  ;;  %v3556_v47 = vunpack.c.l.b16 %v3521_v24  ;;  %v3609_v34 = vld [vmem:[%s10632_s9 + $0x4a] sm:$0x1]  ;;  %v3610_v5 = vld [vmem:[%s10632_s9 + $0x62] sm:$0x1] }
 0x36b   : > { %v3557_v63 = vunpack.c.l.b16 %v3522_v26  ;;  %v3558_v43 = vrot.slane %v3543_v42, 7  ;;  %v3560_v58 = vrot.slane %v3544_v15, 6  ;;  %v3562_v39 = vrot.slane %v3545_v52, 5  ;;  %v3612_v42 = vld [vmem:[%s10632_s9 + $0x92] sm:$0x1] }
 0x36c   : > { %v3564_v56 = vrot.slane %v3546_v45, 4  ;;  %v3566_v48 = vrot.slane %v3547_v54, 3  ;;  %v3568_v36 = vrot.slane %v3548_v27, 2  ;;  %v3570_v1 = vrot.slane %v3549_v4, 1  ;;  %v3613_v54 = vld [vmem:[%s10632_s9 + $0xaa] sm:$0x1] }
 0x36d   : > { %v3572_v6 = vrot.slane %v3551_v12, 7  ;;  %v3559_v33 = vsel %vm1033_vm8, %v3558_v43, %v3542_v61  ;;  %v3574_v55 = vrot.slane %v3552_v8, 6  ;;  %v3576_v44 = vrot.slane %v3553_v7, 5  ;;  %v3611_v61 = vld [vmem:[%s10632_s9 + $0x7a] sm:$0x1] }
 0x36e   : > { %v3578_v20 = vrot.slane %v3554_v25, 4  ;;  %v3561_v50 = vsel %vm1036_vm9, %v3560_v58, %v3559_v33  ;;  %v3580_v10 = vrot.slane %v3555_v28, 3  ;;  %v3582_v30 = vrot.slane %v3556_v47, 2  ;;  %v3614_v27 = vld [vmem:[%s10632_s9 + $0xc2] sm:$0x1] }
 0x36f   : > { %v3573_v18 = vsel %vm1033_vm8, %v3572_v6, %v3550_v35  ;;  %v3563_v41 = vsel %vm1039_vm10, %v3562_v39, %v3561_v50  ;;  %v3584_v26 = vrot.slane %v3557_v63, 1  ;;  %v3622_v15 = vpack.c.bf16 %v3606_v22, %v3606_v22  ;;  %v3615_v7 = vld [vmem:[%s10632_s9 + $0xda] sm:$0x1]  ;;  %v3616_v25 = vld [vmem:[%s10632_s9 + $0xf2] sm:$0x1] }
 0x370   : > { %v3575_v24 = vsel %vm1036_vm9, %v3574_v55, %v3573_v18  ;;  %v3565_v52 = vsel %vm1042_vm11, %v3564_v56, %v3563_v41  ;;  %v3623_v4 = vpack.c.bf16 %v3607_v3, %v3607_v3  ;;  %v3624_v35 = vpack.c.bf16 %v3608_v62, %v3608_v62  ;;  %v3617_v28 = vld [vmem:[%s10632_s9 + $0x10a] sm:$0x1]  ;;  %v3618_v39 = vld [vmem:[%s10632_s9 + $0x122] sm:$0x1]  ;;  %v3619_v56 = vld [vmem:[%s10632_s9 + $0x13a] sm:$0x1] }
 0x371   : > { %v3577_v45 = vsel %vm1039_vm10, %v3576_v44, %v3575_v24  ;;  %v3567_v12 = vsel %vm10919_vm4, %v3566_v48, %v3565_v52  ;;  %v3625_v47 = vpack.c.bf16 %v3609_v34, %v3609_v34  ;;  %v3626_v63 = vpack.c.bf16 %v3610_v5, %v3610_v5  ;;  %v3620_v22 = vld [vmem:[%s10632_s9 + $0x152] sm:$0x1]  ;;  %v3621_v33 = vld [vmem:[%s10632_s9 + $0x16a] sm:$0x1]  ;;  %vm10931_vm4 = vmmov %vm10928_vm2 }
 0x372   : > { %v3579_v8 = vsel %vm1042_vm11, %v3578_v20, %v3577_v45  ;;  %v3569_v43 = vsel %vm10920_vm0, %v3568_v36, %v3567_v12  ;;  %v3627_v48 = vpack.c.bf16 %v3611_v61, %v3611_v61  ;;  %v3628_v6 = vpack.c.bf16 %v3612_v42, %v3612_v42  ;;  %vm10932_vm0 = vmmov %vm10925_vm6 }
 0x373   : > { %v3581_v58 = vsel %vm10921_vm12, %v3580_v10, %v3579_v8  ;;  %v3571_v3 = vsel %vm10922_vm13, %v3570_v1, %v3569_v43  ;;  %v3629_v55 = vpack.c.bf16 %v3613_v54, %v3613_v54  ;;  %v3630_v44 = vpack.c.bf16 %v3614_v27, %v3614_v27  ;;  %vm10933_vm12 = vmmov %vm10926_vm1 }
 0x374   : > { %v3583_v36 = vsel %vm10923_vm14, %v3582_v30, %v3581_v58  ;;  %v3631_v62 = vpack.c.bf16 %v3615_v7, %v3615_v7  ;;  %v3632_v50 = vpack.c.bf16 %v3616_v25, %v3616_v25  ;;  %v3633_v18 = vpack.c.bf16 %v3617_v28, %v3617_v28  ;;  %vm10934_vm13 = vmmov %vm10927_vm5 }
 0x375   : > { %v3585_v20 = vsel %vm10924_vm3, %v3584_v26, %v3583_v36  ;;  %v3634_v34 = vpack.c.bf16 %v3618_v39, %v3618_v39  ;;  %v3635_v5 = vpack.c.bf16 %v3619_v56, %v3619_v56  ;;  %v3636_v41 = vpack.c.bf16 %v3620_v22, %v3620_v22  ;;  %vm10935_vm14 = vmmov %vm10928_vm2 }
 0x376   : > { %v3586_v10 = vpack.c.b16 %v3585_v20, %v3571_v3  ;;  %v3637_v24 = vpack.c.bf16 %v3621_v33, %v3621_v33  ;;  %v3657_v61 = vunpack.c.l.b16 %v3622_v15  ;;  %v3658_v1 = vunpack.c.l.b16 %v3623_v4  ;;  %v3721_v33 = vld [vmem:[%s10632_s9 + $0x3] sm:$0x1]  ;;  %vm10936_vm3 = vmmov %vm10926_vm1 }
 0x377   : > { %v3659_v42 = vunpack.c.l.b16 %v3624_v35  ;;  %v3660_v30 = vunpack.c.l.b16 %v3625_v47  ;;  %v3661_v52 = vunpack.c.l.b16 %v3626_v63  ;;  %v3662_v45 = vunpack.c.l.b16 %v3627_v48  ;;  %v4932_v47 = vpop.permute.xlu1 %4931 }
 0x378   : > { %5954 = vmatmul.msk.bf16.vlgmr.msra.gmra.mxu0 %vm10925_vm6, %v3586_v10  ;;  %v3663_v54 = vunpack.c.l.b16 %v3628_v6  ;;  %v3664_v27 = vunpack.c.l.b16 %v3629_v55  ;;  %v3665_v12 = vunpack.c.l.b16 %v3630_v44  ;;  %v3666_v26 = vunpack.c.l.b16 %v3631_v62  ;;  %vm10937_vm6 = vmmov %vm10927_vm5 }
 0x379   : > { %v3667_v8 = vunpack.c.l.b16 %v3632_v50  ;;  %v3668_v7 = vunpack.c.l.b16 %v3633_v18  ;;  %v3669_v25 = vunpack.c.l.b16 %v3634_v34  ;;  %v3670_v28 = vunpack.c.l.b16 %v3635_v5  ;;  %v3722_v50 = vld [vmem:[%s10632_s9 + $0x1b] sm:$0x1] }
 0x37a   : > { %v3671_v43 = vunpack.c.l.b16 %v3636_v41  ;;  %v3672_v58 = vunpack.c.l.b16 %v3637_v24  ;;  %v3673_v39 = vrot.slane %v3658_v1, 7  ;;  %v3675_v56 = vrot.slane %v3659_v42, 6  ;;  %v3723_v41 = vld [vmem:[%s10632_s9 + $0x33] sm:$0x1]  ;;  %v3724_v42 = vld [vmem:[%s10632_s9 + $0x4b] sm:$0x1] }
 0x37b   : > { %v3677_v15 = vrot.slane %v3660_v30, 5  ;;  %v3679_v4 = vrot.slane %v3661_v52, 4  ;;  %v3681_v35 = vrot.slane %v3662_v45, 3  ;;  %v3683_v22 = vrot.slane %v3663_v54, 2  ;;  %v3725_v54 = vld [vmem:[%s10632_s9 + $0x63] sm:$0x1] }
 0x37c   : > { %v3685_v3 = vrot.slane %v3664_v27, 1  ;;  %v3674_v63 = vsel %vm1033_vm8, %v3673_v39, %v3657_v61  ;;  %v3687_v48 = vrot.slane %v3666_v26, 7  ;;  %v3689_v6 = vrot.slane %v3667_v8, 6 }
 0x37d   : > { %v3691_v36 = vrot.slane %v3668_v7, 5  ;;  %v3676_v55 = vsel %vm1036_vm9, %v3675_v56, %v3674_v63  ;;  %v3693_v44 = vrot.slane %v3669_v25, 4  ;;  %v3695_v20 = vrot.slane %v3670_v28, 3 }
 0x37e   : > { %v3697_v62 = vrot.slane %v3671_v43, 2  ;;  %v3678_v18 = vsel %vm1039_vm10, %v3677_v15, %v3676_v55  ;;  %v3688_v10 = vsel %vm1033_vm8, %v3687_v48, %v3665_v12  ;;  %v3699_v34 = vrot.slane %v3672_v58, 1  ;;  %v3729_v43 = vld [vmem:[%s10632_s9 + $0xc3] sm:$0x1]  ;;  %v3731_v58 = vld [vmem:[%s10632_s9 + $0xf3] sm:$0x1] }
 0x37f   : > { %v4939_v5 = vmul.f32 %v9558_v17, %v4932_v47  ;;  %v3680_v24 = vsel %vm1042_vm11, %v3679_v4, %v3678_v18  ;;  %v3690_v61 = vsel %vm1036_vm9, %v3689_v6, %v3688_v10  ;;  %v4957_v1 = vmul.f32 %v9562_v21, %v4932_v47  ;;  %v3726_v21 = vld [vmem:[%s10632_s9 + $0x7b] sm:$0x1]  ;;  %v3733_v4 = vld [vmem:[%s10632_s9 + $0x123] sm:$0x1]  ;;  %v3736_v48 = vld [vmem:[%s10632_s9 + $0x16b] sm:$0x1] }
 0x380   : > { %v3737_v30 = vpack.c.bf16 %v3721_v33, %v3721_v33  ;;  %v3682_v52 = vsel %vm10926_vm1, %v3681_v35, %v3680_v24  ;;  %v3692_v45 = vsel %vm1039_vm10, %v3691_v36, %v3690_v61  ;;  %v3738_v27 = vpack.c.bf16 %v3722_v50, %v3722_v50  ;;  %v3734_v35 = vld [vmem:[%s10632_s9 + $0x13b] sm:$0x1]  ;;  %vm10938_vm1 = vmmov %vm10928_vm2 }
 0x381   : > { %v4941_v17 = vadd.f32 %v4939_v5, %v4919_v14  ;;  %v3684_v12 = vsel %vm10927_vm5, %v3683_v22, %v3682_v52  ;;  %v3694_v26 = vsel %vm1042_vm11, %v3693_v44, %v3692_v45  ;;  %v4959_v8 = vadd.f32 %v4957_v1, %v9817_v38  ;;  %v3730_v38 = vld [vmem:[%s10632_s9 + $0xdb] sm:$0x1]  ;;  %vm10939_vm5 = vmmov %vm10932_vm0 }
 0x382   : > { %v3739_v14 = vpack.c.bf16 %v3723_v41, %v3723_v41  ;;  %v3686_v7 = vsel %vm10928_vm2, %v3685_v3, %v3684_v12  ;;  %v3696_v25 = vsel %vm10929_vm7, %v3695_v20, %v3694_v26  ;;  %v3740_v39 = vpack.c.bf16 %v3724_v42, %v3724_v42  ;;  %vm10940_vm2 = vmmov %vm10936_vm3 }
 0x383   : > { %v4955_v28 = vsub.f32 %v4941_v17, %v9801_v23  ;;  %v3698_v56 = vsel %vm10930_vm15, %v3697_v62, %v3696_v25  ;;  %v4963_v15 = vadd.f32 %v9804_v40, %v4959_v8  ;;  %v3732_v23 = vld [vmem:[%s10632_s9 + $0x10b] sm:$0x1]  ;;  %v3741_v22 = vpack.c.bf16 %v3725_v54, %v3725_v54  ;;  %v3735_v40 = vld [vmem:[%s10632_s9 + $0x153] sm:$0x1]  ;;  %vm10941_vm7 = vmmov %vm10937_vm6 }
 0x384   : > { %v3742_v3 = vpack.c.bf16 %v3726_v21, %v3726_v21  ;;  %v3700_v47 = vsel %vm10931_vm4, %v3699_v34, %v3698_v56  ;;  %v3743_v6 = vpack.c.bf16 %v3727_v9, %v3727_v9  ;;  %v3744_v36 = vpack.c.bf16 %v3728_v13, %v3728_v13  ;;  %vm10942_vm15 = vmmov %vm10940_vm2 }
 0x385   : > { %v4965_v63 = vmul.f32 %v4955_v28, %v4955_v28  ;;  %v3701_v33 = vpack.c.b16 %v3700_v47, %v3686_v7  ;;  %v4967_v55 = vmul.f32 %v4963_v15, %v4963_v15  ;;  %v3745_v44 = vpack.c.bf16 %v3729_v43, %v3729_v43  ;;  %v5134_v15 = vpop.permute.xlu0 %5133  ;;  %vm10943_vm4 = vmmov %vm10938_vm1 }
 0x386   : > { %v3746_v20 = vpack.c.bf16 %v3730_v38, %v3730_v38  ;;  %v3747_v62 = vpack.c.bf16 %v3731_v58, %v3731_v58  ;;  %v3748_v50 = vpack.c.bf16 %v3732_v23, %v3732_v23  ;;  %v3749_v18 = vpack.c.bf16 %v3733_v4, %v3733_v4 }
 0x387   : > { %v3750_v10 = vpack.c.bf16 %v3734_v35, %v3734_v35  ;;  %5955 = vmatmul.msk.bf16.vlgmr.msra.gmra.mxu1 %vm10932_vm0, %v3701_v33  ;;  %v10052_v34 = vadd.f32 %v4967_v55, %v4965_v63  ;;  %v3751_v5 = vpack.c.bf16 %v3735_v40, %v3735_v40  ;;  %v3752_v41 = vpack.c.bf16 %v3736_v48, %v3736_v48  ;;  %vm10944_vm0 = vmmov %vm10937_vm6 }
 0x388   : > { %v3772_v24 = vunpack.c.l.b16 %v3737_v30  ;;  %v3773_v61 = vunpack.c.l.b16 %v3738_v27  ;;  %v3774_v1 = vunpack.c.l.b16 %v3739_v14  ;;  %v3775_v42 = vunpack.c.l.b16 %v3740_v39 }
 0x389   : > { %v3776_v52 = vunpack.c.l.b16 %v3741_v22  ;;  %v3777_v45 = vunpack.c.l.b16 %v3742_v3  ;;  %v3778_v17 = vunpack.c.l.b16 %v3743_v6  ;;  %v3779_v54 = vunpack.c.l.b16 %v3744_v36  ;;  %v3836_v3 = vld [vmem:[%s10632_s9 + $0x4] sm:$0x1]  ;;  %v3837_v6 = vld [vmem:[%s10632_s9 + $0x1c] sm:$0x1] }
 0x38a   : > { %v3780_v21 = vunpack.c.l.b16 %v3745_v44  ;;  %v3781_v12 = vunpack.c.l.b16 %v3746_v20  ;;  %v3782_v26 = vunpack.c.l.b16 %v3747_v62  ;;  %v3783_v8 = vunpack.c.l.b16 %v3748_v50  ;;  %v6080_v44 = vld [vmem:[%s6501_s21 + $0x40] sm:$0xff]  ;;  %v3838_v62 = vld [vmem:[%s10632_s9 + $0x34] sm:$0x1] }
 0x38b   : > { %v3784_v9 = vunpack.c.l.b16 %v3749_v18  ;;  %v3785_v13 = vunpack.c.l.b16 %v3750_v10  ;;  %v3786_v7 = vunpack.c.l.b16 %v3751_v5  ;;  %v3787_v25 = vunpack.c.l.b16 %v3752_v41  ;;  %v6081_v10 = vld [vmem:[%s6495_s28 + $0x40] sm:$0xff]  ;;  %v3839_v41 = vld [vmem:[%s10632_s9 + $0x4c] sm:$0x1] }
 0x38c   : > { %v3788_v28 = vrot.slane %v3773_v61, 7  ;;  %v3790_v43 = vrot.slane %v3774_v1, 6  ;;  %v3792_v38 = vrot.slane %v3775_v42, 5  ;;  %v3794_v58 = vrot.slane %v3776_v52, 4  ;;  %v3841_v61 = vld [vmem:[%s10632_s9 + $0x7c] sm:$0x1] }
 0x38d   : > { %v3796_v30 = vrot.slane %v3777_v45, 3  ;;  %v3798_v14 = vrot.slane %v3778_v17, 2  ;;  %v3800_v39 = vrot.slane %v3779_v54, 1  ;;  %v3802_v56 = vrot.slane %v3781_v12, 7  ;;  %v3845_v1 = vld [vmem:[%s10632_s9 + $0xdc] sm:$0x1] }
 0x38e   : > { %v3789_v27 = vsel %vm1033_vm8, %v3788_v28, %v3772_v24  ;;  %v3804_v4 = vrot.slane %v3782_v26, 6  ;;  %v3806_v35 = vrot.slane %v3783_v8, 5  ;;  %v3808_v22 = vrot.slane %v3784_v9, 4  ;;  %v3840_v24 = vld [vmem:[%s10632_s9 + $0x64] sm:$0x1] }
 0x38f   : > { %v3791_v23 = vsel %vm1036_vm9, %v3790_v43, %v3789_v27  ;;  %v3803_v63 = vsel %vm1033_vm8, %v3802_v56, %v3780_v21  ;;  %v3810_v40 = vrot.slane %v3785_v13, 3  ;;  %v3812_v48 = vrot.slane %v3786_v7, 2  ;;  %v3842_v54 = vld [vmem:[%s10632_s9 + $0x94] sm:$0x1]  ;;  %v3843_v21 = vld [vmem:[%s10632_s9 + $0xac] sm:$0x1] }
 0x390   : > { %v3793_v47 = vsel %vm1039_vm10, %v3792_v38, %v3791_v23  ;;  %v3805_v33 = vsel %vm1036_vm9, %v3804_v4, %v3803_v63  ;;  %v3814_v55 = vrot.slane %v3787_v25, 1  ;;  %v10067_v20 = vmul.f32 %v6080_v44, %v5134_v15  ;;  %v3844_v12 = vld [vmem:[%s10632_s9 + $0xc4] sm:$0x1]  ;;  %v3846_v7 = vld [vmem:[%s10632_s9 + $0xf4] sm:$0x1] }
 0x391   : > { %v3795_v36 = vsel %vm1042_vm11, %v3794_v58, %v3793_v47  ;;  %v3807_v18 = vsel %vm1039_vm10, %v3806_v35, %v3805_v33  ;;  %v5149_v5 = vmul.f32 %v6081_v10, %v5134_v15  ;;  %v3852_v42 = vpack.c.bf16 %v3836_v3, %v3836_v3  ;;  %v3847_v25 = vld [vmem:[%s10632_s9 + $0x10c] sm:$0x1]  ;;  %v3848_v28 = vld [vmem:[%s10632_s9 + $0x124] sm:$0x1]  ;;  %v3850_v58 = vld [vmem:[%s10632_s9 + $0x154] sm:$0x1] }
 0x392   : > { %v3797_v50 = vsel %vm10933_vm12, %v3796_v30, %v3795_v36  ;;  %v3809_v45 = vsel %vm1042_vm11, %v3808_v22, %v3807_v18  ;;  %v5143_v17 = vsub.f32 %v9824_v57, %v10067_v20  ;;  %v3853_v26 = vpack.c.bf16 %v3837_v6, %v3837_v6  ;;  %v3851_v30 = vld [vmem:[%s10632_s9 + $0x16c] sm:$0x1]  ;;  %vm10945_vm12 = vmmov %vm10938_vm1  ;;  %v5202_v57 = vld [vmem:[%s10632_s9 + $0x1f] sm:$0x1] }
 0x393   : > { %v3799_v52 = vsel %vm10934_vm13, %v3798_v14, %v3797_v50  ;;  %v3811_v9 = vsel %vm10936_vm3, %v3810_v40, %v3809_v45  ;;  %v10103_v13 = vadd.f32 %v5149_v5, %v9827_v2  ;;  %v3854_v43 = vpack.c.bf16 %v3838_v62, %v3838_v62  ;;  %v3849_v2 = vld [vmem:[%s10632_s9 + $0x13c] sm:$0x1]  ;;  %vm10946_vm13 = vmmov %vm10939_vm5 }
 0x394   : > { %v3801_v8 = vsel %vm10935_vm14, %v3800_v39, %v3799_v52  ;;  %v3813_v38 = vsel %vm10937_vm6, %v3812_v48, %v3811_v9  ;;  %v3855_v27 = vpack.c.bf16 %v3839_v41, %v3839_v41  ;;  %v3856_v14 = vpack.c.bf16 %v3840_v24, %v3840_v24  ;;  %vm10947_vm14 = vmmov %vm10940_vm2 }
 0x395   : > { %v3857_v39 = vpack.c.bf16 %v3841_v61, %v3841_v61  ;;  %v3815_v56 = vsel %vm10938_vm1, %v3814_v55, %v3813_v38  ;;  %v3858_v15 = vpack.c.bf16 %v3842_v54, %v3842_v54  ;;  %v3859_v23 = vpack.c.bf16 %v3843_v21, %v3843_v21  ;;  %vm10948_vm3 = vmmov %vm10944_vm0 }
 0x396   : > { %v3860_v4 = vpack.c.bf16 %v3844_v12, %v3844_v12  ;;  %v3816_v35 = vpack.c.b16 %v3815_v56, %v3801_v8  ;;  %v3861_v22 = vpack.c.bf16 %v3845_v1, %v3845_v1  ;;  %v3862_v3 = vpack.c.bf16 %v3846_v7, %v3846_v7  ;;  %vm10949_vm6 = vmmov %vm10938_vm1 }
 0x397   : > { %v3863_v47 = vpack.c.bf16 %v3847_v25, %v3847_v25  ;;  %v3864_v63 = vpack.c.bf16 %v3848_v28, %v3848_v28  ;;  %v3865_v40 = vpack.c.bf16 %v3849_v2, %v3849_v2  ;;  %v3866_v48 = vpack.c.bf16 %v3850_v58, %v3850_v58  ;;  %v5139_v28 = vpop.permute.xlu1 %5138  ;;  %vm10950_vm1 = vmmov %vm10940_vm2 }
 0x398   : > { %v3867_v6 = vpack.c.bf16 %v3851_v30, %v3851_v30  ;;  %5956 = vmatmul.msk.bf16.vlgmr.msra.gmra.mxu2 %vm10939_vm5, %v3816_v35  ;;  %v3887_v36 = vunpack.c.l.b16 %v3852_v42  ;;  %v3888_v33 = vunpack.c.l.b16 %v3853_v26  ;;  %v3889_v44 = vunpack.c.l.b16 %v3854_v43  ;;  %v4951_v30 = vpop.permute.xlu0 %4950  ;;  %v6082_v35 = vld [vmem:[%s6501_s21 + $0x48] sm:$0xff]  ;;  %vm10951_vm5 = vmmov %vm10944_vm0 }
 0x399   : > { %v3890_v62 = vunpack.c.l.b16 %v3855_v27  ;;  %v3891_v50 = vunpack.c.l.b16 %v3856_v14  ;;  %v3892_v18 = vunpack.c.l.b16 %v3857_v39  ;;  %v3893_v55 = vunpack.c.l.b16 %v3858_v15 }
 0x39a   : > { %v3894_v10 = vunpack.c.l.b16 %v3859_v23  ;;  %v3895_v5 = vunpack.c.l.b16 %v3860_v4  ;;  %v3896_v41 = vunpack.c.l.b16 %v3861_v22  ;;  %v3897_v24 = vunpack.c.l.b16 %v3862_v3 }
 0x39b   : > { %v3898_v61 = vunpack.c.l.b16 %v3863_v47  ;;  %v3899_v1 = vunpack.c.l.b16 %v3864_v63  ;;  %v3900_v52 = vunpack.c.l.b16 %v3865_v40  ;;  %v3901_v45 = vunpack.c.l.b16 %v3866_v48  ;;  %v6083_v63 = vld [vmem:[%s6495_s28 + $0x48] sm:$0xff] }
 0x39c   : > { %v3902_v54 = vunpack.c.l.b16 %v3867_v6  ;;  %v3903_v21 = vrot.slane %v3888_v33, 7  ;;  %v3905_v12 = vrot.slane %v3889_v44, 6  ;;  %v3907_v8 = vrot.slane %v3890_v62, 5  ;;  %v3951_v6 = vld [vmem:[%s10632_s9 + $0x5] sm:$0x1] }
 0x39d   : > { %v3909_v9 = vrot.slane %v3891_v50, 4  ;;  %v3911_v42 = vrot.slane %v3892_v18, 3  ;;  %v3913_v26 = vrot.slane %v3893_v55, 2  ;;  %v3915_v7 = vrot.slane %v3894_v10, 1  ;;  %v3952_v50 = vld [vmem:[%s10632_s9 + $0x1d] sm:$0x1] }
 0x39e   : > { %v3917_v25 = vrot.slane %v3896_v41, 7  ;;  %v3904_v43 = vsel %vm1033_vm8, %v3903_v21, %v3887_v36  ;;  %v3919_v38 = vrot.slane %v3897_v24, 6  ;;  %v3921_v2 = vrot.slane %v3898_v61, 5  ;;  %v3955_v41 = vld [vmem:[%s10632_s9 + $0x65] sm:$0x1] }
 0x39f   : > { %v3923_v58 = vrot.slane %v3899_v1, 4  ;;  %v3906_v27 = vsel %vm1036_vm9, %v3905_v12, %v3904_v43  ;;  %v3925_v39 = vrot.slane %v3900_v52, 3  ;;  %v3927_v56 = vrot.slane %v3901_v45, 2  ;;  %v3959_v24 = vld [vmem:[%s10632_s9 + $0xc5] sm:$0x1] }
 0x3a0   : > { %v3918_v14 = vsel %vm1033_vm8, %v3917_v25, %v3895_v5  ;;  %v3908_v15 = vsel %vm1039_vm10, %v3907_v8, %v3906_v27  ;;  %v3929_v4 = vrot.slane %v3902_v54, 1  ;;  %v10132_v22 = vmul.f32 %v6082_v35, %v5139_v28  ;;  %v3960_v61 = vld [vmem:[%s10632_s9 + $0xdd] sm:$0x1]  ;;  %v3957_v45 = vld [vmem:[%s10632_s9 + $0x95] sm:$0x1] }
 0x3a1   : > { %v3920_v23 = vsel %vm1036_vm9, %v3919_v38, %v3918_v14  ;;  %v3910_v3 = vsel %vm1042_vm11, %v3909_v9, %v3908_v15  ;;  %v5150_v40 = vmul.f32 %v6083_v63, %v5139_v28  ;;  %v4954_v48 = vmul.f32 %v9718_v32, %v4951_v30  ;;  %v3953_v32 = vld [vmem:[%s10632_s9 + $0x35] sm:$0x1]  ;;  %v3956_v52 = vld [vmem:[%s10632_s9 + $0x7d] sm:$0x1]  ;;  %v3958_v54 = vld [vmem:[%s10632_s9 + $0xad] sm:$0x1] }
 0x3a2   : > { %v3922_v47 = vsel %vm1039_vm10, %v3921_v2, %v3920_v23  ;;  %v3912_v36 = vsel %vm10940_vm2, %v3911_v42, %v3910_v3  ;;  %v5144_v44 = vsub.f32 %v9857_v0, %v10132_v22  ;;  %v4962_v62 = vmul.f32 %v9714_v60, %v4951_v30  ;;  %v3954_v60 = vld [vmem:[%s10632_s9 + $0x4d] sm:$0x1]  ;;  %v3963_v42 = vld [vmem:[%s10632_s9 + $0x125] sm:$0x1]  ;;  %v3964_v43 = vld [vmem:[%s10632_s9 + $0x13d] sm:$0x1] }
 0x3a3   : > { %v3924_v33 = vsel %vm1042_vm11, %v3923_v58, %v3922_v47  ;;  %v3914_v18 = vsel %vm10941_vm7, %v3913_v26, %v3912_v36  ;;  %v10155_v10 = vadd.f32 %v5150_v40, %v9869_v16  ;;  %v4956_v5 = vsub.f32 %v9744_v51, %v4954_v48  ;;  %v3962_v9 = vld [vmem:[%s10632_s9 + $0x10d] sm:$0x1]  ;;  %v3965_v38 = vld [vmem:[%s10632_s9 + $0x155] sm:$0x1]  ;;  %vm10952_vm2 = vmmov %vm10943_vm4 }
 0x3a4   : > { %v3926_v55 = vsel %vm10942_vm15, %v3925_v39, %v3924_v33  ;;  %v3916_v16 = vsel %vm10943_vm4, %v3915_v7, %v3914_v18  ;;  %v4964_v1 = vadd.f32 %v4962_v62, %v9747_v53  ;;  %v3967_v21 = vpack.c.bf16 %v3951_v6, %v3951_v6  ;;  %v3961_v53 = vld [vmem:[%s10632_s9 + $0xf5] sm:$0x1]  ;;  %v3966_v2 = vld [vmem:[%s10632_s9 + $0x16d] sm:$0x1]  ;;  %vm10953_vm7 = vmmov %vm10946_vm13 }
 0x3a5   : > { %v3928_v51 = vsel %vm10944_vm0, %v3927_v56, %v3926_v55  ;;  %v4966_v8 = vmul.f32 %v4956_v5, %v4956_v5  ;;  %v3968_v26 = vpack.c.bf16 %v3952_v50, %v3952_v50  ;;  %v3969_v7 = vpack.c.bf16 %v3953_v32, %v3953_v32  ;;  %vm10954_vm15 = vmmov %vm10950_vm1 }
 0x3a6   : > { %v3930_v12 = vsel %vm10945_vm12, %v3929_v4, %v3928_v51  ;;  %v4968_v28 = vmul.f32 %v4964_v1, %v4964_v1  ;;  %v3970_v58 = vpack.c.bf16 %v3954_v60, %v3954_v60  ;;  %v3971_v30 = vpack.c.bf16 %v3955_v41, %v3955_v41  ;;  %vm10955_vm4 = vmmov %vm10944_vm0 }
 0x3a7   : > { %v3931_v25 = vpack.c.b16 %v3930_v12, %v3916_v16  ;;  %v3972_v27 = vpack.c.bf16 %v3956_v52, %v3956_v52  ;;  %v3973_v14 = vpack.c.bf16 %v3957_v45, %v3957_v45  ;;  %v3974_v39 = vpack.c.bf16 %v3958_v54, %v3958_v54  ;;  %v4067_v54 = vld [vmem:[%s10632_s9 + $0x1e] sm:$0x1]  ;;  %vm10956_vm0 = vmmov %vm10952_vm2 }
 0x3a8   : > { %v3975_v56 = vpack.c.bf16 %v3959_v24, %v3959_v24  ;;  %v10202_v15 = vadd.f32 %v4968_v28, %v4966_v8  ;;  %v3976_v23 = vpack.c.bf16 %v3960_v61, %v3960_v61  ;;  %v3977_v4 = vpack.c.bf16 %v3961_v53, %v3961_v53  ;;  %vm10957_vm12 = vmmov %vm10950_vm1 }
 0x3a9   : > { %5957 = vmatmul.msk.bf16.vlgmr.msra.gmra.mxu3 %vm10946_vm13, %v3931_v25  ;;  %v3978_v35 = vpack.c.bf16 %v3962_v9, %v3962_v9  ;;  %v3979_v3 = vpack.c.bf16 %v3963_v42, %v3963_v42  ;;  %v3980_v47 = vpack.c.bf16 %v3964_v43, %v3964_v43  ;;  %v3981_v63 = vpack.c.bf16 %v3965_v38, %v3965_v38  ;;  %v4066_v42 = vld [vmem:[%s10632_s9 + $0x6] sm:$0x1]  ;;  %v4069_v43 = vld [vmem:[%s10632_s9 + $0x4e] sm:$0x1]  ;;  %vm10958_vm13 = vmmov %vm10948_vm3 }
 0x3aa   : > { %v3982_v40 = vpack.c.bf16 %v3966_v2, %v3966_v2  ;;  %v10206_v48 = vadd.f32 %v10202_v15, %v9916_v49  ;;  %v4002_v6 = vunpack.c.l.b16 %v3967_v21  ;;  %v4003_v36 = vunpack.c.l.b16 %v3968_v26  ;;  %v4068_v21 = vld [vmem:[%s10632_s9 + $0x36] sm:$0x1] }
 0x3ab   : > { %v4004_v33 = vunpack.c.l.b16 %v3969_v7  ;;  %v4005_v62 = vunpack.c.l.b16 %v3970_v58  ;;  %v4006_v50 = vunpack.c.l.b16 %v3971_v30  ;;  %v4007_v32 = vunpack.c.l.b16 %v3972_v27  ;;  %v4070_v27 = vld [vmem:[%s10632_s9 + $0x66] sm:$0x1] }
 0x3ac   : > { %v4008_v18 = vunpack.c.l.b16 %v3973_v14  ;;  %v4009_v55 = vunpack.c.l.b16 %v3974_v39  ;;  %v4010_v5 = vunpack.c.l.b16 %v3975_v56  ;;  %v4011_v60 = vunpack.c.l.b16 %v3976_v23  ;;  %v4071_v23 = vld [vmem:[%s10632_s9 + $0x7e] sm:$0x1] }
 0x3ad   : > { %v4012_v41 = vunpack.c.l.b16 %v3977_v4  ;;  %v4013_v24 = vunpack.c.l.b16 %v3978_v35  ;;  %v4014_v61 = vunpack.c.l.b16 %v3979_v3  ;;  %v4015_v16 = vunpack.c.l.b16 %v3980_v47  ;;  %v4072_v4 = vld [vmem:[%s10632_s9 + $0x96] sm:$0x1] }
 0x3ae   : > { %v4016_v51 = vunpack.c.l.b16 %v3981_v63  ;;  %v4017_v1 = vunpack.c.l.b16 %v3982_v40  ;;  %v4018_v52 = vrot.slane %v4003_v36, 7  ;;  %v4020_v45 = vrot.slane %v4004_v33, 6  ;;  %v4073_v63 = vld [vmem:[%s10632_s9 + $0xae] sm:$0x1]  ;;  %v4074_v40 = vld [vmem:[%s10632_s9 + $0xc6] sm:$0x1] }
 0x3af   : > { %v4022_v49 = vrot.slane %v4005_v62, 5  ;;  %v4024_v12 = vrot.slane %v4006_v50, 4  ;;  %v4026_v8 = vrot.slane %v4007_v32, 3  ;;  %v4028_v53 = vrot.slane %v4008_v18, 2  ;;  %v4075_v50 = vld [vmem:[%s10632_s9 + $0xde] sm:$0x1] }
 0x3b0   : > { %v4030_v9 = vrot.slane %v4009_v55, 1  ;;  %v4019_v26 = vsel %vm1033_vm8, %v4018_v52, %v4002_v6  ;;  %v4032_v7 = vrot.slane %v4011_v60, 7  ;;  %v4034_v25 = vrot.slane %v4012_v41, 6  ;;  %v4076_v32 = vld [vmem:[%s10632_s9 + $0xf6] sm:$0x1] }
 0x3b1   : > { %v4036_v28 = vrot.slane %v4013_v24, 5  ;;  %v4021_v38 = vsel %vm1036_vm9, %v4020_v45, %v4019_v26  ;;  %v4038_v2 = vrot.slane %v4014_v61, 4  ;;  %v4040_v58 = vrot.slane %v4015_v16, 3  ;;  %v4077_v18 = vld [vmem:[%s10632_s9 + $0x10e] sm:$0x1] }
 0x3b2   : > { %v4042_v30 = vrot.slane %v4016_v51, 2  ;;  %v4023_v14 = vsel %vm1039_vm10, %v4022_v49, %v4021_v38  ;;  %v4033_v39 = vsel %vm1033_vm8, %v4032_v7, %v4010_v5  ;;  %v4044_v56 = vrot.slane %v4017_v1, 1  ;;  %v4078_v24 = vld [vmem:[%s10632_s9 + $0x126] sm:$0x1]  ;;  %v4079_v61 = vld [vmem:[%s10632_s9 + $0x13e] sm:$0x1] }
 0x3b3   : > { %v4082_v35 = vpack.c.bf16 %v4066_v42, %v4066_v42  ;;  %v4025_v3 = vsel %vm1042_vm11, %v4024_v12, %v4023_v14  ;;  %v4035_v47 = vsel %vm1036_vm9, %v4034_v25, %v4033_v39  ;;  %v4083_v6 = vpack.c.bf16 %v4067_v54, %v4067_v54  ;;  %v4080_v16 = vld [vmem:[%s10632_s9 + $0x156] sm:$0x1]  ;;  %v4081_v49 = vld [vmem:[%s10632_s9 + $0x16e] sm:$0x1] }
 0x3b4   : > { %v4084_v36 = vpack.c.bf16 %v4068_v21, %v4068_v21  ;;  %v4027_v33 = vsel %vm10947_vm14, %v4026_v8, %v4025_v3  ;;  %v4037_v62 = vsel %vm1039_vm10, %v4036_v28, %v4035_v47  ;;  %v4085_v55 = vpack.c.bf16 %v4069_v43, %v4069_v43  ;;  %vm10959_vm14 = vmmov %vm10956_vm0 }
 0x3b5   : > { %v4086_v5 = vpack.c.bf16 %v4070_v27, %v4070_v27  ;;  %v4029_v60 = vsel %vm10948_vm3, %v4028_v53, %v4027_v33  ;;  %v4039_v41 = vsel %vm1042_vm11, %v4038_v2, %v4037_v62  ;;  %v4087_v51 = vpack.c.bf16 %v4071_v23, %v4071_v23  ;;  %vm10960_vm3 = vmmov %vm10953_vm7 }
 0x3b6   : > { %v4088_v1 = vpack.c.bf16 %v4072_v4, %v4072_v4  ;;  %v4031_v52 = vsel %vm10949_vm6, %v4030_v9, %v4029_v60  ;;  %v4041_v45 = vsel %vm10950_vm1, %v4040_v58, %v4039_v41  ;;  %v4089_v54 = vpack.c.bf16 %v4073_v63, %v4073_v63  ;;  %v5156_v58 = vpop.permute.xlu1 %5155  ;;  %vm10961_vm6 = vmmov %vm10950_vm1 }
 0x3b7   : > { %v4090_v21 = vpack.c.bf16 %v4074_v40, %v4074_v40  ;;  %v4043_v12 = vsel %vm10951_vm5, %v4042_v30, %v4041_v45  ;;  %v4091_v8 = vpack.c.bf16 %v4075_v50, %v4075_v50  ;;  %v4092_v53 = vpack.c.bf16 %v4076_v32, %v4076_v32  ;;  %vm10962_vm1 = vmmov %vm10955_vm4 }
 0x3b8   : > { %v4093_v42 = vpack.c.bf16 %v4077_v18, %v4077_v18  ;;  %v4045_v26 = vsel %vm10952_vm2, %v4044_v56, %v4043_v12  ;;  %v4094_v7 = vpack.c.bf16 %v4078_v24, %v4078_v24  ;;  %v4095_v25 = vpack.c.bf16 %v4079_v61, %v4079_v61  ;;  %vm10963_vm5 = vmmov %vm10956_vm0 }
 0x3b9   : > { %v4096_v28 = vpack.c.bf16 %v4080_v16, %v4080_v16  ;;  %v4046_v43 = vpack.c.b16 %v4045_v26, %v4031_v52  ;;  %v4097_v9 = vpack.c.bf16 %v4081_v49, %v4081_v49  ;;  %v4117_v38 = vunpack.c.l.b16 %v4082_v35  ;;  %v5170_v52 = vpop.permute.xlu0 %5169  ;;  %v6085_v26 = vld [vmem:[%s6501_s21 + $0x50] sm:$0xff]  ;;  %vm10964_vm2 = vmmov %vm10961_vm6 }
 0x3ba   : > { %v4118_v2 = vunpack.c.l.b16 %v4083_v6  ;;  %v4119_v27 = vunpack.c.l.b16 %v4084_v36  ;;  %v4120_v14 = vunpack.c.l.b16 %v4085_v55  ;;  %v4121_v39 = vunpack.c.l.b16 %v4086_v5 }
 0x3bb   : > { %v4122_v23 = vunpack.c.l.b16 %v4087_v51  ;;  %5958 = vmatmul.msk.bf16.vlgmr.msrb.gmra.mxu0 %vm10953_vm7, %v4046_v43  ;;  %v4123_v30 = vunpack.c.l.b16 %v4088_v1  ;;  %v4124_v4 = vunpack.c.l.b16 %v4089_v54  ;;  %v4125_v3 = vunpack.c.l.b16 %v4090_v21  ;;  %vm10965_vm7 = vmmov %vm10962_vm1 }
 0x3bc   : > { %v4126_v47 = vunpack.c.l.b16 %v4091_v8  ;;  %v4127_v63 = vunpack.c.l.b16 %v4092_v53  ;;  %v4128_v56 = vunpack.c.l.b16 %v4093_v42  ;;  %v4129_v40 = vunpack.c.l.b16 %v4094_v7  ;;  %v6084_v53 = vld [vmem:[%s6495_s28 + $0x50] sm:$0xff] }
 0x3bd   : > { %v4130_v33 = vunpack.c.l.b16 %v4095_v25  ;;  %v4131_v62 = vunpack.c.l.b16 %v4096_v28  ;;  %v4132_v50 = vunpack.c.l.b16 %v4097_v9  ;;  %v4133_v32 = vrot.slane %v4118_v2, 7 }
 0x3be   : > { %v4135_v35 = vrot.slane %v4119_v27, 6  ;;  %v4137_v6 = vrot.slane %v4120_v14, 5  ;;  %v4139_v18 = vrot.slane %v4121_v39, 4  ;;  %v4141_v36 = vrot.slane %v4122_v23, 3  ;;  %v5201_v39 = vld [vmem:[%s10632_s9 + $0x7] sm:$0x1] }
 0x3bf   : > { %v4143_v55 = vrot.slane %v4123_v30, 2  ;;  %v4134_v5 = vsel %vm1033_vm8, %v4133_v32, %v4117_v38  ;;  %v4145_v60 = vrot.slane %v4124_v4, 1  ;;  %v4147_v41 = vrot.slane %v4126_v47, 7  ;;  %v5175_v38 = vpop.permute.xlu1 %5174 }
 0x3c0   : > { %v4149_v24 = vrot.slane %v4127_v63, 6  ;;  %v4136_v61 = vsel %vm1036_vm9, %v4135_v35, %v4134_v5  ;;  %v4151_v16 = vrot.slane %v4128_v56, 5  ;;  %v4153_v51 = vrot.slane %v4129_v40, 4  ;;  %v5203_v63 = vld [vmem:[%s10632_s9 + $0x37] sm:$0x1] }
 0x3c1   : > { %v4155_v1 = vrot.slane %v4130_v33, 3  ;;  %v4138_v45 = vsel %vm1039_vm10, %v4137_v6, %v4136_v61  ;;  %v4148_v49 = vsel %vm1033_vm8, %v4147_v41, %v4125_v3  ;;  %v4157_v54 = vrot.slane %v4131_v62, 2  ;;  %v5205_v40 = vld [vmem:[%s10632_s9 + $0x67] sm:$0x1]  ;;  %v5208_v35 = vld [vmem:[%s10632_s9 + $0xaf] sm:$0x1] }
 0x3c2   : > { %v4159_v21 = vrot.slane %v4132_v50, 1  ;;  %v4140_v12 = vsel %vm1042_vm11, %v4139_v18, %v4138_v45  ;;  %v4150_v8 = vsel %vm1036_vm9, %v4149_v24, %v4148_v49  ;;  %v5163_v42 = vmul.f32 %v6084_v53, %v5156_v58  ;;  %v5209_v6 = vld [vmem:[%s10632_s9 + $0xc7] sm:$0x1]  ;;  %v5210_v18 = vld [vmem:[%s10632_s9 + $0xdf] sm:$0x1] }
 0x3c3   : > { %v5181_v7 = vmul.f32 %v6085_v26, %v5156_v58  ;;  %v4142_v25 = vsel %vm10954_vm15, %v4141_v36, %v4140_v12  ;;  %v4152_v28 = vsel %vm1039_vm10, %v4151_v16, %v4150_v8  ;;  %v4971_v43 = vadd.f32 %v10052_v34, %v9711_v11  ;;  %v5212_v41 = vld [vmem:[%s10632_s9 + $0x10f] sm:$0x1]  ;;  %v5213_v24 = vld [vmem:[%s10632_s9 + $0x127] sm:$0x1]  ;;  %vm10966_vm15 = vmmov %vm10956_vm0 }
 0x3c4   : > { %v5177_v9 = vmul.f32 %v6085_v26, %v5170_v52  ;;  %v4144_v2 = vsel %vm10955_vm4, %v4143_v55, %v4142_v25  ;;  %v4154_v27 = vsel %vm1042_vm11, %v4153_v51, %v4152_v28  ;;  %v5165_v14 = vadd.f32 %v5163_v42, %v5143_v17  ;;  %v5216_v8 = vld [vmem:[%s10632_s9 + $0x16f] sm:$0x1]  ;;  %vm10967_vm4 = vmmov %vm10960_vm3 }
 0x3c5   : > { %v5183_v58 = vadd.f32 %v5181_v7, %v10103_v13  ;;  %v4146_v23 = vsel %vm10956_vm0, %v4145_v60, %v4144_v2  ;;  %v4156_v11 = vsel %vm10957_vm12, %v4155_v1, %v4154_v27  ;;  %v5185_v30 = vmul.f32 %v6084_v53, %v5170_v52  ;;  %v6086_v13 = vld [vmem:[%s6501_s21 + $0x58] sm:$0xff]  ;;  %v5211_v60 = vld [vmem:[%s10632_s9 + $0xf7] sm:$0x1]  ;;  %vm10968_vm0 = vmmov %vm10964_vm2  ;;  %s483_s21 = scalar_lea.vmem [#allocation2], %s5880_s13 }
 0x3c6   : > { %v5166_v4 = vadd.f32 %v9834_v29, %v5144_v44  ;;  %v4158_v20 = vsel %vm10958_vm13, %v4157_v54, %v4156_v11  ;;  %v5179_v17 = vsub.f32 %v5165_v14, %v5177_v9  ;;  %v5178_v3 = vmul.f32 %v6086_v13, %v5175_v38  ;;  %v5204_v29 = vld [vmem:[%s10632_s9 + $0x4f] sm:$0x1]  ;;  %v6087_v44 = vld [vmem:[%s6495_s28 + $0x58] sm:$0xff]  ;;  %v5215_v52 = vld [vmem:[%s10632_s9 + $0x157] sm:$0x1]  ;;  %s5735_s4 = sshll.u32 %s483_s21, 4  ;;  %s5736_s4 = int_to_ptr.vmem [resolvable:$true] %s5735_s4 }
 0x3c7   : > { %v5184_v47 = vadd.f32 %v9839_v37, %v10155_v10  ;;  %v4160_v0 = vsel %vm10959_vm14, %v4159_v21, %v4158_v20  ;;  %v5187_v22 = vadd.f32 %v5185_v30, %v5183_v58  ;;  %v5186_v56 = vmul.f32 %v6087_v44, %v5175_v38  ;;  %v5206_v37 = vld [vmem:[%s10632_s9 + $0x7f] sm:$0x1]  ;;  %v5207_v10 = vld [vmem:[%s10632_s9 + $0x97] sm:$0x1]  ;;  %vm10969_vm12 = vmmov %vm10962_vm1 }
 0x3c8   : > { %v5217_v33 = vpack.c.bf16 %v5201_v39, %v5201_v39  ;;  %v4161_v62 = vpack.c.b16 %v4160_v0, %v4146_v23  ;;  %v5189_v50 = vmul.f32 %v5179_v17, %v5179_v17  ;;  %v5180_v32 = vsub.f32 %v5166_v4, %v5178_v3  ;;  %v5214_v1 = vld [vmem:[%s10632_s9 + $0x13f] sm:$0x1]  ;;  %vm10970_vm13 = vmmov %vm10963_vm5 }
 0x3c9   : > { %v5218_v36 = vpack.c.bf16 %v5202_v57, %v5202_v57  ;;  %v5191_v55 = vmul.f32 %v5187_v22, %v5187_v22  ;;  %v5188_v5 = vadd.f32 %v5186_v56, %v5184_v47  ;;  %v5219_v61 = vpack.c.bf16 %v5203_v63, %v5203_v63  ;;  %vm10971_vm14 = vmmov %vm10968_vm0 }
 0x3ca   : > { %v5220_v16 = vpack.c.bf16 %v5204_v29, %v5204_v29  ;;  %5959 = vmatmul.msk.bf16.vlgmr.msrb.gmra.mxu1 %vm10960_vm3, %v4161_v62  ;;  %v5190_v51 = vmul.f32 %v5180_v32, %v5180_v32  ;;  %v5221_v45 = vpack.c.bf16 %v5205_v40, %v5205_v40  ;;  %v5222_v49 = vpack.c.bf16 %v5206_v37, %v5206_v37  ;;  %vm10972_vm3 = vmmov %vm10962_vm1 }
 0x3cb   : > { %v5223_v54 = vpack.c.bf16 %v5207_v10, %v5207_v10  ;;  %v5193_v21 = vadd.f32 %v5191_v55, %v5189_v50  ;;  %v5192_v12 = vmul.f32 %v5188_v5, %v5188_v5  ;;  %v5224_v53 = vpack.c.bf16 %v5208_v35, %v5208_v35 }
 0x3cc   : > { %v5225_v42 = vpack.c.bf16 %v5209_v6, %v5209_v6  ;;  %v5226_v26 = vpack.c.bf16 %v5210_v18, %v5210_v18  ;;  %v5227_v7 = vpack.c.bf16 %v5211_v60, %v5211_v60  ;;  %v5228_v25 = vpack.c.bf16 %v5212_v41, %v5212_v41  ;;  %v10367_v18 = vld [vmem:[%s10632_s9 + $0x8] sm:$0x1]  ;;  %v5317_v41 = vld [vmem:[%s10632_s9 + $0x20] sm:$0x1] }
 0x3cd   : > { %v5229_v28 = vpack.c.bf16 %v5213_v24, %v5213_v24  ;;  %v5195_v9 = vadd.f32 %v5193_v21, %v4971_v43  ;;  %v5194_v38 = vadd.f32 %v5192_v12, %v5190_v51  ;;  %v5230_v2 = vpack.c.bf16 %v5214_v1, %v5214_v1  ;;  %v5318_v12 = vld [vmem:[%s10632_s9 + $0x38] sm:$0x1] }
 0x3ce   : > { %v5231_v27 = vpack.c.bf16 %v5215_v52, %v5215_v52  ;;  %v5232_v14 = vpack.c.bf16 %v5216_v8, %v5216_v8  ;;  %v5252_v58 = vunpack.c.l.b16 %v5217_v33  ;;  %v5253_v39 = vunpack.c.l.b16 %v5218_v36  ;;  %v5319_v8 = vld [vmem:[%s10632_s9 + $0x50] sm:$0x1] }
 0x3cf   : > { %v5254_v23 = vunpack.c.l.b16 %v5219_v61  ;;  %v5197_v11 = vadd.f32 1e-08, %v5195_v9  ;;  %v5196_v30 = vadd.f32 %v5194_v38, %v10206_v48  ;;  %v5255_v4 = vunpack.c.l.b16 %v5220_v16  ;;  %v5321_v9 = vld [vmem:[%s10632_s9 + $0x80] sm:$0x1] }
 0x3d0   : > { %v5256_v57 = vunpack.c.l.b16 %v5221_v45  ;;  %v5257_v20 = vunpack.c.l.b16 %v5222_v49  ;;  %v10351_v17 = vunpack.c.l.b16 %v5223_v54  ;;  %v10353_v13 = vunpack.c.l.b16 %v5224_v53 }
 0x3d1   : > { %v5260_v3 = vunpack.c.l.b16 %v5225_v42  ;;  %6042 = vrcp.f32 %v5197_v11  ;;  %v5198_v43 = vadd.f32 1e-08, %v5196_v30  ;;  %v5261_v47 = vunpack.c.l.b16 %v5226_v26  ;;  %v5324_v11 = vld [vmem:[%s10632_s9 + $0xc8] sm:$0x1] }
 0x3d2   : > { %v5262_v63 = vunpack.c.l.b16 %v5227_v7  ;;  %v5263_v29 = vunpack.c.l.b16 %v5228_v25  ;;  %v5264_v0 = vunpack.c.l.b16 %v5229_v28  ;;  %v10355_v22 = vunpack.c.l.b16 %v5230_v2  ;;  %v5320_v28 = vld [vmem:[%s10632_s9 + $0x68] sm:$0x1] }
 0x3d3   : > { %v10357_v44 = vunpack.c.l.b16 %v5231_v27  ;;  %6044 = vrcp.f32 %v5198_v43  ;;  %v10359_v48 = vunpack.c.l.b16 %v5232_v14  ;;  %v5268_v56 = vrot.slane %v5253_v39, 7 }
 0x3d4   : > { %v5270_v40 = vrot.slane %v5254_v23, 6  ;;  %v5272_v37 = vrot.slane %v5255_v4, 5  ;;  %v5274_v10 = vrot.slane %v5256_v57, 4  ;;  %v5276_v33 = vrot.slane %v5257_v20, 3  ;;  %v5323_v23 = vld [vmem:[%s10632_s9 + $0xb0] sm:$0x1] }
 0x3d5   : > { %v5278_v62 = vrot.slane %v10351_v17, 2  ;;  %v5269_v50 = vsel %vm1033_vm8, %v5268_v56, %v5252_v58  ;;  %v5280_v32 = vrot.slane %v10353_v13, 1  ;;  %v5282_v35 = vrot.slane %v5261_v47, 7  ;;  %v5325_v57 = vld [vmem:[%s10632_s9 + $0xe0] sm:$0x1] }
 0x3d6   : > { %v5284_v6 = vrot.slane %v5262_v63, 6  ;;  %v5271_v36 = vsel %vm1036_vm9, %v5270_v40, %v5269_v50  ;;  %v5286_v55 = vrot.slane %v5263_v29, 5  ;;  %v5288_v5 = vrot.slane %v5264_v0, 4  ;;  %v5326_v20 = vld [vmem:[%s10632_s9 + $0xf8] sm:$0x1] }
 0x3d7   : > { %v5290_v60 = vrot.slane %v10355_v22, 3  ;;  %v6043_v24 = vpop.eup %6042  ;;  %v5273_v61 = vsel %vm1039_vm10, %v5272_v37, %v5271_v36  ;;  %v5283_v16 = vsel %vm1033_vm8, %v5282_v35, %v5260_v3  ;;  %v5292_v51 = vrot.slane %v10357_v44, 2  ;;  %v5327_v17 = vld [vmem:[%s10632_s9 + $0x110] sm:$0x1]  ;;  %v5328_v63 = vld [vmem:[%s10632_s9 + $0x128] sm:$0x1] }
 0x3d8   : > { %v5294_v1 = vrot.slane %v10359_v48, 1  ;;  %v5578_v52 = vmul.f32 %v6043_v24, %v5193_v21  ;;  %v5233_v45 = vmul.f32 %v6043_v24, %v10904_v46  ;;  %v5348_v49 = vmul.f32 %v6043_v24, %v9695_v31  ;;  %v5329_v29 = vld [vmem:[%s10632_s9 + $0x140] sm:$0x1]  ;;  %v5330_v0 = vld [vmem:[%s10632_s9 + $0x158] sm:$0x1] }
 0x3d9   : > { %v5463_v54 = vmul.f32 %v6043_v24, %v10052_v34  ;;  %v6045_v53 = vpop.eup %6044  ;;  %v5275_v42 = vsel %vm1042_vm11, %v5274_v10, %v5273_v61  ;;  %v5285_v26 = vsel %vm1036_vm9, %v5284_v6, %v5283_v16  ;;  %v5332_v46 = vpack.c.bf16 %v10367_v18, %v10367_v18  ;;  %v5331_v48 = vld [vmem:[%s10632_s9 + $0x170] sm:$0x1] }
 0x3da   : > { %v5333_v21 = vpack.c.bf16 %v5317_v41, %v5317_v41  ;;  %v5579_v31 = vmul.f32 %v6045_v53, %v5194_v38  ;;  %v5234_v34 = vmul.f32 %v6045_v53, %v10918_v19  ;;  %v5349_v7 = vmul.f32 %v6045_v53, %v9912_v59  ;;  %v5322_v19 = vld [vmem:[%s10632_s9 + $0x98] sm:$0x1] }
 0x3db   : > { %v5464_v25 = vmul.f32 %v6045_v53, %v10202_v15  ;;  %v5277_v2 = vsel %vm10961_vm6, %v5276_v33, %v5275_v42  ;;  %v5287_v27 = vsel %vm1039_vm10, %v5286_v55, %v5285_v26  ;;  %v5334_v38 = vpack.c.bf16 %v5318_v12, %v5318_v12  ;;  %vm10973_vm6 = vmmov %vm10963_vm5 }
 0x3dc   : > { %v5335_v59 = vpack.c.bf16 %v5319_v8, %v5319_v8  ;;  %v5235_v14 = vpack.c.bf16 %v5234_v34, %v5233_v45  ;;  %v5350_v15 = vpack.c.bf16 %v5349_v7, %v5348_v49  ;;  %v5580_v39 = vpack.c.bf16 %v5579_v31, %v5578_v52 }
 0x3dd   : > { %v5465_v58 = vpack.c.bf16 %v5464_v25, %v5463_v54  ;;  %v5279_v30 = vsel %vm10962_vm1, %v5278_v62, %v5277_v2  ;;  %v5289_v4 = vsel %vm1042_vm11, %v5288_v5, %v5287_v27  ;;  %v5336_v13 = vpack.c.bf16 %v5320_v28, %v5320_v28  ;;  %v5431_v25 = vld [vmem:[%s10632_s9 + $0x9] sm:$0x1]  ;;  %vm10974_vm1 = vmmov %vm10967_vm4 }
 0x3de   : > { %v5337_v3 = vpack.c.bf16 %v5321_v9, %v5321_v9  ;;  %5307 = vmatpush.bf16.msrb.mxu2 %v5235_v14  ;;  %5422 = vmatpush.bf16.msrb.mxu3 %v5350_v15  ;;  %v5281_v43 = vsel %vm10963_vm5, %v5280_v32, %v5279_v30  ;;  %v5291_v47 = vsel %vm10964_vm2, %v5290_v60, %v5289_v4  ;;  %v5368_v37 = vunpack.c.l.b16 %v5333_v21  ;;  %v5435_v4 = vld [vmem:[%s10632_s9 + $0x69] sm:$0x1]  ;;  %vm10975_vm5 = vmmov %vm10968_vm0 }
 0x3df   : > { %v5338_v22 = vpack.c.bf16 %v5322_v19, %v5322_v19  ;;  %5537 = vmatpush.bf16.msra.mxu0 %v5465_v58  ;;  %5652 = vmatpush.bf16.msra.mxu1 %v5580_v39  ;;  %v5293_v44 = vsel %vm10965_vm7, %v5292_v51, %v5291_v47  ;;  %v5339_v56 = vpack.c.bf16 %v5323_v23, %v5323_v23  ;;  %v5369_v55 = vunpack.c.l.b16 %v5334_v38  ;;  %v5432_v19 = vld [vmem:[%s10632_s9 + $0x21] sm:$0x1]  ;;  %v5433_v58 = vld [vmem:[%s10632_s9 + $0x39] sm:$0x1]  ;;  %v5434_v39 = vld [vmem:[%s10632_s9 + $0x51] sm:$0x1] }
 0x3e0   : > { %v5340_v40 = vpack.c.bf16 %v5324_v11, %v5324_v11  ;;  %v5295_v10 = vsel %vm10966_vm15, %v5294_v1, %v5293_v44  ;;  %v5341_v33 = vpack.c.bf16 %v5325_v57, %v5325_v57  ;;  %v5342_v62 = vpack.c.bf16 %v5326_v20, %v5326_v20  ;;  %v5436_v57 = vld [vmem:[%s10632_s9 + $0x81] sm:$0x1]  ;;  %v5442_v44 = vld [vmem:[%s10632_s9 + $0x111] sm:$0x1]  ;;  %vm10976_vm2 = vmmov %vm10972_vm3 }
 0x3e1   : > { %v5343_v50 = vpack.c.bf16 %v5327_v17, %v5327_v17  ;;  %v5296_v32 = vpack.c.b16 %v5295_v10, %v5281_v43  ;;  %v5344_v35 = vpack.c.bf16 %v5328_v63, %v5328_v63  ;;  %v5345_v6 = vpack.c.bf16 %v5329_v29, %v5329_v29  ;;  %v5438_v43 = vld [vmem:[%s10632_s9 + $0xb1] sm:$0x1]  ;;  %v5439_v10 = vld [vmem:[%s10632_s9 + $0xc9] sm:$0x1]  ;;  %vm10977_vm7 = vmmov %vm10968_vm0 }
 0x3e2   : > { %v5346_v18 = vpack.c.bf16 %v5330_v0, %v5330_v0  ;;  %v5347_v36 = vpack.c.bf16 %v5331_v48, %v5331_v48  ;;  %v5370_v5 = vunpack.c.l.b16 %v5335_v59  ;;  %v5371_v60 = vunpack.c.l.b16 %v5336_v13  ;;  %v5440_v0 = vld [vmem:[%s10632_s9 + $0xe1] sm:$0x1]  ;;  %vm10978_vm15 = vmmov %vm10973_vm6 }
 0x3e3   : > { %5960 = vmatmul.msk.bf16.vlgmr.msrb.gmra.mxu2 %vm10967_vm4, %v5296_v32  ;;  %v5367_v41 = vunpack.c.l.b16 %v5332_v46  ;;  %v5372_v24 = vunpack.c.l.b16 %v5337_v3  ;;  %v5373_v61 = vunpack.c.l.b16 %v5338_v22  ;;  %v5374_v16 = vunpack.c.l.b16 %v5339_v56  ;;  %v5437_v3 = vld [vmem:[%s10632_s9 + $0x99] sm:$0x1]  ;;  %vm10979_vm4 = vmmov %vm10976_vm2 }
 0x3e4   : > { %v5376_v51 = vunpack.c.l.b16 %v5341_v33  ;;  %v5377_v52 = vunpack.c.l.b16 %v5342_v62  ;;  %v5378_v1 = vunpack.c.l.b16 %v5343_v50  ;;  %v5379_v45 = vunpack.c.l.b16 %v5344_v35  ;;  %v5441_v22 = vld [vmem:[%s10632_s9 + $0xf9] sm:$0x1]  ;;  %v5443_v33 = vld [vmem:[%s10632_s9 + $0x129] sm:$0x1]  ;;  %v5444_v62 = vld [vmem:[%s10632_s9 + $0x141] sm:$0x1] }
 0x3e5   : > { %v5375_v49 = vunpack.c.l.b16 %v5340_v40  ;;  %v5380_v54 = vunpack.c.l.b16 %v5345_v6  ;;  %v5381_v12 = vunpack.c.l.b16 %v5346_v18  ;;  %v5383_v8 = vrot.slane %v5368_v37, 7  ;;  %v5445_v6 = vld [vmem:[%s10632_s9 + $0x159] sm:$0x1] }
 0x3e6   : > { %v5382_v53 = vunpack.c.l.b16 %v5347_v36  ;;  %v5385_v42 = vrot.slane %v5369_v55, 6  ;;  %v5387_v26 = vrot.slane %v5370_v5, 5  ;;  %v5389_v21 = vrot.slane %v5371_v60, 4  ;;  %v5446_v60 = vld [vmem:[%s10632_s9 + $0x171] sm:$0x1] }
 0x3e7   : > { %v5384_v31 = vsel %vm1033_vm8, %v5383_v8, %v5367_v41  ;;  %v5391_v34 = vrot.slane %v5372_v24, 3  ;;  %v5393_v7 = vrot.slane %v5373_v61, 2  ;;  %v5397_v46 = vrot.slane %v5376_v51, 7 }
 0x3e8   : > { %v5386_v28 = vsel %vm1036_vm9, %v5385_v42, %v5384_v31  ;;  %v5399_v9 = vrot.slane %v5377_v52, 6  ;;  %v5401_v2 = vrot.slane %v5378_v1, 5  ;;  %v5403_v27 = vrot.slane %v5379_v45, 4 }
 0x3e9   : > { %v5388_v38 = vsel %vm1039_vm10, %v5387_v26, %v5386_v28  ;;  %v5395_v59 = vrot.slane %v5374_v16, 1  ;;  %v5398_v14 = vsel %vm1033_vm8, %v5397_v46, %v5375_v49  ;;  %v5405_v15 = vrot.slane %v5380_v54, 3 }
 0x3ea   : > { %v5390_v23 = vsel %vm1042_vm11, %v5389_v21, %v5388_v38  ;;  %v5400_v11 = vsel %vm1036_vm9, %v5399_v9, %v5398_v14  ;;  %v5407_v30 = vrot.slane %v5381_v12, 2  ;;  %v5409_v13 = vrot.slane %v5382_v53, 1 }
 0x3eb   : > { %v5392_v20 = vsel %vm10968_vm0, %v5391_v34, %v5390_v23  ;;  %v5402_v17 = vsel %vm1039_vm10, %v5401_v2, %v5400_v11  ;;  %v5447_v47 = vpack.c.bf16 %v5431_v25, %v5431_v25  ;;  %v5448_v48 = vpack.c.bf16 %v5432_v19, %v5432_v19  ;;  %vm10980_vm0 = vmmov %vm10973_vm6 }
 0x3ec   : > { %v5394_v63 = vsel %vm10969_vm12, %v5393_v7, %v5392_v20  ;;  %v5404_v29 = vsel %vm1042_vm11, %v5403_v27, %v5402_v17  ;;  %v5449_v56 = vpack.c.bf16 %v5433_v58, %v5433_v58  ;;  %v5450_v50 = vpack.c.bf16 %v5434_v39, %v5434_v39  ;;  %vm10981_vm12 = vmmov %vm10974_vm1 }
 0x3ed   : > { %v5396_v40 = vsel %vm10970_vm13, %v5395_v59, %v5394_v63  ;;  %v5406_v37 = vsel %vm10971_vm14, %v5405_v15, %v5404_v29  ;;  %v5451_v32 = vpack.c.bf16 %v5435_v4, %v5435_v4  ;;  %v5452_v18 = vpack.c.bf16 %v5436_v57, %v5436_v57  ;;  %v5546_v4 = vld [vmem:[%s10632_s9 + $0xa] sm:$0x1]  ;;  %vm10982_vm13 = vmmov %vm10975_vm5 }
 0x3ee   : > { %v5408_v35 = vsel %vm10972_vm3, %v5407_v30, %v5406_v37  ;;  %v5453_v36 = vpack.c.bf16 %v5437_v3, %v5437_v3  ;;  %v5454_v55 = vpack.c.bf16 %v5438_v43, %v5438_v43  ;;  %v5456_v41 = vpack.c.bf16 %v5440_v0, %v5440_v0  ;;  %v5547_v3 = vld [vmem:[%s10632_s9 + $0x22] sm:$0x1]  ;;  %v5548_v43 = vld [vmem:[%s10632_s9 + $0x3a] sm:$0x1]  ;;  %vm10983_vm14 = vmmov %vm10976_vm2 }
 0x3ef   : > { %v5410_v5 = vsel %vm10973_vm6, %v5409_v13, %v5408_v35  ;;  %v5457_v24 = vpack.c.bf16 %v5441_v22, %v5441_v22  ;;  %v5458_v61 = vpack.c.bf16 %v5442_v44, %v5442_v44  ;;  %v5455_v51 = vpack.c.bf16 %v5439_v10, %v5439_v10  ;;  %v5549_v22 = vld [vmem:[%s10632_s9 + $0x52] sm:$0x1]  ;;  %v5550_v44 = vld [vmem:[%s10632_s9 + $0x6a] sm:$0x1]  ;;  %v5551_v37 = vld [vmem:[%s10632_s9 + $0x82] sm:$0x1] }
 0x3f0   : > { %v5411_v16 = vpack.c.b16 %v5410_v5, %v5396_v40  ;;  %v5459_v52 = vpack.c.bf16 %v5443_v33, %v5443_v33  ;;  %v5460_v1 = vpack.c.bf16 %v5444_v62, %v5444_v62  ;;  %v5461_v45 = vpack.c.bf16 %v5445_v6, %v5445_v6  ;;  %v5552_v10 = vld [vmem:[%s10632_s9 + $0x9a] sm:$0x1]  ;;  %v5555_v35 = vld [vmem:[%s10632_s9 + $0xe2] sm:$0x1]  ;;  %vm10984_vm3 = vmmov %vm10980_vm0 }
 0x3f1   : > { %v5483_v49 = vunpack.c.l.b16 %v5448_v48  ;;  %v5484_v54 = vunpack.c.l.b16 %v5449_v56  ;;  %v5485_v12 = vunpack.c.l.b16 %v5450_v50  ;;  %v5462_v8 = vpack.c.bf16 %v5446_v60, %v5446_v60  ;;  %v5556_v6 = vld [vmem:[%s10632_s9 + $0xfa] sm:$0x1]  ;;  %v5554_v60 = vld [vmem:[%s10632_s9 + $0xca] sm:$0x1]  ;;  %vm10985_vm6 = vmmov %vm10975_vm5 }
 0x3f2   : > { %5961 = vmatmul.msk.bf16.vlgmr.msrb.gmra.mxu3 %vm10974_vm1, %v5411_v16  ;;  %v5482_v53 = vunpack.c.l.b16 %v5447_v47  ;;  %v5486_v42 = vunpack.c.l.b16 %v5451_v32  ;;  %v5487_v26 = vunpack.c.l.b16 %v5452_v18  ;;  %v5488_v21 = vunpack.c.l.b16 %v5453_v36  ;;  %v5553_v32 = vld [vmem:[%s10632_s9 + $0xb2] sm:$0x1]  ;;  %vm10987_vm1 = vmmov %vm10980_vm0 }
 0x3f3   : > { %v5491_v31 = vunpack.c.l.b16 %v5456_v41  ;;  %v5492_v34 = vunpack.c.l.b16 %v5457_v24  ;;  %v5493_v7 = vunpack.c.l.b16 %v5458_v61  ;;  %v5489_v46 = vunpack.c.l.b16 %v5454_v55  ;;  %v5557_v41 = vld [vmem:[%s10632_s9 + $0x112] sm:$0x1]  ;;  %v5558_v24 = vld [vmem:[%s10632_s9 + $0x12a] sm:$0x1] }
 0x3f4   : > { %v5490_v25 = vunpack.c.l.b16 %v5455_v51  ;;  %v5494_v28 = vunpack.c.l.b16 %v5459_v52  ;;  %v5495_v9 = vunpack.c.l.b16 %v5460_v1  ;;  %v5496_v2 = vunpack.c.l.b16 %v5461_v45  ;;  %v5559_v1 = vld [vmem:[%s10632_s9 + $0x142] sm:$0x1]  ;;  %v5560_v45 = vld [vmem:[%s10632_s9 + $0x15a] sm:$0x1] }
 0x3f5   : > { %v5498_v27 = vrot.slane %v5483_v49, 7  ;;  %v5500_v19 = vrot.slane %v5484_v54, 6  ;;  %v5502_v38 = vrot.slane %v5485_v12, 5  ;;  %v5497_v59 = vunpack.c.l.b16 %v5462_v8  ;;  %v5561_v8 = vld [vmem:[%s10632_s9 + $0x172] sm:$0x1] }
 0x3f6   : > { %v5504_v14 = vrot.slane %v5486_v42, 4  ;;  %v5506_v15 = vrot.slane %v5487_v26, 3  ;;  %v5512_v58 = vrot.slane %v5491_v31, 7  ;;  %v5514_v23 = vrot.slane %v5492_v34, 6 }
 0x3f7   : > { %v5499_v39 = vsel %vm1033_vm8, %v5498_v27, %v5482_v53  ;;  %v5516_v11 = vrot.slane %v5493_v7, 5  ;;  %v5518_v30 = vrot.slane %v5494_v28, 4  ;;  %v5508_v20 = vrot.slane %v5488_v21, 2 }
 0x3f8   : > { %v5501_v57 = vsel %vm1036_vm9, %v5500_v19, %v5499_v39  ;;  %v5513_v17 = vsel %vm1033_vm8, %v5512_v58, %v5490_v25  ;;  %v5520_v13 = vrot.slane %v5495_v9, 3  ;;  %v5510_v63 = vrot.slane %v5489_v46, 1 }
 0x3f9   : > { %v5503_v47 = vsel %vm1039_vm10, %v5502_v38, %v5501_v57  ;;  %v5515_v29 = vsel %vm1036_vm9, %v5514_v23, %v5513_v17  ;;  %v5522_v0 = vrot.slane %v5496_v2, 2  ;;  %v5524_v40 = vrot.slane %v5497_v59, 1 }
 0x3fa   : > { %v5505_v48 = vsel %vm1042_vm11, %v5504_v14, %v5503_v47  ;;  %v5517_v56 = vsel %vm1039_vm10, %v5516_v11, %v5515_v29  ;;  %v5562_v33 = vpack.c.bf16 %v5546_v4, %v5546_v4  ;;  %v5563_v18 = vpack.c.bf16 %v5547_v3, %v5547_v3 }
 0x3fb   : > { %v5507_v62 = vsel %vm10975_vm5, %v5506_v15, %v5505_v48  ;;  %v5519_v50 = vsel %vm1042_vm11, %v5518_v30, %v5517_v56  ;;  %v5564_v36 = vpack.c.bf16 %v5548_v43, %v5548_v43  ;;  %v5565_v61 = vpack.c.bf16 %v5549_v22, %v5549_v22 }
 0x3fc   : > { %v5509_v55 = vsel %vm10976_vm2, %v5508_v20, %v5507_v62  ;;  %v5521_v5 = vsel %vm10977_vm7, %v5520_v13, %v5519_v50  ;;  %v5566_v16 = vpack.c.bf16 %v5550_v44, %v5550_v44  ;;  %v5567_v49 = vpack.c.bf16 %v5551_v37, %v5551_v37 }
 0x3fd   : > { %v5511_v51 = vsel %vm10978_vm15, %v5510_v63, %v5509_v55  ;;  %v5523_v52 = vsel %vm10979_vm4, %v5522_v0, %v5521_v5  ;;  %v5568_v54 = vpack.c.bf16 %v5552_v10, %v5552_v10  ;;  %v5569_v53 = vpack.c.bf16 %v5553_v32, %v5553_v32 }
 0x3fe   : > { %v5525_v12 = vsel %vm10980_vm0, %v5524_v40, %v5523_v52  ;;  %v5571_v42 = vpack.c.bf16 %v5555_v35, %v5555_v35  ;;  %v5572_v26 = vpack.c.bf16 %v5556_v6, %v5556_v6  ;;  %v5570_v31 = vpack.c.bf16 %v5554_v60, %v5554_v60 }
 0x3ff   : > { %v5526_v21 = vpack.c.b16 %v5525_v12, %v5511_v51  ;;  %v5573_v34 = vpack.c.bf16 %v5557_v41, %v5557_v41  ;;  %v5574_v7 = vpack.c.bf16 %v5558_v24, %v5558_v24  ;;  %v5575_v46 = vpack.c.bf16 %v5559_v1, %v5559_v1  ;;  %v1159_v51 = vpop.f32.mrf.mxu2  ;;  %v1620_v1 = vpop.f32.mrf.mxu3 }
 0x400   : > { %v5576_v25 = vpack.c.bf16 %v5560_v45, %v5560_v45  ;;  %v5598_v28 = vunpack.c.l.b16 %v5563_v18  ;;  %v5599_v9 = vunpack.c.l.b16 %v5564_v36  ;;  %v5577_v2 = vpack.c.bf16 %v5561_v8, %v5561_v8  ;;  %v2083_v45 = vpop.f32.mrf.mxu0 }
 0x401   : > { %5962 = vmatmul.msk.bf16.vlgmr.msra.gmra.mxu0 %vm10981_vm12, %v5526_v21  ;;  %v5600_v27 = vunpack.c.l.b16 %v5565_v61  ;;  %v5601_v19 = vunpack.c.l.b16 %v5566_v16  ;;  %v5602_v38 = vunpack.c.l.b16 %v5567_v49  ;;  %v5597_v59 = vunpack.c.l.b16 %v5562_v33  ;;  %v1081_v16 = vpop.f32.mrf.mxu1 }
 0x402   : > { %v5603_v14 = vunpack.c.l.b16 %v5568_v54  ;;  %v5606_v15 = vunpack.c.l.b16 %v5571_v42  ;;  %v5607_v58 = vunpack.c.l.b16 %v5572_v26  ;;  %v5604_v39 = vunpack.c.l.b16 %v5569_v53 }
 0x403   : > { %v5605_v23 = vunpack.c.l.b16 %v5570_v31  ;;  %v5608_v11 = vunpack.c.l.b16 %v5573_v34  ;;  %v5609_v30 = vunpack.c.l.b16 %v5574_v7  ;;  %v5610_v4 = vunpack.c.l.b16 %v5575_v46 }
 0x404   : > { %v5613_v57 = vrot.slane %v5598_v28, 7  ;;  %v5615_v20 = vrot.slane %v5599_v9, 6  ;;  %v5617_v17 = vrot.slane %v5600_v27, 5  ;;  %v5611_v13 = vunpack.c.l.b16 %v5576_v25 }
 0x405   : > { %v5612_v3 = vunpack.c.l.b16 %v5577_v2  ;;  %v5619_v43 = vrot.slane %v5601_v19, 4  ;;  %v5621_v47 = vrot.slane %v5602_v38, 3  ;;  %v5627_v29 = vrot.slane %v5606_v15, 7 }
 0x406   : > { %v5614_v63 = vsel %vm1033_vm8, %v5613_v57, %v5597_v59  ;;  %v5629_v0 = vrot.slane %v5607_v58, 6  ;;  %v5631_v22 = vrot.slane %v5608_v11, 5  ;;  %v5623_v48 = vrot.slane %v5603_v14, 2 }
 0x407   : > { %v5616_v44 = vsel %vm1036_vm9, %v5615_v20, %v5614_v63  ;;  %v5633_v56 = vrot.slane %v5609_v30, 4  ;;  %v5625_v37 = vrot.slane %v5604_v39, 1  ;;  %v5628_v10 = vsel %vm1033_vm8, %v5627_v29, %v5605_v23  ;;  %vm10986_vm8 = vmmov %vm10976_vm2  ;;  %v1161_v49 = vpop.f32.mrf.mxu2  ;;  %v1622_v12 = vpop.f32.mrf.mxu3 }
 0x408   : > { %v5618_v40 = vsel %vm1039_vm10, %v5617_v17, %v5616_v44  ;;  %v5635_v33 = vrot.slane %v5610_v4, 3  ;;  %v5630_v50 = vsel %vm1036_vm9, %v5629_v0, %v5628_v10  ;;  %v5637_v32 = vrot.slane %v5611_v13, 2  ;;  %vm10988_vm9 = vmmov %vm10981_vm12  ;;  %v2085_v53 = vpop.f32.mrf.mxu0 }
 0x409   : > { %v5620_v62 = vsel %vm1042_vm11, %v5619_v43, %v5618_v40  ;;  %v5632_v6 = vsel %vm1039_vm10, %v5631_v22, %v5630_v50  ;;  %v5639_v18 = vrot.slane %v5612_v3, 1  ;;  %v1083_v52 = vpop.f32.mrf.mxu1  ;;  %v1160_v8 = vadd.f32 %v1159_v51, %v1081_v16  ;;  %vm10991_vm12 = vmmov %vm10988_vm9 }
 0x40a   : > { %v5622_v35 = vsel %vm10982_vm13, %v5621_v47, %v5620_v62  ;;  %v5634_v55 = vsel %vm1042_vm11, %v5633_v56, %v5632_v6  ;;  %v1162_v31 = vadd.f32 %v1161_v49, %v1083_v52 }
 0x40b   : > { %v5624_v36 = vsel %vm10983_vm14, %v5623_v48, %v5622_v35  ;;  %v5636_v60 = vsel %vm10985_vm6, %v5635_v33, %v5634_v55  ;;  %v1625_v26 = vadd.f32 %v1620_v1, %v1160_v8 }
 0x40c   : > { %v5626_v5 = vsel %vm10984_vm3, %v5625_v37, %v5624_v36  ;;  %v5638_v41 = vsel %vm10986_vm8, %v5637_v32, %v5636_v60  ;;  %v1626_v25 = vadd.f32 %v1622_v12, %v1162_v31 }
 0x40d   : > { %v5640_v24 = vsel %vm10987_vm1, %v5639_v18, %v5638_v41  ;;  %v2088_v21 = vadd.f32 %v2083_v45, %v1625_v26 }
 0x40e   : > { %v5641_v61 = vpack.c.b16 %v5640_v24, %v5626_v5  ;;  %v2089_v2 = vadd.f32 %v2085_v53, %v1626_v25 }
 0x40f   : > { %v3009_v42 = vpop.f32.mrf.mxu2  ;;  %v3472_v7 = vpop.f32.mrf.mxu3 }
 0x410   : > { %5963 = vmatmul.msk.bf16.vlgmr.msra.gmra.mxu1 %vm10988_vm9, %v5641_v61  ;;  %v3599_v28 = vpop.f32.mrf.mxu0 }
 0x411   : > { %v2546_v54 = vpop.f32.mrf.mxu1 }
 0x412   : > { %v2551_v46 = vadd.f32 %v2546_v54, %v2088_v21 }
 0x414   : > { %v3014_v27 = vadd.f32 %v3009_v42, %v2551_v46 }
 0x416   : > { %v3477_v14 = vadd.f32 %v3472_v7, %v3014_v27 }
 0x417   : > { %v3011_v9 = vpop.f32.mrf.mxu2  ;;  %v3474_v38 = vpop.f32.mrf.mxu3 }
 0x418   : > { %v3601_v15 = vpop.f32.mrf.mxu0  ;;  %v3604_v39 = vadd.f32 %v3599_v28, %v3477_v14 }
 0x419   : > { %v2548_v34 = vpop.f32.mrf.mxu1 }
 0x41a   : > { %v2552_v59 = vadd.f32 %v2548_v34, %v2089_v2 }
 0x41c   : > { %v3015_v23 = vadd.f32 %v3011_v9, %v2552_v59 }
 0x41e   : > { %v3478_v30 = vadd.f32 %v3474_v38, %v3015_v23 }
 0x41f   : > { %v3829_v58 = vpop.f32.mrf.mxu2 }
 0x420   : > { %v3605_v20 = vadd.f32 %v3601_v15, %v3478_v30 }
 0x421   : > { %v3714_v19 = vpop.f32.mrf.mxu1 }
 0x422   : > { %v3719_v11 = vadd.f32 %v3714_v19, %v3604_v39  ;;  %v10989_v39 = vld [vmem:[#allocation33_spill] sm:$0xff] }
 0x424   : > { %v3834_v17 = vadd.f32 %v3829_v58, %v3719_v11  ;;  %v10990_v11 = vld [vmem:[#allocation34_spill] sm:$0xff] }
 0x427   : > { %v3831_v3 = vpop.f32.mrf.mxu2 }
 0x429   : > { %v3716_v4 = vpop.f32.mrf.mxu1 }
 0x42a   : > { %v3720_v43 = vadd.f32 %v3716_v4, %v3605_v20  ;;  %v5701_v4 = vld [vmem:[%s10633_s10] sm:$0xff] }
 0x42b   : > { %v5702_v20 = vpack.c.bf16 %v5701_v4, %v5701_v4 }
 0x42c   : > { %v3944_v57 = vpop.f32.mrf.mxu3  ;;  %v3835_v22 = vadd.f32 %v3831_v3, %v3720_v43 }
 0x42d   : > { %v3949_v47 = vadd.f32 %v3944_v57, %v3834_v17 }
 0x434   : > { %v3946_v29 = vpop.f32.mrf.mxu3 }
 0x435   : > { %v3950_v40 = vadd.f32 %v3946_v29, %v3835_v22 }
 0x438   : > { %v4059_v13 = vpop.f32.mrf.mxu0 }
 0x439   : > { %v4064_v0 = vadd.f32 %v4059_v13, %v3949_v47 }
 0x440   : > { %v4061_v48 = vpop.f32.mrf.mxu0 }
 0x441   : > { %v4065_v33 = vadd.f32 %v4061_v48, %v3950_v40 }
 0x447   : > { %v4174_v63 = vpop.f32.mrf.mxu1 }
 0x448   : > { %v4179_v56 = vadd.f32 %v4174_v63, %v4064_v0 }
 0x44f   : > { %v4176_v62 = vpop.f32.mrf.mxu1 }
 0x450   : > { %v4180_v6 = vadd.f32 %v4176_v62, %v4065_v33 }
 0x466   : > { %v5309_v44 = vpop.f32.mrf.mxu2 }
 0x467   : > { %v5314_v37 = vadd.f32 %v5309_v44, %v4179_v56 }
 0x46e   : > { %v5311_v35 = vpop.f32.mrf.mxu2 }
 0x46f   : > { %v5315_v36 = vadd.f32 %v5311_v35, %v4180_v6 }
 0x475   : > { %v5424_v10 = vpop.f32.mrf.mxu3 }
 0x476   : > { %v5429_v50 = vadd.f32 %v5424_v10, %v5314_v37 }
 0x47d   : > { %v5426_v5 = vpop.f32.mrf.mxu3 }
 0x47e   : > { %v5539_v32 = vpop.f32.mrf.mxu0  ;;  %v5430_v41 = vadd.f32 %v5426_v5, %v5315_v36 }
 0x47f   : > { %v5544_v18 = vadd.f32 %v5539_v32, %v5429_v50 }
 0x486   : > { %v5541_v61 = vpop.f32.mrf.mxu0 }
 0x487   : > { %v5545_v16 = vadd.f32 %v5541_v61, %v5430_v41 }
 0x48d   : > { %v5654_v55 = vpop.f32.mrf.mxu1 }
 0x48e   : > { %v5659_v60 = vadd.f32 %v5654_v55, %v5544_v18 }
 0x490   : > { %v5964_v24 = vmul.f32 -1.442695, %v5659_v60 }
 0x492   : > { %6046 = vpow2.f32 %v5964_v24 }
 0x495   : > { %v5656_v51 = vpop.f32.mrf.mxu1 }
 0x496   : > { %v5660_v52 = vadd.f32 %v5656_v51, %v5545_v16 }
 0x498   : > { %v6047_v1 = vpop.eup %6046  ;;  %v5965_v45 = vmul.f32 -1.442695, %v5660_v52 }
 0x499   : > { %v5667_v49 = vadd.f32 1.0, %v6047_v1 }
 0x49a   : > { %6048 = vpow2.f32 %v5965_v45 }
 0x49b   : > { %6050 = vrcp.f32 %v5667_v49  ;;  %v5680_v7 = vand.u32 2147483648, %v5667_v49  ;;  %vm5674_vm11 = vweird.f32 %v5667_v49  ;;  %v5678_v25 = vand.u32 2147483647, %v5667_v49 }
 0x49d   : > { %v5681_v19 = vor.u32 1.1754944e-38, %v5680_v7  ;;  %vm5679_vm7 = vcmp.eq.f32.partialorder %v5678_v25, 8.507059e+37 }
 0x4a0   : > { %v6049_v54 = vpop.eup %6048 }
 0x4a1   : > { %v6051_v12 = vpop.eup %6050  ;;  %v5668_v8 = vadd.f32 1.0, %v6049_v54 }
 0x4a2   : > { %v5670_v53 = vmul.f32 %v6051_v12, %v5667_v49  ;;  %vm5675_vm10 = vweird.f32 %v6051_v12 }
 0x4a3   : > { %6052 = vrcp.f32 %v5668_v8  ;;  %vm5676_vm5 = vmor %vm5674_vm11, %vm5675_vm10  ;;  %v5695_v28 = vand.u32 2147483648, %v5668_v8  ;;  %v5693_v27 = vand.u32 2147483647, %v5668_v8  ;;  %vm5689_vm15 = vweird.f32 %v5668_v8 }
 0x4a4   : > { %v5671_v42 = vsub.f32 1.0, %v5670_v53 }
 0x4a5   : > { %v5696_v14 = vor.u32 1.1754944e-38, %v5695_v28  ;;  %vm5694_vm0 = vcmp.eq.f32.partialorder %v5693_v27, 8.507059e+37 }
 0x4a6   : > { %v5672_v26 = vmul.f32 %v6051_v12, %v5671_v42 }
 0x4a8   : > { %v5673_v34 = vadd.f32 %v6051_v12, %v5672_v26 }
 0x4a9   : > { %v6053_v21 = vpop.eup %6052 }
 0x4aa   : > { %v5685_v31 = vmul.f32 %v6053_v21, %v5668_v8  ;;  %v5677_v9 = vsel %vm5676_vm5, %v6051_v12, %v5673_v34  ;;  %vm5690_vm2 = vweird.f32 %v6053_v21 }
 0x4ab   : > { %v5682_v59 = vsel %vm5679_vm7, %v5681_v19, %v5677_v9  ;;  %vm5691_vm4 = vmor %vm5689_vm15, %vm5690_vm2 }
 0x4ac   : > { %v5686_v46 = vsub.f32 1.0, %v5685_v31  ;;  %v5699_v23 = vmul.f32 %v5682_v59, %v10989_v39 }
 0x4ae   : > { %v5687_v2 = vmul.f32 %v6053_v21, %v5686_v46 }
 0x4b0   : > { %v5688_v38 = vadd.f32 %v6053_v21, %v5687_v2 }
 0x4b2   : > { %v5692_v15 = vsel %vm5691_vm4, %v6053_v21, %v5688_v38 }
 0x4b3   : > { %v5697_v58 = vsel %vm5694_vm0, %v5696_v14, %v5692_v15 }
 0x4b4   : > { %v5700_v30 = vmul.f32 %v5697_v58, %v10990_v11 }
 0x4b6   : > { %v5703_v57 = vpack.c.bf16 %v5700_v30, %v5699_v23 }
 0x4b8   : > { %5714 = vmatpush.bf16.msra.mxu2 %v5703_v57 }
 0x4bb   : > { %5966 = vmatmul.msk.bf16.vlgmr.msra.gmra.mxu2 %vm10991_vm12, %v5702_v20 }
 0x53e   : > { %v5716_v17 = vpop.f32.mrf.mxu2 }
 0x53f   : > { %5720 = vst [vmem:[%s483_s21] sm:$0xff] %v5716_v17 }
 0x540   : > { %6115 = shalt.err (!%p6112_p5)
}
 0x541   : > { %5972 = dma.vmem_to_hbm [thread:$0]  (%p6276_p4), %s5736_s4, 128, %s5738_s5, %s5722_s12  }
 0x546   : > { %v5718_v13 = vpop.f32.mrf.mxu2 }
 0x547 PF: > { %p5978_p6 = scmp.ge.s32.totalorder %s6166_s22, 2  ;;  %s5749_s14 = sand.u32 1, %s6146_s17  }
 0x548   : > { %s5750_s16 = scalar_lea.sflag [#allocation3], %s5749_s14 }
 0x549   : > { %p5975_p7 = pnand %p5978_p6, %p6283_p8 }
 0x54b   : > { %p5976_p9 = pneg %p5975_p7 }
 0x54d   : > { %6141 = dma.done.wait (%p5976_p9), %s5750_s16, 128  }
 0x54e   : > { %6143 = vsyncadd (%p5976_p9), %s5750_s16, 4294967168  ;;  %s24_s22 = sadd.s32 1, %s6166_s22   ;;  %s10992_s27 = sld [smem:[#allocation7_spill]] }
 0x54f   : > { %p21_p10 = scmp.ge.s32.totalorder %s24_s22, 4   ;;  %s10993_s20 = sld [smem:[#allocation5_spill]] }
 0x550   : > { %s10994_s21 = sld [smem:[#allocation6_spill]]  ;;  %s10995_s17 = smov %s6150_s18 }
 0x551   : > { %s10996_s18 = smov %s6154_s19  ;;  %23 = sbr.rel (!%p21_p10) target bundleno = 7 (0x7), region = 111 }
 0x554   : > { %s10997_s19 = smov %s10992_s27 }
 0x556   :  { %5756 = vsyncpa [#allocation3], 1 }
 0x557   :  { %5758 = vsyncpa [#allocation3 + $0x1], 1 }

</bundles_post_ra>
